<compile_context>
chip_gen: v7x
topology: tpu7x:2x2x1
jax: 0.10.0
libtpu: 0.0.40
codegen_flags: <defaults>
</compile_context>

<pallas_src>
import functools
import math

import jax
import jax.numpy as jnp
from jax import lax
from jax.experimental import pallas as pl
from jax.experimental.pallas import tpu as pltpu

_NEG_SLOPE = 0.3   # LeakyReLU slope used by DeepFc
_LN_EPS = 1e-5     # PyTorch LayerNorm default eps
_SMALL_S = 8       # S <= this -> VPU attention path (avoid tiny MXU matmuls)
_VMEM_LIMIT = 48 * 1024 * 1024

_STACK_ORDER = ("wqkv", "bqkv", "wo", "bo",
                "l1w", "l1b", "l2w", "l2b",
                "n1w", "n1b", "n2w", "n2b")


def _round_up(v, m):
    return ((v + m - 1) // m) * m


def _pick_hidden_tile(hid_pad):
    for t in (512, 256, 128):
        if hid_pad % t == 0:
            return t
    return hid_pad


# ---------------------------------------------------------------------------
# In-kernel helpers
# ---------------------------------------------------------------------------
def _layer_norm(x, w, b):
    mu = jnp.mean(x, axis=-1, keepdims=True)
    var = jnp.mean(jnp.square(x - mu), axis=-1, keepdims=True)
    return (x - mu) * lax.rsqrt(var + _LN_EPS) * w + b


# ---------------------------------------------------------------------------
# Kernel 1: a stack of GraphStructuralEncoder layers, grid=(B_tiles, L).
# Activations are batch-major (Bt, S, D) and live in the VMEM-resident output
# block across the (inner, "arbitrary") layer axis; the leading batch-tile
# axis is "parallel" (megacore on v7x). Per-layer folded bf16 weights are
# streamed.
# ---------------------------------------------------------------------------
def _encoder_stack_kernel(n_head, hd_pad, small_s,
                          src_ref,
                          wqkv_ref, bqkv_ref, wo_ref, bo_ref,
                          l1w_ref, l1b_ref, l2w_ref, l2b_ref,
                          n1w_ref, n1b_ref, n2w_ref, n2b_ref,
                          out_ref):
    B, S, D = src_ref.shape
    l = pl.program_id(1)

    @pl.when(l == 0)
    def _():
        out_ref[...] = src_ref[...]

    x = out_ref[...]                           # (B, S, D) f32, resident
    x2 = x.reshape(B * S, D)

    # --- fused QKV projection (dup + 1/sqrt(hd) already folded, bf16 MXU) ----
    qkv = jnp.dot(x2.astype(jnp.bfloat16), wqkv_ref[...],
                  preferred_element_type=jnp.float32) + bqkv_ref[...]

    H = n_head
    o_heads = []
    for h in range(H):                         # static unroll, H is small
        q3 = qkv[:, h * hd_pad:(h + 1) * hd_pad].reshape(B, S, hd_pad)
        k3 = qkv[:, (H + h) * hd_pad:(H + h + 1) * hd_pad].reshape(B, S, hd_pad)
        v3 = qkv[:, (2 * H + h) * hd_pad:(2 * H + h + 1) * hd_pad].reshape(B, S, hd_pad)

        if small_s:
            # VPU path: S is tiny -> broadcast-multiply + lane reduce
            cols = [jnp.sum(q3 * k3[:, kk:kk + 1, :], axis=-1, keepdims=True)
                    for kk in range(S)]
            s = jnp.concatenate(cols, axis=-1)                 # (B, S, S)
        else:
            s = lax.dot_general(q3.astype(jnp.bfloat16), k3.astype(jnp.bfloat16),
                                (((2,), (2,)), ((0,), (0,))),
                                preferred_element_type=jnp.float32)

        s = s - jnp.max(s, axis=-1, keepdims=True)
        p = jnp.exp(s)
        p = p * pl.reciprocal(jnp.sum(p, axis=-1, keepdims=True), approx=True)

        if small_s:
            o_h = p[:, :, 0:1] * v3[:, 0:1, :]
            for kk in range(1, S):
                o_h = o_h + p[:, :, kk:kk + 1] * v3[:, kk:kk + 1, :]
        else:
            o_h = lax.dot_general(p.astype(jnp.bfloat16), v3.astype(jnp.bfloat16),
                                  (((2,), (1,)), ((0,), (0,))),
                                  preferred_element_type=jnp.float32)
        o_heads.append(o_h.reshape(B * S, hd_pad))

    # 128-aligned head concat, single out-projection (split+sum already folded)
    o_cat = jnp.concatenate(o_heads, axis=-1)                  # (B*S, H*hd_pad)
    src2 = jnp.dot(o_cat.astype(jnp.bfloat16), wo_ref[...],
                   preferred_element_type=jnp.float32) + bo_ref[...]

    # --- residual + norm1 + FFN + norm2 -------------------------------------
    x = _layer_norm(x + src2.reshape(B, S, D), n1w_ref[...], n1b_ref[...])
    h1 = jnp.dot(x.reshape(B * S, D).astype(jnp.bfloat16), l1w_ref[...],
                 preferred_element_type=jnp.float32) + l1b_ref[...]
    h1 = jnp.maximum(h1, 0.0)
    ff = jnp.dot(h1.astype(jnp.bfloat16), l2w_ref[...],
                 preferred_element_type=jnp.float32) + l2b_ref[...]
    x = _layer_norm(x + ff.reshape(B, S, D), n2w_ref[...], n2b_ref[...])

    out_ref[...] = x


def _layer_block_spec(arr):
    nz = arr.ndim - 1
    return pl.BlockSpec((None,) + tuple(arr.shape[1:]),
                        lambda b, l, _nz=nz: (l,) + (0,) * _nz)


def encoder_stack(src_bsd, stacked, n_head):
    """Run L encoder layers on batch-major input (B, S, D)."""
    B, S, D = src_bsd.shape
    L = stacked["wqkv"].shape[0]
    hd_pad = stacked["wqkv"].shape[2] // (3 * n_head)
    small_s = S <= _SMALL_S
    nb = 2 if B % 2 == 0 else 1                 # batch tiles ("parallel", v7x)
    bt = B // nb

    in_specs = [pl.BlockSpec((bt, S, D), lambda b, l: (b, 0, 0))]
    in_specs += [_layer_block_spec(stacked[k]) for k in _STACK_ORDER]
    args = [src_bsd] + [stacked[k] for k in _STACK_ORDER]

    return pl.pallas_call(
        functools.partial(_encoder_stack_kernel, n_head, hd_pad, small_s),
        out_shape=jax.ShapeDtypeStruct((B, S, D), jnp.float32),
        grid_spec=pltpu.PrefetchScalarGridSpec(
            num_scalar_prefetch=0,
            grid=(nb, L),
            in_specs=in_specs,
            out_specs=pl.BlockSpec((bt, S, D), lambda b, l: (b, 0, 0)),
        ),
        compiler_params=pltpu.CompilerParams(
            dimension_semantics=("parallel", "arbitrary"),
            vmem_limit_bytes=_VMEM_LIMIT,
        ),
    )(*args)


# ---------------------------------------------------------------------------
# Kernel 2: para1/para2 mix + DeepFc head (linear1*linear2 fused offline).
# grid = (M_tiles, hidden_tiles); hidden dim streamed & reduced into an f32
# accumulator; the para mix is computed once per M-tile into a bf16 scratch.
# ---------------------------------------------------------------------------
def _mix_fc_kernel(para_ref, cross_ref, emb_ref,
                   w12_ref, b12_ref, w3_ref, b3_ref,
                   out_ref, acc_ref, x_ref):
    j = pl.program_id(1)

    @pl.when(j == 0)
    def _():
        p1 = para_ref[0, 0]
        p2 = para_ref[0, 1]
        x_ref[...] = (cross_ref[...] * p2 + emb_ref[...] * p1).astype(jnp.bfloat16)
        acc_ref[...] = jnp.zeros_like(acc_ref)

    h = jnp.dot(x_ref[...], w12_ref[...],
                preferred_element_type=jnp.float32) + b12_ref[...]
    h = jnp.where(h > 0, h, _NEG_SLOPE * h)
    acc_ref[...] += jnp.dot(h.astype(jnp.bfloat16), w3_ref[...],
                            preferred_element_type=jnp.float32)

    @pl.when(j == pl.num_programs(1) - 1)
    def _():
        o = acc_ref[...] + b3_ref[...]
        out_ref[...] = jnp.where(o > 0, o, _NEG_SLOPE * o)


def mix_and_fc(cross_flat, emb_flat, para, fc):
    M, d_fc = cross_flat.shape
    w12T, b12, w3T, b3p = fc["w12T"], fc["b12"], fc["w3T"], fc["b3p"]
    hid_pad = w12T.shape[1]
    out_pad = w3T.shape[1]
    th = _pick_hidden_tile(hid_pad)
    mt = M // 2 if (M % 2 == 0 and (M // 2) % 8 == 0) else M
    nm = M // mt

    in_specs = [
        pl.BlockSpec(memory_space=pltpu.MemorySpace.SMEM),      # para (1,2)
        pl.BlockSpec((mt, d_fc), lambda m, j: (m, 0)),          # cross (resident)
        pl.BlockSpec((mt, d_fc), lambda m, j: (m, 0)),          # emb   (resident)
        pl.BlockSpec((d_fc, th), lambda m, j: (0, j)),          # W12^T tile (bf16)
        pl.BlockSpec((1, th), lambda m, j: (0, j)),             # b12 tile
        pl.BlockSpec((th, out_pad), lambda m, j: (j, 0)),       # W3^T tile (bf16)
        pl.BlockSpec((1, out_pad), lambda m, j: (0, 0)),        # b3 (padded)
    ]
    return pl.pallas_call(
        _mix_fc_kernel,
        out_shape=jax.ShapeDtypeStruct((M, out_pad), jnp.float32),
        grid_spec=pltpu.PrefetchScalarGridSpec(
            num_scalar_prefetch=0,
            grid=(nm, hid_pad // th),
            in_specs=in_specs,
            out_specs=pl.BlockSpec((mt, out_pad), lambda m, j: (m, 0)),
            scratch_shapes=[pltpu.VMEM((mt, out_pad), jnp.float32),
                            pltpu.VMEM((mt, d_fc), jnp.bfloat16)],
        ),
        compiler_params=pltpu.CompilerParams(
            dimension_semantics=("parallel", "arbitrary"),
            vmem_limit_bytes=_VMEM_LIMIT,
        ),
    )(para, cross_flat, emb_flat, w12T, b12, w3T, b3p)


# ---------------------------------------------------------------------------
# Offline parameter preparation (weight folding / padding / stacking / bf16)
# ---------------------------------------------------------------------------
def _fold_encoder_layer(p, d_model, n_head):
    D = d_model
    E = 2 * D
    H = n_head
    hd = E // H
    hd_pad = _round_up(hd, 128)               # lane-dense per-head width
    scale = 1.0 / math.sqrt(hd)

    ipw = p["in_proj_w"]                       # (3E, E)
    ipb = p["in_proj_b"].reshape(3 * E)
    # fold src.repeat(1,1,2): x_dup @ W.T == x @ (W[:, :D] + W[:, D:]).T
    ipw_f = ipw[:, :D] + ipw[:, D:]            # (3E, D)

    def proj(w_rows, b_rows, s):
        w = jnp.transpose(w_rows.reshape(H, hd, D), (0, 2, 1)) * s      # (H, D, hd)
        w = jnp.pad(w, ((0, 0), (0, 0), (0, hd_pad - hd)))              # (H, D, hd_pad)
        b = jnp.pad(b_rows.reshape(H, hd) * s, ((0, 0), (0, hd_pad - hd)))
        return w, b

    wq, bq = proj(ipw_f[0:E], ipb[0:E], scale)        # q pre-scaled by 1/sqrt(hd)
    wk, bk = proj(ipw_f[E:2 * E], ipb[E:2 * E], 1.0)
    wv, bv = proj(ipw_f[2 * E:3 * E], ipb[2 * E:3 * E], 1.0)

    wqkv = jnp.concatenate([wq, wk, wv], axis=0)                        # (3H, D, hd_pad)
    wqkv = jnp.transpose(wqkv, (1, 0, 2)).reshape(D, 3 * H * hd_pad)
    bqkv = jnp.concatenate([bq, bk, bv], axis=0).reshape(1, 3 * H * hd_pad)

    opw = p["out_proj_w"]                      # (E, E)
    opb = p["out_proj_b"].reshape(E)
    # fold o.split(D,-1)[0] + o.split(D,-1)[1] into the weight
    opw_f = opw[:D, :] + opw[D:, :]            # (D, E)
    wo = jnp.transpose(opw_f, (1, 0)).reshape(H, hd, D)
    wo = jnp.pad(wo, ((0, 0), (0, hd_pad - hd), (0, 0))).reshape(H * hd_pad, D)
    bo = (opb[:D] + opb[D:]).reshape(1, D)

    ffn = p["lin1_w"].shape[0]
    ffn_pad = _round_up(ffn, 128)              # lane-dense FFN hidden
    l1w = jnp.pad(p["lin1_w"].T, ((0, 0), (0, ffn_pad - ffn)))          # (D, ffn_pad)
    l1b = jnp.pad(p["lin1_b"], ((0, 0), (0, ffn_pad - ffn)))            # (1, ffn_pad)
    l2w = jnp.pad(p["lin2_w"].T, ((0, ffn_pad - ffn), (0, 0)))          # (ffn_pad, D)

    bf = jnp.bfloat16
    return {
        "wqkv": wqkv.astype(bf), "bqkv": bqkv,
        "wo": wo.astype(bf), "bo": bo,
        "l1w": l1w.astype(bf), "l1b": l1b,
        "l2w": l2w.astype(bf), "l2b": p["lin2_b"],
        "n1w": p["norm1_w"], "n1b": p["norm1_b"],   # LayerNorm dim NOT padded
        "n2w": p["norm2_w"], "n2b": p["norm2_b"],
    }


def _stack_layers(layer_list):
    return {k: jnp.stack([lp[k] for lp in layer_list], axis=0)
            for k in layer_list[0]}


def _prepare_fc(fc, output_dim):
    w1, b1 = fc["w1"], fc["b1"]                 # (2d, d), (1, 2d)
    w2, b2 = fc["w2"], fc["b2"]                 # (2d, 2d), (1, 2d)
    w3, b3 = fc["w3"], fc["b3"]                 # (out, 2d), (1, out)
    # No nonlinearity between linear1 and linear2 -> fuse them offline (f32).
    w12T = w1.T @ w2.T                          # (d, 2d) == (w2 @ w1).T
    b12 = b1 @ w2.T + b2                        # (1, 2d)
    w3T = w3.T                                  # (2d, out)
    hid = w12T.shape[1]
    hid_pad = _round_up(hid, 128)
    out_pad = _round_up(output_dim, 128)        # lane-dense output
    w12T = jnp.pad(w12T, ((0, 0), (0, hid_pad - hid)))
    b12 = jnp.pad(b12, ((0, 0), (0, hid_pad - hid)))
    w3T = jnp.pad(w3T, ((0, hid_pad - hid), (0, out_pad - output_dim)))
    b3p = jnp.pad(b3, ((0, 0), (0, out_pad - output_dim)))
    return {"w12T": w12T.astype(jnp.bfloat16), "b12": b12,
            "w3T": w3T.astype(jnp.bfloat16), "b3p": b3p}


def prepare_params(params, n_head):
    """One-time (offline) weight folding for the Pallas kernels."""
    d_model = params["multi_pattern"][0]["norm1_w"].shape[1]
    output_dim = params["fc"]["w3"].shape[0]
    mp = _stack_layers([_fold_encoder_layer(p, d_model, n_head)
                        for p in params["multi_pattern"]])
    cg = _stack_layers([_fold_encoder_layer(p, d_model, n_head)
                        for p in params["cross_graph"]])
    return {"mp": mp, "cg": cg,
            "fc": _prepare_fc(params["fc"], output_dim),
            "para": params["para"]}


# ---------------------------------------------------------------------------
# Full forward
# ---------------------------------------------------------------------------
@functools.partial(jax.jit, static_argnums=(2, 3))
def mobility_pattern_joint_learning(x, prep, n_head, output_dim):
    G, N, _ = x.shape

    # multi-pattern pass: seq = G, batch = N; kernel works batch-major (B,S,D)
    h = jnp.transpose(x, (1, 0, 2))                         # (N, G, N)
    h = encoder_stack(h, prep["mp"], n_head)                # (N, G, N)
    emb_gnn = jnp.transpose(h, (1, 0, 2))                   # (G, N, N) == multi_pattern_emb

    # cross-graph pass: seq = N, batch = G; batch-major input == emb_gnn and
    # batch-major output == PyTorch's transpose-back result.
    cross_gnn = encoder_stack(emb_gnn, prep["cg"], n_head)  # (G, N, N)

    cross_flat = cross_gnn.reshape(-1, N * G)
    emb_flat = emb_gnn.reshape(-1, N * G)
    # para1/para2 mix fused into the FC kernel (elementwise, commutes with reshape)
    y = mix_and_fc(cross_flat, emb_flat, prep["para"], prep["fc"])
    return y[:, :output_dim]                                # drop lane padding


# ---------------------------------------------------------------------------
# Deterministic parameter init (PyTorch-Linear-style uniform bounds)
# ---------------------------------------------------------------------------
def _linear_init(key, out_f, in_f):
    kw, kb = jax.random.split(key)
    bound = 1.0 / math.sqrt(in_f)
    w = jax.random.uniform(kw, (out_f, in_f), jnp.float32, -bound, bound)
    b = jax.random.uniform(kb, (1, out_f), jnp.float32, -bound, bound)
    return w, b


def _encoder_params(key, d_model, ffn_dim=64):
    E = 2 * d_model
    ks = jax.random.split(key, 4)
    ipw, ipb = _linear_init(ks[0], 3 * E, E)
    opw, opb = _linear_init(ks[1], E, E)
    l1w, l1b = _linear_init(ks[2], ffn_dim, d_model)
    l2w, l2b = _linear_init(ks[3], d_model, ffn_dim)
    return {
        "in_proj_w": ipw, "in_proj_b": ipb,
        "out_proj_w": opw, "out_proj_b": opb,
        "lin1_w": l1w, "lin1_b": l1b,
        "lin2_w": l2w, "lin2_b": l2b,
        "norm1_w": jnp.ones((1, d_model), jnp.float32),
        "norm1_b": jnp.zeros((1, d_model), jnp.float32),
        "norm2_w": jnp.ones((1, d_model), jnp.float32),
        "norm2_b": jnp.zeros((1, d_model), jnp.float32),
    }


def init_params(key, graph_num, node_num, output_dim):
    n_mp, n_cg = 3, 1
    keys = jax.random.split(key, n_mp + n_cg + 3)
    multi = [_encoder_params(keys[i], node_num) for i in range(n_mp)]
    cross = [_encoder_params(keys[n_mp + i], node_num) for i in range(n_cg)]
    d_fc = graph_num * node_num
    w1, b1 = _linear_init(keys[-3], 2 * d_fc, d_fc)
    w2, b2 = _linear_init(keys[-2], 2 * d_fc, 2 * d_fc)
    w3, b3 = _linear_init(keys[-1], output_dim, 2 * d_fc)
    return {
        "multi_pattern": multi,
        "cross_graph": cross,
        "fc": {"w1": w1, "b1": b1, "w2": w2, "b2": b2, "w3": w3, "b3": b3},
        "para": jnp.array([[0.7, 0.3]], dtype=jnp.float32),  # (para1, para2)
    }


# ---------------------------------------------------------------------------
# Pure-JAX reference (mirrors the PyTorch forward, eval mode) for self-check
# ---------------------------------------------------------------------------
def _ln_ref(x, w, b):
    mu = jnp.mean(x, -1, keepdims=True)
    var = jnp.mean((x - mu) ** 2, -1, keepdims=True)
    return (x - mu) / jnp.sqrt(var + _LN_EPS) * w + b


def _leaky(x):
    return jnp.where(x > 0, x, _NEG_SLOPE * x)


def _encoder_ref(src, p, n_head):
    S, B, D = src.shape
    E = 2 * D
    hd = E // n_head
    src1 = jnp.concatenate([src, src], axis=-1)
    qkv = src1 @ p["in_proj_w"].T + p["in_proj_b"][0]
    q, k, v = jnp.split(qkv, 3, axis=-1)
    q = q * (hd ** -0.5)

    def split_heads(t):  # (S,B,E) -> (B*H, S, hd), PyTorch MHA head layout
        return jnp.transpose(t.reshape(S, B * n_head, hd), (1, 0, 2))

    qh, kh, vh = split_heads(q), split_heads(k), split_heads(v)
    w = jax.nn.softmax(qh @ jnp.transpose(kh, (0, 2, 1)), axis=-1)
    o = jnp.transpose(w @ vh, (1, 0, 2)).reshape(S, B, E)
    o = o @ p["out_proj_w"].T + p["out_proj_b"][0]
    src2 = o[..., :D] + o[..., D:]
    x = _ln_ref(src + src2, p["norm1_w"][0], p["norm1_b"][0])
    ff = jax.nn.relu(x @ p["lin1_w"].T + p["lin1_b"][0]) @ p["lin2_w"].T + p["lin2_b"][0]
    return _ln_ref(x + ff, p["norm2_w"][0], p["norm2_b"][0])


def reference_forward(x, params, n_head):
    G, N, _ = x.shape
    out = x
    for p in params["multi_pattern"]:
        out = _encoder_ref(out, p, n_head)
    emb = out
    out = jnp.transpose(out, (1, 0, 2))
    for p in params["cross_graph"]:
        out = _encoder_ref(out, p, n_head)
    out = jnp.transpose(out, (1, 0, 2))
    out = out * params["para"][0, 1] + emb * params["para"][0, 0]
    out = out.reshape(-1, N * G)
    fc = params["fc"]
    h = out @ fc["w1"].T + fc["b1"][0]
    h = h @ fc["w2"].T + fc["b2"][0]
    h = _leaky(h)
    return _leaky(h @ fc["w3"].T + fc["b3"][0])


# ---------------------------------------------------------------------------
if __name__ == "__main__":
    graph_num, node_num, output_dim = 4, 16, 32          # small analogue of (7, 180, 144)
    n_head = 4 if (node_num and node_num % 2 == 0) else 2

    key = jax.random.PRNGKey(0)
    k_x, k_p = jax.random.split(key)
    x = jax.random.normal(k_x, (graph_num, node_num, node_num), jnp.float32)
    params = init_params(k_p, graph_num, node_num, output_dim)
    prep = prepare_params(params, n_head)                # one-time offline folding

    out = mobility_pattern_joint_learning(x, prep, n_head, output_dim)
    out = jax.block_until_ready(out)

    assert out.shape == (node_num, output_dim), out.shape
    assert bool(jnp.all(jnp.isfinite(out)))

    ref = reference_forward(x, params, n_head)
    err = float(jnp.max(jnp.abs(out - ref)))
    denom = max(1.0, float(jnp.max(jnp.abs(ref))))
    # bf16 MXU + approx reciprocal: relative tolerance vs the f32 reference
    assert err / denom < 8e-2, f"max abs error vs reference: {err} (scale {denom})"

    print("KERNEL_OK")
</pallas_src>

<mosaic_0001>
module attributes {stable_mosaic.version = 11 : i64} {
  func.func @_encoder_stack_kernel(%arg0: i32, %arg1: i32, %arg2: memref<8x4x16xf32, #tpu.memory_space<vmem>>, %arg3: memref<1x16x1536xbf16, #tpu.memory_space<vmem>>, %arg4: memref<1x1x1536xf32, #tpu.memory_space<vmem>>, %arg5: memref<1x512x16xbf16, #tpu.memory_space<vmem>>, %arg6: memref<1x1x16xf32, #tpu.memory_space<vmem>>, %arg7: memref<1x16x128xbf16, #tpu.memory_space<vmem>>, %arg8: memref<1x1x128xf32, #tpu.memory_space<vmem>>, %arg9: memref<1x128x16xbf16, #tpu.memory_space<vmem>>, %arg10: memref<1x1x16xf32, #tpu.memory_space<vmem>>, %arg11: memref<1x1x16xf32, #tpu.memory_space<vmem>>, %arg12: memref<1x1x16xf32, #tpu.memory_space<vmem>>, %arg13: memref<1x1x16xf32, #tpu.memory_space<vmem>>, %arg14: memref<1x1x16xf32, #tpu.memory_space<vmem>>, %arg15: memref<8x4x16xf32, #tpu.memory_space<vmem>>) attributes {dimension_semantics = [#tpu.dimension_semantics<parallel>, #tpu.dimension_semantics<arbitrary>], iteration_bounds = array<i64: 2, 3>, scalar_prefetch = 0 : i64, scratch_operands = 0 : i64, tpu.core_type = #tpu.core_type<tc>, window_params = [{transform_indices = @transform_0, window_bounds = array<i64: 8, 4, 16>}, {transform_indices = @transform_1, window_bounds = array<i64: 1, 16, 1536>}, {transform_indices = @transform_2, window_bounds = array<i64: 1, 1, 1536>}, {transform_indices = @transform_3, window_bounds = array<i64: 1, 512, 16>}, {transform_indices = @transform_4, window_bounds = array<i64: 1, 1, 16>}, {transform_indices = @transform_5, window_bounds = array<i64: 1, 16, 128>}, {transform_indices = @transform_6, window_bounds = array<i64: 1, 1, 128>}, {transform_indices = @transform_7, window_bounds = array<i64: 1, 128, 16>}, {transform_indices = @transform_8, window_bounds = array<i64: 1, 1, 16>}, {transform_indices = @transform_9, window_bounds = array<i64: 1, 1, 16>}, {transform_indices = @transform_10, window_bounds = array<i64: 1, 1, 16>}, {transform_indices = @transform_11, window_bounds = array<i64: 1, 1, 16>}, {transform_indices = @transform_12, window_bounds = array<i64: 1, 1, 16>}, {transform_indices = @transform_13, window_bounds = array<i64: 8, 4, 16>}]} {
    %c0_i32 = arith.constant 0 : i32
    %0 = arith.cmpi eq, %arg1, %c0_i32 : i32
    %1 = arith.extui %0 : i1 to i32
    %c0_i32_0 = arith.constant 0 : i32
    %2 = arith.cmpi ne, %1, %c0_i32_0 : i32
    scf.if %2 {
      %c0_80 = arith.constant 0 : index
      %c0_81 = arith.constant 0 : index
      %c0_82 = arith.constant 0 : index
      %346 = vector.load %arg2[%c0_80, %c0_81, %c0_82] : memref<8x4x16xf32, #tpu.memory_space<vmem>>, vector<8x4x16xf32>
      %c0_83 = arith.constant 0 : index
      %c0_84 = arith.constant 0 : index
      %c0_85 = arith.constant 0 : index
      %347 = vector.load %arg15[%c0_83, %c0_84, %c0_85] : memref<8x4x16xf32, #tpu.memory_space<vmem>>, vector<8x4x16xf32>
      tpu.vector_store %arg15[%c0_83, %c0_84, %c0_85], %346 {strides = array<i32>} : memref<8x4x16xf32, #tpu.memory_space<vmem>>, vector<8x4x16xf32>,
    } else {
    }
    %c0 = arith.constant 0 : index
    %c0_1 = arith.constant 0 : index
    %c0_2 = arith.constant 0 : index
    %3 = vector.load %arg15[%c0, %c0_1, %c0_2] : memref<8x4x16xf32, #tpu.memory_space<vmem>>, vector<8x4x16xf32>
    %4 = vector.shape_cast %3 : vector<8x4x16xf32> to vector<32x16xf32>
    %5 = arith.truncf %4 : vector<32x16xf32> to vector<32x16xbf16>
    %c0_3 = arith.constant 0 : index
    %c0_4 = arith.constant 0 : index
    %c0_5 = arith.constant 0 : index
    %6 = vector.load %arg3[%c0_3, %c0_4, %c0_5] : memref<1x16x1536xbf16, #tpu.memory_space<vmem>>, vector<1x16x1536xbf16>
    %7 = vector.shape_cast %6 : vector<1x16x1536xbf16> to vector<16x1536xbf16>
    %cst = arith.constant dense<0.000000e+00> : vector<32x1536xf32>
    %8 = tpu.matmul %5, %7, %cst {dimension_numbers = #tpu.dot_dimension_numbers<[1], [0], [0], [1], [0, 0, 1, 1], [], []>} : vector<32x16xbf16>, vector<16x1536xbf16>, vector<32x1536xf32> -> vector<32x1536xf32>
    %c0_6 = arith.constant 0 : index
    %c0_7 = arith.constant 0 : index
    %c0_8 = arith.constant 0 : index
    %9 = vector.load %arg4[%c0_6, %c0_7, %c0_8] : memref<1x1x1536xf32, #tpu.memory_space<vmem>>, vector<1x1x1536xf32>
    %10 = vector.shape_cast %9 : vector<1x1x1536xf32> to vector<1x1536xf32>
    %11 = vector.broadcast %10 : vector<1x1536xf32> to vector<32x1536xf32>
    %12 = arith.addf %8, %11 : vector<32x1536xf32>
    %13 = vector.extract_strided_slice %12 {offsets = [0, 0], sizes = [32, 128], strides = [1, 1]} : vector<32x1536xf32> to vector<32x128xf32>
    %14 = vector.shape_cast %13 : vector<32x128xf32> to vector<8x4x128xf32>
    %15 = vector.extract_strided_slice %12 {offsets = [0, 512], sizes = [32, 128], strides = [1, 1]} : vector<32x1536xf32> to vector<32x128xf32>
    %16 = vector.shape_cast %15 : vector<32x128xf32> to vector<8x4x128xf32>
    %17 = vector.extract_strided_slice %12 {offsets = [0, 1024], sizes = [32, 128], strides = [1, 1]} : vector<32x1536xf32> to vector<32x128xf32>
    %18 = vector.shape_cast %17 : vector<32x128xf32> to vector<8x4x128xf32>
    %19 = vector.extract_strided_slice %16 {offsets = [0, 0, 0], sizes = [8, 1, 128], strides = [1, 1, 1]} : vector<8x4x128xf32> to vector<8x1x128xf32>
    %20 = vector.broadcast %19 : vector<8x1x128xf32> to vector<8x4x128xf32>
    %21 = arith.mulf %14, %20 : vector<8x4x128xf32>
    %cst_9 = arith.constant dense<0.000000e+00> : vector<8x4xf32>
    %22 = vector.multi_reduction <add>, %21, %cst_9 [2] : vector<8x4x128xf32> to vector<8x4xf32>
    %23 = vector.shape_cast %22 : vector<8x4xf32> to vector<8x4x1xf32>
    %24 = vector.extract_strided_slice %16 {offsets = [0, 1, 0], sizes = [8, 1, 128], strides = [1, 1, 1]} : vector<8x4x128xf32> to vector<8x1x128xf32>
    %25 = vector.broadcast %24 : vector<8x1x128xf32> to vector<8x4x128xf32>
    %26 = arith.mulf %14, %25 : vector<8x4x128xf32>
    %cst_10 = arith.constant dense<0.000000e+00> : vector<8x4xf32>
    %27 = vector.multi_reduction <add>, %26, %cst_10 [2] : vector<8x4x128xf32> to vector<8x4xf32>
    %28 = vector.shape_cast %27 : vector<8x4xf32> to vector<8x4x1xf32>
    %29 = vector.extract_strided_slice %16 {offsets = [0, 2, 0], sizes = [8, 1, 128], strides = [1, 1, 1]} : vector<8x4x128xf32> to vector<8x1x128xf32>
    %30 = vector.broadcast %29 : vector<8x1x128xf32> to vector<8x4x128xf32>
    %31 = arith.mulf %14, %30 : vector<8x4x128xf32>
    %cst_11 = arith.constant dense<0.000000e+00> : vector<8x4xf32>
    %32 = vector.multi_reduction <add>, %31, %cst_11 [2] : vector<8x4x128xf32> to vector<8x4xf32>
    %33 = vector.shape_cast %32 : vector<8x4xf32> to vector<8x4x1xf32>
    %34 = vector.extract_strided_slice %16 {offsets = [0, 3, 0], sizes = [8, 1, 128], strides = [1, 1, 1]} : vector<8x4x128xf32> to vector<8x1x128xf32>
    %35 = vector.broadcast %34 : vector<8x1x128xf32> to vector<8x4x128xf32>
    %36 = arith.mulf %14, %35 : vector<8x4x128xf32>
    %cst_12 = arith.constant dense<0.000000e+00> : vector<8x4xf32>
    %37 = vector.multi_reduction <add>, %36, %cst_12 [2] : vector<8x4x128xf32> to vector<8x4xf32>
    %38 = vector.shape_cast %37 : vector<8x4xf32> to vector<8x4x1xf32>
    %39 = tpu.concatenate %23, %28, %33, %38 in 2 : vector<8x4x1xf32>, vector<8x4x1xf32>, vector<8x4x1xf32>, vector<8x4x1xf32> -> vector<8x4x4xf32>
    %cst_13 = arith.constant dense<0xFF800000> : vector<8x4xf32>
    %40 = vector.multi_reduction <maximumf>, %39, %cst_13 [2] : vector<8x4x4xf32> to vector<8x4xf32>
    %41 = vector.shape_cast %40 : vector<8x4xf32> to vector<8x4x1xf32>
    %42 = vector.broadcast %41 : vector<8x4x1xf32> to vector<8x4x4xf32>
    %43 = arith.subf %39, %42 : vector<8x4x4xf32>
    %44 = math.exp %43 : vector<8x4x4xf32>
    %cst_14 = arith.constant dense<0.000000e+00> : vector<8x4xf32>
    %45 = vector.multi_reduction <add>, %44, %cst_14 [2] : vector<8x4x4xf32> to vector<8x4xf32>
    %46 = vector.shape_cast %45 : vector<8x4xf32> to vector<8x4x1xf32>
    %47 = tpu.reciprocal %46 {approx = true} : vector<8x4x1xf32> -> vector<8x4x1xf32>
    %48 = vector.broadcast %47 : vector<8x4x1xf32> to vector<8x4x4xf32>
    %49 = arith.mulf %44, %48 : vector<8x4x4xf32>
    %50 = vector.extract_strided_slice %49 {offsets = [0, 0, 0], sizes = [8, 4, 1], strides = [1, 1, 1]} : vector<8x4x4xf32> to vector<8x4x1xf32>
    %51 = vector.extract_strided_slice %18 {offsets = [0, 0, 0], sizes = [8, 1, 128], strides = [1, 1, 1]} : vector<8x4x128xf32> to vector<8x1x128xf32>
    %52 = vector.broadcast %50 : vector<8x4x1xf32> to vector<8x4x128xf32>
    %53 = vector.broadcast %51 : vector<8x1x128xf32> to vector<8x4x128xf32>
    %54 = arith.mulf %52, %53 : vector<8x4x128xf32>
    %55 = vector.extract_strided_slice %49 {offsets = [0, 0, 1], sizes = [8, 4, 1], strides = [1, 1, 1]} : vector<8x4x4xf32> to vector<8x4x1xf32>
    %56 = vector.extract_strided_slice %18 {offsets = [0, 1, 0], sizes = [8, 1, 128], strides = [1, 1, 1]} : vector<8x4x128xf32> to vector<8x1x128xf32>
    %57 = vector.broadcast %55 : vector<8x4x1xf32> to vector<8x4x128xf32>
    %58 = vector.broadcast %56 : vector<8x1x128xf32> to vector<8x4x128xf32>
    %59 = arith.mulf %57, %58 : vector<8x4x128xf32>
    %60 = arith.addf %54, %59 : vector<8x4x128xf32>
    %61 = vector.extract_strided_slice %49 {offsets = [0, 0, 2], sizes = [8, 4, 1], strides = [1, 1, 1]} : vector<8x4x4xf32> to vector<8x4x1xf32>
    %62 = vector.extract_strided_slice %18 {offsets = [0, 2, 0], sizes = [8, 1, 128], strides = [1, 1, 1]} : vector<8x4x128xf32> to vector<8x1x128xf32>
    %63 = vector.broadcast %61 : vector<8x4x1xf32> to vector<8x4x128xf32>
    %64 = vector.broadcast %62 : vector<8x1x128xf32> to vector<8x4x128xf32>
    %65 = arith.mulf %63, %64 : vector<8x4x128xf32>
    %66 = arith.addf %60, %65 : vector<8x4x128xf32>
    %67 = vector.extract_strided_slice %49 {offsets = [0, 0, 3], sizes = [8, 4, 1], strides = [1, 1, 1]} : vector<8x4x4xf32> to vector<8x4x1xf32>
    %68 = vector.extract_strided_slice %18 {offsets = [0, 3, 0], sizes = [8, 1, 128], strides = [1, 1, 1]} : vector<8x4x128xf32> to vector<8x1x128xf32>
    %69 = vector.broadcast %67 : vector<8x4x1xf32> to vector<8x4x128xf32>
    %70 = vector.broadcast %68 : vector<8x1x128xf32> to vector<8x4x128xf32>
    %71 = arith.mulf %69, %70 : vector<8x4x128xf32>
    %72 = arith.addf %66, %71 : vector<8x4x128xf32>
    %73 = vector.shape_cast %72 : vector<8x4x128xf32> to vector<32x128xf32>
    %74 = vector.extract_strided_slice %12 {offsets = [0, 128], sizes = [32, 128], strides = [1, 1]} : vector<32x1536xf32> to vector<32x128xf32>
    %75 = vector.shape_cast %74 : vector<32x128xf32> to vector<8x4x128xf32>
    %76 = vector.extract_strided_slice %12 {offsets = [0, 640], sizes = [32, 128], strides = [1, 1]} : vector<32x1536xf32> to vector<32x128xf32>
    %77 = vector.shape_cast %76 : vector<32x128xf32> to vector<8x4x128xf32>
    %78 = vector.extract_strided_slice %12 {offsets = [0, 1152], sizes = [32, 128], strides = [1, 1]} : vector<32x1536xf32> to vector<32x128xf32>
    %79 = vector.shape_cast %78 : vector<32x128xf32> to vector<8x4x128xf32>
    %80 = vector.extract_strided_slice %77 {offsets = [0, 0, 0], sizes = [8, 1, 128], strides = [1, 1, 1]} : vector<8x4x128xf32> to vector<8x1x128xf32>
    %81 = vector.broadcast %80 : vector<8x1x128xf32> to vector<8x4x128xf32>
    %82 = arith.mulf %75, %81 : vector<8x4x128xf32>
    %cst_15 = arith.constant dense<0.000000e+00> : vector<8x4xf32>
    %83 = vector.multi_reduction <add>, %82, %cst_15 [2] : vector<8x4x128xf32> to vector<8x4xf32>
    %84 = vector.shape_cast %83 : vector<8x4xf32> to vector<8x4x1xf32>
    %85 = vector.extract_strided_slice %77 {offsets = [0, 1, 0], sizes = [8, 1, 128], strides = [1, 1, 1]} : vector<8x4x128xf32> to vector<8x1x128xf32>
    %86 = vector.broadcast %85 : vector<8x1x128xf32> to vector<8x4x128xf32>
    %87 = arith.mulf %75, %86 : vector<8x4x128xf32>
    %cst_16 = arith.constant dense<0.000000e+00> : vector<8x4xf32>
    %88 = vector.multi_reduction <add>, %87, %cst_16 [2] : vector<8x4x128xf32> to vector<8x4xf32>
    %89 = vector.shape_cast %88 : vector<8x4xf32> to vector<8x4x1xf32>
    %90 = vector.extract_strided_slice %77 {offsets = [0, 2, 0], sizes = [8, 1, 128], strides = [1, 1, 1]} : vector<8x4x128xf32> to vector<8x1x128xf32>
    %91 = vector.broadcast %90 : vector<8x1x128xf32> to vector<8x4x128xf32>
    %92 = arith.mulf %75, %91 : vector<8x4x128xf32>
    %cst_17 = arith.constant dense<0.000000e+00> : vector<8x4xf32>
    %93 = vector.multi_reduction <add>, %92, %cst_17 [2] : vector<8x4x128xf32> to vector<8x4xf32>
    %94 = vector.shape_cast %93 : vector<8x4xf32> to vector<8x4x1xf32>
    %95 = vector.extract_strided_slice %77 {offsets = [0, 3, 0], sizes = [8, 1, 128], strides = [1, 1, 1]} : vector<8x4x128xf32> to vector<8x1x128xf32>
    %96 = vector.broadcast %95 : vector<8x1x128xf32> to vector<8x4x128xf32>
    %97 = arith.mulf %75, %96 : vector<8x4x128xf32>
    %cst_18 = arith.constant dense<0.000000e+00> : vector<8x4xf32>
    %98 = vector.multi_reduction <add>, %97, %cst_18 [2] : vector<8x4x128xf32> to vector<8x4xf32>
    %99 = vector.shape_cast %98 : vector<8x4xf32> to vector<8x4x1xf32>
    %100 = tpu.concatenate %84, %89, %94, %99 in 2 : vector<8x4x1xf32>, vector<8x4x1xf32>, vector<8x4x1xf32>, vector<8x4x1xf32> -> vector<8x4x4xf32>
    %cst_19 = arith.constant dense<0xFF800000> : vector<8x4xf32>
    %101 = vector.multi_reduction <maximumf>, %100, %cst_19 [2] : vector<8x4x4xf32> to vector<8x4xf32>
    %102 = vector.shape_cast %101 : vector<8x4xf32> to vector<8x4x1xf32>
    %103 = vector.broadcast %102 : vector<8x4x1xf32> to vector<8x4x4xf32>
    %104 = arith.subf %100, %103 : vector<8x4x4xf32>
    %105 = math.exp %104 : vector<8x4x4xf32>
    %cst_20 = arith.constant dense<0.000000e+00> : vector<8x4xf32>
    %106 = vector.multi_reduction <add>, %105, %cst_20 [2] : vector<8x4x4xf32> to vector<8x4xf32>
    %107 = vector.shape_cast %106 : vector<8x4xf32> to vector<8x4x1xf32>
    %108 = tpu.reciprocal %107 {approx = true} : vector<8x4x1xf32> -> vector<8x4x1xf32>
    %109 = vector.broadcast %108 : vector<8x4x1xf32> to vector<8x4x4xf32>
    %110 = arith.mulf %105, %109 : vector<8x4x4xf32>
    %111 = vector.extract_strided_slice %110 {offsets = [0, 0, 0], sizes = [8, 4, 1], strides = [1, 1, 1]} : vector<8x4x4xf32> to vector<8x4x1xf32>
    %112 = vector.extract_strided_slice %79 {offsets = [0, 0, 0], sizes = [8, 1, 128], strides = [1, 1, 1]} : vector<8x4x128xf32> to vector<8x1x128xf32>
    %113 = vector.broadcast %111 : vector<8x4x1xf32> to vector<8x4x128xf32>
    %114 = vector.broadcast %112 : vector<8x1x128xf32> to vector<8x4x128xf32>
    %115 = arith.mulf %113, %114 : vector<8x4x128xf32>
    %116 = vector.extract_strided_slice %110 {offsets = [0, 0, 1], sizes = [8, 4, 1], strides = [1, 1, 1]} : vector<8x4x4xf32> to vector<8x4x1xf32>
    %117 = vector.extract_strided_slice %79 {offsets = [0, 1, 0], sizes = [8, 1, 128], strides = [1, 1, 1]} : vector<8x4x128xf32> to vector<8x1x128xf32>
    %118 = vector.broadcast %116 : vector<8x4x1xf32> to vector<8x4x128xf32>
    %119 = vector.broadcast %117 : vector<8x1x128xf32> to vector<8x4x128xf32>
    %120 = arith.mulf %118, %119 : vector<8x4x128xf32>
    %121 = arith.addf %115, %120 : vector<8x4x128xf32>
    %122 = vector.extract_strided_slice %110 {offsets = [0, 0, 2], sizes = [8, 4, 1], strides = [1, 1, 1]} : vector<8x4x4xf32> to vector<8x4x1xf32>
    %123 = vector.extract_strided_slice %79 {offsets = [0, 2, 0], sizes = [8, 1, 128], strides = [1, 1, 1]} : vector<8x4x128xf32> to vector<8x1x128xf32>
    %124 = vector.broadcast %122 : vector<8x4x1xf32> to vector<8x4x128xf32>
    %125 = vector.broadcast %123 : vector<8x1x128xf32> to vector<8x4x128xf32>
    %126 = arith.mulf %124, %125 : vector<8x4x128xf32>
    %127 = arith.addf %121, %126 : vector<8x4x128xf32>
    %128 = vector.extract_strided_slice %110 {offsets = [0, 0, 3], sizes = [8, 4, 1], strides = [1, 1, 1]} : vector<8x4x4xf32> to vector<8x4x1xf32>
    %129 = vector.extract_strided_slice %79 {offsets = [0, 3, 0], sizes = [8, 1, 128], strides = [1, 1, 1]} : vector<8x4x128xf32> to vector<8x1x128xf32>
    %130 = vector.broadcast %128 : vector<8x4x1xf32> to vector<8x4x128xf32>
    %131 = vector.broadcast %129 : vector<8x1x128xf32> to vector<8x4x128xf32>
    %132 = arith.mulf %130, %131 : vector<8x4x128xf32>
    %133 = arith.addf %127, %132 : vector<8x4x128xf32>
    %134 = vector.shape_cast %133 : vector<8x4x128xf32> to vector<32x128xf32>
    %135 = vector.extract_strided_slice %12 {offsets = [0, 256], sizes = [32, 128], strides = [1, 1]} : vector<32x1536xf32> to vector<32x128xf32>
    %136 = vector.shape_cast %135 : vector<32x128xf32> to vector<8x4x128xf32>
    %137 = vector.extract_strided_slice %12 {offsets = [0, 768], sizes = [32, 128], strides = [1, 1]} : vector<32x1536xf32> to vector<32x128xf32>
    %138 = vector.shape_cast %137 : vector<32x128xf32> to vector<8x4x128xf32>
    %139 = vector.extract_strided_slice %12 {offsets = [0, 1280], sizes = [32, 128], strides = [1, 1]} : vector<32x1536xf32> to vector<32x128xf32>
    %140 = vector.shape_cast %139 : vector<32x128xf32> to vector<8x4x128xf32>
    %141 = vector.extract_strided_slice %138 {offsets = [0, 0, 0], sizes = [8, 1, 128], strides = [1, 1, 1]} : vector<8x4x128xf32> to vector<8x1x128xf32>
    %142 = vector.broadcast %141 : vector<8x1x128xf32> to vector<8x4x128xf32>
    %143 = arith.mulf %136, %142 : vector<8x4x128xf32>
    %cst_21 = arith.constant dense<0.000000e+00> : vector<8x4xf32>
    %144 = vector.multi_reduction <add>, %143, %cst_21 [2] : vector<8x4x128xf32> to vector<8x4xf32>
    %145 = vector.shape_cast %144 : vector<8x4xf32> to vector<8x4x1xf32>
    %146 = vector.extract_strided_slice %138 {offsets = [0, 1, 0], sizes = [8, 1, 128], strides = [1, 1, 1]} : vector<8x4x128xf32> to vector<8x1x128xf32>
    %147 = vector.broadcast %146 : vector<8x1x128xf32> to vector<8x4x128xf32>
    %148 = arith.mulf %136, %147 : vector<8x4x128xf32>
    %cst_22 = arith.constant dense<0.000000e+00> : vector<8x4xf32>
    %149 = vector.multi_reduction <add>, %148, %cst_22 [2] : vector<8x4x128xf32> to vector<8x4xf32>
    %150 = vector.shape_cast %149 : vector<8x4xf32> to vector<8x4x1xf32>
    %151 = vector.extract_strided_slice %138 {offsets = [0, 2, 0], sizes = [8, 1, 128], strides = [1, 1, 1]} : vector<8x4x128xf32> to vector<8x1x128xf32>
    %152 = vector.broadcast %151 : vector<8x1x128xf32> to vector<8x4x128xf32>
    %153 = arith.mulf %136, %152 : vector<8x4x128xf32>
    %cst_23 = arith.constant dense<0.000000e+00> : vector<8x4xf32>
    %154 = vector.multi_reduction <add>, %153, %cst_23 [2] : vector<8x4x128xf32> to vector<8x4xf32>
    %155 = vector.shape_cast %154 : vector<8x4xf32> to vector<8x4x1xf32>
    %156 = vector.extract_strided_slice %138 {offsets = [0, 3, 0], sizes = [8, 1, 128], strides = [1, 1, 1]} : vector<8x4x128xf32> to vector<8x1x128xf32>
    %157 = vector.broadcast %156 : vector<8x1x128xf32> to vector<8x4x128xf32>
    %158 = arith.mulf %136, %157 : vector<8x4x128xf32>
    %cst_24 = arith.constant dense<0.000000e+00> : vector<8x4xf32>
    %159 = vector.multi_reduction <add>, %158, %cst_24 [2] : vector<8x4x128xf32> to vector<8x4xf32>
    %160 = vector.shape_cast %159 : vector<8x4xf32> to vector<8x4x1xf32>
    %161 = tpu.concatenate %145, %150, %155, %160 in 2 : vector<8x4x1xf32>, vector<8x4x1xf32>, vector<8x4x1xf32>, vector<8x4x1xf32> -> vector<8x4x4xf32>
    %cst_25 = arith.constant dense<0xFF800000> : vector<8x4xf32>
    %162 = vector.multi_reduction <maximumf>, %161, %cst_25 [2] : vector<8x4x4xf32> to vector<8x4xf32>
    %163 = vector.shape_cast %162 : vector<8x4xf32> to vector<8x4x1xf32>
    %164 = vector.broadcast %163 : vector<8x4x1xf32> to vector<8x4x4xf32>
    %165 = arith.subf %161, %164 : vector<8x4x4xf32>
    %166 = math.exp %165 : vector<8x4x4xf32>
    %cst_26 = arith.constant dense<0.000000e+00> : vector<8x4xf32>
    %167 = vector.multi_reduction <add>, %166, %cst_26 [2] : vector<8x4x4xf32> to vector<8x4xf32>
    %168 = vector.shape_cast %167 : vector<8x4xf32> to vector<8x4x1xf32>
    %169 = tpu.reciprocal %168 {approx = true} : vector<8x4x1xf32> -> vector<8x4x1xf32>
    %170 = vector.broadcast %169 : vector<8x4x1xf32> to vector<8x4x4xf32>
    %171 = arith.mulf %166, %170 : vector<8x4x4xf32>
    %172 = vector.extract_strided_slice %171 {offsets = [0, 0, 0], sizes = [8, 4, 1], strides = [1, 1, 1]} : vector<8x4x4xf32> to vector<8x4x1xf32>
    %173 = vector.extract_strided_slice %140 {offsets = [0, 0, 0], sizes = [8, 1, 128], strides = [1, 1, 1]} : vector<8x4x128xf32> to vector<8x1x128xf32>
    %174 = vector.broadcast %172 : vector<8x4x1xf32> to vector<8x4x128xf32>
    %175 = vector.broadcast %173 : vector<8x1x128xf32> to vector<8x4x128xf32>
    %176 = arith.mulf %174, %175 : vector<8x4x128xf32>
    %177 = vector.extract_strided_slice %171 {offsets = [0, 0, 1], sizes = [8, 4, 1], strides = [1, 1, 1]} : vector<8x4x4xf32> to vector<8x4x1xf32>
    %178 = vector.extract_strided_slice %140 {offsets = [0, 1, 0], sizes = [8, 1, 128], strides = [1, 1, 1]} : vector<8x4x128xf32> to vector<8x1x128xf32>
    %179 = vector.broadcast %177 : vector<8x4x1xf32> to vector<8x4x128xf32>
    %180 = vector.broadcast %178 : vector<8x1x128xf32> to vector<8x4x128xf32>
    %181 = arith.mulf %179, %180 : vector<8x4x128xf32>
    %182 = arith.addf %176, %181 : vector<8x4x128xf32>
    %183 = vector.extract_strided_slice %171 {offsets = [0, 0, 2], sizes = [8, 4, 1], strides = [1, 1, 1]} : vector<8x4x4xf32> to vector<8x4x1xf32>
    %184 = vector.extract_strided_slice %140 {offsets = [0, 2, 0], sizes = [8, 1, 128], strides = [1, 1, 1]} : vector<8x4x128xf32> to vector<8x1x128xf32>
    %185 = vector.broadcast %183 : vector<8x4x1xf32> to vector<8x4x128xf32>
    %186 = vector.broadcast %184 : vector<8x1x128xf32> to vector<8x4x128xf32>
    %187 = arith.mulf %185, %186 : vector<8x4x128xf32>
    %188 = arith.addf %182, %187 : vector<8x4x128xf32>
    %189 = vector.extract_strided_slice %171 {offsets = [0, 0, 3], sizes = [8, 4, 1], strides = [1, 1, 1]} : vector<8x4x4xf32> to vector<8x4x1xf32>
    %190 = vector.extract_strided_slice %140 {offsets = [0, 3, 0], sizes = [8, 1, 128], strides = [1, 1, 1]} : vector<8x4x128xf32> to vector<8x1x128xf32>
    %191 = vector.broadcast %189 : vector<8x4x1xf32> to vector<8x4x128xf32>
    %192 = vector.broadcast %190 : vector<8x1x128xf32> to vector<8x4x128xf32>
    %193 = arith.mulf %191, %192 : vector<8x4x128xf32>
    %194 = arith.addf %188, %193 : vector<8x4x128xf32>
    %195 = vector.shape_cast %194 : vector<8x4x128xf32> to vector<32x128xf32>
    %196 = vector.extract_strided_slice %12 {offsets = [0, 384], sizes = [32, 128], strides = [1, 1]} : vector<32x1536xf32> to vector<32x128xf32>
    %197 = vector.shape_cast %196 : vector<32x128xf32> to vector<8x4x128xf32>
    %198 = vector.extract_strided_slice %12 {offsets = [0, 896], sizes = [32, 128], strides = [1, 1]} : vector<32x1536xf32> to vector<32x128xf32>
    %199 = vector.shape_cast %198 : vector<32x128xf32> to vector<8x4x128xf32>
    %200 = vector.extract_strided_slice %12 {offsets = [0, 1408], sizes = [32, 128], strides = [1, 1]} : vector<32x1536xf32> to vector<32x128xf32>
    %201 = vector.shape_cast %200 : vector<32x128xf32> to vector<8x4x128xf32>
    %202 = vector.extract_strided_slice %199 {offsets = [0, 0, 0], sizes = [8, 1, 128], strides = [1, 1, 1]} : vector<8x4x128xf32> to vector<8x1x128xf32>
    %203 = vector.broadcast %202 : vector<8x1x128xf32> to vector<8x4x128xf32>
    %204 = arith.mulf %197, %203 : vector<8x4x128xf32>
    %cst_27 = arith.constant dense<0.000000e+00> : vector<8x4xf32>
    %205 = vector.multi_reduction <add>, %204, %cst_27 [2] : vector<8x4x128xf32> to vector<8x4xf32>
    %206 = vector.shape_cast %205 : vector<8x4xf32> to vector<8x4x1xf32>
    %207 = vector.extract_strided_slice %199 {offsets = [0, 1, 0], sizes = [8, 1, 128], strides = [1, 1, 1]} : vector<8x4x128xf32> to vector<8x1x128xf32>
    %208 = vector.broadcast %207 : vector<8x1x128xf32> to vector<8x4x128xf32>
    %209 = arith.mulf %197, %208 : vector<8x4x128xf32>
    %cst_28 = arith.constant dense<0.000000e+00> : vector<8x4xf32>
    %210 = vector.multi_reduction <add>, %209, %cst_28 [2] : vector<8x4x128xf32> to vector<8x4xf32>
    %211 = vector.shape_cast %210 : vector<8x4xf32> to vector<8x4x1xf32>
    %212 = vector.extract_strided_slice %199 {offsets = [0, 2, 0], sizes = [8, 1, 128], strides = [1, 1, 1]} : vector<8x4x128xf32> to vector<8x1x128xf32>
    %213 = vector.broadcast %212 : vector<8x1x128xf32> to vector<8x4x128xf32>
    %214 = arith.mulf %197, %213 : vector<8x4x128xf32>
    %cst_29 = arith.constant dense<0.000000e+00> : vector<8x4xf32>
    %215 = vector.multi_reduction <add>, %214, %cst_29 [2] : vector<8x4x128xf32> to vector<8x4xf32>
    %216 = vector.shape_cast %215 : vector<8x4xf32> to vector<8x4x1xf32>
    %217 = vector.extract_strided_slice %199 {offsets = [0, 3, 0], sizes = [8, 1, 128], strides = [1, 1, 1]} : vector<8x4x128xf32> to vector<8x1x128xf32>
    %218 = vector.broadcast %217 : vector<8x1x128xf32> to vector<8x4x128xf32>
    %219 = arith.mulf %197, %218 : vector<8x4x128xf32>
    %cst_30 = arith.constant dense<0.000000e+00> : vector<8x4xf32>
    %220 = vector.multi_reduction <add>, %219, %cst_30 [2] : vector<8x4x128xf32> to vector<8x4xf32>
    %221 = vector.shape_cast %220 : vector<8x4xf32> to vector<8x4x1xf32>
    %222 = tpu.concatenate %206, %211, %216, %221 in 2 : vector<8x4x1xf32>, vector<8x4x1xf32>, vector<8x4x1xf32>, vector<8x4x1xf32> -> vector<8x4x4xf32>
    %cst_31 = arith.constant dense<0xFF800000> : vector<8x4xf32>
    %223 = vector.multi_reduction <maximumf>, %222, %cst_31 [2] : vector<8x4x4xf32> to vector<8x4xf32>
    %224 = vector.shape_cast %223 : vector<8x4xf32> to vector<8x4x1xf32>
    %225 = vector.broadcast %224 : vector<8x4x1xf32> to vector<8x4x4xf32>
    %226 = arith.subf %222, %225 : vector<8x4x4xf32>
    %227 = math.exp %226 : vector<8x4x4xf32>
    %cst_32 = arith.constant dense<0.000000e+00> : vector<8x4xf32>
    %228 = vector.multi_reduction <add>, %227, %cst_32 [2] : vector<8x4x4xf32> to vector<8x4xf32>
    %229 = vector.shape_cast %228 : vector<8x4xf32> to vector<8x4x1xf32>
    %230 = tpu.reciprocal %229 {approx = true} : vector<8x4x1xf32> -> vector<8x4x1xf32>
    %231 = vector.broadcast %230 : vector<8x4x1xf32> to vector<8x4x4xf32>
    %232 = arith.mulf %227, %231 : vector<8x4x4xf32>
    %233 = vector.extract_strided_slice %232 {offsets = [0, 0, 0], sizes = [8, 4, 1], strides = [1, 1, 1]} : vector<8x4x4xf32> to vector<8x4x1xf32>
    %234 = vector.extract_strided_slice %201 {offsets = [0, 0, 0], sizes = [8, 1, 128], strides = [1, 1, 1]} : vector<8x4x128xf32> to vector<8x1x128xf32>
    %235 = vector.broadcast %233 : vector<8x4x1xf32> to vector<8x4x128xf32>
    %236 = vector.broadcast %234 : vector<8x1x128xf32> to vector<8x4x128xf32>
    %237 = arith.mulf %235, %236 : vector<8x4x128xf32>
    %238 = vector.extract_strided_slice %232 {offsets = [0, 0, 1], sizes = [8, 4, 1], strides = [1, 1, 1]} : vector<8x4x4xf32> to vector<8x4x1xf32>
    %239 = vector.extract_strided_slice %201 {offsets = [0, 1, 0], sizes = [8, 1, 128], strides = [1, 1, 1]} : vector<8x4x128xf32> to vector<8x1x128xf32>
    %240 = vector.broadcast %238 : vector<8x4x1xf32> to vector<8x4x128xf32>
    %241 = vector.broadcast %239 : vector<8x1x128xf32> to vector<8x4x128xf32>
    %242 = arith.mulf %240, %241 : vector<8x4x128xf32>
    %243 = arith.addf %237, %242 : vector<8x4x128xf32>
    %244 = vector.extract_strided_slice %232 {offsets = [0, 0, 2], sizes = [8, 4, 1], strides = [1, 1, 1]} : vector<8x4x4xf32> to vector<8x4x1xf32>
    %245 = vector.extract_strided_slice %201 {offsets = [0, 2, 0], sizes = [8, 1, 128], strides = [1, 1, 1]} : vector<8x4x128xf32> to vector<8x1x128xf32>
    %246 = vector.broadcast %244 : vector<8x4x1xf32> to vector<8x4x128xf32>
    %247 = vector.broadcast %245 : vector<8x1x128xf32> to vector<8x4x128xf32>
    %248 = arith.mulf %246, %247 : vector<8x4x128xf32>
    %249 = arith.addf %243, %248 : vector<8x4x128xf32>
    %250 = vector.extract_strided_slice %232 {offsets = [0, 0, 3], sizes = [8, 4, 1], strides = [1, 1, 1]} : vector<8x4x4xf32> to vector<8x4x1xf32>
    %251 = vector.extract_strided_slice %201 {offsets = [0, 3, 0], sizes = [8, 1, 128], strides = [1, 1, 1]} : vector<8x4x128xf32> to vector<8x1x128xf32>
    %252 = vector.broadcast %250 : vector<8x4x1xf32> to vector<8x4x128xf32>
    %253 = vector.broadcast %251 : vector<8x1x128xf32> to vector<8x4x128xf32>
    %254 = arith.mulf %252, %253 : vector<8x4x128xf32>
    %255 = arith.addf %249, %254 : vector<8x4x128xf32>
    %256 = vector.shape_cast %255 : vector<8x4x128xf32> to vector<32x128xf32>
    %257 = tpu.concatenate %73, %134, %195, %256 in 1 : vector<32x128xf32>, vector<32x128xf32>, vector<32x128xf32>, vector<32x128xf32> -> vector<32x512xf32>
    %258 = arith.truncf %257 : vector<32x512xf32> to vector<32x512xbf16>
    %c0_33 = arith.constant 0 : index
    %c0_34 = arith.constant 0 : index
    %c0_35 = arith.constant 0 : index
    %259 = vector.load %arg5[%c0_33, %c0_34, %c0_35] : memref<1x512x16xbf16, #tpu.memory_space<vmem>>, vector<1x512x16xbf16>
    %260 = vector.shape_cast %259 : vector<1x512x16xbf16> to vector<512x16xbf16>
    %cst_36 = arith.constant dense<0.000000e+00> : vector<32x16xf32>
    %261 = tpu.matmul %258, %260, %cst_36 {dimension_numbers = #tpu.dot_dimension_numbers<[1], [0], [0], [1], [0, 0, 1, 1], [], []>} : vector<32x512xbf16>, vector<512x16xbf16>, vector<32x16xf32> -> vector<32x16xf32>
    %c0_37 = arith.constant 0 : index
    %c0_38 = arith.constant 0 : index
    %c0_39 = arith.constant 0 : index
    %262 = vector.load %arg6[%c0_37, %c0_38, %c0_39] : memref<1x1x16xf32, #tpu.memory_space<vmem>>, vector<1x1x16xf32>
    %263 = vector.shape_cast %262 : vector<1x1x16xf32> to vector<1x16xf32>
    %264 = vector.broadcast %263 : vector<1x16xf32> to vector<32x16xf32>
    %265 = arith.addf %261, %264 : vector<32x16xf32>
    %266 = vector.shape_cast %265 : vector<32x16xf32> to vector<8x4x16xf32>
    %267 = arith.addf %3, %266 : vector<8x4x16xf32>
    %c0_40 = arith.constant 0 : index
    %c0_41 = arith.constant 0 : index
    %c0_42 = arith.constant 0 : index
    %268 = vector.load %arg11[%c0_40, %c0_41, %c0_42] : memref<1x1x16xf32, #tpu.memory_space<vmem>>, vector<1x1x16xf32>
    %269 = vector.shape_cast %268 : vector<1x1x16xf32> to vector<1x16xf32>
    %c0_43 = arith.constant 0 : index
    %c0_44 = arith.constant 0 : index
    %c0_45 = arith.constant 0 : index
    %270 = vector.load %arg12[%c0_43, %c0_44, %c0_45] : memref<1x1x16xf32, #tpu.memory_space<vmem>>, vector<1x1x16xf32>
    %271 = vector.shape_cast %270 : vector<1x1x16xf32> to vector<1x16xf32>
    %cst_46 = arith.constant dense<0.000000e+00> : vector<8x4xf32>
    %272 = vector.multi_reduction <add>, %267, %cst_46 [2] : vector<8x4x16xf32> to vector<8x4xf32>
    %273 = vector.shape_cast %272 : vector<8x4xf32> to vector<8x4x1xf32>
    %cst_47 = arith.constant 1.600000e+01 : f32
    %274 = vector.broadcast %cst_47 : f32 to vector<8x4x1xf32>
    %275 = arith.divf %273, %274 : vector<8x4x1xf32>
    %276 = vector.broadcast %275 : vector<8x4x1xf32> to vector<8x4x16xf32>
    %277 = arith.subf %267, %276 : vector<8x4x16xf32>
    %278 = arith.mulf %277, %277 : vector<8x4x16xf32>
    %cst_48 = arith.constant dense<0.000000e+00> : vector<8x4xf32>
    %279 = vector.multi_reduction <add>, %278, %cst_48 [2] : vector<8x4x16xf32> to vector<8x4xf32>
    %280 = vector.shape_cast %279 : vector<8x4xf32> to vector<8x4x1xf32>
    %cst_49 = arith.constant 1.600000e+01 : f32
    %281 = vector.broadcast %cst_49 : f32 to vector<8x4x1xf32>
    %282 = arith.divf %280, %281 : vector<8x4x1xf32>
    %283 = vector.broadcast %275 : vector<8x4x1xf32> to vector<8x4x16xf32>
    %284 = arith.subf %267, %283 : vector<8x4x16xf32>
    %cst_50 = arith.constant 9.99999974E-6 : f32
    %285 = vector.broadcast %cst_50 : f32 to vector<8x4x1xf32>
    %286 = arith.addf %282, %285 : vector<8x4x1xf32>
    %287 = math.rsqrt %286 : vector<8x4x1xf32>
    %288 = vector.broadcast %287 : vector<8x4x1xf32> to vector<8x4x16xf32>
    %289 = arith.mulf %284, %288 : vector<8x4x16xf32>
    %290 = vector.shape_cast %269 : vector<1x16xf32> to vector<1x1x16xf32>
    %291 = vector.broadcast %290 : vector<1x1x16xf32> to vector<8x4x16xf32>
    %292 = arith.mulf %289, %291 : vector<8x4x16xf32>
    %293 = vector.shape_cast %271 : vector<1x16xf32> to vector<1x1x16xf32>
    %294 = vector.broadcast %293 : vector<1x1x16xf32> to vector<8x4x16xf32>
    %295 = arith.addf %292, %294 : vector<8x4x16xf32>
    %296 = vector.shape_cast %295 : vector<8x4x16xf32> to vector<32x16xf32>
    %297 = arith.truncf %296 : vector<32x16xf32> to vector<32x16xbf16>
    %c0_51 = arith.constant 0 : index
    %c0_52 = arith.constant 0 : index
    %c0_53 = arith.constant 0 : index
    %298 = vector.load %arg7[%c0_51, %c0_52, %c0_53] : memref<1x16x128xbf16, #tpu.memory_space<vmem>>, vector<1x16x128xbf16>
    %299 = vector.shape_cast %298 : vector<1x16x128xbf16> to vector<16x128xbf16>
    %cst_54 = arith.constant dense<0.000000e+00> : vector<32x128xf32>
    %300 = tpu.matmul %297, %299, %cst_54 {dimension_numbers = #tpu.dot_dimension_numbers<[1], [0], [0], [1], [0, 0, 1, 1], [], []>} : vector<32x16xbf16>, vector<16x128xbf16>, vector<32x128xf32> -> vector<32x128xf32>
    %c0_55 = arith.constant 0 : index
    %c0_56 = arith.constant 0 : index
    %c0_57 = arith.constant 0 : index
    %301 = vector.load %arg8[%c0_55, %c0_56, %c0_57] : memref<1x1x128xf32, #tpu.memory_space<vmem>>, vector<1x1x128xf32>
    %302 = vector.shape_cast %301 : vector<1x1x128xf32> to vector<1x128xf32>
    %303 = vector.broadcast %302 : vector<1x128xf32> to vector<32x128xf32>
    %304 = arith.addf %300, %303 : vector<32x128xf32>
    %cst_58 = arith.constant 0.000000e+00 : f32
    %305 = vector.broadcast %cst_58 : f32 to vector<32x128xf32>
    %306 = arith.maximumf %304, %305 : vector<32x128xf32>
    %307 = arith.truncf %306 : vector<32x128xf32> to vector<32x128xbf16>
    %c0_59 = arith.constant 0 : index
    %c0_60 = arith.constant 0 : index
    %c0_61 = arith.constant 0 : index
    %308 = vector.load %arg9[%c0_59, %c0_60, %c0_61] : memref<1x128x16xbf16, #tpu.memory_space<vmem>>, vector<1x128x16xbf16>
    %309 = vector.shape_cast %308 : vector<1x128x16xbf16> to vector<128x16xbf16>
    %cst_62 = arith.constant dense<0.000000e+00> : vector<32x16xf32>
    %310 = tpu.matmul %307, %309, %cst_62 {dimension_numbers = #tpu.dot_dimension_numbers<[1], [0], [0], [1], [0, 0, 1, 1], [], []>} : vector<32x128xbf16>, vector<128x16xbf16>, vector<32x16xf32> -> vector<32x16xf32>
    %c0_63 = arith.constant 0 : index
    %c0_64 = arith.constant 0 : index
    %c0_65 = arith.constant 0 : index
    %311 = vector.load %arg10[%c0_63, %c0_64, %c0_65] : memref<1x1x16xf32, #tpu.memory_space<vmem>>, vector<1x1x16xf32>
    %312 = vector.shape_cast %311 : vector<1x1x16xf32> to vector<1x16xf32>
    %313 = vector.broadcast %312 : vector<1x16xf32> to vector<32x16xf32>
    %314 = arith.addf %310, %313 : vector<32x16xf32>
    %315 = vector.shape_cast %314 : vector<32x16xf32> to vector<8x4x16xf32>
    %316 = arith.addf %295, %315 : vector<8x4x16xf32>
    %c0_66 = arith.constant 0 : index
    %c0_67 = arith.constant 0 : index
    %c0_68 = arith.constant 0 : index
    %317 = vector.load %arg13[%c0_66, %c0_67, %c0_68] : memref<1x1x16xf32, #tpu.memory_space<vmem>>, vector<1x1x16xf32>
    %318 = vector.shape_cast %317 : vector<1x1x16xf32> to vector<1x16xf32>
    %c0_69 = arith.constant 0 : index
    %c0_70 = arith.constant 0 : index
    %c0_71 = arith.constant 0 : index
    %319 = vector.load %arg14[%c0_69, %c0_70, %c0_71] : memref<1x1x16xf32, #tpu.memory_space<vmem>>, vector<1x1x16xf32>
    %320 = vector.shape_cast %319 : vector<1x1x16xf32> to vector<1x16xf32>
    %cst_72 = arith.constant dense<0.000000e+00> : vector<8x4xf32>
    %321 = vector.multi_reduction <add>, %316, %cst_72 [2] : vector<8x4x16xf32> to vector<8x4xf32>
    %322 = vector.shape_cast %321 : vector<8x4xf32> to vector<8x4x1xf32>
    %cst_73 = arith.constant 1.600000e+01 : f32
    %323 = vector.broadcast %cst_73 : f32 to vector<8x4x1xf32>
    %324 = arith.divf %322, %323 : vector<8x4x1xf32>
    %325 = vector.broadcast %324 : vector<8x4x1xf32> to vector<8x4x16xf32>
    %326 = arith.subf %316, %325 : vector<8x4x16xf32>
    %327 = arith.mulf %326, %326 : vector<8x4x16xf32>
    %cst_74 = arith.constant dense<0.000000e+00> : vector<8x4xf32>
    %328 = vector.multi_reduction <add>, %327, %cst_74 [2] : vector<8x4x16xf32> to vector<8x4xf32>
    %329 = vector.shape_cast %328 : vector<8x4xf32> to vector<8x4x1xf32>
    %cst_75 = arith.constant 1.600000e+01 : f32
    %330 = vector.broadcast %cst_75 : f32 to vector<8x4x1xf32>
    %331 = arith.divf %329, %330 : vector<8x4x1xf32>
    %332 = vector.broadcast %324 : vector<8x4x1xf32> to vector<8x4x16xf32>
    %333 = arith.subf %316, %332 : vector<8x4x16xf32>
    %cst_76 = arith.constant 9.99999974E-6 : f32
    %334 = vector.broadcast %cst_76 : f32 to vector<8x4x1xf32>
    %335 = arith.addf %331, %334 : vector<8x4x1xf32>
    %336 = math.rsqrt %335 : vector<8x4x1xf32>
    %337 = vector.broadcast %336 : vector<8x4x1xf32> to vector<8x4x16xf32>
    %338 = arith.mulf %333, %337 : vector<8x4x16xf32>
    %339 = vector.shape_cast %318 : vector<1x16xf32> to vector<1x1x16xf32>
    %340 = vector.broadcast %339 : vector<1x1x16xf32> to vector<8x4x16xf32>
    %341 = arith.mulf %338, %340 : vector<8x4x16xf32>
    %342 = vector.shape_cast %320 : vector<1x16xf32> to vector<1x1x16xf32>
    %343 = vector.broadcast %342 : vector<1x1x16xf32> to vector<8x4x16xf32>
    %344 = arith.addf %341, %343 : vector<8x4x16xf32>
    %c0_77 = arith.constant 0 : index
    %c0_78 = arith.constant 0 : index
    %c0_79 = arith.constant 0 : index
    %345 = vector.load %arg15[%c0_77, %c0_78, %c0_79] : memref<8x4x16xf32, #tpu.memory_space<vmem>>, vector<8x4x16xf32>
    tpu.vector_store %arg15[%c0_77, %c0_78, %c0_79], %344 {strides = array<i32>} : memref<8x4x16xf32, #tpu.memory_space<vmem>>, vector<8x4x16xf32>,
    return
  }
  func.func @transform_0(%arg0: i32, %arg1: i32) -> (i32, i32, i32) {
    %c0_i32 = arith.constant 0 : i32
    %c0_i32_0 = arith.constant 0 : i32
    %c0_i32_1 = arith.constant 0 : i32
    return %arg0, %c0_i32, %c0_i32_0 : i32, i32, i32
  }
  func.func @transform_1(%arg0: i32, %arg1: i32) -> (i32, i32, i32) {
    %c0_i32 = arith.constant 0 : i32
    %c0_i32_0 = arith.constant 0 : i32
    %c0_i32_1 = arith.constant 0 : i32
    return %arg1, %c0_i32, %c0_i32_0 : i32, i32, i32
  }
  func.func @transform_2(%arg0: i32, %arg1: i32) -> (i32, i32, i32) {
    %c0_i32 = arith.constant 0 : i32
    %c0_i32_0 = arith.constant 0 : i32
    %c0_i32_1 = arith.constant 0 : i32
    return %arg1, %c0_i32, %c0_i32_0 : i32, i32, i32
  }
  func.func @transform_3(%arg0: i32, %arg1: i32) -> (i32, i32, i32) {
    %c0_i32 = arith.constant 0 : i32
    %c0_i32_0 = arith.constant 0 : i32
    %c0_i32_1 = arith.constant 0 : i32
    return %arg1, %c0_i32, %c0_i32_0 : i32, i32, i32
  }
  func.func @transform_4(%arg0: i32, %arg1: i32) -> (i32, i32, i32) {
    %c0_i32 = arith.constant 0 : i32
    %c0_i32_0 = arith.constant 0 : i32
    %c0_i32_1 = arith.constant 0 : i32
    return %arg1, %c0_i32, %c0_i32_0 : i32, i32, i32
  }
  func.func @transform_5(%arg0: i32, %arg1: i32) -> (i32, i32, i32) {
    %c0_i32 = arith.constant 0 : i32
    %c0_i32_0 = arith.constant 0 : i32
    %c0_i32_1 = arith.constant 0 : i32
    return %arg1, %c0_i32, %c0_i32_0 : i32, i32, i32
  }
  func.func @transform_6(%arg0: i32, %arg1: i32) -> (i32, i32, i32) {
    %c0_i32 = arith.constant 0 : i32
    %c0_i32_0 = arith.constant 0 : i32
    %c0_i32_1 = arith.constant 0 : i32
    return %arg1, %c0_i32, %c0_i32_0 : i32, i32, i32
  }
  func.func @transform_7(%arg0: i32, %arg1: i32) -> (i32, i32, i32) {
    %c0_i32 = arith.constant 0 : i32
    %c0_i32_0 = arith.constant 0 : i32
    %c0_i32_1 = arith.constant 0 : i32
    return %arg1, %c0_i32, %c0_i32_0 : i32, i32, i32
  }
  func.func @transform_8(%arg0: i32, %arg1: i32) -> (i32, i32, i32) {
    %c0_i32 = arith.constant 0 : i32
    %c0_i32_0 = arith.constant 0 : i32
    %c0_i32_1 = arith.constant 0 : i32
    return %arg1, %c0_i32, %c0_i32_0 : i32, i32, i32
  }
  func.func @transform_9(%arg0: i32, %arg1: i32) -> (i32, i32, i32) {
    %c0_i32 = arith.constant 0 : i32
    %c0_i32_0 = arith.constant 0 : i32
    %c0_i32_1 = arith.constant 0 : i32
    return %arg1, %c0_i32, %c0_i32_0 : i32, i32, i32
  }
  func.func @transform_10(%arg0: i32, %arg1: i32) -> (i32, i32, i32) {
    %c0_i32 = arith.constant 0 : i32
    %c0_i32_0 = arith.constant 0 : i32
    %c0_i32_1 = arith.constant 0 : i32
    return %arg1, %c0_i32, %c0_i32_0 : i32, i32, i32
  }
  func.func @transform_11(%arg0: i32, %arg1: i32) -> (i32, i32, i32) {
    %c0_i32 = arith.constant 0 : i32
    %c0_i32_0 = arith.constant 0 : i32
    %c0_i32_1 = arith.constant 0 : i32
    return %arg1, %c0_i32, %c0_i32_0 : i32, i32, i32
  }
  func.func @transform_12(%arg0: i32, %arg1: i32) -> (i32, i32, i32) {
    %c0_i32 = arith.constant 0 : i32
    %c0_i32_0 = arith.constant 0 : i32
    %c0_i32_1 = arith.constant 0 : i32
    return %arg1, %c0_i32, %c0_i32_0 : i32, i32, i32
  }
  func.func @transform_13(%arg0: i32, %arg1: i32) -> (i32, i32, i32) {
    %c0_i32 = arith.constant 0 : i32
    %c0_i32_0 = arith.constant 0 : i32
    %c0_i32_1 = arith.constant 0 : i32
    return %arg0, %c0_i32, %c0_i32_0 : i32, i32, i32
  }
}

module attributes {stable_mosaic.version = 11 : i64} {
  func.func @_mix_fc_kernel(%arg0: i32, %arg1: i32, %arg2: memref<1x2xf32, #tpu.memory_space<smem>>, %arg3: memref<8x64xf32, #tpu.memory_space<vmem>>, %arg4: memref<8x64xf32, #tpu.memory_space<vmem>>, %arg5: memref<64x128xbf16, #tpu.memory_space<vmem>>, %arg6: memref<1x128xf32, #tpu.memory_space<vmem>>, %arg7: memref<128x128xbf16, #tpu.memory_space<vmem>>, %arg8: memref<1x128xf32, #tpu.memory_space<vmem>>, %arg9: memref<8x128xf32, #tpu.memory_space<vmem>>, %arg10: memref<8x128xf32, #tpu.memory_space<vmem>>, %arg11: memref<8x64xbf16, #tpu.memory_space<vmem>>) attributes {dimension_semantics = [#tpu.dimension_semantics<parallel>, #tpu.dimension_semantics<arbitrary>], iteration_bounds = array<i64: 2, 1>, scalar_prefetch = 0 : i64, scratch_operands = 2 : i64, tpu.core_type = #tpu.core_type<tc>, window_params = [{transform_indices = @transform_0, window_bounds = array<i64: 1, 2>}, {transform_indices = @transform_1, window_bounds = array<i64: 8, 64>}, {transform_indices = @transform_2, window_bounds = array<i64: 8, 64>}, {transform_indices = @transform_3, window_bounds = array<i64: 64, 128>}, {transform_indices = @transform_4, window_bounds = array<i64: 1, 128>}, {transform_indices = @transform_5, window_bounds = array<i64: 128, 128>}, {pipeline_mode = #tpu.pipeline_mode<synchronous>, transform_indices = @transform_6, window_bounds = array<i64: 1, 128>}, {transform_indices = @transform_7, window_bounds = array<i64: 8, 128>}]} {
    %c0_i32 = arith.constant 0 : i32
    %0 = arith.cmpi eq, %arg1, %c0_i32 : i32
    %1 = arith.extui %0 : i1 to i32
    %c0_i32_0 = arith.constant 0 : i32
    %2 = arith.cmpi ne, %1, %c0_i32_0 : i32
    scf.if %2 {
      %c0_17 = arith.constant 0 : index
      %c0_18 = arith.constant 0 : index
      %23 = memref.load %arg2[%c0_17, %c0_18] : memref<1x2xf32, #tpu.memory_space<smem>>
      %c0_19 = arith.constant 0 : index
      %c1 = arith.constant 1 : index
      %24 = memref.load %arg2[%c0_19, %c1] : memref<1x2xf32, #tpu.memory_space<smem>>
      %c0_20 = arith.constant 0 : index
      %c0_21 = arith.constant 0 : index
      %25 = vector.load %arg3[%c0_20, %c0_21] : memref<8x64xf32, #tpu.memory_space<vmem>>, vector<8x64xf32>
      %26 = vector.broadcast %24 : f32 to vector<8x64xf32>
      %27 = arith.mulf %25, %26 : vector<8x64xf32>
      %c0_22 = arith.constant 0 : index
      %c0_23 = arith.constant 0 : index
      %28 = vector.load %arg4[%c0_22, %c0_23] : memref<8x64xf32, #tpu.memory_space<vmem>>, vector<8x64xf32>
      %29 = vector.broadcast %23 : f32 to vector<8x64xf32>
      %30 = arith.mulf %28, %29 : vector<8x64xf32>
      %31 = arith.addf %27, %30 : vector<8x64xf32>
      %32 = arith.truncf %31 : vector<8x64xf32> to vector<8x64xbf16>
      %c0_24 = arith.constant 0 : index
      %c0_25 = arith.constant 0 : index
      %33 = vector.load %arg11[%c0_24, %c0_25] : memref<8x64xbf16, #tpu.memory_space<vmem>>, vector<8x64xbf16>
      tpu.vector_store %arg11[%c0_24, %c0_25], %32 {strides = array<i32>} : memref<8x64xbf16, #tpu.memory_space<vmem>>, vector<8x64xbf16>,
      %cst_26 = arith.constant 0.000000e+00 : f32
      %34 = vector.broadcast %cst_26 : f32 to vector<8x128xf32>
      %c0_27 = arith.constant 0 : index
      %c0_28 = arith.constant 0 : index
      %35 = vector.load %arg10[%c0_27, %c0_28] : memref<8x128xf32, #tpu.memory_space<vmem>>, vector<8x128xf32>
      tpu.vector_store %arg10[%c0_27, %c0_28], %34 {strides = array<i32>} : memref<8x128xf32, #tpu.memory_space<vmem>>, vector<8x128xf32>,
    } else {
    }
    %c0 = arith.constant 0 : index
    %c0_1 = arith.constant 0 : index
    %3 = vector.load %arg11[%c0, %c0_1] : memref<8x64xbf16, #tpu.memory_space<vmem>>, vector<8x64xbf16>
    %c0_2 = arith.constant 0 : index
    %c0_3 = arith.constant 0 : index
    %4 = vector.load %arg5[%c0_2, %c0_3] : memref<64x128xbf16, #tpu.memory_space<vmem>>, vector<64x128xbf16>
    %cst = arith.constant dense<0.000000e+00> : vector<8x128xf32>
    %5 = tpu.matmul %3, %4, %cst {dimension_numbers = #tpu.dot_dimension_numbers<[1], [0], [0], [1], [0, 0, 1, 1], [], []>} : vector<8x64xbf16>, vector<64x128xbf16>, vector<8x128xf32> -> vector<8x128xf32>
    %c0_4 = arith.constant 0 : index
    %c0_5 = arith.constant 0 : index
    %6 = vector.load %arg6[%c0_4, %c0_5] : memref<1x128xf32, #tpu.memory_space<vmem>>, vector<1x128xf32>
    %7 = vector.broadcast %6 : vector<1x128xf32> to vector<8x128xf32>
    %8 = arith.addf %5, %7 : vector<8x128xf32>
    %cst_6 = arith.constant 0.000000e+00 : f32
    %9 = vector.broadcast %cst_6 : f32 to vector<8x128xf32>
    %10 = arith.cmpf ogt, %8, %9 : vector<8x128xf32>
    %cst_7 = arith.constant 3.000000e-01 : f32
    %11 = vector.broadcast %cst_7 : f32 to vector<8x128xf32>
    %12 = arith.mulf %11, %8 : vector<8x128xf32>
    %13 = arith.select %10, %8, %12 : vector<8x128xi1>, vector<8x128xf32>
    %c0_8 = arith.constant 0 : index
    %c0_9 = arith.constant 0 : index
    %14 = vector.load %arg10[%c0_8, %c0_9] : memref<8x128xf32, #tpu.memory_space<vmem>>, vector<8x128xf32>
    %15 = arith.truncf %13 : vector<8x128xf32> to vector<8x128xbf16>
    %c0_10 = arith.constant 0 : index
    %c0_11 = arith.constant 0 : index
    %16 = vector.load %arg7[%c0_10, %c0_11] : memref<128x128xbf16, #tpu.memory_space<vmem>>, vector<128x128xbf16>
    %cst_12 = arith.constant dense<0.000000e+00> : vector<8x128xf32>
    %17 = tpu.matmul %15, %16, %cst_12 {dimension_numbers = #tpu.dot_dimension_numbers<[1], [0], [0], [1], [0, 0, 1, 1], [], []>} : vector<8x128xbf16>, vector<128x128xbf16>, vector<8x128xf32> -> vector<8x128xf32>
    %18 = arith.addf %14, %17 : vector<8x128xf32>
    %c0_13 = arith.constant 0 : index
    %c0_14 = arith.constant 0 : index
    %19 = vector.load %arg10[%c0_13, %c0_14] : memref<8x128xf32, #tpu.memory_space<vmem>>, vector<8x128xf32>
    tpu.vector_store %arg10[%c0_13, %c0_14], %18 {strides = array<i32>} : memref<8x128xf32, #tpu.memory_space<vmem>>, vector<8x128xf32>,
    %c0_i32_15 = arith.constant 0 : i32
    %20 = arith.cmpi eq, %arg1, %c0_i32_15 : i32
    %21 = arith.extui %20 : i1 to i32
    %c0_i32_16 = arith.constant 0 : i32
    %22 = arith.cmpi ne, %21, %c0_i32_16 : i32
    scf.if %22 {
      %c0_17 = arith.constant 0 : index
      %c0_18 = arith.constant 0 : index
      %23 = vector.load %arg10[%c0_17, %c0_18] : memref<8x128xf32, #tpu.memory_space<vmem>>, vector<8x128xf32>
      %c0_19 = arith.constant 0 : index
      %c0_20 = arith.constant 0 : index
      %24 = vector.load %arg8[%c0_19, %c0_20] : memref<1x128xf32, #tpu.memory_space<vmem>>, vector<1x128xf32>
      %25 = vector.broadcast %24 : vector<1x128xf32> to vector<8x128xf32>
      %26 = arith.addf %23, %25 : vector<8x128xf32>
      %cst_21 = arith.constant 0.000000e+00 : f32
      %27 = vector.broadcast %cst_21 : f32 to vector<8x128xf32>
      %28 = arith.cmpf ogt, %26, %27 : vector<8x128xf32>
      %cst_22 = arith.constant 3.000000e-01 : f32
      %29 = vector.broadcast %cst_22 : f32 to vector<8x128xf32>
      %30 = arith.mulf %29, %26 : vector<8x128xf32>
      %31 = arith.select %28, %26, %30 : vector<8x128xi1>, vector<8x128xf32>
      %c0_23 = arith.constant 0 : index
      %c0_24 = arith.constant 0 : index
      %32 = vector.load %arg9[%c0_23, %c0_24] : memref<8x128xf32, #tpu.memory_space<vmem>>, vector<8x128xf32>
      tpu.vector_store %arg9[%c0_23, %c0_24], %31 {strides = array<i32>} : memref<8x128xf32, #tpu.memory_space<vmem>>, vector<8x128xf32>,
    } else {
    }
    return
  }
  func.func @transform_0(%arg0: i32, %arg1: i32) -> (i32, i32) {
    %c0_i32 = arith.constant 0 : i32
    %c0_i32_0 = arith.constant 0 : i32
    %c0_i32_1 = arith.constant 0 : i32
    return %c0_i32, %c0_i32_0 : i32, i32
  }
  func.func @transform_1(%arg0: i32, %arg1: i32) -> (i32, i32) {
    %c0_i32 = arith.constant 0 : i32
    %c0_i32_0 = arith.constant 0 : i32
    return %arg0, %c0_i32 : i32, i32
  }
  func.func @transform_2(%arg0: i32, %arg1: i32) -> (i32, i32) {
    %c0_i32 = arith.constant 0 : i32
    %c0_i32_0 = arith.constant 0 : i32
    return %arg0, %c0_i32 : i32, i32
  }
  func.func @transform_3(%arg0: i32, %arg1: i32) -> (i32, i32) {
    %c0_i32 = arith.constant 0 : i32
    %c0_i32_0 = arith.constant 0 : i32
    return %c0_i32, %arg1 : i32, i32
  }
  func.func @transform_4(%arg0: i32, %arg1: i32) -> (i32, i32) {
    %c0_i32 = arith.constant 0 : i32
    %c0_i32_0 = arith.constant 0 : i32
    return %c0_i32, %arg1 : i32, i32
  }
  func.func @transform_5(%arg0: i32, %arg1: i32) -> (i32, i32) {
    %c0_i32 = arith.constant 0 : i32
    %c0_i32_0 = arith.constant 0 : i32
    return %arg1, %c0_i32 : i32, i32
  }
  func.func @transform_6(%arg0: i32, %arg1: i32) -> (i32, i32) {
    %c0_i32 = arith.constant 0 : i32
    %c0_i32_0 = arith.constant 0 : i32
    %c0_i32_1 = arith.constant 0 : i32
    return %c0_i32, %c0_i32_0 : i32, i32
  }
  func.func @transform_7(%arg0: i32, %arg1: i32) -> (i32, i32) {
    %c0_i32 = arith.constant 0 : i32
    %c0_i32_0 = arith.constant 0 : i32
    return %arg0, %c0_i32 : i32, i32
  }
}

module attributes {stable_mosaic.version = 11 : i64} {
  func.func @_encoder_stack_kernel(%arg0: i32, %arg1: i32, %arg2: memref<2x16x16xf32, #tpu.memory_space<vmem>>, %arg3: memref<1x16x1536xbf16, #tpu.memory_space<vmem>>, %arg4: memref<1x1x1536xf32, #tpu.memory_space<vmem>>, %arg5: memref<1x512x16xbf16, #tpu.memory_space<vmem>>, %arg6: memref<1x1x16xf32, #tpu.memory_space<vmem>>, %arg7: memref<1x16x128xbf16, #tpu.memory_space<vmem>>, %arg8: memref<1x1x128xf32, #tpu.memory_space<vmem>>, %arg9: memref<1x128x16xbf16, #tpu.memory_space<vmem>>, %arg10: memref<1x1x16xf32, #tpu.memory_space<vmem>>, %arg11: memref<1x1x16xf32, #tpu.memory_space<vmem>>, %arg12: memref<1x1x16xf32, #tpu.memory_space<vmem>>, %arg13: memref<1x1x16xf32, #tpu.memory_space<vmem>>, %arg14: memref<1x1x16xf32, #tpu.memory_space<vmem>>, %arg15: memref<2x16x16xf32, #tpu.memory_space<vmem>>) attributes {dimension_semantics = [#tpu.dimension_semantics<parallel>, #tpu.dimension_semantics<arbitrary>], iteration_bounds = array<i64: 2, 1>, scalar_prefetch = 0 : i64, scratch_operands = 0 : i64, tpu.core_type = #tpu.core_type<tc>, window_params = [{transform_indices = @transform_0, window_bounds = array<i64: 2, 16, 16>}, {transform_indices = @transform_1, window_bounds = array<i64: 1, 16, 1536>}, {transform_indices = @transform_2, window_bounds = array<i64: 1, 1, 1536>}, {transform_indices = @transform_3, window_bounds = array<i64: 1, 512, 16>}, {transform_indices = @transform_4, window_bounds = array<i64: 1, 1, 16>}, {transform_indices = @transform_5, window_bounds = array<i64: 1, 16, 128>}, {transform_indices = @transform_6, window_bounds = array<i64: 1, 1, 128>}, {transform_indices = @transform_7, window_bounds = array<i64: 1, 128, 16>}, {transform_indices = @transform_8, window_bounds = array<i64: 1, 1, 16>}, {transform_indices = @transform_9, window_bounds = array<i64: 1, 1, 16>}, {transform_indices = @transform_10, window_bounds = array<i64: 1, 1, 16>}, {transform_indices = @transform_11, window_bounds = array<i64: 1, 1, 16>}, {transform_indices = @transform_12, window_bounds = array<i64: 1, 1, 16>}, {transform_indices = @transform_13, window_bounds = array<i64: 2, 16, 16>}]} {
    %c0_i32 = arith.constant 0 : i32
    %0 = arith.cmpi eq, %arg1, %c0_i32 : i32
    %1 = arith.extui %0 : i1 to i32
    %c0_i32_0 = arith.constant 0 : i32
    %2 = arith.cmpi ne, %1, %c0_i32_0 : i32
    scf.if %2 {
      %c0_72 = arith.constant 0 : index
      %c0_73 = arith.constant 0 : index
      %c0_74 = arith.constant 0 : index
      %194 = vector.load %arg2[%c0_72, %c0_73, %c0_74] : memref<2x16x16xf32, #tpu.memory_space<vmem>>, vector<2x16x16xf32>
      %c0_75 = arith.constant 0 : index
      %c0_76 = arith.constant 0 : index
      %c0_77 = arith.constant 0 : index
      %195 = vector.load %arg15[%c0_75, %c0_76, %c0_77] : memref<2x16x16xf32, #tpu.memory_space<vmem>>, vector<2x16x16xf32>
      tpu.vector_store %arg15[%c0_75, %c0_76, %c0_77], %194 {strides = array<i32>} : memref<2x16x16xf32, #tpu.memory_space<vmem>>, vector<2x16x16xf32>,
    } else {
    }
    %c0 = arith.constant 0 : index
    %c0_1 = arith.constant 0 : index
    %c0_2 = arith.constant 0 : index
    %3 = vector.load %arg15[%c0, %c0_1, %c0_2] : memref<2x16x16xf32, #tpu.memory_space<vmem>>, vector<2x16x16xf32>
    %4 = vector.shape_cast %3 : vector<2x16x16xf32> to vector<32x16xf32>
    %5 = arith.truncf %4 : vector<32x16xf32> to vector<32x16xbf16>
    %c0_3 = arith.constant 0 : index
    %c0_4 = arith.constant 0 : index
    %c0_5 = arith.constant 0 : index
    %6 = vector.load %arg3[%c0_3, %c0_4, %c0_5] : memref<1x16x1536xbf16, #tpu.memory_space<vmem>>, vector<1x16x1536xbf16>
    %7 = vector.shape_cast %6 : vector<1x16x1536xbf16> to vector<16x1536xbf16>
    %cst = arith.constant dense<0.000000e+00> : vector<32x1536xf32>
    %8 = tpu.matmul %5, %7, %cst {dimension_numbers = #tpu.dot_dimension_numbers<[1], [0], [0], [1], [0, 0, 1, 1], [], []>} : vector<32x16xbf16>, vector<16x1536xbf16>, vector<32x1536xf32> -> vector<32x1536xf32>
    %c0_6 = arith.constant 0 : index
    %c0_7 = arith.constant 0 : index
    %c0_8 = arith.constant 0 : index
    %9 = vector.load %arg4[%c0_6, %c0_7, %c0_8] : memref<1x1x1536xf32, #tpu.memory_space<vmem>>, vector<1x1x1536xf32>
    %10 = vector.shape_cast %9 : vector<1x1x1536xf32> to vector<1x1536xf32>
    %11 = vector.broadcast %10 : vector<1x1536xf32> to vector<32x1536xf32>
    %12 = arith.addf %8, %11 : vector<32x1536xf32>
    %13 = vector.extract_strided_slice %12 {offsets = [0, 0], sizes = [32, 128], strides = [1, 1]} : vector<32x1536xf32> to vector<32x128xf32>
    %14 = vector.shape_cast %13 : vector<32x128xf32> to vector<2x16x128xf32>
    %15 = vector.extract_strided_slice %12 {offsets = [0, 512], sizes = [32, 128], strides = [1, 1]} : vector<32x1536xf32> to vector<32x128xf32>
    %16 = vector.shape_cast %15 : vector<32x128xf32> to vector<2x16x128xf32>
    %17 = vector.extract_strided_slice %12 {offsets = [0, 1024], sizes = [32, 128], strides = [1, 1]} : vector<32x1536xf32> to vector<32x128xf32>
    %18 = vector.shape_cast %17 : vector<32x128xf32> to vector<2x16x128xf32>
    %19 = arith.truncf %14 : vector<2x16x128xf32> to vector<2x16x128xbf16>
    %20 = arith.truncf %16 : vector<2x16x128xf32> to vector<2x16x128xbf16>
    %cst_9 = arith.constant dense<0.000000e+00> : vector<2x16x16xf32>
    %21 = tpu.matmul %19, %20, %cst_9 {dimension_numbers = #tpu.dot_dimension_numbers<[2], [2], [1], [1], [0, 0, 0, 1, 1, 1], [0], [0]>} : vector<2x16x128xbf16>, vector<2x16x128xbf16>, vector<2x16x16xf32> -> vector<2x16x16xf32>
    %cst_10 = arith.constant dense<0xFF800000> : vector<2x16xf32>
    %22 = vector.multi_reduction <maximumf>, %21, %cst_10 [2] : vector<2x16x16xf32> to vector<2x16xf32>
    %23 = vector.shape_cast %22 : vector<2x16xf32> to vector<2x16x1xf32>
    %24 = vector.broadcast %23 : vector<2x16x1xf32> to vector<2x16x16xf32>
    %25 = arith.subf %21, %24 : vector<2x16x16xf32>
    %26 = math.exp %25 : vector<2x16x16xf32>
    %cst_11 = arith.constant dense<0.000000e+00> : vector<2x16xf32>
    %27 = vector.multi_reduction <add>, %26, %cst_11 [2] : vector<2x16x16xf32> to vector<2x16xf32>
    %28 = vector.shape_cast %27 : vector<2x16xf32> to vector<2x16x1xf32>
    %29 = tpu.reciprocal %28 {approx = true} : vector<2x16x1xf32> -> vector<2x16x1xf32>
    %30 = vector.broadcast %29 : vector<2x16x1xf32> to vector<2x16x16xf32>
    %31 = arith.mulf %26, %30 : vector<2x16x16xf32>
    %32 = arith.truncf %31 : vector<2x16x16xf32> to vector<2x16x16xbf16>
    %33 = arith.truncf %18 : vector<2x16x128xf32> to vector<2x16x128xbf16>
    %cst_12 = arith.constant dense<0.000000e+00> : vector<2x16x128xf32>
    %34 = tpu.matmul %32, %33, %cst_12 {dimension_numbers = #tpu.dot_dimension_numbers<[2], [1], [1], [2], [0, 0, 0, 1, 1, 2], [0], [0]>} : vector<2x16x16xbf16>, vector<2x16x128xbf16>, vector<2x16x128xf32> -> vector<2x16x128xf32>
    %35 = vector.shape_cast %34 : vector<2x16x128xf32> to vector<32x128xf32>
    %36 = vector.extract_strided_slice %12 {offsets = [0, 128], sizes = [32, 128], strides = [1, 1]} : vector<32x1536xf32> to vector<32x128xf32>
    %37 = vector.shape_cast %36 : vector<32x128xf32> to vector<2x16x128xf32>
    %38 = vector.extract_strided_slice %12 {offsets = [0, 640], sizes = [32, 128], strides = [1, 1]} : vector<32x1536xf32> to vector<32x128xf32>
    %39 = vector.shape_cast %38 : vector<32x128xf32> to vector<2x16x128xf32>
    %40 = vector.extract_strided_slice %12 {offsets = [0, 1152], sizes = [32, 128], strides = [1, 1]} : vector<32x1536xf32> to vector<32x128xf32>
    %41 = vector.shape_cast %40 : vector<32x128xf32> to vector<2x16x128xf32>
    %42 = arith.truncf %37 : vector<2x16x128xf32> to vector<2x16x128xbf16>
    %43 = arith.truncf %39 : vector<2x16x128xf32> to vector<2x16x128xbf16>
    %cst_13 = arith.constant dense<0.000000e+00> : vector<2x16x16xf32>
    %44 = tpu.matmul %42, %43, %cst_13 {dimension_numbers = #tpu.dot_dimension_numbers<[2], [2], [1], [1], [0, 0, 0, 1, 1, 1], [0], [0]>} : vector<2x16x128xbf16>, vector<2x16x128xbf16>, vector<2x16x16xf32> -> vector<2x16x16xf32>
    %cst_14 = arith.constant dense<0xFF800000> : vector<2x16xf32>
    %45 = vector.multi_reduction <maximumf>, %44, %cst_14 [2] : vector<2x16x16xf32> to vector<2x16xf32>
    %46 = vector.shape_cast %45 : vector<2x16xf32> to vector<2x16x1xf32>
    %47 = vector.broadcast %46 : vector<2x16x1xf32> to vector<2x16x16xf32>
    %48 = arith.subf %44, %47 : vector<2x16x16xf32>
    %49 = math.exp %48 : vector<2x16x16xf32>
    %cst_15 = arith.constant dense<0.000000e+00> : vector<2x16xf32>
    %50 = vector.multi_reduction <add>, %49, %cst_15 [2] : vector<2x16x16xf32> to vector<2x16xf32>
    %51 = vector.shape_cast %50 : vector<2x16xf32> to vector<2x16x1xf32>
    %52 = tpu.reciprocal %51 {approx = true} : vector<2x16x1xf32> -> vector<2x16x1xf32>
    %53 = vector.broadcast %52 : vector<2x16x1xf32> to vector<2x16x16xf32>
    %54 = arith.mulf %49, %53 : vector<2x16x16xf32>
    %55 = arith.truncf %54 : vector<2x16x16xf32> to vector<2x16x16xbf16>
    %56 = arith.truncf %41 : vector<2x16x128xf32> to vector<2x16x128xbf16>
    %cst_16 = arith.constant dense<0.000000e+00> : vector<2x16x128xf32>
    %57 = tpu.matmul %55, %56, %cst_16 {dimension_numbers = #tpu.dot_dimension_numbers<[2], [1], [1], [2], [0, 0, 0, 1, 1, 2], [0], [0]>} : vector<2x16x16xbf16>, vector<2x16x128xbf16>, vector<2x16x128xf32> -> vector<2x16x128xf32>
    %58 = vector.shape_cast %57 : vector<2x16x128xf32> to vector<32x128xf32>
    %59 = vector.extract_strided_slice %12 {offsets = [0, 256], sizes = [32, 128], strides = [1, 1]} : vector<32x1536xf32> to vector<32x128xf32>
    %60 = vector.shape_cast %59 : vector<32x128xf32> to vector<2x16x128xf32>
    %61 = vector.extract_strided_slice %12 {offsets = [0, 768], sizes = [32, 128], strides = [1, 1]} : vector<32x1536xf32> to vector<32x128xf32>
    %62 = vector.shape_cast %61 : vector<32x128xf32> to vector<2x16x128xf32>
    %63 = vector.extract_strided_slice %12 {offsets = [0, 1280], sizes = [32, 128], strides = [1, 1]} : vector<32x1536xf32> to vector<32x128xf32>
    %64 = vector.shape_cast %63 : vector<32x128xf32> to vector<2x16x128xf32>
    %65 = arith.truncf %60 : vector<2x16x128xf32> to vector<2x16x128xbf16>
    %66 = arith.truncf %62 : vector<2x16x128xf32> to vector<2x16x128xbf16>
    %cst_17 = arith.constant dense<0.000000e+00> : vector<2x16x16xf32>
    %67 = tpu.matmul %65, %66, %cst_17 {dimension_numbers = #tpu.dot_dimension_numbers<[2], [2], [1], [1], [0, 0, 0, 1, 1, 1], [0], [0]>} : vector<2x16x128xbf16>, vector<2x16x128xbf16>, vector<2x16x16xf32> -> vector<2x16x16xf32>
    %cst_18 = arith.constant dense<0xFF800000> : vector<2x16xf32>
    %68 = vector.multi_reduction <maximumf>, %67, %cst_18 [2] : vector<2x16x16xf32> to vector<2x16xf32>
    %69 = vector.shape_cast %68 : vector<2x16xf32> to vector<2x16x1xf32>
    %70 = vector.broadcast %69 : vector<2x16x1xf32> to vector<2x16x16xf32>
    %71 = arith.subf %67, %70 : vector<2x16x16xf32>
    %72 = math.exp %71 : vector<2x16x16xf32>
    %cst_19 = arith.constant dense<0.000000e+00> : vector<2x16xf32>
    %73 = vector.multi_reduction <add>, %72, %cst_19 [2] : vector<2x16x16xf32> to vector<2x16xf32>
    %74 = vector.shape_cast %73 : vector<2x16xf32> to vector<2x16x1xf32>
    %75 = tpu.reciprocal %74 {approx = true} : vector<2x16x1xf32> -> vector<2x16x1xf32>
    %76 = vector.broadcast %75 : vector<2x16x1xf32> to vector<2x16x16xf32>
    %77 = arith.mulf %72, %76 : vector<2x16x16xf32>
    %78 = arith.truncf %77 : vector<2x16x16xf32> to vector<2x16x16xbf16>
    %79 = arith.truncf %64 : vector<2x16x128xf32> to vector<2x16x128xbf16>
    %cst_20 = arith.constant dense<0.000000e+00> : vector<2x16x128xf32>
    %80 = tpu.matmul %78, %79, %cst_20 {dimension_numbers = #tpu.dot_dimension_numbers<[2], [1], [1], [2], [0, 0, 0, 1, 1, 2], [0], [0]>} : vector<2x16x16xbf16>, vector<2x16x128xbf16>, vector<2x16x128xf32> -> vector<2x16x128xf32>
    %81 = vector.shape_cast %80 : vector<2x16x128xf32> to vector<32x128xf32>
    %82 = vector.extract_strided_slice %12 {offsets = [0, 384], sizes = [32, 128], strides = [1, 1]} : vector<32x1536xf32> to vector<32x128xf32>
    %83 = vector.shape_cast %82 : vector<32x128xf32> to vector<2x16x128xf32>
    %84 = vector.extract_strided_slice %12 {offsets = [0, 896], sizes = [32, 128], strides = [1, 1]} : vector<32x1536xf32> to vector<32x128xf32>
    %85 = vector.shape_cast %84 : vector<32x128xf32> to vector<2x16x128xf32>
    %86 = vector.extract_strided_slice %12 {offsets = [0, 1408], sizes = [32, 128], strides = [1, 1]} : vector<32x1536xf32> to vector<32x128xf32>
    %87 = vector.shape_cast %86 : vector<32x128xf32> to vector<2x16x128xf32>
    %88 = arith.truncf %83 : vector<2x16x128xf32> to vector<2x16x128xbf16>
    %89 = arith.truncf %85 : vector<2x16x128xf32> to vector<2x16x128xbf16>
    %cst_21 = arith.constant dense<0.000000e+00> : vector<2x16x16xf32>
    %90 = tpu.matmul %88, %89, %cst_21 {dimension_numbers = #tpu.dot_dimension_numbers<[2], [2], [1], [1], [0, 0, 0, 1, 1, 1], [0], [0]>} : vector<2x16x128xbf16>, vector<2x16x128xbf16>, vector<2x16x16xf32> -> vector<2x16x16xf32>
    %cst_22 = arith.constant dense<0xFF800000> : vector<2x16xf32>
    %91 = vector.multi_reduction <maximumf>, %90, %cst_22 [2] : vector<2x16x16xf32> to vector<2x16xf32>
    %92 = vector.shape_cast %91 : vector<2x16xf32> to vector<2x16x1xf32>
    %93 = vector.broadcast %92 : vector<2x16x1xf32> to vector<2x16x16xf32>
    %94 = arith.subf %90, %93 : vector<2x16x16xf32>
    %95 = math.exp %94 : vector<2x16x16xf32>
    %cst_23 = arith.constant dense<0.000000e+00> : vector<2x16xf32>
    %96 = vector.multi_reduction <add>, %95, %cst_23 [2] : vector<2x16x16xf32> to vector<2x16xf32>
    %97 = vector.shape_cast %96 : vector<2x16xf32> to vector<2x16x1xf32>
    %98 = tpu.reciprocal %97 {approx = true} : vector<2x16x1xf32> -> vector<2x16x1xf32>
    %99 = vector.broadcast %98 : vector<2x16x1xf32> to vector<2x16x16xf32>
    %100 = arith.mulf %95, %99 : vector<2x16x16xf32>
    %101 = arith.truncf %100 : vector<2x16x16xf32> to vector<2x16x16xbf16>
    %102 = arith.truncf %87 : vector<2x16x128xf32> to vector<2x16x128xbf16>
    %cst_24 = arith.constant dense<0.000000e+00> : vector<2x16x128xf32>
    %103 = tpu.matmul %101, %102, %cst_24 {dimension_numbers = #tpu.dot_dimension_numbers<[2], [1], [1], [2], [0, 0, 0, 1, 1, 2], [0], [0]>} : vector<2x16x16xbf16>, vector<2x16x128xbf16>, vector<2x16x128xf32> -> vector<2x16x128xf32>
    %104 = vector.shape_cast %103 : vector<2x16x128xf32> to vector<32x128xf32>
    %105 = tpu.concatenate %35, %58, %81, %104 in 1 : vector<32x128xf32>, vector<32x128xf32>, vector<32x128xf32>, vector<32x128xf32> -> vector<32x512xf32>
    %106 = arith.truncf %105 : vector<32x512xf32> to vector<32x512xbf16>
    %c0_25 = arith.constant 0 : index
    %c0_26 = arith.constant 0 : index
    %c0_27 = arith.constant 0 : index
    %107 = vector.load %arg5[%c0_25, %c0_26, %c0_27] : memref<1x512x16xbf16, #tpu.memory_space<vmem>>, vector<1x512x16xbf16>
    %108 = vector.shape_cast %107 : vector<1x512x16xbf16> to vector<512x16xbf16>
    %cst_28 = arith.constant dense<0.000000e+00> : vector<32x16xf32>
    %109 = tpu.matmul %106, %108, %cst_28 {dimension_numbers = #tpu.dot_dimension_numbers<[1], [0], [0], [1], [0, 0, 1, 1], [], []>} : vector<32x512xbf16>, vector<512x16xbf16>, vector<32x16xf32> -> vector<32x16xf32>
    %c0_29 = arith.constant 0 : index
    %c0_30 = arith.constant 0 : index
    %c0_31 = arith.constant 0 : index
    %110 = vector.load %arg6[%c0_29, %c0_30, %c0_31] : memref<1x1x16xf32, #tpu.memory_space<vmem>>, vector<1x1x16xf32>
    %111 = vector.shape_cast %110 : vector<1x1x16xf32> to vector<1x16xf32>
    %112 = vector.broadcast %111 : vector<1x16xf32> to vector<32x16xf32>
    %113 = arith.addf %109, %112 : vector<32x16xf32>
    %114 = vector.shape_cast %113 : vector<32x16xf32> to vector<2x16x16xf32>
    %115 = arith.addf %3, %114 : vector<2x16x16xf32>
    %c0_32 = arith.constant 0 : index
    %c0_33 = arith.constant 0 : index
    %c0_34 = arith.constant 0 : index
    %116 = vector.load %arg11[%c0_32, %c0_33, %c0_34] : memref<1x1x16xf32, #tpu.memory_space<vmem>>, vector<1x1x16xf32>
    %117 = vector.shape_cast %116 : vector<1x1x16xf32> to vector<1x16xf32>
    %c0_35 = arith.constant 0 : index
    %c0_36 = arith.constant 0 : index
    %c0_37 = arith.constant 0 : index
    %118 = vector.load %arg12[%c0_35, %c0_36, %c0_37] : memref<1x1x16xf32, #tpu.memory_space<vmem>>, vector<1x1x16xf32>
    %119 = vector.shape_cast %118 : vector<1x1x16xf32> to vector<1x16xf32>
    %cst_38 = arith.constant dense<0.000000e+00> : vector<2x16xf32>
    %120 = vector.multi_reduction <add>, %115, %cst_38 [2] : vector<2x16x16xf32> to vector<2x16xf32>
    %121 = vector.shape_cast %120 : vector<2x16xf32> to vector<2x16x1xf32>
    %cst_39 = arith.constant 1.600000e+01 : f32
    %122 = vector.broadcast %cst_39 : f32 to vector<2x16x1xf32>
    %123 = arith.divf %121, %122 : vector<2x16x1xf32>
    %124 = vector.broadcast %123 : vector<2x16x1xf32> to vector<2x16x16xf32>
    %125 = arith.subf %115, %124 : vector<2x16x16xf32>
    %126 = arith.mulf %125, %125 : vector<2x16x16xf32>
    %cst_40 = arith.constant dense<0.000000e+00> : vector<2x16xf32>
    %127 = vector.multi_reduction <add>, %126, %cst_40 [2] : vector<2x16x16xf32> to vector<2x16xf32>
    %128 = vector.shape_cast %127 : vector<2x16xf32> to vector<2x16x1xf32>
    %cst_41 = arith.constant 1.600000e+01 : f32
    %129 = vector.broadcast %cst_41 : f32 to vector<2x16x1xf32>
    %130 = arith.divf %128, %129 : vector<2x16x1xf32>
    %131 = vector.broadcast %123 : vector<2x16x1xf32> to vector<2x16x16xf32>
    %132 = arith.subf %115, %131 : vector<2x16x16xf32>
    %cst_42 = arith.constant 9.99999974E-6 : f32
    %133 = vector.broadcast %cst_42 : f32 to vector<2x16x1xf32>
    %134 = arith.addf %130, %133 : vector<2x16x1xf32>
    %135 = math.rsqrt %134 : vector<2x16x1xf32>
    %136 = vector.broadcast %135 : vector<2x16x1xf32> to vector<2x16x16xf32>
    %137 = arith.mulf %132, %136 : vector<2x16x16xf32>
    %138 = vector.shape_cast %117 : vector<1x16xf32> to vector<1x1x16xf32>
    %139 = vector.broadcast %138 : vector<1x1x16xf32> to vector<2x16x16xf32>
    %140 = arith.mulf %137, %139 : vector<2x16x16xf32>
    %141 = vector.shape_cast %119 : vector<1x16xf32> to vector<1x1x16xf32>
    %142 = vector.broadcast %141 : vector<1x1x16xf32> to vector<2x16x16xf32>
    %143 = arith.addf %140, %142 : vector<2x16x16xf32>
    %144 = vector.shape_cast %143 : vector<2x16x16xf32> to vector<32x16xf32>
    %145 = arith.truncf %144 : vector<32x16xf32> to vector<32x16xbf16>
    %c0_43 = arith.constant 0 : index
    %c0_44 = arith.constant 0 : index
    %c0_45 = arith.constant 0 : index
    %146 = vector.load %arg7[%c0_43, %c0_44, %c0_45] : memref<1x16x128xbf16, #tpu.memory_space<vmem>>, vector<1x16x128xbf16>
    %147 = vector.shape_cast %146 : vector<1x16x128xbf16> to vector<16x128xbf16>
    %cst_46 = arith.constant dense<0.000000e+00> : vector<32x128xf32>
    %148 = tpu.matmul %145, %147, %cst_46 {dimension_numbers = #tpu.dot_dimension_numbers<[1], [0], [0], [1], [0, 0, 1, 1], [], []>} : vector<32x16xbf16>, vector<16x128xbf16>, vector<32x128xf32> -> vector<32x128xf32>
    %c0_47 = arith.constant 0 : index
    %c0_48 = arith.constant 0 : index
    %c0_49 = arith.constant 0 : index
    %149 = vector.load %arg8[%c0_47, %c0_48, %c0_49] : memref<1x1x128xf32, #tpu.memory_space<vmem>>, vector<1x1x128xf32>
    %150 = vector.shape_cast %149 : vector<1x1x128xf32> to vector<1x128xf32>
    %151 = vector.broadcast %150 : vector<1x128xf32> to vector<32x128xf32>
    %152 = arith.addf %148, %151 : vector<32x128xf32>
    %cst_50 = arith.constant 0.000000e+00 : f32
    %153 = vector.broadcast %cst_50 : f32 to vector<32x128xf32>
    %154 = arith.maximumf %152, %153 : vector<32x128xf32>
    %155 = arith.truncf %154 : vector<32x128xf32> to vector<32x128xbf16>
    %c0_51 = arith.constant 0 : index
    %c0_52 = arith.constant 0 : index
    %c0_53 = arith.constant 0 : index
    %156 = vector.load %arg9[%c0_51, %c0_52, %c0_53] : memref<1x128x16xbf16, #tpu.memory_space<vmem>>, vector<1x128x16xbf16>
    %157 = vector.shape_cast %156 : vector<1x128x16xbf16> to vector<128x16xbf16>
    %cst_54 = arith.constant dense<0.000000e+00> : vector<32x16xf32>
    %158 = tpu.matmul %155, %157, %cst_54 {dimension_numbers = #tpu.dot_dimension_numbers<[1], [0], [0], [1], [0, 0, 1, 1], [], []>} : vector<32x128xbf16>, vector<128x16xbf16>, vector<32x16xf32> -> vector<32x16xf32>
    %c0_55 = arith.constant 0 : index
    %c0_56 = arith.constant 0 : index
    %c0_57 = arith.constant 0 : index
    %159 = vector.load %arg10[%c0_55, %c0_56, %c0_57] : memref<1x1x16xf32, #tpu.memory_space<vmem>>, vector<1x1x16xf32>
    %160 = vector.shape_cast %159 : vector<1x1x16xf32> to vector<1x16xf32>
    %161 = vector.broadcast %160 : vector<1x16xf32> to vector<32x16xf32>
    %162 = arith.addf %158, %161 : vector<32x16xf32>
    %163 = vector.shape_cast %162 : vector<32x16xf32> to vector<2x16x16xf32>
    %164 = arith.addf %143, %163 : vector<2x16x16xf32>
    %c0_58 = arith.constant 0 : index
    %c0_59 = arith.constant 0 : index
    %c0_60 = arith.constant 0 : index
    %165 = vector.load %arg13[%c0_58, %c0_59, %c0_60] : memref<1x1x16xf32, #tpu.memory_space<vmem>>, vector<1x1x16xf32>
    %166 = vector.shape_cast %165 : vector<1x1x16xf32> to vector<1x16xf32>
    %c0_61 = arith.constant 0 : index
    %c0_62 = arith.constant 0 : index
    %c0_63 = arith.constant 0 : index
    %167 = vector.load %arg14[%c0_61, %c0_62, %c0_63] : memref<1x1x16xf32, #tpu.memory_space<vmem>>, vector<1x1x16xf32>
    %168 = vector.shape_cast %167 : vector<1x1x16xf32> to vector<1x16xf32>
    %cst_64 = arith.constant dense<0.000000e+00> : vector<2x16xf32>
    %169 = vector.multi_reduction <add>, %164, %cst_64 [2] : vector<2x16x16xf32> to vector<2x16xf32>
    %170 = vector.shape_cast %169 : vector<2x16xf32> to vector<2x16x1xf32>
    %cst_65 = arith.constant 1.600000e+01 : f32
    %171 = vector.broadcast %cst_65 : f32 to vector<2x16x1xf32>
    %172 = arith.divf %170, %171 : vector<2x16x1xf32>
    %173 = vector.broadcast %172 : vector<2x16x1xf32> to vector<2x16x16xf32>
    %174 = arith.subf %164, %173 : vector<2x16x16xf32>
    %175 = arith.mulf %174, %174 : vector<2x16x16xf32>
    %cst_66 = arith.constant dense<0.000000e+00> : vector<2x16xf32>
    %176 = vector.multi_reduction <add>, %175, %cst_66 [2] : vector<2x16x16xf32> to vector<2x16xf32>
    %177 = vector.shape_cast %176 : vector<2x16xf32> to vector<2x16x1xf32>
    %cst_67 = arith.constant 1.600000e+01 : f32
    %178 = vector.broadcast %cst_67 : f32 to vector<2x16x1xf32>
    %179 = arith.divf %177, %178 : vector<2x16x1xf32>
    %180 = vector.broadcast %172 : vector<2x16x1xf32> to vector<2x16x16xf32>
    %181 = arith.subf %164, %180 : vector<2x16x16xf32>
    %cst_68 = arith.constant 9.99999974E-6 : f32
    %182 = vector.broadcast %cst_68 : f32 to vector<2x16x1xf32>
    %183 = arith.addf %179, %182 : vector<2x16x1xf32>
    %184 = math.rsqrt %183 : vector<2x16x1xf32>
    %185 = vector.broadcast %184 : vector<2x16x1xf32> to vector<2x16x16xf32>
    %186 = arith.mulf %181, %185 : vector<2x16x16xf32>
    %187 = vector.shape_cast %166 : vector<1x16xf32> to vector<1x1x16xf32>
    %188 = vector.broadcast %187 : vector<1x1x16xf32> to vector<2x16x16xf32>
    %189 = arith.mulf %186, %188 : vector<2x16x16xf32>
    %190 = vector.shape_cast %168 : vector<1x16xf32> to vector<1x1x16xf32>
    %191 = vector.broadcast %190 : vector<1x1x16xf32> to vector<2x16x16xf32>
    %192 = arith.addf %189, %191 : vector<2x16x16xf32>
    %c0_69 = arith.constant 0 : index
    %c0_70 = arith.constant 0 : index
    %c0_71 = arith.constant 0 : index
    %193 = vector.load %arg15[%c0_69, %c0_70, %c0_71] : memref<2x16x16xf32, #tpu.memory_space<vmem>>, vector<2x16x16xf32>
    tpu.vector_store %arg15[%c0_69, %c0_70, %c0_71], %192 {strides = array<i32>} : memref<2x16x16xf32, #tpu.memory_space<vmem>>, vector<2x16x16xf32>,
    return
  }
  func.func @transform_0(%arg0: i32, %arg1: i32) -> (i32, i32, i32) {
    %c0_i32 = arith.constant 0 : i32
    %c0_i32_0 = arith.constant 0 : i32
    %c0_i32_1 = arith.constant 0 : i32
    return %arg0, %c0_i32, %c0_i32_0 : i32, i32, i32
  }
  func.func @transform_1(%arg0: i32, %arg1: i32) -> (i32, i32, i32) {
    %c0_i32 = arith.constant 0 : i32
    %c0_i32_0 = arith.constant 0 : i32
    %c0_i32_1 = arith.constant 0 : i32
    return %arg1, %c0_i32, %c0_i32_0 : i32, i32, i32
  }
  func.func @transform_2(%arg0: i32, %arg1: i32) -> (i32, i32, i32) {
    %c0_i32 = arith.constant 0 : i32
    %c0_i32_0 = arith.constant 0 : i32
    %c0_i32_1 = arith.constant 0 : i32
    return %arg1, %c0_i32, %c0_i32_0 : i32, i32, i32
  }
  func.func @transform_3(%arg0: i32, %arg1: i32) -> (i32, i32, i32) {
    %c0_i32 = arith.constant 0 : i32
    %c0_i32_0 = arith.constant 0 : i32
    %c0_i32_1 = arith.constant 0 : i32
    return %arg1, %c0_i32, %c0_i32_0 : i32, i32, i32
  }
  func.func @transform_4(%arg0: i32, %arg1: i32) -> (i32, i32, i32) {
    %c0_i32 = arith.constant 0 : i32
    %c0_i32_0 = arith.constant 0 : i32
    %c0_i32_1 = arith.constant 0 : i32
    return %arg1, %c0_i32, %c0_i32_0 : i32, i32, i32
  }
  func.func @transform_5(%arg0: i32, %arg1: i32) -> (i32, i32, i32) {
    %c0_i32 = arith.constant 0 : i32
    %c0_i32_0 = arith.constant 0 : i32
    %c0_i32_1 = arith.constant 0 : i32
    return %arg1, %c0_i32, %c0_i32_0 : i32, i32, i32
  }
  func.func @transform_6(%arg0: i32, %arg1: i32) -> (i32, i32, i32) {
    %c0_i32 = arith.constant 0 : i32
    %c0_i32_0 = arith.constant 0 : i32
    %c0_i32_1 = arith.constant 0 : i32
    return %arg1, %c0_i32, %c0_i32_0 : i32, i32, i32
  }
  func.func @transform_7(%arg0: i32, %arg1: i32) -> (i32, i32, i32) {
    %c0_i32 = arith.constant 0 : i32
    %c0_i32_0 = arith.constant 0 : i32
    %c0_i32_1 = arith.constant 0 : i32
    return %arg1, %c0_i32, %c0_i32_0 : i32, i32, i32
  }
  func.func @transform_8(%arg0: i32, %arg1: i32) -> (i32, i32, i32) {
    %c0_i32 = arith.constant 0 : i32
    %c0_i32_0 = arith.constant 0 : i32
    %c0_i32_1 = arith.constant 0 : i32
    return %arg1, %c0_i32, %c0_i32_0 : i32, i32, i32
  }
  func.func @transform_9(%arg0: i32, %arg1: i32) -> (i32, i32, i32) {
    %c0_i32 = arith.constant 0 : i32
    %c0_i32_0 = arith.constant 0 : i32
    %c0_i32_1 = arith.constant 0 : i32
    return %arg1, %c0_i32, %c0_i32_0 : i32, i32, i32
  }
  func.func @transform_10(%arg0: i32, %arg1: i32) -> (i32, i32, i32) {
    %c0_i32 = arith.constant 0 : i32
    %c0_i32_0 = arith.constant 0 : i32
    %c0_i32_1 = arith.constant 0 : i32
    return %arg1, %c0_i32, %c0_i32_0 : i32, i32, i32
  }
  func.func @transform_11(%arg0: i32, %arg1: i32) -> (i32, i32, i32) {
    %c0_i32 = arith.constant 0 : i32
    %c0_i32_0 = arith.constant 0 : i32
    %c0_i32_1 = arith.constant 0 : i32
    return %arg1, %c0_i32, %c0_i32_0 : i32, i32, i32
  }
  func.func @transform_12(%arg0: i32, %arg1: i32) -> (i32, i32, i32) {
    %c0_i32 = arith.constant 0 : i32
    %c0_i32_0 = arith.constant 0 : i32
    %c0_i32_1 = arith.constant 0 : i32
    return %arg1, %c0_i32, %c0_i32_0 : i32, i32, i32
  }
  func.func @transform_13(%arg0: i32, %arg1: i32) -> (i32, i32, i32) {
    %c0_i32 = arith.constant 0 : i32
    %c0_i32_0 = arith.constant 0 : i32
    %c0_i32_1 = arith.constant 0 : i32
    return %arg0, %c0_i32, %c0_i32_0 : i32, i32, i32
  }
}

</mosaic_0001>

<bundles_post_ra>
// kernel: mobility_pattern_joint_learning.5
= control target key start
LH: loop header
LB: loop body
LE: loop exit
PB: predicated region body
PF: predicated region fallthrough
CT: control target
= control target key end

     0   :  { %s1226_s0 = inlined_call_operand.vmem [shape: f32[1,2], index: 0, kind: input, shape index: {}]   ;;  %s1227_s1 = inlined_call_operand.vmem [shape: f32[16,64], index: 1, kind: input, shape index: {}]   ;;  %s1228_s2 = inlined_call_operand.vmem [shape: f32[16,64], index: 2, kind: input, shape index: {}]   ;;  %s1229_s3 = inlined_call_operand.vmem [shape: bf16[64,128], index: 3, kind: input, shape index: {}]   ;;  %s1230_s4 = inlined_call_operand.vmem [shape: f32[1,128], index: 4, kind: input, shape index: {}]   ;;  %s1231_s5 = inlined_call_operand.vmem [shape: bf16[128,128], index: 5, kind: input, shape index: {}]   ;;  %s1232_s6 = inlined_call_operand.vmem [shape: f32[1,128], index: 6, kind: input, shape index: {}]   ;;  %s1233_s7 = inlined_call_operand.hbm [shape: f32[16,128], index: 7, kind: output, shape index: {}]  }
   0x1   :  { %1234 = sst [smem:[#allocation10_spill]] %s1226_s0 }
   0x2   :  { %12 = vsyncpa [#allocation6], 0 }
   0x3   :  { %13 = vsyncpa [#allocation5], 0 }
   0x4   :  { %15 = vsyncpa [#allocation5 + $0x1], 0  ;;  %s1048_s24 = smov 0   ;;  %s1050_s25 = smov 0  }
   0x5   :  { %s1052_s26 = smov 0   ;;  %s1054_s27 = smov 0  }
   0x6   :  { %s1056_s28 = smov 0   ;;  %s1058_s29 = smov 0  }
   0x7 LB: > { %s746_s30 = sadd.s32 4294967295, %s1002_s29   ;;  %s747_s8 = sadd.s32 4294967294, %s1002_s29   ;;  %s1002_s29 = sphi %s1058_s29, %s21_s29   ;;  %s998_s28 = sphi %s1056_s28, %s1244_s28   ;;  %s994_s27 = sphi %s1054_s27, %s1243_s27   ;;  %s990_s26 = sphi %s1052_s26, %s1242_s26   ;;  %s986_s25 = sphi %s1050_s25, %s1241_s25   ;;  %s982_s24 = sphi %s1048_s24, %s1240_s24  }
   0x8   : > { %s33_s9 = sadd.s32 1, %s998_s28  ;;  %s212_s10 = sadd.s32 1, %s990_s26 }
   0x9   : > { %p35_p0 = scmp.ge.s32.totalorder %s33_s9, 2  ;;  %p222_p1 = scmp.ne.s32.totalorder %s990_s26, %s986_s25 }
   0xa   : > { %p223_p2 = scmp.eq.s32.totalorder %s746_s30, 1  ;;  %p228_p3 = scmp.ne.s32.totalorder %s986_s25, %s982_s24 }
   0xb   : > { %s1246_s9 = smov (%p35_p0, %s33_s9), 0  ;;  %p229_p5 = scmp.eq.s32.totalorder %s747_s8, 1 }
   0xc   : > { %p1088_p4 = por %p223_p2, %p222_p1  ;;  %s209_s12 = ssub.s32 %s998_s28, %s1246_s9 }
   0xd   : > { %p748_p6 = scmp.ge.s32.totalorder %s1002_s29, 1  ;;  %p210_p7 = scmp.eq.s32.totalorder %s209_s12, 0 }
   0xe   : > { %p1095_p8 = por %p229_p5, %p228_p3  ;;  %p236_p9 = scmp.lt.s32.totalorder %s1002_s29, 3 }
   0xf   : > { %s1101_s14 = scalar_select %p210_p7, %s990_s26, %s212_s10  }
  0x10   : > { %p1103_p10 = pnand %p748_p6, %p236_p9  ;;  %p1107_p11 = scmp.eq.s32.totalorder %s746_s30, 0 }
  0x11   : > { %s1239_s0 = sld [smem:[#allocation10_spill]] }
  0x12   : > { %p831_p12 = pneg %p1103_p10 }
  0x14   : > { %p832_p13 = pnand %p1107_p11, %p831_p12 }
  0x16   : > { %p907_p1 = pneg %p832_p13 }
  0x17   : > { %s249_s19 = sshll.u32 %s1239_s0, 4  ;;  %s250_s19 = int_to_ptr.vmem [resolvable:$true] %s249_s19 }
  0x18   : > { %s905_s20 = scalar_lea.vmem %s250_s19, 16  ;;  %p913_p5 = scmp.lt.s32.totalorder %s250_s19, %s250_s19 }
  0x19   : > { %p906_p0 = scmp.ne.s32.totalorder %s250_s19, %s905_s20  ;;  %p914_p6 = scmp.lt.s32.totalorder %s905_s20, %s905_s20 }
  0x1b   : > { %p908_p2 = pnand %p907_p1, %p906_p0  ;;  %p915_p7 = por %p914_p6, %p913_p5 }
  0x1d   : > { %p909_p3 = pneg %p908_p2 }
  0x1f   : > { %p916_p9 = pnand %p915_p7, %p909_p3 }
  0x21   : > { %919 = shalt.err (!%p916_p9)
}
  0x22   : > { %s1004_s21 = smov [#allocation4]   ;;  %301 = sbr.rel (%p1103_p10) target bundleno = 516 (0x204), region = 48 }
  0x23   : > { %834 = dma.vmem_to_smem (!%p832_p13), %s250_s19, 16, %s1004_s21, [#allocation6]  }
  0x29   : > { %973 = dma.done.wait (%p1107_p11), [#allocation6], 16  }
  0x2a   : > { %975 = vsyncadd (%p1107_p11), [#allocation6], 4294967280 }
  0x2b   : > { %307 = sfence }
  0x2c   : > { %v893_v0 = vld [vmem:[%s1229_s3] sm:$0xff]   ;;  %v1005_v1 = vmov 0.0   ;;  %v894_v2 = vld [vmem:[%s1229_s3 + $0x8] sm:$0xff]   ;;  %vm1006_vm0 = vmmov 0   ;;  %p349_p10 = scmp.lt.s32.totalorder %s994_s27, 1  ;;  %v895_v3 = vld [vmem:[%s1229_s3 + $0x10] sm:$0xff]  }
  0x2d   : > { %793 = vmatprep.subr.bf16.mxu0 %v1005_v1  ;;  %805 = vmatprep.subr.bf16.mxu1 %v1005_v1  ;;  %s375_s16 = sld [smem:[#allocation4]]  ;;  %s759_s17 = sld [smem:[#allocation4 + $0x1]]  ;;  %v897_v4 = vld [vmem:[%s1231_s5] sm:$0xff]   ;;  %v898_v5 = vld [vmem:[%s1231_s5 + $0x8] sm:$0xff]   ;;  %v896_v8 = vld [vmem:[%s1229_s3 + $0x18] sm:$0xff]   ;;  %vm385_vm1 = vcmask 519168  }
  0x2e   : > { %794 = vmatpush3.bf16.msra.mxu0 %v893_v0  ;;  %801 = vmatprep.mubr.msk.bf16.mxu0 %vm1006_vm0, %v1005_v1  ;;  %s350_s10 = scalar_select %p349_p10, %s994_s27, 1  ;;  %v899_v11 = vld [vmem:[%s1231_s5 + $0x10] sm:$0xff]   ;;  %v900_v15 = vld [vmem:[%s1231_s5 + $0x18] sm:$0xff]   ;;  %v901_v17 = vld [vmem:[%s1231_s5 + $0x20] sm:$0xff]   ;;  %vm428_vm2 = vcmask 523264  }
  0x2f   : > { %795 = vmatprep.subr.bf16.mxu0 %v1005_v1  ;;  %821 = vmatprep.mubr.msk.bf16.mxu1 %vm1006_vm0, %v1005_v1  ;;  %v902_v18 = vld [vmem:[%s1231_s5 + $0x28] sm:$0xff]   ;;  %v903_v20 = vld [vmem:[%s1231_s5 + $0x30] sm:$0xff]   ;;  %v904_v21 = vld [vmem:[%s1231_s5 + $0x38] sm:$0xff]   ;;  %s346_s19 = sand.u32 1, %s986_s25  }
  0x30   : > { %s757_s20 = sshll.u32 %s350_s10, 3  ;;  %806 = vmatpush3.bf16.msra.mxu1 %v897_v4  ;;  %v760_v22 = vld [vmem:[%s1230_s4] ss:$0 sm:$0xff]  ;;  %s756_s21 = sshll.u32 %s346_s19, 3 }
  0x31   : > { %s352_s8 = scalar_lea.vmem %s1227_s1, %s757_s20  ;;  %s356_s15 = scalar_lea.vmem %s1228_s2, %s757_s20  ;;  %807 = vmatprep.subr.bf16.mxu1 %v1005_v1  ;;  %v774_v31 = vld [vmem:[%s1232_s6] ss:$0 sm:$0xff] }
  0x32   : > { %796 = vmatpush3.bf16.msra.mxu0 %v894_v2  ;;  %v377_v6 = vld [vmem:[%s352_s8] sm:$0xff]  ;;  %s600_s12 = scalar_lea.sflag [#allocation5], %s346_s19 }
  0x33   : > { %797 = vmatprep.subr.bf16.mxu0 %v1005_v1  ;;  %v380_v7 = vld [vmem:[%s356_s15] sm:$0xff]  ;;  %v378_v9 = vstv %s759_s17  ;;  %v381_v10 = vstv %s375_s16  ;;  %s776_s16 = sshll.u32 %s994_s27, 7  ;;  %s348_s17 = scalar_lea.vmem [#allocation7], %s756_s21 }
  0x34   : > { %808 = vmatpush3.bf16.msra.mxu1 %v898_v5  ;;  %v379_v12 = vmul.f32 %v378_v9, %v377_v6  ;;  %v382_v13 = vmul.f32 %v381_v10, %v380_v7  ;;  %s613_s22 = sshll.u32 %s348_s17, 4  ;;  %s1179_s8 = scalar_lea.hbm %s1233_s7, %s776_s16  ;;  %s1181_s22 = int_to_ptr.vmem [resolvable:$true] %s613_s22 }
  0x35   : > { %809 = vmatprep.subr.bf16.mxu1 %v1005_v1  ;;  %s920_s27 = scalar_lea.vmem %s1181_s22, 128  ;;  %s1007_s15 = smov [#allocation7]  }
  0x36   : > { %798 = vmatpush3.bf16.msra.mxu0 %v895_v3  ;;  %v383_v14 = vadd.f32 %v382_v13, %v379_v12  ;;  %p921_p11 = scmp.ne.s32.totalorder %s1181_s22, %s920_s27  ;;  %s924_s18 = sshll.u32 %s1007_s15, 4  ;;  %s925_s18 = int_to_ptr.vmem [resolvable:$false] %s924_s18 }
  0x37   : > { %799 = vmatprep.subr.bf16.mxu0 %v1005_v1  ;;  %s926_s10 = scalar_lea.vmem %s925_s18, 256  ;;  %p927_p0 = scmp.lt.s32.totalorder %s1181_s22, %s925_s18 }
  0x38   : > { %810 = vmatpush3.bf16.msra.mxu1 %v899_v11  ;;  %v384_v16 = vpack.c.bf16 %v383_v14, %v383_v14  ;;  %p922_p12 = pnand %p921_p11, %p1088_p4  ;;  %p928_p1 = scmp.lt.s32.totalorder %s926_s10, %s920_s27 }
  0x39   : > { %811 = vmatprep.subr.bf16.mxu1 %v1005_v1 }
  0x3a   : > { %800 = vmatpush3.bf16.msra.mxu0 %v896_v8  ;;  %386 = vst.msk [vmem:[#allocation3] sm:$0xf] %vm385_vm1, %v384_v16  ;;  %p923_p13 = pneg %p922_p12  ;;  %p929_p2 = por %p928_p1, %p927_p0 }
  0x3c   : > { %812 = vmatpush3.bf16.msra.mxu1 %v900_v15  ;;  %p930_p3 = pnand %p929_p2, %p923_p13 }
  0x3d   : > { %813 = vmatprep.subr.bf16.mxu1 %v1005_v1 }
  0x40   : > { %814 = vmatpush3.bf16.msra.mxu1 %v901_v17 }
  0x41   : > { %815 = vmatprep.subr.bf16.mxu1 %v1005_v1  ;;  %v388_v19 = vld [vmem:[#allocation3] sm:$0xf] }
  0x42   : > { %802 = vmatmul.mubr.msk.bf16.vlgmr.msra.gmra.mrb[0].mxu0 %vm428_vm2, %v388_v19 }
  0x44   : > { %816 = vmatpush3.bf16.msra.mxu1 %v902_v18 }
  0x45   : > { %817 = vmatprep.subr.bf16.mxu1 %v1005_v1 }
  0x48   : > { %818 = vmatpush3.bf16.msra.mxu1 %v903_v20 }
  0x49   : > { %819 = vmatprep.subr.bf16.mxu1 %v1005_v1 }
  0x4c   : > { %820 = vmatpush3.bf16.msra.mxu1 %v904_v21 }
 0x115   : > { %v466_v23 = vpop.f32.mrb[0].mxu0 }
 0x116   : > { %v467_v24 = vadd.f32 %v760_v22, %v466_v23  ;;  %v803_v25 = vpop.f32.mrb[1].mxu0 }
 0x117   : > { %v469_v26 = vpop.f32.mrb[2].mxu0 }
 0x118   : > { %vm472_vm3 = vcmp.gt.f32.partialorder %v467_v24, 0.0  ;;  %v473_v27 = vmul.f32 0.3, %v467_v24  ;;  %v804_v28 = vpop.f32.mrb[3].mxu0 }
 0x11a   : > { %v474_v29 = vsel %vm472_vm3, %v467_v24, %v473_v27 }
 0x11b   : > { %v476_v30 = vpack.c.bf16 %v474_v29, %v474_v29 }
 0x11d   : > { %822 = vmatmul.mubr.bf16.vlgmr.msra.gmra.mrb[0].mxu1 %v476_v30 }
 0x1f0   : > { %v575_v32 = vpop.f32.mrb[0].mxu1 }
 0x1f1   : > { %v594_v33 = vadd.f32 %v774_v31, %v575_v32  ;;  %v823_v34 = vpop.f32.mrb[1].mxu1 }
 0x1f2   : > { %v578_v35 = vpop.f32.mrb[2].mxu1 }
 0x1f3   : > { %vm595_vm4 = vcmp.gt.f32.partialorder %v594_v33, 0.0  ;;  %v596_v36 = vmul.f32 0.3, %v594_v33  ;;  %v824_v37 = vpop.f32.mrb[3].mxu1 }
 0x1f5   : > { %v597_v38 = vsel %vm595_vm4, %v594_v33, %v596_v36 }
 0x1f6   : > { %598 = vst [vmem:[%s348_s17] sm:$0xff] %v597_v38 }
 0x1f7   : > { %933 = shalt.err (!%p930_p3)
}
 0x1f8   : > { %s934_s19 = scalar_lea.hbm %s1179_s8, 128  ;;  %s938_s20 = scalar_lea.hbm %s1233_s7, 256 }
 0x1f9   : > { %p935_p5 = scmp.ne.s32.totalorder %s1179_s8, %s934_s19  ;;  %p939_p9 = scmp.lt.u32.totalorder %s1179_s8, %s1233_s7 }
 0x1fa   : > { %p940_p10 = scmp.lt.u32.totalorder %s938_s20, %s934_s19  ;;  %p942_p12 = scmp.lt.u32.totalorder %s934_s19, %s1179_s8 }
 0x1fb   : > { %p936_p6 = pnand %p935_p5, %p1088_p4 }
 0x1fc   : > { %p941_p11 = por %p940_p10, %p939_p9 }
 0x1fd   : > { %p937_p7 = pneg %p936_p6 }
 0x1fe   : > { %p943_p13 = por %p942_p12, %p941_p11 }
 0x200   : > { %p944_p0 = pnand %p943_p13, %p937_p7 }
 0x202   : > { %947 = shalt.err (!%p944_p0)
}
 0x203   : > { %829 = dma.vmem_to_hbm [thread:$0]  (%p1088_p4), %s1181_s22, 128, %s1179_s8, %s600_s12  }
 0x204 PF: > { %p841_p1 = scmp.ge.s32.totalorder %s1002_s29, 2  ;;  %s625_s23 = sand.u32 1, %s982_s24  }
 0x205   : > { %s626_s30 = scalar_lea.sflag [#allocation5], %s625_s23 }
 0x206   : > { %p836_p2 = pnand %p841_p1, %p1095_p8 }
 0x208   : > { %977 = dma.done.wait (!%p836_p2), %s626_s30, 128  }
 0x209   : > { %979 = vsyncadd (!%p836_p2), %s626_s30, 4294967168  ;;  %s21_s29 = sadd.s32 1, %s1002_s29   ;;  %s1240_s24 = smov %s986_s25 }
 0x20a   : > { %p18_p3 = scmp.ge.s32.totalorder %s21_s29, 4   ;;  %s1241_s25 = smov %s990_s26 }
 0x20b   : > { %s1242_s26 = smov %s1101_s14  ;;  %s1243_s27 = smov %s998_s28 }
 0x20c   : > { %s1244_s28 = smov %s1246_s9  ;;  %20 = sbr.rel (!%p18_p3) target bundleno = 7 (0x7), region = 108 }
 0x213   :  { %631 = vsyncpa [#allocation5], 1 }
 0x214   :  { %633 = vsyncpa [#allocation5 + $0x1], 1 }
 0x215   :  { %634 = vsyncpa [#allocation6], 1 }
 0x216   :  { %636 = vsyncpa [#allocation6 + $0x1], 1 }

// kernel: mobility_pattern_joint_learning.4
= control target key start
LH: loop header
LB: loop body
LE: loop exit
PB: predicated region body
PF: predicated region fallthrough
CT: control target
= control target key end

     0   :  { %s3580_s25 = smov 0   ;;  %s3582_s26 = smov 0   ;;  %s4207_s0 = inlined_call_operand.vmem [shape: f32[4,16,16], index: 0, kind: input, shape index: {}]   ;;  %s4208_s1 = inlined_call_operand.vmem [shape: bf16[1,16,1536], index: 1, kind: input, shape index: {}]   ;;  %s4209_s2 = inlined_call_operand.vmem [shape: f32[1,1,1536], index: 2, kind: input, shape index: {}]   ;;  %s4210_s3 = inlined_call_operand.vmem [shape: bf16[1,512,16], index: 3, kind: input, shape index: {}]   ;;  %s4211_s4 = inlined_call_operand.vmem [shape: f32[1,1,16], index: 4, kind: input, shape index: {}]   ;;  %s4212_s5 = inlined_call_operand.vmem [shape: bf16[1,16,128], index: 5, kind: input, shape index: {}]   ;;  %s4213_s6 = inlined_call_operand.vmem [shape: f32[1,1,128], index: 6, kind: input, shape index: {}]   ;;  %s4214_s7 = inlined_call_operand.vmem [shape: bf16[1,128,16], index: 7, kind: input, shape index: {}]   ;;  %s4215_s8 = inlined_call_operand.vmem [shape: f32[1,1,16], index: 8, kind: input, shape index: {}]   ;;  %s4216_s9 = inlined_call_operand.vmem [shape: f32[1,1,16], index: 9, kind: input, shape index: {}]   ;;  %s4217_s10 = inlined_call_operand.vmem [shape: f32[1,1,16], index: 10, kind: input, shape index: {}]   ;;  %s4218_s11 = inlined_call_operand.vmem [shape: f32[1,1,16], index: 11, kind: input, shape index: {}]   ;;  %s4219_s12 = inlined_call_operand.vmem [shape: f32[1,1,16], index: 12, kind: input, shape index: {}]   ;;  %s4220_s13 = inlined_call_operand.vmem [shape: f32[4,16,16], index: 13, kind: output, shape index: {}]  }
   0x1   :  { %s3584_s27 = smov 0  }
   0x2 LB: > { %s35_s28 = sadd.s32 1, %s3501_s26  ;;  %p2995_p0 = scmp.ge.s32.totalorder %s3505_s27, 1  ;;  %s3505_s27 = sphi %s3584_s27, %s23_s27   ;;  %s3501_s26 = sphi %s3582_s26, %s4232_s26   ;;  %s3497_s25 = sphi %s3580_s25, %s4231_s25  }
   0x3   : > { %p37_p1 = scmp.ge.s32.totalorder %s35_s28, 2  ;;  %p506_p2 = scmp.lt.s32.totalorder %s3505_s27, 3 }
   0x5   : > { %s4234_s28 = smov (%p37_p1, %s35_s28), 0  ;;  %p507_p3 = pnand %p2995_p0, %p506_p2 }
   0x6   : > { %v3340_v0 = vld [vmem:[%s4208_s1 + $0x4] ss:$48 sps:$4 sm:$0xff] (!%p507_p3)   ;;  %s2996_s14 = sshll.u32 (!%p507_p3), %s3497_s25, 1  ;;  %v3342_v1 = vld [vmem:[%s4208_s1] ss:$48 sps:$4 sm:$0xff] (!%p507_p3)   ;;  %v3507_v2 = vmov (!%p507_p3), 0   ;;  %v692_v24 = vlaneseq (!%p507_p3) }
   0x7   : > { %510 = sbr.rel (%p507_p3) target bundleno = 3943 (0xf67), region = 72  ;;  %851 = vmatprep.mubr.bf16.mxu0 (!%p507_p3), %v3507_v2  ;;  %p598_p4 = scmp.lt.s32.totalorder (!%p507_p3), %s2996_s14, 3  ;;  %914 = vmatprep.mubr.bf16.mxu1 (!%p507_p3), %v3507_v2  ;;  %v3345_v3 = vld [vmem:[%s4208_s1 + $0xc] ss:$48 sps:$4 sm:$0xff] (!%p507_p3)   ;;  %v3343_v4 = vld [vmem:[%s4208_s1 + $0x8] ss:$48 sps:$4 sm:$0xff] (!%p507_p3)  }
   0x8   : > { %819 = vmatprep.subr.bf16.mxu0 (!%p507_p3), %v3340_v0  ;;  %3311 = vmatprep.subr.bf16.mxu1 (!%p507_p3), %v3345_v3  ;;  %vm665_vm0 = vcmask (!%p507_p3), 130048   ;;  %v3348_v9 = vld [vmem:[%s4208_s1 + $0x14] ss:$48 sps:$4 sm:$0xff] (!%p507_p3)   ;;  %v3346_v16 = vld [vmem:[%s4208_s1 + $0x10] ss:$48 sps:$4 sm:$0xff] (!%p507_p3)   ;;  %v3508_v23 = vmov (!%p507_p3), 0.0  }
   0x9   : > { %820 = vmatpush1.bf16.msra.mxu0 (!%p507_p3), %v3342_v1  ;;  %3312 = vmatpush1.bf16.msra.mxu1 (!%p507_p3), %v3343_v4  ;;  %v3351_v17 = vld [vmem:[%s4208_s1 + $0x1c] ss:$48 sps:$4 sm:$0xff] (!%p507_p3)   ;;  %v3349_v18 = vld [vmem:[%s4208_s1 + $0x18] ss:$48 sps:$4 sm:$0xff] (!%p507_p3)   ;;  %v3354_v19 = vld [vmem:[%s4208_s1 + $0x24] ss:$48 sps:$4 sm:$0xff] (!%p507_p3)  }
   0xa   : > { %872 = vmatprep.subr.bf16.mxu0 (!%p507_p3), %v3345_v3  ;;  %978 = vmatprep.subr.bf16.mxu1 (!%p507_p3), %v3351_v17  ;;  %v3352_v20 = vld [vmem:[%s4208_s1 + $0x20] ss:$48 sps:$4 sm:$0xff] (!%p507_p3)   ;;  %v3357_v21 = vld [vmem:[%s4208_s1 + $0x2c] ss:$48 sps:$4 sm:$0xff] (!%p507_p3)   ;;  %v3355_v22 = vld [vmem:[%s4208_s1 + $0x28] ss:$48 sps:$4 sm:$0xff] (!%p507_p3)  }
   0xb   : > { %vm3509_vm1 = vmmov (!%p507_p3), 0   ;;  %v3684_v25 = vshrl.u32 (!%p507_p3), %v692_v24, 7  ;;  %v3690_v27 = vld [vmem:[%s4209_s2] sm:$0xff] (!%p507_p3) }
   0xd   : > { %v694_v26 = vsub.s32 (!%p507_p3), 0, %v3684_v25  ;;  %v698_v28 = vsub.s32 (!%p507_p3), 1, %v3684_v25  ;;  %v702_v29 = vsub.s32 (!%p507_p3), 2, %v3684_v25  ;;  %v706_v30 = vsub.s32 (!%p507_p3), 3, %v3684_v25 }
   0xe   : > { %s4236_s14 = smov (!%p598_p4, %s2996_s14), 3 }
   0xf   : > { %s3086_s21 = sshll.u32 %s4236_s14, 4  ;;  %v695_v31 = vrot.slane %v3690_v27, %v694_v26  ;;  %v699_v33 = vrot.slane %v3690_v27, %v698_v28  ;;  %v703_v35 = vrot.slane %v3690_v27, %v702_v29  ;;  %v707_v37 = vrot.slane %v3690_v27, %v706_v30 }
  0x10   : > { %s602_s24 = scalar_lea.vmem %s4207_s0, %s3086_s21  ;;  %s3618_s30 = scalar_lea.vmem %s4220_s13, %s3086_s21 }
  0x11   : > { %v661_v5 = vld [vmem:[%s602_s24] sm:$0xff]  ;;  %v662_v6 = vld [vmem:[%s602_s24 + $0x8] sm:$0xff]  ;;  %v663_v7 = vld [vmem:[%s602_s24 + $0x10] sm:$0xff] }
  0x12   : > { %v664_v8 = vld [vmem:[%s602_s24 + $0x18] sm:$0xff]  ;;  %666 = vst.msk [vmem:[%s3618_s30] sm:$0xff] %vm665_vm0, %v661_v5  ;;  %667 = vst.msk [vmem:[%s3618_s30 + $0x8] sm:$0xff] %vm665_vm0, %v662_v6 }
  0x13   : > { %668 = vst.msk [vmem:[%s3618_s30 + $0x10] sm:$0xff] %vm665_vm0, %v663_v7  ;;  %669 = vst.msk [vmem:[%s3618_s30 + $0x18] sm:$0xff] %vm665_vm0, %v664_v8  ;;  %v710_v7 = vsub.s32 4, %v3684_v25 }
  0x19   : > { %v670_v10 = vld [vmem:[%s3618_s30] sm:$0xff]  ;;  %v671_v11 = vld [vmem:[%s3618_s30 + $0x8] sm:$0xff] }
  0x1a   : > { %v672_v12 = vld [vmem:[%s3618_s30 + $0x10] sm:$0xff]  ;;  %v674_v13 = vpack.c.bf16 %v671_v11, %v670_v10  ;;  %v673_v14 = vld [vmem:[%s3618_s30 + $0x18] sm:$0xff]  ;;  %v714_v10 = vsub.s32 5, %v3684_v25 }
  0x1b   : > { %v675_v15 = vpack.c.bf16 %v673_v14, %v672_v12 }
  0x1c   : > { %3014 = vmatmul.mubr.msk.bf16.vlgmr.msra.gmra.mrb[0].mxu0 %vm665_vm0, %v674_v13 }
  0x1d   : > { %861 = vmatprep.mubr.bf16.mxu0 %v3507_v2  ;;  %873 = vmatpush1.bf16.msra.mxu0 %v3343_v4 }
  0x1e   : > { %925 = vmatprep.subr.bf16.mxu0 %v3348_v9  ;;  %3017 = vmatmul.mubr.msk.bf16.vlgmr.msra.gmra.mrb[0].mxu1 %vm665_vm0, %v675_v15 }
  0x1f   : > { %1010 = vmatprep.mubr.bf16.mxu1 %v3507_v2  ;;  %979 = vmatpush1.bf16.msra.mxu1 %v3349_v18 }
  0x20   : > { %1084 = vmatprep.subr.bf16.mxu1 %v3357_v21 }
  0x24   : > { %3015 = vmatmul.mubr.msk.bf16.gmra.mrb[4].mxu0 %vm665_vm0, %v675_v15 }
  0x25   : > { %904 = vmatprep.mubr.bf16.mxu0 %v3507_v2 }
  0x26   : > { %3020 = vmatmul.mubr.msk.bf16.vlgmr.msra.gmra.mrb[4].mxu1 %vm665_vm0, %v674_v13 }
  0x27   : > { %1020 = vmatprep.mubr.bf16.mxu1 %v3507_v2  ;;  %1085 = vmatpush1.bf16.msra.mxu1 %v3355_v22 }
  0x28   : > { %3195 = vmatprep.subr.bf16.mxu1 %v3508_v23 }
  0x2c   : > { %3016 = vmatmul.mubr.msk.bf16.vlgmr.msra.gmra.mrb[8].mxu0 %vm665_vm0, %v674_v13 }
  0x2d   : > { %926 = vmatpush1.bf16.msra.mxu0 %v3346_v16  ;;  %957 = vmatprep.mubr.bf16.mxu0 %v3507_v2 }
  0x2e   : > { %1031 = vmatprep.subr.bf16.mxu0 %v3354_v19  ;;  %3021 = vmatmul.mubr.msk.bf16.gmra.mrb[8].mxu1 %vm665_vm0, %v675_v15 }
  0x2f   : > { %1116 = vmatprep.mubr.bf16.mxu1 %v3507_v2 }
  0x34   : > { %3018 = vmatmul.mubr.msk.bf16.vlgmr.msra.gmra.mrb[12].mxu0 %vm665_vm0, %v674_v13 }
  0x35   : > { %967 = vmatprep.mubr.bf16.mxu0 %v3507_v2  ;;  %1032 = vmatpush1.bf16.msra.mxu0 %v3352_v20 }
  0x36   : > { %3024 = vmatmul.mubr.msk.bf16.vlgmr.msra.gmra.mrb[12].mxu1 %vm665_vm0, %v674_v13  ;;  %3189 = vmatprep.subr.bf16.mxu0 %v3508_v23 }
  0x37   : > { %1126 = vmatprep.mubr.bf16.mxu1 %v3507_v2 }
  0x3c   : > { %3019 = vmatmul.mubr.msk.bf16.gmra.mrb[16].mxu0 %vm665_vm0, %v675_v15 }
  0x3d   : > { %1063 = vmatprep.mubr.bf16.mxu0 %v3507_v2 }
  0x3e   : > { %3025 = vmatmul.mubr.msk.bf16.gmra.mrb[16].mxu1 %vm665_vm0, %v675_v15 }
  0x3f   : > { %3197 = vmatprep.mubr.msk.bf16.mxu1 %vm3509_vm1, %v3508_v23 }
  0x44   : > { %3022 = vmatmul.mubr.msk.bf16.vlgmr.msra.gmra.mrb[20].mxu0 %vm665_vm0, %v674_v13  ;;  %v711_v13 = vrot.slane %v3690_v27, %v710_v7 }
  0x45   : > { %1073 = vmatprep.mubr.bf16.mxu0 %v3507_v2 }
  0x4c   : > { %3023 = vmatmul.mubr.msk.bf16.gmra.mrb[24].mxu0 %vm665_vm0, %v675_v15  ;;  %v715_v15 = vrot.slane %v3690_v27, %v714_v10 }
  0x4d   : > { %3191 = vmatprep.mubr.msk.bf16.mxu0 %vm3509_vm1, %v3508_v23 }
  0xef   : > { %v853_v32 = vpop.f32.mrb[0].mxu0 }
  0xf0   : > { %v855_v34 = vpop.f32.mrb[1].mxu0  ;;  %v854_v39 = vadd.f32 %v853_v32, %v695_v31 }
  0xf1   : > { %v857_v36 = vpop.f32.mrb[2].mxu0  ;;  %v916_v38 = vpop.f32.mrb[0].mxu1  ;;  %v3709_v44 = vadd.f32 %v855_v34, %v699_v33 }
  0xf2   : > { %v858_v40 = vadd.f32 %v857_v36, %v695_v31  ;;  %v859_v41 = vpop.f32.mrb[3].mxu0  ;;  %v3707_v42 = vadd.f32 %v916_v38, %v703_v35  ;;  %v918_v43 = vpop.f32.mrb[1].mxu1 }
  0xf3   : > { %v3711_v45 = vadd.f32 %v859_v41, %v699_v33  ;;  %v3713_v46 = vadd.f32 %v918_v43, %v707_v37  ;;  %v920_v47 = vpop.f32.mrb[2].mxu1  ;;  %v718_v43 = vsub.s32 6, %v3684_v25 }
  0xf4   : > { %v1137_v48 = vpack.c.bf16 %v858_v40, %v854_v39  ;;  %v3715_v49 = vadd.f32 %v920_v47, %v703_v35  ;;  %v922_v50 = vpop.f32.mrb[3].mxu1  ;;  %v722_v47 = vsub.s32 7, %v3684_v25 }
  0xf5   : > { %v1359_v51 = vpack.c.bf16 %v3711_v45, %v3709_v44  ;;  %v3719_v52 = vadd.f32 %v922_v50, %v707_v37  ;;  %v719_v50 = vrot.slane %v3690_v27, %v718_v43 }
  0xf7   : > { %v863_v54 = vpop.f32.mrb[4].mxu0 }
  0xf8   : > { %v865_v56 = vpop.f32.mrb[5].mxu0  ;;  %v864_v58 = vadd.f32 %v863_v54, %v695_v31  ;;  %v723_v54 = vrot.slane %v3690_v27, %v722_v47 }
  0xf9   : > { %v867_v57 = vpop.f32.mrb[6].mxu0  ;;  %v3725_v61 = vadd.f32 %v865_v56, %v699_v33  ;;  %v1012_v56 = vpop.f32.mrb[4].mxu1 }
  0xfa   : > { %v868_v59 = vadd.f32 %v867_v57, %v695_v31  ;;  %v869_v60 = vpop.f32.mrb[7].mxu0  ;;  %v1014_v57 = vpop.f32.mrb[5].mxu1 }
  0xfb   : > { %v3727_v62 = vadd.f32 %v869_v60, %v699_v33  ;;  %v689_v60 = vld [vmem:[%s4209_s2 + $0x8] sm:$0xf] }
  0xfc   : > { %v1138_v63 = vpack.c.bf16 %v868_v59, %v864_v58  ;;  %v3771_v58 = vadd.f32 %v1014_v57, %v723_v54  ;;  %v1016_v59 = vpop.f32.mrb[6].mxu1  ;;  %v727_v27 = vrot.slane %v689_v60, %v694_v26  ;;  %v731_v7 = vrot.slane %v689_v60, %v698_v28 }
  0xfd   : > { %v1360_v0 = vpack.c.bf16 %v3727_v62, %v3725_v61 }
  0xff   : > { %v906_v1 = vpop.f32.mrb[8].mxu0 }
 0x100   : > { %v908_v2 = vpop.f32.mrb[9].mxu0  ;;  %v3731_v4 = vadd.f32 %v906_v1, %v703_v35  ;;  %v1018_v1 = vpop.f32.mrb[7].mxu1 }
 0x101   : > { %v910_v3 = vpop.f32.mrb[10].mxu0  ;;  %v3736_v8 = vadd.f32 %v908_v2, %v707_v37  ;;  %v3778_v2 = vadd.f32 %v1018_v1, %v723_v54  ;;  %v1022_v10 = vpop.f32.mrb[8].mxu1 }
 0x102   : > { %v3733_v5 = vadd.f32 %v910_v3, %v703_v35  ;;  %v912_v6 = vpop.f32.mrb[11].mxu0 }
 0x103   : > { %v3738_v9 = vadd.f32 %v912_v6, %v707_v37 }
 0x104   : > { %v1581_v11 = vpack.c.bf16 %v3733_v5, %v3731_v4  ;;  %v4223_v4 = vpack.c.bf16 %v3715_v49, %v3707_v42 }
 0x107   : > { %v959_v14 = vpop.f32.mrb[12].mxu0 }
 0x108   : > { %v961_v16 = vpop.f32.mrb[13].mxu0  ;;  %v960_v18 = vadd.f32 %v959_v14, %v711_v13  ;;  %v3788_v14 = vadd.f32 %v1022_v10, %v719_v50 }
 0x109   : > { %v963_v17 = vpop.f32.mrb[14].mxu0  ;;  %v3747_v21 = vadd.f32 %v961_v16, %v715_v15  ;;  %v1024_v16 = vpop.f32.mrb[9].mxu1 }
 0x10a   : > { %v964_v19 = vadd.f32 %v963_v17, %v711_v13  ;;  %v965_v20 = vpop.f32.mrb[15].mxu0 }
 0x10b   : > { %v3749_v22 = vadd.f32 %v965_v20, %v715_v15  ;;  %v1026_v20 = vpop.f32.mrb[10].mxu1 }
 0x10c   : > { %v1139_v24 = vpack.c.bf16 %v964_v19, %v960_v18  ;;  %v3790_v18 = vadd.f32 %v1024_v16, %v723_v54  ;;  %v3794_v26 = vadd.f32 %v1026_v20, %v719_v50 }
 0x10d   : > { %v1361_v31 = vpack.c.bf16 %v3749_v22, %v3747_v21 }
 0x10e   : > { %3190 = vmatpush3.bf16.xpose.msra.mxu0 %v1139_v24 }
 0x10f   : > { %v969_v32 = vpop.f32.mrb[16].mxu0  ;;  %3201 = vmatprep.subr.bf16.mxu0 %v3508_v23 }
 0x110   : > { %v971_v33 = vpop.f32.mrb[17].mxu0  ;;  %v970_v35 = vadd.f32 %v969_v32, %v711_v13 }
 0x111   : > { %v973_v34 = vpop.f32.mrb[18].mxu0  ;;  %v3754_v38 = vadd.f32 %v971_v33, %v715_v15  ;;  %v1028_v33 = vpop.f32.mrb[11].mxu1 }
 0x112   : > { %v974_v36 = vadd.f32 %v973_v34, %v711_v13  ;;  %v975_v37 = vpop.f32.mrb[19].mxu0 }
 0x113   : > { %v3756_v39 = vadd.f32 %v975_v37, %v715_v15 }
 0x114   : > { %v1140_v40 = vpack.c.bf16 %v974_v36, %v970_v35  ;;  %v3796_v35 = vadd.f32 %v1028_v33, %v723_v54 }
 0x115   : > { %v1362_v41 = vpack.c.bf16 %v3756_v39, %v3754_v38  ;;  %3192 = vmatmul.mubr.bf16.vlgmr.msra.gmra.mrb[28].mxu0 %v1137_v48  ;;  %v3769_v48 = vadd.f32 %v1012_v56, %v719_v50  ;;  %v1118_v56 = vpop.f32.mrb[12].mxu1 }
 0x116   : > { %3196 = vmatpush3.bf16.xpose.msra.mxu1 %v1140_v40  ;;  %3203 = vmatprep.mubr.msk.bf16.mxu0 %vm3509_vm1, %v3508_v23  ;;  %v735_v40 = vrot.slane %v689_v60, %v702_v29  ;;  %v1120_v10 = vpop.f32.mrb[13].mxu1 }
 0x117   : > { %3207 = vmatprep.subr.bf16.mxu1 %v3508_v23  ;;  %v1065_v13 = vpop.f32.mrb[20].mxu0  ;;  %v1122_v16 = vpop.f32.mrb[14].mxu1 }
 0x118   : > { %v1066_v15 = vadd.f32 %v1065_v13, %v727_v27  ;;  %v1067_v17 = vpop.f32.mrb[21].mxu0  ;;  %v3811_v1 = vadd.f32 %v1118_v56, %v735_v40  ;;  %v3817_v25 = vadd.f32 %v1122_v16, %v735_v40 }
 0x119   : > { %v3792_v19 = vadd.f32 %v1067_v17, %v731_v7  ;;  %v1069_v24 = vpop.f32.mrb[22].mxu0 }
 0x11a   : > { %v1070_v32 = vadd.f32 %v1069_v24, %v727_v27  ;;  %v1071_v34 = vpop.f32.mrb[23].mxu0 }
 0x11b   : > { %v3798_v28 = vadd.f32 %v1071_v34, %v731_v7 }
 0x11c   : > { %v1269_v37 = vpack.c.bf16 %v1070_v32, %v1066_v15 }
 0x11d   : > { %3198 = vmatmul.mubr.bf16.vlgmr.msra.gmra.mrb[20].mxu1 %v1138_v63  ;;  %v3776_v63 = vadd.f32 %v1016_v59, %v719_v50  ;;  %v1491_v47 = vpack.c.bf16 %v3798_v28, %v3792_v19  ;;  %v739_v50 = vrot.slane %v689_v60, %v706_v30  ;;  %v1124_v30 = vpop.f32.mrb[15].mxu1 }
 0x11e   : > { %3209 = vmatprep.mubr.msk.bf16.mxu1 %vm3509_vm1, %v3508_v23  ;;  %3202 = vmatpush3.bf16.msra.mxu0 %v1269_v37 }
 0x11f   : > { %v1583_v3 = vpack.c.bf16 %v3776_v63, %v3769_v48  ;;  %v1075_v54 = vpop.f32.mrb[24].mxu0  ;;  %3213 = vmatprep.subr.bf16.mxu0 %v3508_v23  ;;  %v3815_v15 = vadd.f32 %v1120_v10, %v739_v50  ;;  %v3821_v24 = vadd.f32 %v1124_v30, %v739_v50  ;;  %v4222_v48 = vpack.c.bf16 %v3817_v25, %v3811_v1 }
 0x120   : > { %v1076_v57 = vadd.f32 %v1075_v54, %v727_v27  ;;  %v1077_v59 = vpop.f32.mrb[25].mxu0 }
 0x121   : > { %v3813_v29 = vadd.f32 %v1077_v59, %v731_v7  ;;  %v1079_v13 = vpop.f32.mrb[26].mxu0 }
 0x122   : > { %v1080_v17 = vadd.f32 %v1079_v13, %v727_v27  ;;  %v1081_v20 = vpop.f32.mrb[27].mxu0  ;;  %v1128_v27 = vpop.f32.mrb[16].mxu1 }
 0x123   : > { %v3819_v60 = vadd.f32 %v1081_v20, %v731_v7  ;;  %v1130_v54 = vpop.f32.mrb[17].mxu1  ;;  %v3830_v59 = vadd.f32 %v1128_v27, %v735_v40 }
 0x124   : > { %v1270_v32 = vpack.c.bf16 %v1080_v17, %v1076_v57  ;;  %v1132_v56 = vpop.f32.mrb[18].mxu1  ;;  %v3832_v10 = vadd.f32 %v1130_v54, %v739_v50 }
 0x125   : > { %v1492_v34 = vpack.c.bf16 %v3819_v60, %v3813_v29  ;;  %v1134_v7 = vpop.f32.mrb[19].mxu1  ;;  %v3834_v57 = vadd.f32 %v1132_v56, %v735_v40 }
 0x126   : > { %3208 = vmatpush3.bf16.msra.mxu1 %v1270_v32  ;;  %v3836_v13 = vadd.f32 %v1134_v7, %v739_v50 }
 0x127   : > { %3219 = vmatprep.subr.bf16.mxu1 %v3508_v23  ;;  %v4224_v5 = vpack.c.bf16 %v3834_v57, %v3830_v59 }
 0x1e8   : > { %v1175_v20 = vpop.f32.mrb[28].mxu0 }
 0x1e9   : > { %v3193_v30 = vpop.f32.mrb[29].mxu0  ;;  %v1223_v32 = vsel %vm665_vm0, %v1175_v20, -inf }
 0x1ea   : > { %1224 = vmax.xlane.f32.xlu0 %v1223_v32  ;;  %v1178_v55 = vpop.f32.mrb[30].mxu0 }
 0x1eb   : > { %v3194_v27 = vpop.f32.mrb[31].mxu0  ;;  %v1226_v54 = vsel %vm665_vm0, %v1178_v55, -inf }
 0x1ee   : > { %1227 = vmax.xlane.f32.xlu0 %v1226_v54 }
 0x1f0   : > { %v1216_v40 = vpop.f32.mrb[20].mxu1 }
 0x1f1   : > { %v3199_v56 = vpop.f32.mrb[21].mxu1  ;;  %v1229_v50 = vsel %vm665_vm0, %v1216_v40, -inf }
 0x1f2   : > { %1230 = vmax.xlane.f32.xlu1 %v1229_v50  ;;  %v1219_v7 = vpop.f32.mrb[22].mxu1 }
 0x1f3   : > { %v3200_v37 = vpop.f32.mrb[23].mxu1  ;;  %v1232_v43 = vsel %vm665_vm0, %v1219_v7, -inf }
 0x1f6   : > { %1233 = vmax.xlane.f32.xlu1 %v1232_v43 }
 0x277   : > { %v1225_v17 = vpop.xlane.xlu0 %1224 }
 0x278   : > { %v1235_v30 = vsub.f32 %v1175_v20, %v1225_v17 }
 0x27a   : > { %v1239_v12 = vmul.f32 1.442695, %v1235_v30 }
 0x27b   : > { %v1228_v6 = vpop.xlane.xlu0 %1227 }
 0x27c   : > { %3399 = vpow2.f32 %v1239_v12  ;;  %v1236_v32 = vsub.f32 %v1178_v55, %v1228_v6 }
 0x27e   : > { %v1241_v27 = vmul.f32 1.442695, %v1236_v32 }
 0x27f   : > { %v1231_v16 = vpop.xlane.xlu1 %1230 }
 0x280   : > { %3401 = vpow2.f32 %v1241_v27  ;;  %v1237_v54 = vsub.f32 %v1216_v40, %v1231_v16 }
 0x282   : > { %v1243_v53 = vmul.f32 1.442695, %v1237_v54 }
 0x283   : > { %v1234_v56 = vpop.xlane.xlu1 %1233 }
 0x284   : > { %3403 = vpow2.f32 %v1243_v53  ;;  %v1238_v33 = vsub.f32 %v1219_v7, %v1234_v56 }
 0x286   : > { %v3400_v50 = vpop.eup %3399  ;;  %v1245_v36 = vmul.f32 1.442695, %v1238_v33 }
 0x287   : > { %v1247_v37 = vsel %vm665_vm0, %v3400_v50, 0.0 }
 0x288   : > { %3405 = vpow2.f32 %v1245_v36  ;;  %1248 = vadd.xlane.f32.xlu0 %v1247_v37 }
 0x28a   : > { %v3402_v43 = vpop.eup %3401 }
 0x28b   : > { %v1250_v17 = vsel %vm665_vm0, %v3402_v43, 0.0 }
 0x28c   : > { %1251 = vadd.xlane.f32.xlu1 %v1250_v17 }
 0x28e   : > { %v3404_v12 = vpop.eup %3403 }
 0x28f   : > { %v1253_v55 = vsel %vm665_vm0, %v3404_v12, 0.0 }
 0x290   : > { %1254 = vadd.xlane.f32.xlu0 %v1253_v55 }
 0x292   : > { %v3406_v6 = vpop.eup %3405 }
 0x293   : > { %v1256_v16 = vsel %vm665_vm0, %v3406_v6, 0.0 }
 0x294   : > { %1257 = vadd.xlane.f32.xlu1 %v1256_v16 }
 0x315   : > { %v1249_v53 = vpop.xlane.xlu0 %1248 }
 0x316   : > { %3407 = vrcp.f32 %v1249_v53 }
 0x319   : > { %v1252_v20 = vpop.xlane.xlu1 %1251 }
 0x31a   : > { %3409 = vrcp.f32 %v1252_v20 }
 0x31d   : > { %v1255_v33 = vpop.xlane.xlu0 %1254 }
 0x31e   : > { %3411 = vrcp.f32 %v1255_v33 }
 0x320   : > { %v3408_v40 = vpop.eup %3407 }
 0x321   : > { %v1258_v36 = vpop.xlane.xlu1 %1257  ;;  %v1263_v30 = vmul.f32 %v3408_v40, %v3400_v50 }
 0x322   : > { %3413 = vrcp.f32 %v1258_v36 }
 0x324   : > { %v3410_v7 = vpop.eup %3409 }
 0x325   : > { %v1264_v32 = vmul.f32 %v3410_v7, %v3402_v43 }
 0x327   : > { %v1267_v27 = vpack.c.bf16 %v1264_v32, %v1263_v30 }
 0x328   : > { %v3412_v54 = vpop.eup %3411 }
 0x329   : > { %3204 = vmatmul.mubr.msk.bf16.vlgmr.msra.gmra.mrb[32].mxu0 %vm665_vm0, %v1267_v27  ;;  %v1265_v37 = vmul.f32 %v3412_v54, %v3404_v12 }
 0x32a   : > { %3214 = vmatpush3.bf16.xpose.msra.mxu0 %v1361_v31  ;;  %3215 = vmatprep.mubr.msk.bf16.mxu0 %vm3509_vm1, %v3508_v23 }
 0x32b   : > { %3225 = vmatprep.subr.bf16.mxu0 %v3508_v23 }
 0x32c   : > { %v3414_v56 = vpop.eup %3413 }
 0x32d   : > { %v1266_v17 = vmul.f32 %v3414_v56, %v3406_v6 }
 0x32f   : > { %v1268_v55 = vpack.c.bf16 %v1266_v17, %v1265_v37 }
 0x331   : > { %3210 = vmatmul.mubr.msk.bf16.vlgmr.msra.gmra.mrb[24].mxu1 %vm665_vm0, %v1268_v55  ;;  %3216 = vmatmul.mubr.bf16.vlgmr.msra.gmra.mrb[36].mxu0 %v1359_v51 }
 0x332   : > { %3220 = vmatpush3.bf16.xpose.msra.mxu1 %v1362_v41  ;;  %3226 = vmatpush3.bf16.msra.mxu0 %v1491_v47 }
 0x333   : > { %3221 = vmatprep.mubr.msk.bf16.mxu1 %vm3509_vm1, %v3508_v23  ;;  %3231 = vmatprep.subr.bf16.mxu1 %v3508_v23 }
 0x334   : > { %3227 = vmatprep.mubr.msk.bf16.mxu0 %vm3509_vm1, %v3508_v23  ;;  %3237 = vmatprep.subr.bf16.mxu0 %v3508_v23 }
 0x339   : > { %3222 = vmatmul.mubr.bf16.vlgmr.msra.gmra.mrb[28].mxu1 %v1360_v0 }
 0x33a   : > { %3232 = vmatpush3.bf16.msra.mxu1 %v1492_v34  ;;  %3233 = vmatprep.mubr.msk.bf16.mxu1 %vm3509_vm1, %v3508_v23 }
 0x33b   : > { %3243 = vmatprep.subr.bf16.mxu1 %v3508_v23 }
 0x3fc   : > { %v3882_v44 = vpop.f32.mrb[32].mxu0 }
 0x3fd   : > { %v3205_v45 = vpop.f32.mrb[33].mxu0 }
 0x3fe   : > { %v3884_v51 = vpop.f32.mrb[34].mxu0 }
 0x3ff   : > { %v2025_v21 = vpack.c.bf16 %v3884_v51, %v3882_v44  ;;  %v3206_v22 = vpop.f32.mrb[35].mxu0 }
 0x404   : > { %v3888_v61 = vpop.f32.mrb[24].mxu1  ;;  %v1397_v62 = vpop.f32.mrb[36].mxu0 }
 0x405   : > { %v3211_v0 = vpop.f32.mrb[25].mxu1  ;;  %v3217_v31 = vpop.f32.mrb[37].mxu0  ;;  %v1445_v38 = vsel %vm665_vm0, %v1397_v62, -inf }
 0x406   : > { %v3891_v39 = vpop.f32.mrb[26].mxu1  ;;  %1446 = vmax.xlane.f32.xlu0 %v1445_v38  ;;  %v1400_v41 = vpop.f32.mrb[38].mxu0 }
 0x407   : > { %v2029_v19 = vpack.c.bf16 %v3891_v39, %v3888_v61  ;;  %v3212_v28 = vpop.f32.mrb[27].mxu1  ;;  %v3218_v47 = vpop.f32.mrb[39].mxu0  ;;  %v1448_v29 = vsel %vm665_vm0, %v1400_v41, -inf }
 0x408   : > { %1449 = vmax.xlane.f32.xlu1 %v1448_v29 }
 0x40c   : > { %v1438_v60 = vpop.f32.mrb[28].mxu1 }
 0x40d   : > { %v3223_v34 = vpop.f32.mrb[29].mxu1  ;;  %v1451_v50 = vsel %vm665_vm0, %v1438_v60, -inf }
 0x40e   : > { %v1441_v43 = vpop.f32.mrb[30].mxu1  ;;  %1452 = vmax.xlane.f32.xlu0 %v1451_v50 }
 0x40f   : > { %v3224_v12 = vpop.f32.mrb[31].mxu1  ;;  %v1454_v6 = vsel %vm665_vm0, %v1441_v43, -inf }
 0x410   : > { %1455 = vmax.xlane.f32.xlu1 %v1454_v6 }
 0x493   : > { %v1447_v16 = vpop.xlane.xlu0 %1446 }
 0x494   : > { %v1457_v53 = vsub.f32 %v1397_v62, %v1447_v16 }
 0x495   : > { %v1450_v20 = vpop.xlane.xlu1 %1449 }
 0x496   : > { %v1461_v33 = vmul.f32 1.442695, %v1457_v53  ;;  %v1458_v36 = vsub.f32 %v1400_v41, %v1450_v20 }
 0x498   : > { %3415 = vpow2.f32 %v1461_v33  ;;  %v1463_v40 = vmul.f32 1.442695, %v1458_v36  ;;  %v4221_v33 = vpack.c.bf16 %v3794_v26, %v3788_v14 }
 0x49a   : > { %3417 = vpow2.f32 %v1463_v40 }
 0x49b   : > { %v1453_v7 = vpop.xlane.xlu0 %1452 }
 0x49c   : > { %v1459_v30 = vsub.f32 %v1438_v60, %v1453_v7 }
 0x49d   : > { %v1456_v32 = vpop.xlane.xlu1 %1455 }
 0x49e   : > { %v1465_v27 = vmul.f32 1.442695, %v1459_v30  ;;  %v1460_v54 = vsub.f32 %v1441_v43, %v1456_v32 }
 0x4a0   : > { %3419 = vpow2.f32 %v1465_v27  ;;  %v1467_v56 = vmul.f32 1.442695, %v1460_v54 }
 0x4a2   : > { %v3416_v37 = vpop.eup %3415  ;;  %3421 = vpow2.f32 %v1467_v56 }
 0x4a3   : > { %v1469_v17 = vsel %vm665_vm0, %v3416_v37, 0.0 }
 0x4a4   : > { %v3418_v55 = vpop.eup %3417  ;;  %1470 = vadd.xlane.f32.xlu0 %v1469_v17 }
 0x4a5   : > { %v1472_v45 = vsel %vm665_vm0, %v3418_v55, 0.0 }
 0x4a6   : > { %1473 = vadd.xlane.f32.xlu1 %v1472_v45 }
 0x4aa   : > { %v3420_v22 = vpop.eup %3419 }
 0x4ab   : > { %v1475_v62 = vsel %vm665_vm0, %v3420_v22, 0.0 }
 0x4ac   : > { %v3422_v0 = vpop.eup %3421  ;;  %1476 = vadd.xlane.f32.xlu0 %v1475_v62 }
 0x4ad   : > { %v1478_v31 = vsel %vm665_vm0, %v3422_v0, 0.0 }
 0x4ae   : > { %1479 = vadd.xlane.f32.xlu1 %v1478_v31 }
 0x531   : > { %v1471_v38 = vpop.xlane.xlu0 %1470 }
 0x532   : > { %3423 = vrcp.f32 %v1471_v38 }
 0x533   : > { %v1474_v41 = vpop.xlane.xlu1 %1473 }
 0x534   : > { %3425 = vrcp.f32 %v1474_v41 }
 0x539   : > { %v1477_v28 = vpop.xlane.xlu0 %1476 }
 0x53a   : > { %3427 = vrcp.f32 %v1477_v28 }
 0x53b   : > { %v1480_v47 = vpop.xlane.xlu1 %1479 }
 0x53c   : > { %v3424_v29 = vpop.eup %3423  ;;  %3429 = vrcp.f32 %v1480_v47 }
 0x53d   : > { %v1485_v34 = vmul.f32 %v3424_v29, %v3416_v37 }
 0x53e   : > { %v3426_v60 = vpop.eup %3425 }
 0x53f   : > { %v1486_v50 = vmul.f32 %v3426_v60, %v3418_v55 }
 0x541   : > { %v1489_v43 = vpack.c.bf16 %v1486_v50, %v1485_v34 }
 0x543   : > { %3228 = vmatmul.mubr.msk.bf16.vlgmr.msra.gmra.mrb[40].mxu0 %vm665_vm0, %v1489_v43 }
 0x544   : > { %v3428_v12 = vpop.eup %3427  ;;  %3238 = vmatpush3.bf16.xpose.msra.mxu0 %v1583_v3  ;;  %3239 = vmatprep.mubr.msk.bf16.mxu0 %vm3509_vm1, %v3508_v23 }
 0x545   : > { %3249 = vmatprep.subr.bf16.mxu0 %v3508_v23  ;;  %v1487_v16 = vmul.f32 %v3428_v12, %v3420_v22 }
 0x546   : > { %v3430_v6 = vpop.eup %3429 }
 0x547   : > { %v1488_v53 = vmul.f32 %v3430_v6, %v3422_v0 }
 0x549   : > { %v1490_v20 = vpack.c.bf16 %v1488_v53, %v1487_v16 }
 0x54b   : > { %3234 = vmatmul.mubr.msk.bf16.vlgmr.msra.gmra.mrb[32].mxu1 %vm665_vm0, %v1490_v20  ;;  %3240 = vmatmul.mubr.bf16.vlgmr.msra.gmra.mrb[44].mxu0 %v1581_v11 }
 0x54c   : > { %3244 = vmatpush3.bf16.xpose.msra.mxu1 %v4221_v33  ;;  %3250 = vmatpush3.bf16.msra.mxu0 %v4222_v48 }
 0x54d   : > { %3245 = vmatprep.mubr.msk.bf16.mxu1 %vm3509_vm1, %v3508_v23  ;;  %3255 = vmatprep.subr.bf16.mxu1 %v3508_v23 }
 0x54e   : > { %3251 = vmatprep.mubr.msk.bf16.mxu0 %vm3509_vm1, %v3508_v23  ;;  %3261 = vmatprep.subr.bf16.mxu0 %v3508_v23 }
 0x553   : > { %3246 = vmatmul.mubr.bf16.vlgmr.msra.gmra.mrb[36].mxu1 %v4223_v4 }
 0x554   : > { %3256 = vmatpush3.bf16.msra.mxu1 %v4224_v5  ;;  %3257 = vmatprep.mubr.msk.bf16.mxu1 %vm3509_vm1, %v3508_v23 }
 0x555   : > { %3267 = vmatprep.subr.bf16.mxu1 %v3508_v23 }
 0x616   : > { %v3934_v11 = vpop.f32.mrb[40].mxu0 }
 0x617   : > { %v3229_v63 = vpop.f32.mrb[41].mxu0 }
 0x618   : > { %v3936_v3 = vpop.f32.mrb[42].mxu0 }
 0x619   : > { %v2026_v14 = vpack.c.bf16 %v3936_v3, %v3934_v11  ;;  %v3230_v26 = vpop.f32.mrb[43].mxu0  ;;  %v3375_v11 = vld [vmem:[%s4210_s3 + $0x80] sm:$0xff]  }
 0x61e   : > { %v3940_v42 = vpop.f32.mrb[32].mxu1  ;;  %v1619_v49 = vpop.f32.mrb[44].mxu0 }
 0x61f   : > { %v3235_v1 = vpop.f32.mrb[33].mxu1  ;;  %v3241_v25 = vpop.f32.mrb[45].mxu0  ;;  %v1667_v59 = vsel %vm665_vm0, %v1619_v49, -inf }
 0x620   : > { %v3943_v57 = vpop.f32.mrb[34].mxu1  ;;  %1668 = vmax.xlane.f32.xlu0 %v1667_v59  ;;  %v1622_v36 = vpop.f32.mrb[46].mxu0 }
 0x621   : > { %v2030_v40 = vpack.c.bf16 %v3943_v57, %v3940_v42  ;;  %v3236_v7 = vpop.f32.mrb[35].mxu1  ;;  %v3242_v30 = vpop.f32.mrb[47].mxu0  ;;  %v1670_v32 = vsel %vm665_vm0, %v1622_v36, -inf }
 0x622   : > { %1671 = vmax.xlane.f32.xlu1 %v1670_v32  ;;  %v4225_v7 = vpack.c.bf16 %v3778_v2, %v3771_v58  ;;  %v4228_v58 = vpack.c.bf16 %v3821_v24, %v3815_v15 }
 0x626   : > { %v1660_v27 = vpop.f32.mrb[36].mxu1 }
 0x627   : > { %v3247_v54 = vpop.f32.mrb[37].mxu1  ;;  %v1673_v56 = vsel %vm665_vm0, %v1660_v27, -inf }
 0x628   : > { %v1663_v37 = vpop.f32.mrb[38].mxu1  ;;  %1674 = vmax.xlane.f32.xlu0 %v1673_v56  ;;  %v4226_v56 = vpack.c.bf16 %v3738_v9, %v3736_v8  ;;  %v4229_v8 = vpack.c.bf16 %v3719_v52, %v3713_v46  ;;  %v4230_v9 = vpack.c.bf16 %v3836_v13, %v3832_v10 }
 0x629   : > { %v3248_v17 = vpop.f32.mrb[39].mxu1  ;;  %v1676_v55 = vsel %vm665_vm0, %v1663_v37, -inf }
 0x62a   : > { %1677 = vmax.xlane.f32.xlu1 %v1676_v55 }
 0x6ad   : > { %v1669_v45 = vpop.xlane.xlu0 %1668 }
 0x6ae   : > { %v1679_v22 = vsub.f32 %v1619_v49, %v1669_v45 }
 0x6af   : > { %v1672_v62 = vpop.xlane.xlu1 %1671 }
 0x6b0   : > { %v1683_v0 = vmul.f32 1.442695, %v1679_v22  ;;  %v1680_v31 = vsub.f32 %v1622_v36, %v1672_v62 }
 0x6b2   : > { %3431 = vpow2.f32 %v1683_v0  ;;  %v1685_v38 = vmul.f32 1.442695, %v1680_v31 }
 0x6b4   : > { %3433 = vpow2.f32 %v1685_v38 }
 0x6b5   : > { %v1675_v41 = vpop.xlane.xlu0 %1674 }
 0x6b6   : > { %v1681_v28 = vsub.f32 %v1660_v27, %v1675_v41 }
 0x6b7   : > { %v1678_v47 = vpop.xlane.xlu1 %1677 }
 0x6b8   : > { %v1687_v29 = vmul.f32 1.442695, %v1681_v28  ;;  %v1682_v60 = vsub.f32 %v1663_v37, %v1678_v47  ;;  %v4227_v37 = vpack.c.bf16 %v3796_v35, %v3790_v18 }
 0x6ba   : > { %3435 = vpow2.f32 %v1687_v29  ;;  %v1689_v34 = vmul.f32 1.442695, %v1682_v60 }
 0x6bc   : > { %v3432_v50 = vpop.eup %3431  ;;  %3437 = vpow2.f32 %v1689_v34 }
 0x6bd   : > { %v1691_v43 = vsel %vm665_vm0, %v3432_v50, 0.0 }
 0x6be   : > { %v3434_v12 = vpop.eup %3433  ;;  %1692 = vadd.xlane.f32.xlu0 %v1691_v43 }
 0x6bf   : > { %v1694_v6 = vsel %vm665_vm0, %v3434_v12, 0.0 }
 0x6c0   : > { %1695 = vadd.xlane.f32.xlu1 %v1694_v6 }
 0x6c4   : > { %v3436_v16 = vpop.eup %3435 }
 0x6c5   : > { %v1697_v53 = vsel %vm665_vm0, %v3436_v16, 0.0 }
 0x6c6   : > { %v3438_v20 = vpop.eup %3437  ;;  %1698 = vadd.xlane.f32.xlu0 %v1697_v53 }
 0x6c7   : > { %v1700_v33 = vsel %vm665_vm0, %v3438_v20, 0.0 }
 0x6c8   : > { %1701 = vadd.xlane.f32.xlu1 %v1700_v33 }
 0x74b   : > { %v1693_v48 = vpop.xlane.xlu0 %1692 }
 0x74c   : > { %3439 = vrcp.f32 %v1693_v48 }
 0x74d   : > { %v1696_v4 = vpop.xlane.xlu1 %1695 }
 0x74e   : > { %3441 = vrcp.f32 %v1696_v4 }
 0x753   : > { %v1699_v5 = vpop.xlane.xlu0 %1698 }
 0x754   : > { %3443 = vrcp.f32 %v1699_v5 }
 0x755   : > { %v1702_v63 = vpop.xlane.xlu1 %1701 }
 0x756   : > { %v3440_v26 = vpop.eup %3439  ;;  %3445 = vrcp.f32 %v1702_v63 }
 0x757   : > { %v1707_v1 = vmul.f32 %v3440_v26, %v3432_v50 }
 0x758   : > { %v3442_v49 = vpop.eup %3441 }
 0x759   : > { %v1708_v25 = vmul.f32 %v3442_v49, %v3434_v12 }
 0x75b   : > { %v1711_v59 = vpack.c.bf16 %v1708_v25, %v1707_v1 }
 0x75d   : > { %3252 = vmatmul.mubr.msk.bf16.vlgmr.msra.gmra.mrb[48].mxu0 %vm665_vm0, %v1711_v59 }
 0x75e   : > { %v3444_v36 = vpop.eup %3443  ;;  %3262 = vmatpush3.bf16.xpose.msra.mxu0 %v4225_v7  ;;  %3263 = vmatprep.mubr.msk.bf16.mxu0 %vm3509_vm1, %v3508_v23  ;;  %v3358_v7 = vld [vmem:[%s4210_s3 + $0x40] sm:$0xff]  }
 0x75f   : > { %3273 = vmatprep.subr.bf16.mxu0 %v3508_v23  ;;  %v1709_v32 = vmul.f32 %v3444_v36, %v3436_v16 }
 0x760   : > { %v3446_v30 = vpop.eup %3445 }
 0x761   : > { %v1710_v27 = vmul.f32 %v3446_v30, %v3438_v20  ;;  %v3374_v30 = vld [vmem:[%s4210_s3 + $0xc0] sm:$0xff]  }
 0x763   : > { %v1712_v54 = vpack.c.bf16 %v1710_v27, %v1709_v32 }
 0x765   : > { %3258 = vmatmul.mubr.msk.bf16.vlgmr.msra.gmra.mrb[40].mxu1 %vm665_vm0, %v1712_v54  ;;  %3264 = vmatmul.mubr.bf16.vlgmr.msra.gmra.mrb[52].mxu0 %v4226_v56 }
 0x766   : > { %3268 = vmatpush3.bf16.xpose.msra.mxu1 %v4227_v37  ;;  %3274 = vmatpush3.bf16.msra.mxu0 %v4228_v58 }
 0x767   : > { %3269 = vmatprep.mubr.msk.bf16.mxu1 %vm3509_vm1, %v3508_v23  ;;  %3279 = vmatprep.subr.bf16.mxu1 %v3508_v23 }
 0x768   : > { %3275 = vmatprep.mubr.msk.bf16.mxu0 %vm3509_vm1, %v3508_v23  ;;  %3120 = vmatprep.subr.bf16.mxu0 %v3358_v7 }
 0x76d   : > { %3270 = vmatmul.mubr.bf16.vlgmr.msra.gmra.mrb[44].mxu1 %v4229_v8 }
 0x76e   : > { %3280 = vmatpush3.bf16.msra.mxu1 %v4230_v9  ;;  %3281 = vmatprep.mubr.msk.bf16.mxu1 %vm3509_vm1, %v3508_v23 }
 0x76f   : > { %3148 = vmatprep.subr.bf16.mxu1 %v3374_v30 }
 0x830   : > { %v3984_v2 = vpop.f32.mrb[48].mxu0 }
 0x831   : > { %v3253_v18 = vpop.f32.mrb[49].mxu0 }
 0x832   : > { %v3986_v35 = vpop.f32.mrb[50].mxu0  ;;  %v3359_v18 = vld [vmem:[%s4210_s3] sm:$0xff]  }
 0x833   : > { %v2027_v15 = vpack.c.bf16 %v3986_v35, %v3984_v2  ;;  %v3254_v24 = vpop.f32.mrb[51].mxu0 }
 0x838   : > { %v3990_v17 = vpop.f32.mrb[40].mxu1  ;;  %v1841_v46 = vpop.f32.mrb[52].mxu0 }
 0x839   : > { %v3259_v52 = vpop.f32.mrb[41].mxu1  ;;  %v3265_v55 = vpop.f32.mrb[53].mxu0  ;;  %v1889_v10 = vsel %vm665_vm0, %v1841_v46, -inf }
 0x83a   : > { %v3993_v13 = vpop.f32.mrb[42].mxu1  ;;  %1890 = vmax.xlane.f32.xlu0 %v1889_v10  ;;  %v1844_v23 = vpop.f32.mrb[54].mxu0  ;;  %v3361_v55 = vld [vmem:[%s4210_s3 + $0x8] sm:$0xff]   ;;  %v3362_v10 = vld [vmem:[%s4210_s3 + $0x50] sm:$0xff]  }
 0x83b   : > { %v2031_v45 = vpack.c.bf16 %v3993_v13, %v3990_v17  ;;  %v3260_v22 = vpop.f32.mrb[43].mxu1  ;;  %v3266_v62 = vpop.f32.mrb[55].mxu0  ;;  %v1892_v0 = vsel %vm665_vm0, %v1844_v23, -inf }
 0x83c   : > { %1893 = vmax.xlane.f32.xlu1 %v1892_v0  ;;  %v3363_v0 = vld [vmem:[%s4210_s3 + $0x10] sm:$0xff]  }
 0x840   : > { %v1882_v31 = vpop.f32.mrb[44].mxu1 }
 0x841   : > { %v3271_v38 = vpop.f32.mrb[45].mxu1  ;;  %v1895_v41 = vsel %vm665_vm0, %v1882_v31, -inf }
 0x842   : > { %v1885_v28 = vpop.f32.mrb[46].mxu1  ;;  %1896 = vmax.xlane.f32.xlu0 %v1895_v41  ;;  %v3365_v38 = vld [vmem:[%s4210_s3 + $0x18] sm:$0xff]   ;;  %v3377_v41 = vld [vmem:[%s4210_s3 + $0x88] sm:$0xff]  }
 0x843   : > { %v3272_v47 = vpop.f32.mrb[47].mxu1  ;;  %v1898_v29 = vsel %vm665_vm0, %v1885_v28, -inf }
 0x844   : > { %1899 = vmax.xlane.f32.xlu1 %v1898_v29  ;;  %v3378_v47 = vld [vmem:[%s4210_s3 + $0xd0] sm:$0xff]   ;;  %v3367_v29 = vld [vmem:[%s4210_s3 + $0x20] sm:$0xff]  }
 0x8c7   : > { %v1891_v60 = vpop.xlane.xlu0 %1890 }
 0x8c8   : > { %v1901_v34 = vsub.f32 %v1841_v46, %v1891_v60  ;;  %v3360_v46 = vld [vmem:[%s4210_s3 + $0x48] sm:$0xff]   ;;  %v3379_v60 = vld [vmem:[%s4210_s3 + $0x90] sm:$0xff]  }
 0x8c9   : > { %v1894_v50 = vpop.xlane.xlu1 %1893 }
 0x8ca   : > { %v1905_v43 = vmul.f32 1.442695, %v1901_v34  ;;  %v1902_v12 = vsub.f32 %v1844_v23, %v1894_v50  ;;  %v3368_v34 = vld [vmem:[%s4210_s3 + $0x68] sm:$0xff]   ;;  %v3380_v50 = vld [vmem:[%s4210_s3 + $0xd8] sm:$0xff]  }
 0x8cc   : > { %3447 = vpow2.f32 %v1905_v43  ;;  %v1907_v6 = vmul.f32 1.442695, %v1902_v12  ;;  %v3369_v43 = vld [vmem:[%s4210_s3 + $0x28] sm:$0xff]   ;;  %v3381_v12 = vld [vmem:[%s4210_s3 + $0x98] sm:$0xff]  }
 0x8ce   : > { %3449 = vpow2.f32 %v1907_v6  ;;  %v3370_v6 = vld [vmem:[%s4210_s3 + $0x70] sm:$0xff]  }
 0x8cf   : > { %v1897_v16 = vpop.xlane.xlu0 %1896 }
 0x8d0   : > { %v1903_v53 = vsub.f32 %v1882_v31, %v1897_v16  ;;  %v3376_v31 = vld [vmem:[%s4210_s3 + $0xc8] sm:$0xff]   ;;  %v3382_v16 = vld [vmem:[%s4210_s3 + $0xe0] sm:$0xff]  }
 0x8d1   : > { %v1900_v20 = vpop.xlane.xlu1 %1899 }
 0x8d2   : > { %v1909_v33 = vmul.f32 1.442695, %v1903_v53  ;;  %v1904_v48 = vsub.f32 %v1885_v28, %v1900_v20  ;;  %v3366_v28 = vld [vmem:[%s4210_s3 + $0x60] sm:$0xff]   ;;  %v3371_v53 = vld [vmem:[%s4210_s3 + $0x30] sm:$0xff]  }
 0x8d3   : > { %v3383_v20 = vld [vmem:[%s4210_s3 + $0xa0] sm:$0xff]  }
 0x8d4   : > { %3451 = vpow2.f32 %v1909_v33  ;;  %v1911_v4 = vmul.f32 1.442695, %v1904_v48  ;;  %v3372_v33 = vld [vmem:[%s4210_s3 + $0x78] sm:$0xff]   ;;  %v3384_v48 = vld [vmem:[%s4210_s3 + $0xe8] sm:$0xff]  }
 0x8d6   : > { %v3448_v5 = vpop.eup %3447  ;;  %3453 = vpow2.f32 %v1911_v4  ;;  %v3373_v4 = vld [vmem:[%s4210_s3 + $0x38] sm:$0xff]  }
 0x8d7   : > { %v1913_v63 = vsel %vm665_vm0, %v3448_v5, 0.0 }
 0x8d8   : > { %v3450_v26 = vpop.eup %3449  ;;  %1914 = vadd.xlane.f32.xlu0 %v1913_v63  ;;  %v3386_v63 = vld [vmem:[%s4210_s3 + $0xf0] sm:$0xff]  }
 0x8d9   : > { %v1916_v49 = vsel %vm665_vm0, %v3450_v26, 0.0 }
 0x8da   : > { %1917 = vadd.xlane.f32.xlu1 %v1916_v49  ;;  %v3388_v49 = vld [vmem:[%s4210_s3 + $0xf8] sm:$0xff]  }
 0x8de   : > { %v3452_v1 = vpop.eup %3451 }
 0x8df   : > { %v1919_v25 = vsel %vm665_vm0, %v3452_v1, 0.0 }
 0x8e0   : > { %v3454_v59 = vpop.eup %3453  ;;  %1920 = vadd.xlane.f32.xlu0 %v1919_v25 }
 0x8e1   : > { %v1922_v36 = vsel %vm665_vm0, %v3454_v59, 0.0 }
 0x8e2   : > { %1923 = vadd.xlane.f32.xlu1 %v1922_v36 }
 0x965   : > { %v1915_v32 = vpop.xlane.xlu0 %1914 }
 0x966   : > { %3455 = vrcp.f32 %v1915_v32 }
 0x967   : > { %v1918_v27 = vpop.xlane.xlu1 %1917 }
 0x968   : > { %3457 = vrcp.f32 %v1918_v27 }
 0x96d   : > { %v1921_v54 = vpop.xlane.xlu0 %1920 }
 0x96e   : > { %3459 = vrcp.f32 %v1921_v54 }
 0x96f   : > { %v1924_v56 = vpop.xlane.xlu1 %1923 }
 0x970   : > { %v3456_v37 = vpop.eup %3455  ;;  %3461 = vrcp.f32 %v1924_v56 }
 0x971   : > { %v1929_v8 = vmul.f32 %v3456_v37, %v3448_v5  ;;  %v3385_v5 = vld [vmem:[%s4210_s3 + $0xa8] sm:$0xff]  }
 0x972   : > { %v3458_v58 = vpop.eup %3457 }
 0x973   : > { %v1930_v9 = vmul.f32 %v3458_v58, %v3450_v26  ;;  %v3387_v26 = vld [vmem:[%s4210_s3 + $0xb0] sm:$0xff]   ;;  %v3034_v58 = vld [vmem:[%s4211_s4] ss:$0 sm:$0xff] }
 0x975   : > { %v1933_v24 = vpack.c.bf16 %v1930_v9, %v1929_v8 }
 0x977   : > { %3276 = vmatmul.mubr.msk.bf16.vlgmr.msra.gmra.mrb[56].mxu0 %vm665_vm0, %v1933_v24 }
 0x978   : > { %v3460_v52 = vpop.eup %3459  ;;  %3121 = vmatpush3.bf16.msra.mxu0 %v3359_v18  ;;  %2328 = vmatprep.mubr.bf16.mxu0 %v2026_v14  ;;  %v3364_v14 = vld [vmem:[%s4210_s3 + $0x58] sm:$0xff]  }
 0x979   : > { %3122 = vmatprep.subr.bf16.mxu0 %v3360_v46  ;;  %v1931_v22 = vmul.f32 %v3460_v52, %v3452_v1  ;;  %v3389_v1 = vld [vmem:[%s4210_s3 + $0xb8] sm:$0xff]  }
 0x97a   : > { %v3462_v23 = vpop.eup %3461 }
 0x97b   : > { %v1932_v62 = vmul.f32 %v3462_v23, %v3454_v59 }
 0x97c   : > { %3123 = vmatpush3.bf16.msra.mxu0 %v3361_v55 }
 0x97d   : > { %3124 = vmatprep.subr.bf16.mxu0 %v3362_v10  ;;  %v1934_v3 = vpack.c.bf16 %v1932_v62, %v1931_v22  ;;  %v3479_v10 = vld [vmem:[%s3618_s30] sm:$0xff] }
 0x97f   : > { %3282 = vmatmul.mubr.msk.bf16.vlgmr.msra.gmra.mrb[48].mxu1 %vm665_vm0, %v1934_v3 }
 0x980   : > { %3125 = vmatpush3.bf16.msra.mxu0 %v3363_v0  ;;  %3149 = vmatpush3.bf16.msra.mxu1 %v3375_v11  ;;  %v3480_v0 = vld [vmem:[%s3618_s30 + $0x8] sm:$0xff] }
 0x981   : > { %3126 = vmatprep.subr.bf16.mxu0 %v3364_v14  ;;  %3150 = vmatprep.subr.bf16.mxu1 %v3376_v31 }
 0x984   : > { %3127 = vmatpush3.bf16.msra.mxu0 %v3365_v38  ;;  %3151 = vmatpush3.bf16.msra.mxu1 %v3377_v41 }
 0x985   : > { %3128 = vmatprep.subr.bf16.mxu0 %v3366_v28  ;;  %3152 = vmatprep.subr.bf16.mxu1 %v3378_v47 }
 0x988   : > { %3129 = vmatpush3.bf16.msra.mxu0 %v3367_v29  ;;  %3153 = vmatpush3.bf16.msra.mxu1 %v3379_v60 }
 0x989   : > { %3130 = vmatprep.subr.bf16.mxu0 %v3368_v34  ;;  %3154 = vmatprep.subr.bf16.mxu1 %v3380_v50  ;;  %v3481_v50 = vld [vmem:[%s3618_s30 + $0x10] sm:$0xff] }
 0x98c   : > { %3131 = vmatpush3.bf16.msra.mxu0 %v3369_v43  ;;  %3155 = vmatpush3.bf16.msra.mxu1 %v3381_v12 }
 0x98d   : > { %3132 = vmatprep.subr.bf16.mxu0 %v3370_v6  ;;  %3156 = vmatprep.subr.bf16.mxu1 %v3382_v16  ;;  %v3482_v6 = vld [vmem:[%s3618_s30 + $0x18] sm:$0xff] }
 0x990   : > { %3133 = vmatpush3.bf16.msra.mxu0 %v3371_v53  ;;  %3157 = vmatpush3.bf16.msra.mxu1 %v3383_v20 }
 0x991   : > { %3134 = vmatprep.subr.bf16.mxu0 %v3372_v33  ;;  %3158 = vmatprep.subr.bf16.mxu1 %v3384_v48 }
 0x994   : > { %3135 = vmatpush3.bf16.msra.mxu0 %v3373_v4  ;;  %3159 = vmatpush3.bf16.msra.mxu1 %v3385_v5 }
 0x995   : > { %3160 = vmatprep.subr.bf16.mxu1 %v3386_v63 }
 0x997   : > { %2329 = vmatmul.mubr.bf16.vlgmr.msra.gmra.mrb[60].mxu0 %v2025_v21 }
 0x998   : > { %2336 = vmatprep.mubr.bf16.mxu0 %v2030_v40  ;;  %3161 = vmatpush3.bf16.msra.mxu1 %v3387_v26 }
 0x999   : > { %3162 = vmatprep.subr.bf16.mxu1 %v3388_v49 }
 0x99c   : > { %3163 = vmatpush3.bf16.msra.mxu1 %v3389_v1 }
 0x99f   : > { %2337 = vmatmul.mubr.bf16.gmra.mrb[64].mxu0 %v2029_v19 }
 0xa4a   : > { %v1974_v44 = vpop.f32.mrb[56].mxu0 }
 0xa4b   : > { %v3277_v51 = vpop.f32.mrb[57].mxu0 }
 0xa4c   : > { %v1977_v21 = vpop.f32.mrb[58].mxu0 }
 0xa4d   : > { %v2028_v42 = vpack.c.bf16 %v1977_v21, %v1974_v44  ;;  %v3278_v57 = vpop.f32.mrb[59].mxu0 }
 0xa4f   : > { %2377 = vmatprep.mubr.bf16.mxu1 %v2028_v42 }
 0xa50   : > { %2378 = vmatmul.mubr.bf16.vlgmr.msra.gmra.mrb[52].mxu1 %v2027_v15 }
 0xa52   : > { %v2018_v61 = vpop.f32.mrb[48].mxu1 }
 0xa53   : > { %v3283_v39 = vpop.f32.mrb[49].mxu1 }
 0xa54   : > { %v2021_v19 = vpop.f32.mrb[50].mxu1 }
 0xa55   : > { %v2032_v40 = vpack.c.bf16 %v2021_v19, %v2018_v61  ;;  %v3284_v25 = vpop.f32.mrb[51].mxu1 }
 0xa57   : > { %2385 = vmatprep.mubr.bf16.mxu1 %v2032_v40 }
 0xa58   : > { %2386 = vmatmul.mubr.bf16.gmra.mrb[56].mxu1 %v2031_v45 }
 0xa6a   : > { %v3136_v59 = vpop.f32.mrb[60].mxu0 }
 0xa6b   : > { %v3137_v36 = vpop.f32.mrb[61].mxu0 }
 0xa6c   : > { %v3138_v7 = vadd.f32 %v3137_v36, %v3136_v59  ;;  %v3139_v30 = vpop.f32.mrb[62].mxu0  ;;  %v3390_v36 = vld [vmem:[%s4212_s5] sm:$0xff]  }
 0xa6d   : > { %v3140_v32 = vpop.f32.mrb[63].mxu0  ;;  %3285 = vmatprep.subr.bf16.mxu0 %v3390_v36 }
 0xa6e   : > { %v3141_v27 = vadd.f32 %v3140_v32, %v3139_v30  ;;  %v2331_v45 = vadd.f32 %v3138_v7, %v3034_v58  ;;  %3286 = vmatpush3.bf16.msra.mxu0 %v3390_v36  ;;  %v3391_v7 = vld [vmem:[%s4214_s7] sm:$0xff]   ;;  %v3392_v30 = vld [vmem:[%s4214_s7 + $0x8] sm:$0xff]   ;;  %v3393_v32 = vld [vmem:[%s4214_s7 + $0x10] sm:$0xff]  }
 0xa6f   : > { %3291 = vmatprep.subr.bf16.mxu1 %v3391_v7 }
 0xa70   : > { %v2334_v24 = vadd.f32 %v3141_v27, %v3034_v58  ;;  %3292 = vmatpush3.bf16.msra.mxu1 %v3391_v7  ;;  %v3394_v27 = vld [vmem:[%s4214_s7 + $0x18] sm:$0xff]  }
 0xa71   : > { %3293 = vmatprep.subr.bf16.mxu1 %v3392_v30 }
 0xa72   : > { %v3142_v54 = vpop.f32.mrb[64].mxu0 }
 0xa73   : > { %v3143_v56 = vpop.f32.mrb[65].mxu0 }
 0xa74   : > { %v3144_v2 = vadd.f32 %v3143_v56, %v3142_v54  ;;  %v3145_v35 = vpop.f32.mrb[66].mxu0  ;;  %3294 = vmatpush3.bf16.msra.mxu1 %v3392_v30  ;;  %v3395_v54 = vld [vmem:[%s4214_s7 + $0x20] sm:$0xff]   ;;  %v3396_v56 = vld [vmem:[%s4214_s7 + $0x28] sm:$0xff]  }
 0xa75   : > { %v3146_v15 = vpop.f32.mrb[67].mxu0  ;;  %3295 = vmatprep.subr.bf16.mxu1 %v3393_v32 }
 0xa76   : > { %v3147_v37 = vadd.f32 %v3146_v15, %v3145_v35  ;;  %v2339_v14 = vadd.f32 %v3144_v2, %v3034_v58 }
 0xa78   : > { %v2342_v47 = vadd.f32 %v3147_v37, %v3034_v58  ;;  %3296 = vmatpush3.bf16.msra.mxu1 %v3393_v32 }
 0xa79   : > { %3297 = vmatprep.subr.bf16.mxu1 %v3394_v27 }
 0xa7c   : > { %3298 = vmatpush3.bf16.msra.mxu1 %v3394_v27 }
 0xa7d   : > { %3299 = vmatprep.subr.bf16.mxu1 %v3395_v54 }
 0xa80   : > { %3300 = vmatpush3.bf16.msra.mxu1 %v3395_v54 }
 0xa81   : > { %3301 = vmatprep.subr.bf16.mxu1 %v3396_v56 }
 0xa84   : > { %3302 = vmatpush3.bf16.msra.mxu1 %v3396_v56 }
 0xb23   : > { %v3164_v17 = vpop.f32.mrb[52].mxu1 }
 0xb24   : > { %v3165_v13 = vpop.f32.mrb[53].mxu1 }
 0xb25   : > { %v3166_v8 = vadd.f32 %v3165_v13, %v3164_v17  ;;  %v3167_v9 = vpop.f32.mrb[54].mxu1 }
 0xb26   : > { %v3168_v18 = vpop.f32.mrb[55].mxu1 }
 0xb27   : > { %v2380_v46 = vadd.f32 %v3166_v8, %v2331_v45  ;;  %v3169_v52 = vadd.f32 %v3168_v18, %v3167_v9 }
 0xb29   : > { %v2383_v55 = vadd.f32 %v3169_v52, %v2334_v24  ;;  %v2394_v23 = vadd.f32 %v3479_v10, %v2380_v46  ;;  %v3067_v52 = vld [vmem:[%s4216_s9] ss:$0 sm:$0xff] }
 0xb2b   : > { %v3170_v22 = vpop.f32.mrb[56].mxu1  ;;  %v2400_v62 = vsel %vm665_vm0, %v2394_v23, 0.0  ;;  %v2395_v11 = vadd.f32 %v3480_v0, %v2383_v55 }
 0xb2c   : > { %v3171_v3 = vpop.f32.mrb[57].mxu1  ;;  %2401 = vadd.xlane.f32.xlu0 %v2400_v62  ;;  %v3068_v62 = vld [vmem:[%s4217_s10] ss:$0 sm:$0xff] }
 0xb2d   : > { %v3172_v31 = vadd.f32 %v3171_v3, %v3170_v22  ;;  %v3173_v38 = vpop.f32.mrb[58].mxu1  ;;  %v2403_v41 = vsel %vm665_vm0, %v2395_v11, 0.0 }
 0xb2e   : > { %v3174_v28 = vpop.f32.mrb[59].mxu1  ;;  %2404 = vadd.xlane.f32.xlu1 %v2403_v41 }
 0xb2f   : > { %v2388_v29 = vadd.f32 %v3172_v31, %v2339_v14  ;;  %v3175_v60 = vadd.f32 %v3174_v28, %v3173_v38 }
 0xb31   : > { %v2391_v34 = vadd.f32 %v3175_v60, %v2342_v47  ;;  %v2396_v43 = vadd.f32 %v3481_v50, %v2388_v29 }
 0xb33   : > { %v2406_v12 = vsel %vm665_vm0, %v2396_v43, 0.0  ;;  %v2397_v16 = vadd.f32 %v3482_v6, %v2391_v34  ;;  %v3069_v6 = vld [vmem:[%s4213_s6] ss:$0 sm:$0xff] }
 0xb34   : > { %2407 = vadd.xlane.f32.xlu0 %v2406_v12  ;;  %v3398_v12 = vld [vmem:[%s4214_s7 + $0x38] sm:$0xff]  }
 0xb35   : > { %v2409_v53 = vsel %vm665_vm0, %v2397_v16, 0.0 }
 0xb36   : > { %2410 = vadd.xlane.f32.xlu1 %v2409_v53 }
 0xbb9   : > { %v2402_v20 = vpop.xlane.xlu0 %2401 }
 0xbba   : > { %v2413_v33 = vmul.f32 0.0625, %v2402_v20 }
 0xbbb   : > { %v2405_v48 = vpop.xlane.xlu1 %2404 }
 0xbbc   : > { %v2417_v4 = vsub.f32 %v2394_v23, %v2413_v33  ;;  %v2414_v5 = vmul.f32 0.0625, %v2405_v48 }
 0xbbe   : > { %v2418_v63 = vsub.f32 %v2395_v11, %v2414_v5  ;;  %v2421_v26 = vmul.f32 %v2417_v4, %v2417_v4 }
 0xbc0   : > { %v2425_v49 = vsel %vm665_vm0, %v2421_v26, 0.0  ;;  %v2422_v1 = vmul.f32 %v2418_v63, %v2418_v63 }
 0xbc1   : > { %2426 = vadd.xlane.f32.xlu0 %v2425_v49  ;;  %v2408_v44 = vpop.xlane.xlu0 %2407 }
 0xbc2   : > { %v2415_v51 = vmul.f32 0.0625, %v2408_v44  ;;  %v2428_v21 = vsel %vm665_vm0, %v2422_v1, 0.0 }
 0xbc3   : > { %2429 = vadd.xlane.f32.xlu1 %v2428_v21  ;;  %v2411_v42 = vpop.xlane.xlu1 %2410 }
 0xbc4   : > { %v2419_v57 = vsub.f32 %v2396_v43, %v2415_v51  ;;  %v2416_v61 = vmul.f32 0.0625, %v2411_v42  ;;  %v3397_v43 = vld [vmem:[%s4214_s7 + $0x30] sm:$0xff]   ;;  %v3073_v42 = vld [vmem:[%s4215_s8] ss:$0 sm:$0xff] }
 0xbc5   : > { %3303 = vmatprep.subr.bf16.mxu1 %v3397_v43 }
 0xbc6   : > { %v2420_v39 = vsub.f32 %v2397_v16, %v2416_v61  ;;  %v2423_v19 = vmul.f32 %v2419_v57, %v2419_v57  ;;  %3304 = vmatpush3.bf16.msra.mxu1 %v3397_v43 }
 0xbc7   : > { %3305 = vmatprep.subr.bf16.mxu1 %v3398_v12 }
 0xbc8   : > { %v2431_v40 = vsel %vm665_vm0, %v2423_v19, 0.0  ;;  %v2424_v25 = vmul.f32 %v2420_v39, %v2420_v39 }
 0xbc9   : > { %2432 = vadd.xlane.f32.xlu0 %v2431_v40 }
 0xbca   : > { %v2434_v59 = vsel %vm665_vm0, %v2424_v25, 0.0  ;;  %3306 = vmatpush3.bf16.msra.mxu1 %v3398_v12 }
 0xbcb   : > { %2435 = vadd.xlane.f32.xlu1 %v2434_v59 }
 0xc4e   : > { %v2427_v2 = vpop.xlane.xlu0 %2426 }
 0xc4f   : > { %v2437_v35 = vmul.f32 0.0625, %v2427_v2 }
 0xc50   : > { %v2430_v15 = vpop.xlane.xlu1 %2429 }
 0xc51   : > { %v2441_v37 = vadd.f32 1e-05, %v2437_v35  ;;  %v2438_v58 = vmul.f32 0.0625, %v2430_v15 }
 0xc53   : > { %3463 = vrsqrt.f32 %v2441_v37  ;;  %v2442_v17 = vadd.f32 1e-05, %v2438_v58 }
 0xc55   : > { %3465 = vrsqrt.f32 %v2442_v17 }
 0xc56   : > { %v2433_v13 = vpop.xlane.xlu0 %2432 }
 0xc57   : > { %v2439_v45 = vmul.f32 0.0625, %v2433_v13 }
 0xc58   : > { %v2436_v8 = vpop.xlane.xlu1 %2435 }
 0xc59   : > { %v2443_v9 = vadd.f32 1e-05, %v2439_v45  ;;  %v2440_v18 = vmul.f32 0.0625, %v2436_v8 }
 0xc5b   : > { %3467 = vrsqrt.f32 %v2443_v9  ;;  %v2444_v24 = vadd.f32 1e-05, %v2440_v18 }
 0xc5d   : > { %v3464_v46 = vpop.eup %3463  ;;  %3469 = vrsqrt.f32 %v2444_v24 }
 0xc5e   : > { %v2449_v55 = vmul.f32 %v3464_v46, %v2417_v4 }
 0xc5f   : > { %v3466_v10 = vpop.eup %3465 }
 0xc60   : > { %v2450_v23 = vmul.f32 %v3466_v10, %v2418_v63  ;;  %v2459_v22 = vmul.f32 %v3067_v52, %v2449_v55 }
 0xc62   : > { %v2460_v0 = vmul.f32 %v3067_v52, %v2450_v23  ;;  %v2469_v11 = vadd.f32 %v3068_v62, %v2459_v22 }
 0xc64   : > { %v2470_v3 = vadd.f32 %v3068_v62, %v2460_v0 }
 0xc65   : > { %v3468_v14 = vpop.eup %3467 }
 0xc66   : > { %v2451_v31 = vmul.f32 %v3468_v14, %v2419_v57  ;;  %v2473_v38 = vpack.c.bf16 %v2470_v3, %v2469_v11 }
 0xc67   : > { %v3470_v41 = vpop.eup %3469 }
 0xc68   : > { %v2461_v28 = vmul.f32 %v3067_v52, %v2451_v31  ;;  %v2452_v47 = vmul.f32 %v3470_v41, %v2420_v39  ;;  %3287 = vmatprep.mubr.msk.bf16.mxu0 %vm665_vm0, %v2473_v38 }
 0xc6a   : > { %v2462_v29 = vmul.f32 %v3067_v52, %v2452_v47  ;;  %v2471_v60 = vadd.f32 %v3068_v62, %v2461_v28 }
 0xc6c   : > { %v2472_v34 = vadd.f32 %v3068_v62, %v2462_v29 }
 0xc6e   : > { %v2474_v50 = vpack.c.bf16 %v2472_v34, %v2471_v60 }
 0xc70   : > { %3288 = vmatmul.mubr.msk.bf16.vlgmr.msra.gmra.mrb[68].mxu0 %vm665_vm0, %v2474_v50 }
 0xd43   : > { %v3289_v16 = vpop.f32.mrb[68].mxu0 }
 0xd44   : > { %v2539_v53 = vadd.f32 %v3289_v16, %v3069_v6  ;;  %v2530_v20 = vpop.f32.mrb[69].mxu0  ;;  %v3082_v16 = vld [vmem:[%s4218_s11] ss:$0 sm:$0xff] }
 0xd45   : > { %v2531_v33 = vadd.f32 %v3069_v6, %v2530_v20  ;;  %v3290_v48 = vpop.f32.mrb[70].mxu0 }
 0xd46   : > { %v2542_v4 = vadd.f32 %v3290_v48, %v3069_v6  ;;  %v2533_v5 = vpop.f32.mrb[71].mxu0  ;;  %v2547_v26 = vmax.f32 %v2539_v53, 0.0 }
 0xd47   : > { %v2534_v63 = vadd.f32 %v3069_v6, %v2533_v5  ;;  %v2545_v1 = vmax.f32 %v2531_v33, 0.0  ;;  %v3083_v33 = vld [vmem:[%s4219_s12] ss:$0 sm:$0xff] }
 0xd48   : > { %v2548_v49 = vmax.f32 %v2542_v4, 0.0 }
 0xd49   : > { %v2546_v44 = vmax.f32 %v2534_v63, 0.0 }
 0xd4a   : > { %v2550_v51 = vpack.c.bf16 %v2548_v49, %v2547_v26 }
 0xd4b   : > { %v2549_v21 = vpack.c.bf16 %v2546_v44, %v2545_v1 }
 0xd4d   : > { %3307 = vmatprep.mubr.bf16.mxu1 %v2549_v21 }
 0xd4e   : > { %3308 = vmatmul.mubr.bf16.vlgmr.msra.gmra.mrb[60].mxu1 %v2550_v51 }
 0xe21   : > { %v3309_v57 = vpop.f32.mrb[60].mxu1 }
 0xe22   : > { %v2656_v61 = vpop.f32.mrb[61].mxu1  ;;  %v2665_v39 = vadd.f32 %v3309_v57, %v3073_v42 }
 0xe23   : > { %v2657_v19 = vadd.f32 %v3073_v42, %v2656_v61  ;;  %v3310_v40 = vpop.f32.mrb[62].mxu1 }
 0xe24   : > { %v2659_v25 = vpop.f32.mrb[63].mxu1  ;;  %v2668_v59 = vadd.f32 %v3310_v40, %v3073_v42  ;;  %v2673_v27 = vadd.f32 %v2665_v39, %v2471_v60 }
 0xe25   : > { %v2660_v36 = vadd.f32 %v3073_v42, %v2659_v25  ;;  %v2671_v7 = vadd.f32 %v2657_v19, %v2469_v11 }
 0xe26   : > { %v2674_v56 = vadd.f32 %v2668_v59, %v2472_v34  ;;  %v2683_v2 = vsel %vm665_vm0, %v2673_v27, 0.0 }
 0xe27   : > { %v2677_v30 = vsel %vm665_vm0, %v2671_v7, 0.0  ;;  %v2672_v32 = vadd.f32 %v2660_v36, %v2470_v3 }
 0xe28   : > { %2678 = vadd.xlane.f32.xlu0 %v2677_v30  ;;  %v2686_v35 = vsel %vm665_vm0, %v2674_v56, 0.0 }
 0xe29   : > { %v2680_v54 = vsel %vm665_vm0, %v2672_v32, 0.0 }
 0xe2a   : > { %2681 = vadd.xlane.f32.xlu1 %v2680_v54 }
 0xe2c   : > { %2684 = vadd.xlane.f32.xlu0 %v2683_v2 }
 0xe2e   : > { %2687 = vadd.xlane.f32.xlu1 %v2686_v35 }
 0xeb5   : > { %v2679_v15 = vpop.xlane.xlu0 %2678 }
 0xeb6   : > { %v2689_v37 = vmul.f32 0.0625, %v2679_v15 }
 0xeb7   : > { %v2682_v58 = vpop.xlane.xlu1 %2681 }
 0xeb8   : > { %v2693_v17 = vsub.f32 %v2671_v7, %v2689_v37  ;;  %v2690_v13 = vmul.f32 0.0625, %v2682_v58 }
 0xeb9   : > { %v2685_v45 = vpop.xlane.xlu0 %2684 }
 0xeba   : > { %v2694_v8 = vsub.f32 %v2672_v32, %v2690_v13  ;;  %v2691_v9 = vmul.f32 0.0625, %v2685_v45  ;;  %v2697_v18 = vmul.f32 %v2693_v17, %v2693_v17 }
 0xebb   : > { %v2688_v24 = vpop.xlane.xlu1 %2687 }
 0xebc   : > { %v2695_v46 = vsub.f32 %v2673_v27, %v2691_v9  ;;  %v2692_v52 = vmul.f32 0.0625, %v2688_v24  ;;  %v2701_v55 = vsel %vm665_vm0, %v2697_v18, 0.0  ;;  %v2698_v10 = vmul.f32 %v2694_v8, %v2694_v8 }
 0xebd   : > { %2702 = vadd.xlane.f32.xlu0 %v2701_v55 }
 0xebe   : > { %v2696_v23 = vsub.f32 %v2674_v56, %v2692_v52  ;;  %v2704_v22 = vsel %vm665_vm0, %v2698_v10, 0.0  ;;  %v2699_v62 = vmul.f32 %v2695_v46, %v2695_v46 }
 0xebf   : > { %2705 = vadd.xlane.f32.xlu1 %v2704_v22 }
 0xec0   : > { %v2707_v0 = vsel %vm665_vm0, %v2699_v62, 0.0  ;;  %v2700_v11 = vmul.f32 %v2696_v23, %v2696_v23 }
 0xec1   : > { %2708 = vadd.xlane.f32.xlu0 %v2707_v0 }
 0xec2   : > { %v2710_v3 = vsel %vm665_vm0, %v2700_v11, 0.0 }
 0xec3   : > { %2711 = vadd.xlane.f32.xlu1 %v2710_v3 }
 0xf4a   : > { %v2703_v14 = vpop.xlane.xlu0 %2702 }
 0xf4b   : > { %v2713_v31 = vmul.f32 0.0625, %v2703_v14 }
 0xf4c   : > { %v2706_v38 = vpop.xlane.xlu1 %2705 }
 0xf4d   : > { %v2717_v41 = vadd.f32 1e-05, %v2713_v31  ;;  %v2714_v28 = vmul.f32 0.0625, %v2706_v38 }
 0xf4e   : > { %v2709_v47 = vpop.xlane.xlu0 %2708 }
 0xf4f   : > { %3471 = vrsqrt.f32 %v2717_v41  ;;  %v2718_v29 = vadd.f32 1e-05, %v2714_v28  ;;  %v2715_v60 = vmul.f32 0.0625, %v2709_v47 }
 0xf50   : > { %v2712_v34 = vpop.xlane.xlu1 %2711 }
 0xf51   : > { %3473 = vrsqrt.f32 %v2718_v29  ;;  %v2719_v50 = vadd.f32 1e-05, %v2715_v60  ;;  %v2716_v43 = vmul.f32 0.0625, %v2712_v34 }
 0xf53   : > { %3475 = vrsqrt.f32 %v2719_v50  ;;  %v2720_v12 = vadd.f32 1e-05, %v2716_v43 }
 0xf55   : > { %3477 = vrsqrt.f32 %v2720_v12 }
 0xf59   : > { %v3472_v6 = vpop.eup %3471 }
 0xf5a   : > { %v2725_v53 = vmul.f32 %v3472_v6, %v2693_v17 }
 0xf5b   : > { %v3474_v20 = vpop.eup %3473 }
 0xf5c   : > { %v2735_v48 = vmul.f32 %v3082_v16, %v2725_v53  ;;  %v2726_v4 = vmul.f32 %v3474_v20, %v2694_v8 }
 0xf5d   : > { %v3476_v5 = vpop.eup %3475 }
 0xf5e   : > { %v2745_v63 = vadd.f32 %v3083_v33, %v2735_v48  ;;  %v2736_v26 = vmul.f32 %v3082_v16, %v2726_v4  ;;  %v2727_v49 = vmul.f32 %v3476_v5, %v2695_v46 }
 0xf5f   : > { %v3478_v1 = vpop.eup %3477 }
 0xf60   : > { %2749 = vst.msk [vmem:[%s3618_s30] sm:$0xff] %vm665_vm0, %v2745_v63  ;;  %v2746_v44 = vadd.f32 %v3083_v33, %v2736_v26  ;;  %v2737_v51 = vmul.f32 %v3082_v16, %v2727_v49  ;;  %v2728_v21 = vmul.f32 %v3478_v1, %v2696_v23 }
 0xf62   : > { %2750 = vst.msk [vmem:[%s3618_s30 + $0x8] sm:$0xff] %vm665_vm0, %v2746_v44  ;;  %v2747_v42 = vadd.f32 %v3083_v33, %v2737_v51  ;;  %v2738_v57 = vmul.f32 %v3082_v16, %v2728_v21 }
 0xf64   : > { %2751 = vst.msk [vmem:[%s3618_s30 + $0x10] sm:$0xff] %vm665_vm0, %v2747_v42  ;;  %v2748_v61 = vadd.f32 %v3083_v33, %v2738_v57 }
 0xf66   : > { %2752 = vst.msk [vmem:[%s3618_s30 + $0x18] sm:$0xff] %vm665_vm0, %v2748_v61 }
 0xf67 PF: > { %s23_s27 = sadd.s32 1, %s3505_s27   ;;  %s4231_s25 = smov %s3501_s26 }
 0xf68   : > { %p20_p5 = scmp.ge.s32.totalorder %s23_s27, 4   ;;  %s4232_s26 = smov %s4234_s28 }
 0xf6a   :  { %22 = sbr.rel (!%p20_p5) target bundleno = 2 (0x2), region = 142 }

// kernel: mobility_pattern_joint_learning.3
= control target key start
LH: loop header
LB: loop body
LE: loop exit
PB: predicated region body
PF: predicated region fallthrough
CT: control target
= control target key end

     0   :  { %s5912_s25 = smov 0   ;;  %s5914_s26 = smov 0   ;;  %s8508_s0 = inlined_call_operand.vmem [shape: f32[16,4,16], index: 0, kind: input, shape index: {}]   ;;  %s8509_s1 = inlined_call_operand.vmem [shape: bf16[3,16,1536], index: 1, kind: input, shape index: {}]   ;;  %s8510_s2 = inlined_call_operand.vmem [shape: f32[3,1,1536], index: 2, kind: input, shape index: {}]   ;;  %s8511_s3 = inlined_call_operand.vmem [shape: bf16[3,512,16], index: 3, kind: input, shape index: {}]   ;;  %s8512_s4 = inlined_call_operand.vmem [shape: f32[3,1,16], index: 4, kind: input, shape index: {}]   ;;  %s8513_s5 = inlined_call_operand.vmem [shape: bf16[3,16,128], index: 5, kind: input, shape index: {}]   ;;  %s8514_s6 = inlined_call_operand.vmem [shape: f32[3,1,128], index: 6, kind: input, shape index: {}]   ;;  %s8515_s7 = inlined_call_operand.vmem [shape: bf16[3,128,16], index: 7, kind: input, shape index: {}]   ;;  %s8516_s8 = inlined_call_operand.vmem [shape: f32[3,1,16], index: 8, kind: input, shape index: {}]   ;;  %s8517_s9 = inlined_call_operand.vmem [shape: f32[3,1,16], index: 9, kind: input, shape index: {}]   ;;  %s8518_s10 = inlined_call_operand.vmem [shape: f32[3,1,16], index: 10, kind: input, shape index: {}]   ;;  %s8519_s11 = inlined_call_operand.vmem [shape: f32[3,1,16], index: 11, kind: input, shape index: {}]   ;;  %s8520_s12 = inlined_call_operand.vmem [shape: f32[3,1,16], index: 12, kind: input, shape index: {}]   ;;  %s8521_s13 = inlined_call_operand.vmem [shape: f32[16,4,16], index: 13, kind: output, shape index: {}]  }
   0x1   :  { %8567 = sst [smem:[#allocation49_spill]] %s8508_s0  ;;  %s5916_s27 = smov 0  }
   0x2   :  { %8568 = sst [smem:[#allocation50_spill]] %s8509_s1  ;;  %s5918_s28 = smov 0  }
   0x3   :  { %8569 = sst [smem:[#allocation51_spill]] %s8510_s2  ;;  %s5920_s29 = smov 0  }
   0x4   :  { %8570 = sst [smem:[#allocation52_spill]] %s8511_s3 }
   0x5   :  { %8571 = sst [smem:[#allocation53_spill]] %s8513_s5 }
   0x6   :  { %8572 = sst [smem:[#allocation54_spill]] %s8515_s7 }
   0x7   :  { %8573 = sst [smem:[#allocation55_spill]] %s8520_s12 }
   0x8   :  { %8574 = sst [smem:[#allocation56_spill]] %s8521_s13 }
   0x9 LB: > { %8575 = sst [smem:[#allocation2_spill]] %s5820_s25  ;;  %s32_s30 = sadd.s32 1, %s5828_s27  ;;  %s5836_s29 = sphi %s5920_s29, %s23_s29   ;;  %s5832_s28 = sphi %s5918_s28, %s8774_s28   ;;  %s5828_s27 = sphi %s5916_s27, %s8773_s27   ;;  %s5824_s26 = sphi %s5914_s26, %s8772_s26   ;;  %s5820_s25 = sphi %s5912_s25, %s8771_s25  }
   0xa   : > { %8576 = sst [smem:[#allocation3_spill]] %s5828_s27  ;;  %s35_s14 = sadd.s32 1, %s5832_s28 }
   0xb   : > { %8577 = sst [smem:[#allocation4_spill]] %s5832_s28  ;;  %p33_p0 = scmp.ge.s32.totalorder %s32_s30, 3 }
   0xc   : > { %8578 = sst [smem:[#allocation5_spill]] %s5836_s29  ;;  %p5221_p1 = scmp.ge.s32.totalorder %s5836_s29, 1 }
   0xd   : > { %p505_p2 = scmp.lt.s32.totalorder %s5836_s29, 7  ;;  %s8776_s30 = smov (%p33_p0, %s32_s30), 0 }
   0xe   : > { %8579 = sst [smem:[#allocation6_spill]] %s8776_s30  ;;  %s8778_s14 = smov (!%p33_p0, %s35_s14), %s5832_s28 }
   0xf   : > { %p506_p3 = pnand %p5221_p1, %p505_p2  ;;  %p37_p4 = scmp.ge.s32.totalorder %s8778_s14, 2 }
  0x11   : > { %s8780_s14 = smov (%p37_p4, %s8778_s14), 0  ;;  %509 = sbr.rel (%p506_p3) target bundleno = 2705 (0xa91), region = 72 }
  0x12   : > { %8580 = sst [smem:[#allocation7_spill]] %s8780_s14 }
  0x18   : > { %s5222_s15 = sshll.u32 %s5824_s26, 3  ;;  %p600_p5 = scmp.lt.s32.totalorder %s5820_s25, 2 }
  0x19   : > { %p595_p6 = scmp.lt.s32.totalorder %s5222_s15, 15  ;;  %s8581_s0 = sld [smem:[#allocation49_spill]] }
  0x1a   : > { %s5946_s16 = scalar_select %p600_p5, %s5820_s25, 2 }
  0x1b   : > { %s8782_s15 = smov (!%p595_p6, %s5222_s15), 15  ;;  %s8583_s1 = sld [smem:[#allocation50_spill]] }
  0x1c   : > { %s5410_s17 = smul.u32 96, %s5946_s16  ;;  %s5310_s18 = sshll.u32 %s5946_s16, 8 }
  0x1d   : > { %s5223_s19 = sshll.u32 %s8782_s15, 2  ;;  %s5411_s20 = smul.u32 12, %s5946_s16 }
  0x1e   : > { %s8584_s2 = sld [smem:[#allocation51_spill]]  ;;  %s8585_s3 = sld [smem:[#allocation52_spill]] }
  0x1f   : > { %s5954_s23 = scalar_lea.vmem %s8581_s0, %s5223_s19  ;;  %s5311_s22 = sshll.u32 %s5946_s16, 3 }
  0x20   : > { %8582 = sst [smem:[#allocation8_spill]] %s5954_s23  ;;  %s8586_s5 = sld [smem:[#allocation53_spill]] }
  0x21   : > { %s5959_s14 = scalar_lea.vmem %s8583_s1, %s5410_s17  ;;  %s5312_s30 = sshll.u32 %s5946_s16, 6 }
  0x22   : > { %s8587_s7 = sld [smem:[#allocation54_spill]]  ;;  %s635_s0 = scalar_lea.vmem %s8517_s9, %s5946_s16 }
  0x23   : > { %s641_s28 = scalar_lea.vmem %s8519_s11, %s5946_s16 }
  0x24   : > { %s5964_s27 = scalar_lea.vmem %s8584_s2, %s5411_s20  ;;  %s5969_s15 = scalar_lea.vmem %s8585_s3, %s5310_s18 }
  0x25   : > { %s638_s2 = scalar_lea.vmem %s8518_s10, %s5946_s16  ;;  %s8588_s20 = sld [smem:[#allocation55_spill]] }
  0x26   : > { %s5979_s17 = scalar_lea.vmem %s8586_s5, %s5311_s22 }
  0x28   : > { %s5993_s12 = scalar_lea.vmem %s8587_s7, %s5312_s30  ;;  %s8589_s30 = sld [smem:[#allocation56_spill]] }
  0x29   : > { %s8590_s7 = sld [smem:[#allocation2_spill]] }
  0x2b   : > { %s644_s25 = scalar_lea.vmem %s8588_s20, %s5946_s16 }
  0x2e   : > { %s6014_s18 = scalar_lea.vmem %s8589_s30, %s5223_s19 }
  0x2f   : > { %p5233_p7 = scmp.ne.s32.totalorder %s8590_s7, 0 }
  0x30   : > { %s8591_s21 = sld [smem:[#allocation8_spill]] (!%p5233_p7)  ;;  %vm664_vm0 = vcmask (!%p5233_p7), 125952  }
  0x31   : > { %655 = sbr.rel (%p5233_p7) target bundleno = 60 (0x3c), region = 76 }
  0x36   : > { %v656_v0 = vld [vmem:[%s8591_s21] sm:$0xf] (!%p5233_p7)  ;;  %v657_v1 = vld [vmem:[%s8591_s21 + $0x4] sm:$0xf] (!%p5233_p7)  ;;  %v658_v2 = vld [vmem:[%s8591_s21 + $0x8] sm:$0xf] (!%p5233_p7) }
  0x37   : > { %665 = vst.msk [vmem:[%s6014_s18] sm:$0xf] (!%p5233_p7), %vm664_vm0, %v656_v0  ;;  %666 = vst.msk [vmem:[%s6014_s18 + $0x4] sm:$0xf] (!%p5233_p7), %vm664_vm0, %v657_v1  ;;  %v659_v3 = vld [vmem:[%s8591_s21 + $0xc] sm:$0xf] (!%p5233_p7) }
  0x38   : > { %v660_v4 = vld [vmem:[%s8591_s21 + $0x10] sm:$0xf]  ;;  %667 = vst.msk [vmem:[%s6014_s18 + $0x8] sm:$0xf] %vm664_vm0, %v658_v2  ;;  %668 = vst.msk [vmem:[%s6014_s18 + $0xc] sm:$0xf] %vm664_vm0, %v659_v3 }
  0x39   : > { %669 = vst.msk [vmem:[%s6014_s18 + $0x10] sm:$0xf] %vm664_vm0, %v660_v4  ;;  %v661_v5 = vld [vmem:[%s8591_s21 + $0x14] sm:$0xf]  ;;  %v662_v6 = vld [vmem:[%s8591_s21 + $0x18] sm:$0xf] }
  0x3a   : > { %v663_v7 = vld [vmem:[%s8591_s21 + $0x1c] sm:$0xf]  ;;  %670 = vst.msk [vmem:[%s6014_s18 + $0x14] sm:$0xf] %vm664_vm0, %v661_v5  ;;  %671 = vst.msk [vmem:[%s6014_s18 + $0x18] sm:$0xf] %vm664_vm0, %v662_v6 }
  0x3b   : > { %672 = vst.msk [vmem:[%s6014_s18 + $0x1c] sm:$0xf] %vm664_vm0, %v663_v7 }
  0x3c PF: > { %v5567_v8 = vld [vmem:[%s5959_s14 + $0x4] ss:$48 sps:$4 sm:$0xff]   ;;  %v5569_v9 = vld [vmem:[%s5959_s14 + $0xc] ss:$48 sps:$4 sm:$0xff]   ;;  %v8527_v10 = vmov 0   ;;  %vm835_vm1 = vcmask 130048   ;;  %v715_v31 = vlaneseq  ;;  %s8766_s7 = scalar_lea.vmem %s8512_s4, %s5946_s16  ;;  %s8767_s13 = scalar_lea.vmem %s8514_s6, %s5946_s16 }
  0x3d   : > { %874 = vmatprep.mubr.bf16.mxu0 %v8527_v10  ;;  %937 = vmatprep.mubr.bf16.mxu1 %v8527_v10  ;;  %v5571_v11 = vld [vmem:[%s5959_s14] ss:$48 sps:$4 sm:$0xff]   ;;  %v5572_v12 = vld [vmem:[%s5959_s14 + $0x8] ss:$48 sps:$4 sm:$0xff]   ;;  %v5579_v26 = vld [vmem:[%s5959_s14 + $0x1c] ss:$48 sps:$4 sm:$0xff]   ;;  %s8768_s23 = scalar_lea.vmem %s8516_s8, %s5946_s16 }
  0x3e   : > { %842 = vmatprep.subr.bf16.mxu0 %v5567_v8  ;;  %5456 = vset.pattern.permute.xlu0 %v8527_v10  ;;  %v5577_v27 = vld [vmem:[%s5959_s14 + $0x18] ss:$48 sps:$4 sm:$0xff]   ;;  %v5582_v28 = vld [vmem:[%s5959_s14 + $0x14] ss:$48 sps:$4 sm:$0xff]   ;;  %v5580_v30 = vld [vmem:[%s5959_s14 + $0x10] ss:$48 sps:$4 sm:$0xff]  }
  0x3f   : > { %5408 = vmatprep.subr.bf16.mxu1 %v5569_v9  ;;  %843 = vmatpush1.bf16.msra.mxu0 %v5571_v11  ;;  %v6080_v32 = vshrl.u32 %v715_v31, 7  ;;  %v6089_v35 = vld [vmem:[%s5964_s27] sm:$0xff]  ;;  %vm1236_vm2 = vcmask 1043456   ;;  %vm1453_vm3 = vcmask 7168   ;;  %vm1462_vm4 = vcmask 15360  }
  0x40   : > { %5409 = vmatpush1.bf16.msra.mxu1 %v5572_v12  ;;  %v677_v19 = vld [vmem:[%s6014_s18 + $0x10] sm:$0xf]  ;;  %895 = vmatprep.subr.bf16.mxu0 %v5569_v9  ;;  %vm1471_vm5 = vcmask 23552   ;;  %vm1480_vm6 = vcmask 27648   ;;  %vm4516_vm7 = vcmask 125952  }
  0x41   : > { %v678_v20 = vld [vmem:[%s6014_s18 + $0x14] sm:$0xf]  ;;  %v679_v21 = vld [vmem:[%s6014_s18 + $0x18] sm:$0xf]  ;;  %1001 = vmatprep.subr.bf16.mxu1 %v5579_v26  ;;  %v6083_v33 = vsub.s32 3, %v6080_v32  ;;  %v6086_v34 = vsub.s32 2, %v6080_v32 }
  0x42   : > { %v673_v13 = vld [vmem:[%s6014_s18] sm:$0xf]  ;;  %v674_v14 = vld [vmem:[%s6014_s18 + $0x4] sm:$0xf]  ;;  %v680_v22 = vld [vmem:[%s6014_s18 + $0x1c] sm:$0xf]  ;;  %v691_v23 = vcombine.low %v677_v19, %v678_v20 }
  0x43   : > { %v675_v15 = vld [vmem:[%s6014_s18 + $0x8] sm:$0xf]  ;;  %v676_v16 = vld [vmem:[%s6014_s18 + $0xc] sm:$0xf]  ;;  %v689_v17 = vcombine.low %v673_v13, %v674_v14  ;;  %v692_v25 = vcombine.low %v679_v21, %v680_v22  ;;  %8594 = vst [vmem:[#allocation11_spill] sm:$0xff] %v6086_v34  ;;  %v6095_v37 = vrot.slane %v6089_v35, %v6083_v33  ;;  %v6101_v39 = vrot.slane %v6089_v35, %v6086_v34 }
  0x44   : > { %v690_v18 = vcombine.low %v675_v15, %v676_v16  ;;  %v6108_v42 = vsub.s32 0, %v6080_v32  ;;  %v741_v45 = vsub.s32 6, %v6080_v32  ;;  %v6114_v46 = vsub.s32 1, %v6080_v32 }
  0x45   : > { %v6055_v29 = vpack.c.bf16 %v692_v25, %v691_v23  ;;  %v745_v52 = vsub.s32 7, %v6080_v32 }
  0x46   : > { %v6048_v24 = vpack.c.bf16 %v690_v18, %v689_v17  ;;  %8595 = vst [vmem:[#allocation12_spill] sm:$0xff] %v6108_v42  ;;  %8596 = vst [vmem:[#allocation13_spill] sm:$0xff] %v6114_v46  ;;  %v6128_v53 = vrot.slane %v6089_v35, %v6108_v42  ;;  %v6131_v54 = vrot.slane %v6089_v35, %v741_v45 }
  0x47   : > { %8593 = vst [vmem:[#allocation10_spill] sm:$0xff] %v6055_v29  ;;  %5249 = vmatmul.mubr.msk.bf16.vlgmr.msra.gmra.mrb[0].mxu1 %vm835_vm1, %v6055_v29  ;;  %v6135_v55 = vrot.slane %v6089_v35, %v6114_v46  ;;  %v6144_v62 = vrot.slane %v6089_v35, %v745_v52 }
  0x48   : > { %8592 = vst [vmem:[#allocation9_spill] sm:$0xff] %v6048_v24  ;;  %5246 = vmatmul.mubr.msk.bf16.vlgmr.msra.gmra.mrb[0].mxu0 %vm835_vm1, %v6048_v24  ;;  %1002 = vmatpush1.bf16.msra.mxu1 %v5577_v27 }
  0x49   : > { %896 = vmatpush1.bf16.msra.mxu0 %v5572_v12  ;;  %884 = vmatprep.mubr.bf16.mxu0 %v8527_v10  ;;  %v733_v12 = vsub.s32 4, %v6080_v32 }
  0x4a   : > { %948 = vmatprep.subr.bf16.mxu0 %v5582_v28  ;;  %1033 = vmatprep.mubr.bf16.mxu1 %v8527_v10 }
  0x4f   : > { %5252 = vmatmul.mubr.msk.bf16.vlgmr.msra.gmra.mrb[4].mxu1 %vm835_vm1, %v6048_v24 }
  0x50   : > { %5247 = vmatmul.mubr.msk.bf16.gmra.mrb[4].mxu0 %vm835_vm1, %v6055_v29  ;;  %1043 = vmatprep.mubr.bf16.mxu1 %v8527_v10 }
  0x51   : > { %927 = vmatprep.mubr.bf16.mxu0 %v8527_v10 }
  0x57   : > { %5253 = vmatmul.mubr.msk.bf16.gmra.mrb[8].mxu1 %vm835_vm1, %v6055_v29 }
  0x58   : > { %5248 = vmatmul.mubr.msk.bf16.vlgmr.msra.gmra.mrb[8].mxu0 %vm835_vm1, %v6048_v24  ;;  %1139 = vmatprep.mubr.bf16.mxu1 %v8527_v10 }
  0x59   : > { %949 = vmatpush1.bf16.msra.mxu0 %v5580_v30  ;;  %980 = vmatprep.mubr.bf16.mxu0 %v8527_v10 }
  0x60   : > { %5250 = vmatmul.mubr.msk.bf16.vlgmr.msra.gmra.mrb[12].mxu0 %vm835_vm1, %v6048_v24 }
  0x61   : > { %990 = vmatprep.mubr.bf16.mxu0 %v8527_v10 }
  0x68   : > { %5251 = vmatmul.mubr.msk.bf16.gmra.mrb[16].mxu0 %vm835_vm1, %v6055_v29 }
  0x69   : > { %1086 = vmatprep.mubr.bf16.mxu0 %v8527_v10 }
 0x11a   : > { %v6105_v41 = vpop.f32.mrb[0].mxu1 }
 0x11b   : > { %v6091_v36 = vpop.f32.mrb[0].mxu0  ;;  %v941_v44 = vpop.f32.mrb[1].mxu1 }
 0x11c   : > { %v6097_v38 = vpop.f32.mrb[1].mxu0  ;;  %v6117_v47 = vadd.f32 %v941_v44, %v6095_v37  ;;  %v943_v48 = vpop.f32.mrb[2].mxu1 }
 0x11d   : > { %v6103_v40 = vpop.f32.mrb[2].mxu0  ;;  %v6120_v49 = vadd.f32 %v943_v48, %v6101_v39  ;;  %v945_v50 = vpop.f32.mrb[3].mxu1 }
 0x11e   : > { %v6110_v43 = vpop.f32.mrb[3].mxu0  ;;  %v6123_v51 = vadd.f32 %v945_v50, %v6095_v37 }
 0x122   : > { %v1035_v61 = vpop.f32.mrb[4].mxu1 }
 0x123   : > { %v886_v56 = vpop.f32.mrb[4].mxu0  ;;  %v1036_v1 = vadd.f32 %v1035_v61, %v6131_v54  ;;  %v1037_v2 = vpop.f32.mrb[5].mxu1 }
 0x124   : > { %v6138_v57 = vadd.f32 %v886_v56, %v6128_v53  ;;  %v888_v58 = vpop.f32.mrb[5].mxu0  ;;  %v1039_v4 = vpop.f32.mrb[6].mxu1  ;;  %v6156_v7 = vadd.f32 %v1037_v2, %v6144_v62 }
 0x125   : > { %v6141_v59 = vadd.f32 %v888_v58, %v6135_v55  ;;  %v890_v60 = vpop.f32.mrb[6].mxu0  ;;  %v6153_v5 = vpop.f32.mrb[7].mxu1  ;;  %v2629_v6 = vcombine.high %v1036_v1, %v1036_v1  ;;  %v2652_v8 = vrot.slane %v1036_v1, %v6108_v42  ;;  %v6160_v9 = vadd.f32 %v1039_v4, %v6131_v54 }
 0x126   : > { %v6147_v63 = vadd.f32 %v890_v60, %v6128_v53  ;;  %v892_v0 = vpop.f32.mrb[7].mxu0  ;;  %v2716_v13 = vrot.slane %v1036_v1, %v6114_v46  ;;  %v2780_v14 = vrot.slane %v1036_v1, %v6086_v34  ;;  %v2844_v19 = vrot.slane %v1036_v1, %v6083_v33 }
 0x127   : > { %8597 = vst [vmem:[#allocation14_spill] sm:$0xff] %v6141_v59  ;;  %v6151_v3 = vadd.f32 %v892_v0, %v6135_v55  ;;  %v2656_v17 = vrot.slane %v2629_v6, %v6108_v42  ;;  %v2720_v18 = vrot.slane %v2629_v6, %v6114_v46  ;;  %v2784_v22 = vrot.slane %v2629_v6, %v6086_v34 }
 0x128   : > { %8598 = vst [vmem:[#allocation15_spill] sm:$0xff] %v6147_v63  ;;  %v2848_v23 = vrot.slane %v2629_v6, %v6083_v33  ;;  %v3376_v25 = vrot.slane %v6156_v7, %v6108_v42  ;;  %v3353_v26 = vcombine.high %v6156_v7, %v6156_v7  ;;  %v3440_v44 = vrot.slane %v6156_v7, %v6114_v46 }
 0x129   : > { %8599 = vst [vmem:[#allocation16_spill] sm:$0xff] %v6151_v3  ;;  %v3504_v45 = vrot.slane %v6156_v7, %v6086_v34 }
 0x12a   : > { %v6169_v20 = vpop.f32.mrb[8].mxu1 }
 0x12b   : > { %v929_v11 = vpop.f32.mrb[8].mxu0  ;;  %v1047_v27 = vpop.f32.mrb[9].mxu1 }
 0x12c   : > { %v930_v15 = vadd.f32 %v929_v11, %v6101_v39  ;;  %v931_v16 = vpop.f32.mrb[9].mxu0  ;;  %v6185_v50 = vadd.f32 %v1047_v27, %v6144_v62  ;;  %v1049_v52 = vpop.f32.mrb[10].mxu1  ;;  %v3444_v11 = vrot.slane %v3353_v26, %v6114_v46  ;;  %v3508_v27 = vrot.slane %v3353_v26, %v6086_v34 }
 0x12d   : > { %v933_v21 = vpop.f32.mrb[10].mxu0  ;;  %v932_v48 = vadd.f32 %v931_v16, %v6095_v37  ;;  %v6188_v60 = vadd.f32 %v1049_v52, %v6131_v54  ;;  %v1051_v61 = vpop.f32.mrb[11].mxu1 }
 0x12e   : > { %v6177_v28 = vpop.f32.mrb[11].mxu0  ;;  %v2681_v30 = vmul.f32 %v2652_v8, %v930_v15  ;;  %v2617_v31 = vcombine.high %v930_v15, %v930_v15  ;;  %v2745_v56 = vmul.f32 %v2716_v13, %v930_v15  ;;  %v2809_v58 = vmul.f32 %v2780_v14, %v930_v15 }
 0x12f   : > { %v6192_v4 = vadd.f32 %v1051_v61, %v6144_v62  ;;  %v3380_v8 = vrot.slane %v3353_v26, %v6108_v42  ;;  %v2873_v14 = vmul.f32 %v2844_v19, %v930_v15  ;;  %v934_v61 = vadd.f32 %v933_v21, %v6101_v39 }
 0x130   : > { %v2689_v0 = vsel %vm1236_vm2, %v2681_v30, 0.0  ;;  %v2682_v1 = vmul.f32 %v2656_v17, %v2617_v31  ;;  %v2746_v2 = vmul.f32 %v2720_v18, %v2617_v31  ;;  %v2810_v6 = vmul.f32 %v2784_v22, %v2617_v31 }
 0x131   : > { %2690 = vadd.xlane.f32.xlu0 %v2689_v0  ;;  %v2874_v16 = vmul.f32 %v2848_v23, %v2617_v31  ;;  %v3405_v17 = vmul.f32 %v3376_v25, %v932_v48  ;;  %v3341_v18 = vcombine.high %v932_v48, %v932_v48  ;;  %v6200_v30 = vmul.f32 %v3440_v44, %v932_v48 }
 0x132   : > { %v2692_v13 = vsel %vm1236_vm2, %v2682_v1, 0.0  ;;  %v3568_v22 = vrot.slane %v6156_v7, %v6083_v33  ;;  %v737_v0 = vsub.s32 5, %v6080_v32  ;;  %v2753_v15 = vsel %vm1236_vm2, %v2745_v56, 0.0 }
 0x133   : > { %v6198_v52 = vpop.f32.mrb[12].mxu0  ;;  %2693 = vadd.xlane.f32.xlu1 %v2692_v13  ;;  %v6209_v19 = vmul.f32 %v3504_v45, %v932_v48  ;;  %v3406_v25 = vmul.f32 %v3380_v8, %v3341_v18  ;;  %v2630_v31 = vcombine.high %v6160_v9, %v6160_v9  ;;  %v2756_v7 = vsel %vm1236_vm2, %v2746_v2, 0.0 }
 0x134   : > { %v6206_v10 = vpop.f32.mrb[13].mxu0  ;;  %v6218_v21 = vmul.f32 %v3444_v11, %v3341_v18  ;;  %v6220_v32 = vmul.f32 %v3508_v27, %v3341_v18  ;;  %v2660_v56 = vrot.slane %v6160_v9, %v6108_v42  ;;  %v6225_v45 = vrot.slane %v6089_v35, %v733_v12 }
 0x135   : > { %v6211_v23 = vpop.f32.mrb[14].mxu0  ;;  %2754 = vadd.xlane.f32.xlu0 %v2753_v15  ;;  %v6227_v1 = vmul.f32 %v3568_v22, %v932_v48  ;;  %v3572_v8 = vrot.slane %v3353_v26, %v6083_v33  ;;  %v2724_v13 = vrot.slane %v6160_v9, %v6114_v46  ;;  %v6233_v2 = vrot.slane %v6089_v35, %v737_v0 }
 0x136   : > { %v6215_v44 = vpop.f32.mrb[15].mxu0  ;;  %v2817_v11 = vsel %vm1236_vm2, %v2809_v58, 0.0  ;;  %v6236_v27 = vmul.f32 %v2660_v56, %v934_v61  ;;  %v2618_v15 = vcombine.high %v934_v61, %v934_v61  ;;  %v940_v12 = vadd.f32 %v6105_v41, %v6101_v39 }
 0x137   : > { %2757 = vadd.xlane.f32.xlu1 %v2756_v7  ;;  %v6240_v7 = vmul.f32 %v3572_v8, %v3341_v18  ;;  %v2664_v48 = vrot.slane %v2630_v31, %v6108_v42  ;;  %v6243_v26 = vmul.f32 %v2724_v13, %v934_v61  ;;  %v2820_v22 = vsel %vm1236_vm2, %v2810_v6, 0.0 }
 0x138   : > { %v2728_v35 = vrot.slane %v2630_v31, %v6114_v46  ;;  %v2788_v58 = vrot.slane %v6160_v9, %v6086_v34  ;;  %v2792_v0 = vrot.slane %v2630_v31, %v6086_v34  ;;  %v1046_v56 = vadd.f32 %v6169_v20, %v6131_v54 }
 0x139   : > { %2818 = vadd.xlane.f32.xlu0 %v2817_v11  ;;  %v2881_v41 = vsel %vm1236_vm2, %v2873_v14, 0.0  ;;  %v6253_v18 = vmul.f32 %v2664_v48, %v2618_v15  ;;  %v2852_v8 = vrot.slane %v6160_v9, %v6083_v33  ;;  %v2856_v48 = vrot.slane %v2630_v31, %v6083_v33 }
 0x13a   : > { %v6260_v11 = vmul.f32 %v2728_v35, %v2618_v15  ;;  %v6262_v29 = vmul.f32 %v2788_v58, %v934_v61  ;;  %v6264_v24 = vmul.f32 %v2792_v0, %v2618_v15  ;;  %v2884_v35 = vsel %vm1236_vm2, %v2874_v16, 0.0 }
 0x13b   : > { %v992_v39 = vpop.f32.mrb[16].mxu0  ;;  %2821 = vadd.xlane.f32.xlu1 %v2820_v22  ;;  %v6269_v14 = vmul.f32 %v2852_v8, %v934_v61  ;;  %v1042_v58 = vadd.f32 %v6153_v5, %v6144_v62  ;;  %v3413_v61 = vsel %vm1236_vm2, %v3405_v17, 0.0  ;;  %v2668_v31 = vrot.slane %v1046_v56, %v6108_v42 }
 0x13c   : > { %v6258_v6 = vadd.f32 %v992_v39, %v6225_v45  ;;  %v994_v13 = vpop.f32.mrb[17].mxu0  ;;  %v6281_v39 = vmul.f32 %v2856_v48, %v2618_v15  ;;  %v2631_v8 = vcombine.high %v1046_v56, %v1046_v56  ;;  %v936_v16 = vadd.f32 %v6177_v28, %v6095_v37 }
 0x13d   : > { %v6267_v54 = vadd.f32 %v994_v13, %v6233_v2  ;;  %v996_v20 = vpop.f32.mrb[18].mxu0  ;;  %2882 = vadd.xlane.f32.xlu0 %v2881_v41  ;;  %v2619_v41 = vcombine.high %v940_v12, %v940_v12  ;;  %v2732_v13 = vrot.slane %v1046_v56, %v6114_v46  ;;  %v3416_v62 = vsel %vm1236_vm2, %v3406_v25, 0.0 }
 0x13e   : > { %v6273_v9 = vadd.f32 %v996_v20, %v6225_v45  ;;  %v998_v22 = vpop.f32.mrb[19].mxu0  ;;  %v2796_v5 = vrot.slane %v1046_v56, %v6086_v34  ;;  %v2860_v20 = vrot.slane %v1046_v56, %v6083_v33  ;;  %v6291_v15 = vmul.f32 %v2668_v31, %v940_v12 }
 0x13f   : > { %v6279_v0 = vadd.f32 %v998_v22, %v6233_v2  ;;  %2885 = vadd.xlane.f32.xlu1 %v2884_v35  ;;  %v2672_v48 = vrot.slane %v2631_v8, %v6108_v42  ;;  %v6294_v17 = vmul.f32 %v2732_v13, %v940_v12  ;;  %v2736_v22 = vrot.slane %v2631_v8, %v6114_v46 }
 0x140   : > { %8600 = vst [vmem:[#allocation17_spill] sm:$0xff] %v6273_v9  ;;  %v6297_v35 = vmul.f32 %v2796_v5, %v940_v12  ;;  %v2800_v37 = vrot.slane %v2631_v8, %v6086_v34  ;;  %v6300_v28 = vmul.f32 %v2860_v20, %v940_v12  ;;  %v2864_v25 = vrot.slane %v2631_v8, %v6083_v33 }
 0x141   : > { %8601 = vst [vmem:[#allocation18_spill] sm:$0xff] %v6279_v0  ;;  %3414 = vadd.xlane.f32.xlu0 %v3413_v61  ;;  %v3477_v56 = vsel %vm1236_vm2, %v6200_v30, 0.0  ;;  %v6305_v61 = vmul.f32 %v2672_v48, %v2619_v41  ;;  %v6307_v31 = vmul.f32 %v2736_v22, %v2619_v41  ;;  %v3384_v12 = vrot.slane %v1042_v58, %v6108_v42 }
 0x142   : > { %v6309_v13 = vmul.f32 %v2800_v37, %v2619_v41  ;;  %v6311_v3 = vmul.f32 %v2864_v25, %v2619_v41  ;;  %v3541_v8 = vsel %vm1236_vm2, %v6209_v19, 0.0  ;;  %v3342_v5 = vcombine.high %v936_v16, %v936_v16 }
 0x143   : > { %3417 = vadd.xlane.f32.xlu1 %v3416_v62  ;;  %v3480_v62 = vsel %vm1236_vm2, %v6218_v21, 0.0  ;;  %v3354_v30 = vcombine.high %v1042_v58, %v1042_v58  ;;  %v3448_v20 = vrot.slane %v1042_v58, %v6114_v46  ;;  %v6319_v48 = vmul.f32 %v3384_v12, %v936_v16 }
 0x144   : > { %v3512_v22 = vrot.slane %v1042_v58, %v6086_v34  ;;  %v3576_v41 = vrot.slane %v1042_v58, %v6083_v33  ;;  %v3392_v37 = vrot.slane %v6185_v50, %v6108_v42  ;;  %v3605_v9 = vsel %vm1236_vm2, %v6227_v1, 0.0 }
 0x145   : > { %3478 = vadd.xlane.f32.xlu0 %v3477_v56  ;;  %v3388_v21 = vrot.slane %v3354_v30, %v6108_v42  ;;  %v6326_v25 = vmul.f32 %v3448_v20, %v936_v16  ;;  %v3452_v19 = vrot.slane %v3354_v30, %v6114_v46  ;;  %v3516_v56 = vrot.slane %v3354_v30, %v6086_v34 }
 0x146   : > { %v6332_v12 = vmul.f32 %v3512_v22, %v936_v16  ;;  %v6334_v0 = vmul.f32 %v3576_v41, %v936_v16  ;;  %v3580_v58 = vrot.slane %v3354_v30, %v6083_v33  ;;  %v3343_v16 = vcombine.high %v6117_v47, %v6117_v47 }
 0x147   : > { %3481 = vadd.xlane.f32.xlu1 %v3480_v62  ;;  %v3544_v62 = vsel %vm1236_vm2, %v6220_v32, 0.0  ;;  %v6337_v63 = vmul.f32 %v3388_v21, %v3342_v5  ;;  %v6341_v20 = vmul.f32 %v3516_v56, %v3342_v5  ;;  %v6348_v32 = vmul.f32 %v3392_v37, %v6117_v47 }
 0x148   : > { %v6345_v59 = vmul.f32 %v3580_v58, %v3342_v5  ;;  %v3355_v30 = vcombine.high %v6185_v50, %v6185_v50  ;;  %v3608_v22 = vsel %vm1236_vm2, %v6240_v7, 0.0  ;;  %v2695_v41 = vsel %vm1236_vm2, %v6236_v27, 0.0 }
 0x149   : > { %3542 = vadd.xlane.f32.xlu0 %v3541_v8  ;;  %v6339_v8 = vmul.f32 %v3452_v19, %v3342_v5  ;;  %8602 = vst [vmem:[#allocation19_spill] sm:$0xff] %v6348_v32  ;;  %v3456_v1 = vrot.slane %v6185_v50, %v6114_v46  ;;  %v3520_v5 = vrot.slane %v6185_v50, %v6086_v34 }
 0x14a   : > { %v3460_v37 = vrot.slane %v3355_v30, %v6114_v46  ;;  %v3524_v21 = vrot.slane %v3355_v30, %v6086_v34  ;;  %v3584_v19 = vrot.slane %v6185_v50, %v6083_v33  ;;  %v3588_v56 = vrot.slane %v3355_v30, %v6083_v33 }
 0x14b   : > { %3545 = vadd.xlane.f32.xlu1 %v3544_v62  ;;  %v6368_v7 = vmul.f32 %v3456_v1, %v6117_v47  ;;  %v6371_v27 = vmul.f32 %v3520_v5, %v6117_v47  ;;  %v2676_v62 = vrot.slane %v6188_v60, %v6108_v42  ;;  %v2698_v1 = vsel %vm1236_vm2, %v6253_v18, 0.0 }
 0x14c   : > { %v6380_v32 = vmul.f32 %v3524_v21, %v3343_v16  ;;  %v6383_v50 = vmul.f32 %v3584_v19, %v6117_v47  ;;  %v6387_v5 = vmul.f32 %v3588_v56, %v3343_v16  ;;  %v2632_v47 = vcombine.high %v6188_v60, %v6188_v60 }
 0x14d   : > { %3606 = vadd.xlane.f32.xlu0 %v3605_v9  ;;  %v3396_v9 = vrot.slane %v3355_v30, %v6108_v42  ;;  %v6390_v30 = vmul.f32 %v2676_v62, %v6120_v49  ;;  %v2740_v18 = vrot.slane %v6188_v60, %v6114_v46  ;;  %v2868_v21 = vrot.slane %v6188_v60, %v6083_v33 }
 0x14e   : > { %8603 = vst [vmem:[#allocation20_spill] sm:$0xff] %v6380_v32  ;;  %8604 = vst [vmem:[#allocation21_spill] sm:$0xff] %v6383_v50  ;;  %v3400_v19 = vrot.slane %v6192_v4, %v6108_v42  ;;  %v2744_v62 = vrot.slane %v2632_v47, %v6114_v46 }
 0x14f   : > { %3609 = vadd.xlane.f32.xlu1 %v3608_v22  ;;  %v6376_v58 = vmul.f32 %v3396_v9, %v3343_v16  ;;  %v6378_v22 = vmul.f32 %v3460_v37, %v3343_v16  ;;  %8605 = vst [vmem:[#allocation22_spill] sm:$0xff] %v6387_v5  ;;  %8606 = vst [vmem:[#allocation23_spill] sm:$0xff] %v6390_v30  ;;  %v2759_v9 = vsel %vm1236_vm2, %v6243_v26, 0.0  ;;  %v2762_v37 = vsel %vm1236_vm2, %v6260_v11, 0.0 }
 0x150   : > { %v2804_v16 = vrot.slane %v6188_v60, %v6086_v34  ;;  %v3356_v26 = vcombine.high %v6192_v4, %v6192_v4  ;;  %v2680_v11 = vrot.slane %v2632_v47, %v6108_v42  ;;  %v6412_v56 = vmul.f32 %v2740_v18, %v6120_v49 }
 0x151   : > { %2696 = vadd.xlane.f32.xlu0 %v2695_v41  ;;  %v2620_v41 = vcombine.high %v6120_v49, %v6120_v49  ;;  %v6420_v60 = vmul.f32 %v2868_v21, %v6120_v49  ;;  %v2872_v30 = vrot.slane %v2632_v47, %v6083_v33  ;;  %v6424_v5 = vmul.f32 %v3400_v19, %v6123_v51 }
 0x152   : > { %8607 = vst [vmem:[#allocation24_spill] sm:$0xff] %v6412_v56  ;;  %v2823_v18 = vsel %vm1236_vm2, %v6262_v29, 0.0  ;;  %v3344_v29 = vcombine.high %v6123_v51, %v6123_v51  ;;  %v3404_v21 = vrot.slane %v3356_v26, %v6108_v42  ;;  %v2887_v19 = vsel %vm1236_vm2, %v6269_v14, 0.0 }
 0x153   : > { %2699 = vadd.xlane.f32.xlu1 %v2698_v1  ;;  %v2808_v1 = vrot.slane %v2632_v47, %v6086_v34  ;;  %v6428_v56 = vmul.f32 %v2680_v11, %v2620_v41  ;;  %v6430_v50 = vmul.f32 %v2744_v62, %v2620_v41  ;;  %v877_v47 = vadd.f32 %v6091_v36, %v6128_v53 }
 0x154   : > { %v3528_v36 = vrot.slane %v6192_v4, %v6086_v34  ;;  %v3592_v11 = vrot.slane %v6192_v4, %v6083_v33  ;;  %v3596_v62 = vrot.slane %v3356_v26, %v6083_v33 }
 0x155   : > { %2760 = vadd.xlane.f32.xlu0 %v2759_v9  ;;  %v6417_v9 = vmul.f32 %v2804_v16, %v6120_v49  ;;  %v6432_v32 = vmul.f32 %v2808_v1, %v2620_v41  ;;  %v6436_v49 = vmul.f32 %v2872_v30, %v2620_v41  ;;  %v2826_v16 = vsel %vm1236_vm2, %v6264_v24, 0.0 }
 0x156   : > { %v3468_v30 = vrot.slane %v3356_v26, %v6114_v46  ;;  %v6452_v41 = vmul.f32 %v3404_v21, %v3344_v29  ;;  %v3532_v24 = vrot.slane %v3356_v26, %v6086_v34  ;;  %v2890_v21 = vsel %vm1236_vm2, %v6281_v39, 0.0 }
 0x157   : > { %2763 = vadd.xlane.f32.xlu1 %v2762_v37  ;;  %v983_v37 = vadd.f32 %v6198_v52, %v6225_v45  ;;  %v3464_v52 = vrot.slane %v6192_v4, %v6114_v46  ;;  %v6472_v4 = vmul.f32 %v3592_v11, %v6123_v51  ;;  %v6474_v26 = vmul.f32 %v3596_v62, %v3344_v29 }
 0x158   : > { %8608 = vst [vmem:[#allocation25_spill] sm:$0xff] %v6452_v41  ;;  %v6461_v1 = vmul.f32 %v3468_v30, %v3344_v29  ;;  %v6469_v41 = vmul.f32 %v3532_v24, %v3344_v29  ;;  %v6484_v39 = vadd.f32 %v6215_v44, %v6233_v2  ;;  %v2765_v29 = vsel %vm1236_vm2, %v6294_v17, 0.0 }
 0x159   : > { %2824 = vadd.xlane.f32.xlu0 %v2823_v18  ;;  %v6459_v14 = vmul.f32 %v3464_v52, %v6123_v51  ;;  %v6464_v18 = vmul.f32 %v3528_v36, %v6123_v51  ;;  %8609 = vst [vmem:[#allocation26_spill] sm:$0xff] %v6472_v4  ;;  %8610 = vst [vmem:[#allocation27_spill] sm:$0xff] %v6474_v26  ;;  %v985_v52 = vadd.f32 %v6206_v10, %v6233_v2 }
 0x15a   : > { %v1164_v36 = vcombine.high %v877_v47, %v877_v47  ;;  %v2701_v51 = vsel %vm1236_vm2, %v6291_v15, 0.0  ;;  %v1176_v24 = vcombine.high %v983_v37, %v983_v37  ;;  %v1264_v10 = vrot.slane %v983_v37, %v6114_v46 }
 0x15b   : > { %2827 = vadd.xlane.f32.xlu1 %v2826_v16  ;;  %v1199_v16 = vrot.slane %v983_v37, %v6108_v42  ;;  %v1328_v11 = vrot.slane %v983_v37, %v6086_v34  ;;  %v1392_v62 = vrot.slane %v983_v37, %v6083_v33 }
 0x15c   : > { %v1203_v44 = vrot.slane %v1176_v24, %v6108_v42  ;;  %v1268_v2 = vrot.slane %v1176_v24, %v6114_v46  ;;  %v1332_v15 = vrot.slane %v1176_v24, %v6086_v34  ;;  %v6499_v17 = vmul.f32 %v1264_v10, %v877_v47 }
 0x15d   : > { %2888 = vadd.xlane.f32.xlu0 %v2887_v19  ;;  %v879_v19 = vadd.f32 %v6097_v38, %v6135_v55  ;;  %v6480_v30 = vmul.f32 %v1199_v16, %v877_v47  ;;  %v2704_v38 = vsel %vm1236_vm2, %v6305_v61, 0.0  ;;  %v1396_v16 = vrot.slane %v1176_v24, %v6083_v33 }
 0x15e   : > { %v6503_v61 = vmul.f32 %v1392_v62, %v877_v47  ;;  %v6508_v37 = vmul.f32 %v1268_v2, %v1164_v36  ;;  %v6510_v26 = vmul.f32 %v1332_v15, %v1164_v36  ;;  %v987_v24 = vadd.f32 %v6211_v23, %v6225_v45 }
 0x15f   : > { %2891 = vadd.xlane.f32.xlu1 %v2890_v21  ;;  %8611 = vst [vmem:[#allocation28_spill] sm:$0xff] %v6480_v30  ;;  %v6501_v21 = vmul.f32 %v1328_v11, %v877_v47  ;;  %v6506_v30 = vmul.f32 %v1203_v44, %v1164_v36  ;;  %v6512_v4 = vmul.f32 %v1396_v16, %v1164_v36  ;;  %v2768_v10 = vsel %vm1236_vm2, %v6307_v31, 0.0 }
 0x160   : > { %v881_v47 = vadd.f32 %v6103_v40, %v6128_v53  ;;  %v6524_v11 = vadd.f32 %v6110_v43, %v6135_v55  ;;  %v1936_v36 = vrot.slane %v6484_v39, %v6108_v42  ;;  %v1992_v62 = vrot.slane %v985_v52, %v6114_v46 }
 0x161   : > { %2702 = vadd.xlane.f32.xlu0 %v2701_v51  ;;  %v1928_v51 = vrot.slane %v985_v52, %v6108_v42  ;;  %v1893_v23 = vcombine.high %v879_v19, %v879_v19  ;;  %v2829_v45 = vsel %vm1236_vm2, %v6297_v35, 0.0  ;;  %v2832_v40 = vsel %vm1236_vm2, %v6309_v13, 0.0 }
 0x162   : > { %v1905_v53 = vcombine.high %v985_v52, %v985_v52  ;;  %v2056_v31 = vrot.slane %v985_v52, %v6086_v34  ;;  %v6535_v43 = vmul.f32 %v1936_v36, %v6524_v11  ;;  %v6537_v55 = vmul.f32 %v1992_v62, %v879_v19 }
 0x163   : > { %2705 = vadd.xlane.f32.xlu1 %v2704_v38  ;;  %v6516_v38 = vmul.f32 %v1928_v51, %v879_v19  ;;  %v1207_v44 = vrot.slane %v987_v24, %v6108_v42 }
 0x164   : > { %v1996_v2 = vrot.slane %v1905_v53, %v6114_v46  ;;  %v6542_v15 = vmul.f32 %v2056_v31, %v879_v19  ;;  %v2060_v35 = vrot.slane %v1905_v53, %v6086_v34  ;;  %v2124_v13 = vrot.slane %v1905_v53, %v6083_v33 }
 0x165   : > { %2766 = vadd.xlane.f32.xlu0 %v2765_v29  ;;  %v2120_v29 = vrot.slane %v985_v52, %v6083_v33  ;;  %v6548_v51 = vmul.f32 %v1207_v44, %v881_v47  ;;  %v1272_v31 = vrot.slane %v987_v24, %v6114_v46  ;;  %v1336_v44 = vrot.slane %v987_v24, %v6086_v34 }
 0x166   : > { %v6552_v36 = vmul.f32 %v1996_v2, %v1893_v23  ;;  %v6554_v52 = vmul.f32 %v2060_v35, %v1893_v23  ;;  %v6556_v62 = vmul.f32 %v2124_v13, %v1893_v23 }
 0x167   : > { %2769 = vadd.xlane.f32.xlu1 %v2768_v10  ;;  %v6546_v16 = vmul.f32 %v2120_v29, %v879_v19  ;;  %8613 = vst [vmem:[#allocation30_spill] sm:$0xff] %v6548_v51  ;;  %v2893_v10 = vsel %vm1236_vm2, %v6300_v28, 0.0  ;;  %v3419_v19 = vsel %vm1236_vm2, %v6319_v48, 0.0  ;;  %v1165_v29 = vcombine.high %v881_v47, %v881_v47 }
 0x168   : > { %8614 = vst [vmem:[#allocation31_spill] sm:$0xff] %v6556_v62  ;;  %v6565_v2 = vmul.f32 %v1272_v31, %v881_v47  ;;  %v1400_v51 = vrot.slane %v987_v24, %v6083_v33  ;;  %v1932_v48 = vrot.slane %v1905_v53, %v6108_v42  ;;  %v3422_v31 = vsel %vm1236_vm2, %v6337_v63, 0.0 }
 0x169   : > { %2830 = vadd.xlane.f32.xlu0 %v2829_v45  ;;  %8612 = vst [vmem:[#allocation29_spill] sm:$0xff] %v6546_v16  ;;  %v1177_v45 = vcombine.high %v987_v24, %v987_v24  ;;  %v1906_v24 = vcombine.high %v6484_v39, %v6484_v39  ;;  %v3483_v53 = vsel %vm1236_vm2, %v6326_v25, 0.0  ;;  %v2000_v63 = vrot.slane %v6484_v39, %v6114_v46 }
 0x16a   : > { %8615 = vst [vmem:[#allocation32_spill] sm:$0xff] %v6565_v2  ;;  %v6582_v2 = vmul.f32 %v1400_v51, %v881_v47  ;;  %v2064_v51 = vrot.slane %v6484_v39, %v6086_v34 }
 0x16b   : > { %2833 = vadd.xlane.f32.xlu1 %v2832_v40  ;;  %v2896_v40 = vsel %vm1236_vm2, %v6311_v3, 0.0  ;;  %v1211_v28 = vrot.slane %v1177_v45, %v6108_v42  ;;  %v1276_v35 = vrot.slane %v1177_v45, %v6114_v46  ;;  %v1340_v13 = vrot.slane %v1177_v45, %v6086_v34 }
 0x16c   : > { %v1404_v3 = vrot.slane %v1177_v45, %v6083_v33  ;;  %v3486_v45 = vsel %vm1236_vm2, %v6339_v8, 0.0  ;;  %v6604_v25 = vmul.f32 %v2000_v63, %v6524_v11  ;;  %v2128_v8 = vrot.slane %v6484_v39, %v6083_v33 }
 0x16d   : > { %2894 = vadd.xlane.f32.xlu0 %v2893_v10  ;;  %v6569_v10 = vmul.f32 %v1336_v44, %v881_v47  ;;  %v6574_v62 = vmul.f32 %v1211_v28, %v1165_v29  ;;  %v6578_v16 = vmul.f32 %v1340_v13, %v1165_v29  ;;  %v1940_v47 = vrot.slane %v1906_v24, %v6108_v42 }
 0x16e   : > { %v6584_v44 = vmul.f32 %v1404_v3, %v1165_v29  ;;  %v2132_v28 = vrot.slane %v1906_v24, %v6083_v33  ;;  %v6623_v39 = vmul.f32 %v2128_v8, %v6524_v11  ;;  %v1408_v8 = vrot.slane %v6258_v6, %v6083_v33 }
 0x16f   : > { %2897 = vadd.xlane.f32.xlu1 %v2896_v40  ;;  %8616 = vst [vmem:[#allocation33_spill] sm:$0xff] %v6569_v10  ;;  %v6576_v40 = vmul.f32 %v1276_v35, %v1165_v29  ;;  %v6586_v10 = vmul.f32 %v1932_v48, %v1893_v23  ;;  %v2004_v23 = vrot.slane %v1906_v24, %v6114_v46 }
 0x170   : > { %v2068_v29 = vrot.slane %v1906_v24, %v6086_v34  ;;  %v1215_v35 = vrot.slane %v6258_v6, %v6108_v42  ;;  %v6616_v48 = vmul.f32 %v2064_v51, %v6524_v11  ;;  %8619 = vst [vmem:[#allocation36_spill] sm:$0xff] %v6623_v39  ;;  %v1280_v51 = vrot.slane %v6258_v6, %v6114_v46 }
 0x171   : > { %3420 = vadd.xlane.f32.xlu0 %v3419_v19  ;;  %v1894_v19 = vcombine.high %v6524_v11, %v6524_v11  ;;  %v3614_v11 = vsel %vm1236_vm2, %v6345_v59, 0.0 }
 0x172   : > { %8617 = vst [vmem:[#allocation34_spill] sm:$0xff] %v6616_v48  ;;  %v6628_v63 = vmul.f32 %v1215_v35, %v6138_v57 }
 0x173   : > { %3423 = vadd.xlane.f32.xlu1 %v3422_v31  ;;  %v6611_v13 = vmul.f32 %v1940_v47, %v1894_v19  ;;  %v6613_v3 = vmul.f32 %v2004_v23, %v1894_v19  ;;  %v6618_v31 = vmul.f32 %v2068_v29, %v1894_v19  ;;  %v6625_v24 = vmul.f32 %v2132_v28, %v1894_v19 }
 0x174   : > { %8621 = vst [vmem:[#allocation38_spill] sm:$0xff] %v6628_v63  ;;  %v1166_v47 = vcombine.high %v6138_v57, %v6138_v57  ;;  %v3550_v23 = vsel %vm1236_vm2, %v6341_v20, 0.0  ;;  %v1178_v19 = vcombine.high %v6258_v6, %v6258_v6  ;;  %v1344_v29 = vrot.slane %v6258_v6, %v6086_v34  ;;  %v8624_v63 = vld [vmem:[#allocation14_spill] sm:$0xff] }
 0x175   : > { %3484 = vadd.xlane.f32.xlu0 %v3483_v53  ;;  %8618 = vst [vmem:[#allocation35_spill] sm:$0xff] %v6618_v31  ;;  %v3547_v53 = vsel %vm1236_vm2, %v6332_v12, 0.0  ;;  %8620 = vst [vmem:[#allocation37_spill] sm:$0xff] %v6625_v24  ;;  %v3611_v12 = vsel %vm1236_vm2, %v6334_v0, 0.0  ;;  %v1944_v20 = vrot.slane %v6267_v54, %v6108_v42  ;;  %v6661_v6 = vmul.f32 %v1408_v8, %v6138_v57 }
 0x176   : > { %v1219_v0 = vrot.slane %v1178_v19, %v6108_v42  ;;  %v1284_v59 = vrot.slane %v1178_v19, %v6114_v46  ;;  %v1348_v28 = vrot.slane %v1178_v19, %v6086_v34  ;;  %v1412_v35 = vrot.slane %v1178_v19, %v6083_v33 }
 0x177   : > { %3487 = vadd.xlane.f32.xlu1 %v3486_v45  ;;  %v1907_v45 = vcombine.high %v6267_v54, %v6267_v54  ;;  %8623 = vst [vmem:[#allocation40_spill] sm:$0xff] %v6661_v6  ;;  %v6664_v24 = vmul.f32 %v1944_v20, %v8624_v63  ;;  %v3428_v20 = vsel %vm1236_vm2, %v6376_v58, 0.0 }
 0x178   : > { %v6666_v39 = vmul.f32 %v1219_v0, %v1166_v47  ;;  %v6668_v31 = vmul.f32 %v1284_v59, %v1166_v47  ;;  %v6670_v48 = vmul.f32 %v1348_v28, %v1166_v47  ;;  %v6672_v19 = vmul.f32 %v1412_v35, %v1166_v47 }
 0x179   : > { %3548 = vadd.xlane.f32.xlu0 %v3547_v53  ;;  %v6655_v53 = vmul.f32 %v1280_v51, %v6138_v57  ;;  %8625 = vst [vmem:[#allocation14_spill] sm:$0xff] %v6664_v24  ;;  %v8629_v51 = vld [vmem:[#allocation17_spill] sm:$0xff]  ;;  %v3489_v0 = vsel %vm1236_vm2, %v6368_v7, 0.0  ;;  %v1948_v47 = vrot.slane %v1907_v45, %v6108_v42  ;;  %v2012_v59 = vrot.slane %v1907_v45, %v6114_v46 }
 0x17a   : > { %8626 = vst [vmem:[#allocation41_spill] sm:$0xff] %v6668_v31  ;;  %8627 = vst [vmem:[#allocation42_spill] sm:$0xff] %v6670_v48  ;;  %v2072_v28 = vrot.slane %v6267_v54, %v6086_v34  ;;  %v2076_v35 = vrot.slane %v1907_v45, %v6086_v34  ;;  %v2140_v58 = vrot.slane %v1907_v45, %v6083_v33 }
 0x17b   : > { %3551 = vadd.xlane.f32.xlu1 %v3550_v23  ;;  %v6658_v23 = vmul.f32 %v1344_v29, %v6138_v57  ;;  %8628 = vst [vmem:[#allocation43_spill] sm:$0xff] %v6672_v19  ;;  %v1179_v29 = vcombine.high %v8629_v51, %v8629_v51  ;;  %v8630_v57 = vld [vmem:[#allocation19_spill] sm:$0xff]  ;;  %v1223_v7 = vrot.slane %v8629_v51, %v6108_v42 }
 0x17c   : > { %v3425_v8 = vsel %vm1236_vm2, %v8630_v57, 0.0  ;;  %v2136_v57 = vrot.slane %v6267_v54, %v6083_v33  ;;  %v6704_v6 = vmul.f32 %v2072_v28, %v8624_v63  ;;  %v8637_v28 = vld [vmem:[#allocation20_spill] sm:$0xff] }
 0x17d   : > { %3612 = vadd.xlane.f32.xlu0 %v3611_v12  ;;  %8622 = vst [vmem:[#allocation39_spill] sm:$0xff] %v6658_v23  ;;  %v1895_v12 = vcombine.high %v8624_v63, %v8624_v63  ;;  %v8634_v23 = vld [vmem:[#allocation15_spill] sm:$0xff] }
 0x17e   : > { %v6714_v31 = vmul.f32 %v1223_v7, %v8634_v23  ;;  %v1420_v7 = vrot.slane %v1179_v29, %v6083_v33 }
 0x17f   : > { %3615 = vadd.xlane.f32.xlu1 %v3614_v11  ;;  %v2008_v11 = vrot.slane %v6267_v54, %v6114_v46  ;;  %v6701_v19 = vmul.f32 %v2012_v59, %v1895_v12  ;;  %v6706_v48 = vmul.f32 %v2076_v35, %v1895_v12  ;;  %v6709_v54 = vmul.f32 %v2136_v57, %v8624_v63 }
 0x180   : > { %v6711_v45 = vmul.f32 %v2140_v58, %v1895_v12  ;;  %8635 = vst [vmem:[#allocation15_spill] sm:$0xff] %v6714_v31  ;;  %v3553_v59 = vsel %vm1236_vm2, %v6371_v27, 0.0  ;;  %v3556_v35 = vsel %vm1236_vm2, %v8637_v28, 0.0  ;;  %v1292_v57 = vrot.slane %v1179_v29, %v6114_v46 }
 0x181   : > { %3426 = vadd.xlane.f32.xlu0 %v3425_v8  ;;  %v6696_v8 = vmul.f32 %v1948_v47, %v1895_v12  ;;  %v6699_v24 = vmul.f32 %v2008_v11, %v8624_v63  ;;  %8631 = vst [vmem:[#allocation17_spill] sm:$0xff] %v6706_v48  ;;  %8632 = vst [vmem:[#allocation19_spill] sm:$0xff] %v6709_v54  ;;  %v3492_v11 = vsel %vm1236_vm2, %v6378_v22, 0.0 }
 0x182   : > { %8633 = vst [vmem:[#allocation44_spill] sm:$0xff] %v6711_v45  ;;  %v1167_v63 = vcombine.high %v8634_v23, %v8634_v23  ;;  %v1227_v12 = vrot.slane %v1179_v29, %v6108_v42  ;;  %v1352_v22 = vrot.slane %v8629_v51, %v6086_v34  ;;  %v1356_v58 = vrot.slane %v1179_v29, %v6086_v34 }
 0x183   : > { %3429 = vadd.xlane.f32.xlu1 %v3428_v20  ;;  %v8636_v20 = vld [vmem:[#allocation18_spill] sm:$0xff]  ;;  %v1416_v27 = vrot.slane %v8629_v51, %v6083_v33 }
 0x184   : > { %v1908_v47 = vcombine.high %v8636_v20, %v8636_v20  ;;  %v6741_v31 = vmul.f32 %v1292_v57, %v1167_v63  ;;  %v1952_v45 = vrot.slane %v8636_v20, %v6108_v42  ;;  %v6746_v54 = vmul.f32 %v1352_v22, %v8634_v23 }
 0x185   : > { %3490 = vadd.xlane.f32.xlu0 %v3489_v0  ;;  %v1288_v0 = vrot.slane %v8629_v51, %v6114_v46  ;;  %v6748_v48 = vmul.f32 %v1356_v58, %v1167_v63  ;;  %v6751_v51 = vmul.f32 %v1416_v27, %v8634_v23  ;;  %v6753_v29 = vmul.f32 %v1420_v7, %v1167_v63 }
 0x186   : > { %8639 = vst [vmem:[#allocation20_spill] sm:$0xff] %v6741_v31  ;;  %v8643_v31 = vld [vmem:[#allocation22_spill] sm:$0xff]  ;;  %v1956_v58 = vrot.slane %v1908_v47, %v6108_v42  ;;  %v2144_v27 = vrot.slane %v8636_v20, %v6083_v33  ;;  %v2148_v42 = vrot.slane %v1908_v47, %v6083_v33 }
 0x187   : > { %3493 = vadd.xlane.f32.xlu1 %v3492_v11  ;;  %v6736_v11 = vmul.f32 %v1227_v12, %v1167_v63  ;;  %v6739_v28 = vmul.f32 %v1288_v0, %v8634_v23  ;;  %v8642_v0 = vld [vmem:[#allocation21_spill] sm:$0xff]  ;;  %v2016_v23 = vrot.slane %v8636_v20, %v6114_v46  ;;  %v2084_v63 = vrot.slane %v1908_v47, %v6086_v34 }
 0x188   : > { %v3617_v57 = vsel %vm1236_vm2, %v8642_v0, 0.0 }
 0x189   : > { %3554 = vadd.xlane.f32.xlu0 %v3553_v59  ;;  %8638 = vst [vmem:[#allocation18_spill] sm:$0xff] %v6739_v28  ;;  %v8640_v59 = vld [vmem:[#allocation16_spill] sm:$0xff]  ;;  %v3620_v28 = vsel %vm1236_vm2, %v8643_v31, 0.0  ;;  %v8644_v31 = vld [vmem:[#allocation23_spill] sm:$0xff] }
 0x18a   : > { %v6756_v12 = vmul.f32 %v1952_v45, %v8640_v59  ;;  %v1896_v22 = vcombine.high %v8640_v59, %v8640_v59  ;;  %v2080_v45 = vrot.slane %v8636_v20, %v6086_v34  ;;  %v2707_v7 = vsel %vm1236_vm2, %v8644_v31, 0.0  ;;  %v8648_v31 = vld [vmem:[#allocation27_spill] sm:$0xff] }
 0x18b   : > { %3557 = vadd.xlane.f32.xlu1 %v3556_v35  ;;  %v2020_v35 = vrot.slane %v1908_v47, %v6114_v46  ;;  %v6789_v20 = vmul.f32 %v2144_v27, %v8640_v59 }
 0x18c   : > { %8641 = vst [vmem:[#allocation16_spill] sm:$0xff] %v6756_v12  ;;  %v6775_v0 = vmul.f32 %v1956_v58, %v1896_v22  ;;  %v6784_v12 = vmul.f32 %v2080_v45, %v8640_v59  ;;  %v6786_v34 = vmul.f32 %v2084_v63, %v1896_v22  ;;  %v2710_v58 = vsel %vm1236_vm2, %v6428_v56, 0.0  ;;  %v8647_v63 = vld [vmem:[#allocation26_spill] sm:$0xff] }
 0x18d   : > { %3618 = vadd.xlane.f32.xlu0 %v3617_v57  ;;  %v6778_v57 = vmul.f32 %v2016_v23, %v8640_v59  ;;  %v6781_v46 = vmul.f32 %v2020_v35, %v1896_v22  ;;  %v8645_v23 = vld [vmem:[#allocation24_spill] sm:$0xff]  ;;  %v2774_v35 = vsel %vm1236_vm2, %v6430_v50, 0.0  ;;  %v2835_v45 = vsel %vm1236_vm2, %v6417_v9, 0.0 }
 0x18e   : > { %v2771_v47 = vsel %vm1236_vm2, %v8645_v23, 0.0  ;;  %v2899_v56 = vsel %vm1236_vm2, %v6420_v60, 0.0  ;;  %v2902_v59 = vsel %vm1236_vm2, %v6436_v49, 0.0  ;;  %v3431_v50 = vsel %vm1236_vm2, %v6424_v5, 0.0 }
 0x18f   : > { %3621 = vadd.xlane.f32.xlu1 %v3620_v28  ;;  %v6791_v28 = vmul.f32 %v2148_v42, %v1896_v22  ;;  %v2838_v42 = vsel %vm1236_vm2, %v6432_v32, 0.0  ;;  %v8646_v22 = vld [vmem:[#allocation25_spill] sm:$0xff]  ;;  %v3495_v32 = vsel %vm1236_vm2, %v6459_v14, 0.0  ;;  %v3498_v60 = vsel %vm1236_vm2, %v6461_v1, 0.0 }
 0x190   : > { %v3434_v9 = vsel %vm1236_vm2, %v8646_v22, 0.0  ;;  %v3559_v49 = vsel %vm1236_vm2, %v6464_v18, 0.0  ;;  %v3562_v5 = vsel %vm1236_vm2, %v6469_v41, 0.0  ;;  %v3623_v27 = vsel %vm1236_vm2, %v8647_v63, 0.0 }
 0x191   : > { %2708 = vadd.xlane.f32.xlu0 %v2707_v7  ;;  %v3626_v14 = vsel %vm1236_vm2, %v8648_v31, 0.0  ;;  %v8649_v7 = vld [vmem:[#allocation28_spill] sm:$0xff]  ;;  %v1240_v18 = vsel %vm1236_vm2, %v6506_v30, 0.0  ;;  %v1301_v41 = vsel %vm1236_vm2, %v6499_v17, 0.0  ;;  %v1365_v23 = vsel %vm1236_vm2, %v6501_v21, 0.0 }
 0x192   : > { %v1237_v1 = vsel %vm1236_vm2, %v8649_v7, 0.0  ;;  %v1429_v30 = vsel %vm1236_vm2, %v6503_v61, 0.0  ;;  %v1432_v17 = vsel %vm1236_vm2, %v6512_v4, 0.0  ;;  %v8652_v7 = vld [vmem:[#allocation30_spill] sm:$0xff] }
 0x193   : > { %2711 = vadd.xlane.f32.xlu1 %v2710_v58  ;;  %v1304_v58 = vsel %vm1236_vm2, %v6508_v37, 0.0  ;;  %v1965_v37 = vsel %vm1236_vm2, %v6516_v38, 0.0  ;;  %v2032_v38 = vsel %vm1236_vm2, %v6552_v36, 0.0 }
 0x195   : > { %2772 = vadd.xlane.f32.xlu0 %v2771_v47  ;;  %v1368_v47 = vsel %vm1236_vm2, %v6510_v26, 0.0  ;;  %v1971_v26 = vsel %vm1236_vm2, %v6535_v43, 0.0  ;;  %v2093_v43 = vsel %vm1236_vm2, %v6542_v15, 0.0 }
 0x197   : > { %2775 = vadd.xlane.f32.xlu1 %v2774_v35 }
 0x199   : > { %2836 = vadd.xlane.f32.xlu0 %v2835_v45 }
 0x19b   : > { %2839 = vadd.xlane.f32.xlu1 %v2838_v42 }
 0x19d   : > { %2900 = vadd.xlane.f32.xlu0 %v2899_v56  ;;  %v2029_v56 = vsel %vm1236_vm2, %v6537_v55, 0.0 }
 0x19f   : > { %2903 = vadd.xlane.f32.xlu1 %v2902_v59 }
 0x1a1   : > { %3432 = vadd.xlane.f32.xlu0 %v3431_v50 }
 0x1a3   : > { %3435 = vadd.xlane.f32.xlu1 %v3434_v9 }
 0x1a5   : > { %3496 = vadd.xlane.f32.xlu0 %v3495_v32  ;;  %v2096_v32 = vsel %vm1236_vm2, %v6554_v52, 0.0  ;;  %v1243_v52 = vsel %vm1236_vm2, %v8652_v7, 0.0 }
 0x1a7   : > { %3499 = vadd.xlane.f32.xlu1 %v3498_v60 }
 0x1a9   : > { %3560 = vadd.xlane.f32.xlu0 %v3559_v49  ;;  %v8650_v49 = vld [vmem:[#allocation29_spill] sm:$0xff] }
 0x1ab   : > { %3563 = vadd.xlane.f32.xlu1 %v3562_v5  ;;  %v2157_v5 = vsel %vm1236_vm2, %v8650_v49, 0.0  ;;  %v2038_v49 = vsel %vm1236_vm2, %v6613_v3, 0.0  ;;  %v8657_v3 = vld [vmem:[#allocation36_spill] sm:$0xff] }
 0x1ad   : > { %3624 = vadd.xlane.f32.xlu0 %v3623_v27  ;;  %v8651_v27 = vld [vmem:[#allocation31_spill] sm:$0xff] }
 0x1ae   : > { %v2160_v31 = vsel %vm1236_vm2, %v8651_v27, 0.0 }
 0x1af   : > { %3627 = vadd.xlane.f32.xlu1 %v3626_v14 }
 0x1b1   : > { %1238 = vadd.xlane.f32.xlu0 %v1237_v1 }
 0x1b3   : > { %1241 = vadd.xlane.f32.xlu1 %v1240_v18  ;;  %v1246_v18 = vsel %vm1236_vm2, %v6574_v62, 0.0 }
 0x1b5   : > { %1302 = vadd.xlane.f32.xlu0 %v1301_v41 }
 0x1b7   : > { %1305 = vadd.xlane.f32.xlu1 %v1304_v58 }
 0x1b9   : > { %1366 = vadd.xlane.f32.xlu0 %v1365_v23  ;;  %v8653_v23 = vld [vmem:[#allocation32_spill] sm:$0xff] }
 0x1bb   : > { %1369 = vadd.xlane.f32.xlu1 %v1368_v47  ;;  %v1307_v47 = vsel %vm1236_vm2, %v8653_v23, 0.0 }
 0x1bd   : > { %1430 = vadd.xlane.f32.xlu0 %v1429_v30 }
 0x1be   : > { %v2691_v35 = vpop.xlane.xlu0 %2690 }
 0x1bf   : > { %1433 = vadd.xlane.f32.xlu1 %v1432_v17  ;;  %v1310_v17 = vsel %vm1236_vm2, %v6576_v40, 0.0  ;;  %v1435_v40 = vsel %vm1236_vm2, %v6582_v2, 0.0 }
 0x1c0   : > { %v2694_v45 = vpop.xlane.xlu1 %2693 }
 0x1c1   : > { %1966 = vadd.xlane.f32.xlu0 %v1965_v37 }
 0x1c2   : > { %v2755_v21 = vpop.xlane.xlu0 %2754 }
 0x1c3   : > { %v2905_v42 = vsel %vm1453_vm3, %v2691_v35, %v2755_v21  ;;  %1972 = vadd.xlane.f32.xlu1 %v1971_v26  ;;  %v8654_v21 = vld [vmem:[#allocation33_spill] sm:$0xff] }
 0x1c4   : > { %v2758_v61 = vpop.xlane.xlu1 %2757  ;;  %v1371_v62 = vsel %vm1236_vm2, %v8654_v21, 0.0 }
 0x1c5   : > { %v2906_v4 = vsel %vm1453_vm3, %v2694_v45, %v2758_v61  ;;  %2030 = vadd.xlane.f32.xlu0 %v2029_v56  ;;  %v1374_v61 = vsel %vm1236_vm2, %v6578_v16, 0.0  ;;  %v1968_v16 = vsel %vm1236_vm2, %v6586_v10, 0.0 }
 0x1c6   : > { %v2819_v59 = vpop.xlane.xlu0 %2818 }
 0x1c7   : > { %v2913_v50 = vsel %vm1462_vm4, %v2905_v42, %v2819_v59  ;;  %2033 = vadd.xlane.f32.xlu1 %v2032_v38 }
 0x1c8   : > { %v2822_v22 = vpop.xlane.xlu1 %2821 }
 0x1c9   : > { %v2914_v9 = vsel %vm1462_vm4, %v2906_v4, %v2822_v22  ;;  %2094 = vadd.xlane.f32.xlu0 %v2093_v43 }
 0x1ca   : > { %v2883_v55 = vpop.xlane.xlu0 %2882 }
 0x1cb   : > { %v6856_v60 = vsel %vm1471_vm5, %v2913_v50, %v2883_v55  ;;  %2097 = vadd.xlane.f32.xlu1 %v2096_v32  ;;  %v1438_v50 = vsel %vm1236_vm2, %v6584_v44, 0.0  ;;  %v2035_v32 = vsel %vm1236_vm2, %v6604_v25, 0.0 }
 0x1cc   : > { %v2886_v36 = vpop.xlane.xlu1 %2885 }
 0x1cd   : > { %v6861_v63 = vsel %vm1471_vm5, %v2914_v9, %v2886_v36  ;;  %2158 = vadd.xlane.f32.xlu0 %v2157_v5  ;;  %v1974_v9 = vsel %vm1236_vm2, %v6611_v13, 0.0 }
 0x1ce   : > { %v3415_v15 = vpop.xlane.xlu0 %3414 }
 0x1cf   : > { %2161 = vadd.xlane.f32.xlu1 %v2160_v31 }
 0x1d0   : > { %v3418_v14 = vpop.xlane.xlu1 %3417 }
 0x1d1   : > { %1244 = vadd.xlane.f32.xlu0 %v1243_v52 }
 0x1d2   : > { %v3479_v1 = vpop.xlane.xlu0 %3478 }
 0x1d3   : > { %v3629_v41 = vsel %vm1453_vm3, %v3415_v15, %v3479_v1  ;;  %1247 = vadd.xlane.f32.xlu1 %v1246_v18  ;;  %v8655_v15 = vld [vmem:[#allocation34_spill] sm:$0xff]  ;;  %v2163_v1 = vsel %vm1236_vm2, %v8657_v3, 0.0  ;;  %v2044_v3 = vsel %vm1236_vm2, %v6701_v19, 0.0 }
 0x1d4   : > { %v3482_v58 = vpop.xlane.xlu1 %3481  ;;  %v2099_v13 = vsel %vm1236_vm2, %v8655_v15, 0.0  ;;  %v8665_v15 = vld [vmem:[#allocation14_spill] sm:$0xff] }
 0x1d5   : > { %v3630_v30 = vsel %vm1453_vm3, %v3418_v14, %v3482_v58  ;;  %1308 = vadd.xlane.f32.xlu0 %v1307_v47  ;;  %v8656_v14 = vld [vmem:[#allocation35_spill] sm:$0xff]  ;;  %v8658_v58 = vld [vmem:[#allocation37_spill] sm:$0xff] }
 0x1d6   : > { %v3543_v35 = vpop.xlane.xlu0 %3542  ;;  %v2102_v25 = vsel %vm1236_vm2, %v8656_v14, 0.0  ;;  %v2166_v23 = vsel %vm1236_vm2, %v8658_v58, 0.0  ;;  %v8666_v58 = vld [vmem:[#allocation17_spill] sm:$0xff] }
 0x1d7   : > { %v3637_v45 = vsel %vm1462_vm4, %v3629_v41, %v3543_v35  ;;  %1311 = vadd.xlane.f32.xlu1 %v1310_v17 }
 0x1d8   : > { %v3546_v37 = vpop.xlane.xlu1 %3545 }
 0x1d9   : > { %v3638_v26 = vsel %vm1462_vm4, %v3630_v30, %v3546_v37  ;;  %1372 = vadd.xlane.f32.xlu0 %v1371_v62  ;;  %v8659_v30 = vld [vmem:[#allocation38_spill] sm:$0xff]  ;;  %v1313_v62 = vsel %vm1236_vm2, %v6655_v53, 0.0 }
 0x1da   : > { %v3607_v42 = vpop.xlane.xlu0 %3606  ;;  %v1249_v35 = vsel %vm1236_vm2, %v8659_v30, 0.0 }
 0x1db   : > { %v6882_v56 = vsel %vm1471_vm5, %v3637_v45, %v3607_v42  ;;  %1375 = vadd.xlane.f32.xlu1 %v1374_v61  ;;  %v1252_v45 = vsel %vm1236_vm2, %v6666_v39, 0.0  ;;  %v8660_v61 = vld [vmem:[#allocation41_spill] sm:$0xff] }
 0x1dc   : > { %v3610_v4 = vpop.xlane.xlu1 %3609 }
 0x1dd   : > { %v6887_v59 = vsel %vm1471_vm5, %v3638_v26, %v3610_v4  ;;  %1436 = vadd.xlane.f32.xlu0 %v1435_v40  ;;  %v1316_v4 = vsel %vm1236_vm2, %v8660_v61, 0.0 }
 0x1de   : > { %v2697_v38 = vpop.xlane.xlu0 %2696 }
 0x1df   : > { %1439 = vadd.xlane.f32.xlu1 %v1438_v50  ;;  %v8661_v50 = vld [vmem:[#allocation39_spill] sm:$0xff] }
 0x1e0   : > { %v2700_v22 = vpop.xlane.xlu1 %2699  ;;  %v1377_v39 = vsel %vm1236_vm2, %v8661_v50, 0.0 }
 0x1e1   : > { %1969 = vadd.xlane.f32.xlu0 %v1968_v16 }
 0x1e2   : > { %v2761_v43 = vpop.xlane.xlu0 %2760 }
 0x1e3   : > { %v2907_v2 = vsel %vm1453_vm3, %v2697_v38, %v2761_v43  ;;  %1975 = vadd.xlane.f32.xlu1 %v1974_v9  ;;  %v8662_v43 = vld [vmem:[#allocation42_spill] sm:$0xff] }
 0x1e4   : > { %v2764_v55 = vpop.xlane.xlu1 %2763  ;;  %v1380_v53 = vsel %vm1236_vm2, %v8662_v43, 0.0  ;;  %v1447_v43 = vsel %vm1236_vm2, %v6751_v51, 0.0 }
 0x1e5   : > { %v2908_v36 = vsel %vm1453_vm3, %v2700_v22, %v2764_v55  ;;  %2036 = vadd.xlane.f32.xlu0 %v2035_v32  ;;  %v8663_v55 = vld [vmem:[#allocation40_spill] sm:$0xff] }
 0x1e6   : > { %v2825_v44 = vpop.xlane.xlu0 %2824  ;;  %v1441_v32 = vsel %vm1236_vm2, %v8663_v55, 0.0  ;;  %v8672_v55 = vld [vmem:[#allocation16_spill] sm:$0xff] }
 0x1e7   : > { %v2915_v10 = vsel %vm1462_vm4, %v2907_v2, %v2825_v44  ;;  %2039 = vadd.xlane.f32.xlu1 %v2038_v49  ;;  %v8664_v49 = vld [vmem:[#allocation43_spill] sm:$0xff] }
 0x1e8   : > { %v2828_v5 = vpop.xlane.xlu1 %2827 }
 0x1e9   : > { %v2916_v27 = vsel %vm1462_vm4, %v2908_v36, %v2828_v5  ;;  %2100 = vadd.xlane.f32.xlu0 %v2099_v13  ;;  %v1977_v13 = vsel %vm1236_vm2, %v8665_v15, 0.0  ;;  %v2050_v15 = vsel %vm1236_vm2, %v6781_v46, 0.0  ;;  %v2178_v46 = vsel %vm1236_vm2, %v6791_v28, 0.0 }
 0x1ea   : > { %v2889_v31 = vpop.xlane.xlu0 %2888  ;;  %v3656_v28 = vsel %vm1480_vm6, %v6887_v59, -inf }
 0x1eb   : > { %v6908_v7 = vsel %vm1471_vm5, %v2915_v10, %v2889_v31  ;;  %2103 = vadd.xlane.f32.xlu1 %v2102_v25  ;;  %v1444_v10 = vsel %vm1236_vm2, %v8664_v49, 0.0  ;;  %v1980_v31 = vsel %vm1236_vm2, %v6696_v8, 0.0  ;;  %v2041_v25 = vsel %vm1236_vm2, %v6699_v24, 0.0 }
 0x1ec   : > { %v2892_v52 = vpop.xlane.xlu1 %2891  ;;  %v1986_v49 = vsel %vm1236_vm2, %v6775_v0, 0.0  ;;  %v2114_v0 = vsel %vm1236_vm2, %v6786_v34, 0.0  ;;  %v2932_v34 = vsel %vm1480_vm6, %v6861_v63, -inf }
 0x1ed   : > { %v6913_v18 = vsel %vm1471_vm5, %v2916_v27, %v2892_v52  ;;  %2164 = vadd.xlane.f32.xlu0 %v2163_v1 }
 0x1ee   : > { %v2703_v41 = vpop.xlane.xlu0 %2702 }
 0x1ef   : > { %2167 = vadd.xlane.f32.xlu1 %v2166_v23  ;;  %v2108_v23 = vsel %vm1236_vm2, %v8666_v58, 0.0 }
 0x1f0   : > { %v2706_v47 = vpop.xlane.xlu1 %2705 }
 0x1f1   : > { %1250 = vadd.xlane.f32.xlu0 %v1249_v35  ;;  %v8668_v35 = vld [vmem:[#allocation44_spill] sm:$0xff] }
 0x1f2   : > { %v2767_v17 = vpop.xlane.xlu0 %2766 }
 0x1f3   : > { %v2909_v37 = vsel %vm1453_vm3, %v2703_v41, %v2767_v17  ;;  %1253 = vadd.xlane.f32.xlu1 %v1252_v45  ;;  %v2105_v41 = vsel %vm1236_vm2, %v6704_v6, 0.0  ;;  %v2172_v17 = vsel %vm1236_vm2, %v8668_v35, 0.0  ;;  %v8669_v45 = vld [vmem:[#allocation15_spill] sm:$0xff] }
 0x1f4   : > { %v2770_v21 = vpop.xlane.xlu1 %2769 }
 0x1f5   : > { %v2910_v26 = vsel %vm1453_vm3, %v2706_v47, %v2770_v21  ;;  %1314 = vadd.xlane.f32.xlu0 %v1313_v62  ;;  %v8667_v47 = vld [vmem:[#allocation19_spill] sm:$0xff]  ;;  %v1258_v62 = vsel %vm1236_vm2, %v6736_v11, 0.0 }
 0x1f6   : > { %v2831_v42 = vpop.xlane.xlu0 %2830  ;;  %v2169_v30 = vsel %vm1236_vm2, %v8667_v47, 0.0 }
 0x1f7   : > { %v2917_v40 = vsel %vm1462_vm4, %v2909_v37, %v2831_v42  ;;  %1317 = vadd.xlane.f32.xlu1 %v1316_v4  ;;  %v1255_v37 = vsel %vm1236_vm2, %v8669_v45, 0.0  ;;  %v8670_v42 = vld [vmem:[#allocation18_spill] sm:$0xff] }
 0x1f8   : > { %v2834_v38 = vpop.xlane.xlu1 %2833  ;;  %v1319_v61 = vsel %vm1236_vm2, %v8670_v42, 0.0 }
 0x1f9   : > { %v2918_v22 = vsel %vm1462_vm4, %v2910_v26, %v2834_v38  ;;  %1378 = vadd.xlane.f32.xlu0 %v1377_v39  ;;  %v1383_v39 = vsel %vm1236_vm2, %v6746_v54, 0.0 }
 0x1fa   : > { %v2895_v16 = vpop.xlane.xlu0 %2894 }
 0x1fb   : > { %v6934_v9 = vsel %vm1471_vm5, %v2917_v40, %v2895_v16  ;;  %1381 = vadd.xlane.f32.xlu1 %v1380_v53  ;;  %v8671_v40 = vld [vmem:[#allocation20_spill] sm:$0xff] }
 0x1fc   : > { %v2898_v2 = vpop.xlane.xlu1 %2897  ;;  %v1322_v38 = vsel %vm1236_vm2, %v8671_v40, 0.0  ;;  %v2941_v40 = vsel %vm1480_vm6, %v6934_v9, -inf }
 0x1fd   : > { %v6939_v36 = vsel %vm1471_vm5, %v2918_v22, %v2898_v2  ;;  %1442 = vadd.xlane.f32.xlu0 %v1441_v32  ;;  %v1386_v22 = vsel %vm1236_vm2, %v6748_v48, 0.0  ;;  %v1450_v2 = vsel %vm1236_vm2, %v6753_v29, 0.0  ;;  %v1983_v32 = vsel %vm1236_vm2, %v8672_v55, 0.0 }
 0x1fe   : > { %v6941_v44 = vpop.xlane.xlu0 %3420 }
 0x1ff   : > { %1445 = vadd.xlane.f32.xlu1 %v1444_v10  ;;  %v2047_v10 = vsel %vm1236_vm2, %v6778_v57, 0.0  ;;  %v2175_v57 = vsel %vm1236_vm2, %v6789_v20, 0.0  ;;  %v3653_v20 = vsel %vm1480_vm6, %v6882_v56, -inf }
 0x200   : > { %v6945_v5 = vpop.xlane.xlu1 %3423 }
 0x201   : > { %1978 = vadd.xlane.f32.xlu0 %v1977_v13 }
 0x202   : > { %v6949_v27 = vpop.xlane.xlu0 %3484 }
 0x203   : > { %1981 = vadd.xlane.f32.xlu1 %v1980_v31  ;;  %v2111_v31 = vsel %vm1236_vm2, %v6784_v12, 0.0  ;;  %v2929_v12 = vsel %vm1480_vm6, %v6856_v60, -inf }
 0x204   : > { %v6953_v14 = vpop.xlane.xlu1 %3487 }
 0x205   : > { %2042 = vadd.xlane.f32.xlu0 %v2041_v25 }
 0x206   : > { %v6957_v52 = vpop.xlane.xlu0 %3548 }
 0x207   : > { %2045 = vadd.xlane.f32.xlu1 %v2044_v3 }
 0x208   : > { %v6961_v1 = vpop.xlane.xlu1 %3551 }
 0x209   : > { %2106 = vadd.xlane.f32.xlu0 %v2105_v41 }
 0x20a   : > { %v6965_v8 = vpop.xlane.xlu0 %3612 }
 0x20b   : > { %2109 = vadd.xlane.f32.xlu1 %v2108_v23 }
 0x20c   : > { %v6969_v24 = vpop.xlane.xlu1 %3615 }
 0x20d   : > { %2170 = vadd.xlane.f32.xlu0 %v2169_v30 }
 0x20e   : > { %v6973_v19 = vpop.xlane.xlu0 %3426 }
 0x20f   : > { %2173 = vadd.xlane.f32.xlu1 %v2172_v17  ;;  %v2935_v17 = vsel %vm1480_vm6, %v6908_v7, -inf }
 0x210   : > { %v6977_v6 = vpop.xlane.xlu1 %3429 }
 0x211   : > { %1256 = vadd.xlane.f32.xlu0 %v1255_v37  ;;  %v2938_v37 = vsel %vm1480_vm6, %v6913_v18, -inf }
 0x212   : > { %v6981_v21 = vpop.xlane.xlu0 %3490 }
 0x213   : > { %1259 = vadd.xlane.f32.xlu1 %v1258_v62  ;;  %v3631_v62 = vsel %vm1453_vm3, %v6941_v44, %v6949_v27 }
 0x214   : > { %v6985_v26 = vpop.xlane.xlu1 %3493  ;;  %v3639_v42 = vsel %vm1462_vm4, %v3631_v62, %v6957_v52  ;;  %v2944_v52 = vsel %vm1480_vm6, %v6939_v36, -inf }
 0x215   : > { %1320 = vadd.xlane.f32.xlu0 %v1319_v61 }
 0x216   : > { %v6989_v4 = vpop.xlane.xlu0 %3554 }
 0x217   : > { %1323 = vadd.xlane.f32.xlu1 %v1322_v38  ;;  %v3632_v38 = vsel %vm1453_vm3, %v6945_v5, %v6953_v14  ;;  %v3633_v5 = vsel %vm1453_vm3, %v6973_v19, %v6981_v21 }
 0x218   : > { %v6993_v50 = vpop.xlane.xlu1 %3557  ;;  %v3640_v44 = vsel %vm1462_vm4, %v3632_v38, %v6961_v1  ;;  %v3641_v14 = vsel %vm1462_vm4, %v3633_v5, %v6989_v4 }
 0x219   : > { %1384 = vadd.xlane.f32.xlu0 %v1383_v39  ;;  %v7057_v39 = vsel %vm1471_vm5, %v3639_v42, %v6965_v8 }
 0x21a   : > { %v6997_v11 = vpop.xlane.xlu0 %3618  ;;  %v3659_v1 = vsel %vm1480_vm6, %v7057_v39, -inf }
 0x21b   : > { %1387 = vadd.xlane.f32.xlu1 %v1386_v22  ;;  %v7065_v22 = vsel %vm1471_vm5, %v3640_v44, %v6969_v24  ;;  %v7079_v24 = vsel %vm1471_vm5, %v3641_v14, %v6997_v11 }
 0x21c   : > { %v7001_v16 = vpop.xlane.xlu1 %3621  ;;  %v3662_v4 = vsel %vm1480_vm6, %v7065_v22, -inf  ;;  %v3665_v55 = vsel %vm1480_vm6, %v7079_v24, -inf }
 0x21d   : > { %1448 = vadd.xlane.f32.xlu0 %v1447_v43  ;;  %v3634_v43 = vsel %vm1453_vm3, %v6977_v6, %v6985_v26 }
 0x21e   : > { %v7005_v53 = vpop.xlane.xlu0 %2708  ;;  %v3642_v19 = vsel %vm1462_vm4, %v3634_v43, %v6993_v50 }
 0x21f   : > { %1451 = vadd.xlane.f32.xlu1 %v1450_v2  ;;  %v7087_v2 = vsel %vm1471_vm5, %v3642_v19, %v7001_v16 }
 0x220   : > { %v7009_v54 = vpop.xlane.xlu1 %2711 }
 0x221   : > { %1984 = vadd.xlane.f32.xlu0 %v1983_v32 }
 0x222   : > { %v7013_v48 = vpop.xlane.xlu0 %2772 }
 0x223   : > { %1987 = vadd.xlane.f32.xlu1 %v1986_v49  ;;  %v2911_v6 = vsel %vm1453_vm3, %v7005_v53, %v7013_v48  ;;  %v3668_v53 = vsel %vm1480_vm6, %v7087_v2, -inf }
 0x224   : > { %v7017_v51 = vpop.xlane.xlu1 %2775 }
 0x225   : > { %2048 = vadd.xlane.f32.xlu0 %v2047_v10  ;;  %v2912_v50 = vsel %vm1453_vm3, %v7009_v54, %v7017_v51 }
 0x226   : > { %v2837_v29 = vpop.xlane.xlu0 %2836 }
 0x227   : > { %2051 = vadd.xlane.f32.xlu1 %v2050_v15  ;;  %v2919_v26 = vsel %vm1462_vm4, %v2911_v6, %v2837_v29 }
 0x228   : > { %v7023_v13 = vpop.xlane.xlu1 %2839 }
 0x229   : > { %2112 = vadd.xlane.f32.xlu0 %v2111_v31  ;;  %v2920_v16 = vsel %vm1462_vm4, %v2912_v50, %v7023_v13 }
 0x22a   : > { %v2901_v25 = vpop.xlane.xlu0 %2900 }
 0x22b   : > { %2115 = vadd.xlane.f32.xlu1 %v2114_v0  ;;  %v7099_v32 = vsel %vm1471_vm5, %v2919_v26, %v2901_v25 }
 0x22c   : > { %v2904_v3 = vpop.xlane.xlu1 %2903  ;;  %v2947_v51 = vsel %vm1480_vm6, %v7099_v32, -inf }
 0x22d   : > { %2176 = vadd.xlane.f32.xlu0 %v2175_v57  ;;  %v7106_v48 = vsel %vm1471_vm5, %v2920_v16, %v2904_v3 }
 0x22e   : > { %v3433_v41 = vpop.xlane.xlu0 %3432  ;;  %v2950_v0 = vsel %vm1480_vm6, %v7106_v48, -inf }
 0x22f   : > { %2179 = vadd.xlane.f32.xlu1 %v2178_v46 }
 0x230   : > { %v3436_v58 = vpop.xlane.xlu1 %3435 }
 0x231   : > { %2930 = vmax.xlane.f32.xlu0 %v2929_v12 }
 0x232   : > { %v3497_v23 = vpop.xlane.xlu0 %3496 }
 0x233   : > { %2933 = vmax.xlane.f32.xlu1 %v2932_v34  ;;  %v3635_v10 = vsel %vm1453_vm3, %v3433_v41, %v3497_v23 }
 0x234   : > { %v3500_v47 = vpop.xlane.xlu1 %3499 }
 0x235   : > { %3654 = vmax.xlane.f32.xlu0 %v3653_v20  ;;  %v3636_v15 = vsel %vm1453_vm3, %v3436_v58, %v3500_v47 }
 0x236   : > { %v3561_v30 = vpop.xlane.xlu0 %3560 }
 0x237   : > { %3657 = vmax.xlane.f32.xlu1 %v3656_v28  ;;  %v3643_v29 = vsel %vm1462_vm4, %v3635_v10, %v3561_v30 }
 0x238   : > { %v3564_v35 = vpop.xlane.xlu1 %3563 }
 0x239   : > { %2936 = vmax.xlane.f32.xlu0 %v2935_v17  ;;  %v3644_v31 = vsel %vm1462_vm4, %v3636_v15, %v3564_v35 }
 0x23a   : > { %v3625_v45 = vpop.xlane.xlu0 %3624 }
 0x23b   : > { %2939 = vmax.xlane.f32.xlu1 %v2938_v37  ;;  %v7114_v13 = vsel %vm1471_vm5, %v3643_v29, %v3625_v45 }
 0x23c   : > { %v3628_v61 = vpop.xlane.xlu1 %3627  ;;  %v3671_v58 = vsel %vm1480_vm6, %v7114_v13, -inf }
 0x23d   : > { %2942 = vmax.xlane.f32.xlu0 %v2941_v40  ;;  %v7120_v3 = vsel %vm1471_vm5, %v3644_v31, %v3628_v61 }
 0x23e   : > { %v1239_v27 = vpop.xlane.xlu0 %1238  ;;  %v3674_v20 = vsel %vm1480_vm6, %v7120_v3, -inf }
 0x23f   : > { %2945 = vmax.xlane.f32.xlu1 %v2944_v52 }
 0x240   : > { %v1242_v8 = vpop.xlane.xlu1 %1241 }
 0x241   : > { %3660 = vmax.xlane.f32.xlu0 %v3659_v1 }
 0x242   : > { %v1303_v21 = vpop.xlane.xlu0 %1302 }
 0x243   : > { %3663 = vmax.xlane.f32.xlu1 %v3662_v4  ;;  %v1454_v57 = vsel %vm1453_vm3, %v1239_v27, %v1303_v21 }
 0x244   : > { %v1306_v11 = vpop.xlane.xlu1 %1305 }
 0x245   : > { %3666 = vmax.xlane.f32.xlu0 %v3665_v55  ;;  %v1455_v12 = vsel %vm1453_vm3, %v1242_v8, %v1306_v11 }
 0x246   : > { %v1367_v49 = vpop.xlane.xlu0 %1366 }
 0x247   : > { %3669 = vmax.xlane.f32.xlu1 %v3668_v53  ;;  %v1463_v41 = vsel %vm1462_vm4, %v1454_v57, %v1367_v49 }
 0x248   : > { %v1370_v54 = vpop.xlane.xlu1 %1369 }
 0x249   : > { %2948 = vmax.xlane.f32.xlu0 %v2947_v51  ;;  %v1464_v34 = vsel %vm1462_vm4, %v1455_v12, %v1370_v54 }
 0x24a   : > { %v1431_v25 = vpop.xlane.xlu0 %1430 }
 0x24b   : > { %2951 = vmax.xlane.f32.xlu1 %v2950_v0  ;;  %v7128_v23 = vsel %vm1471_vm5, %v1463_v41, %v1431_v25 }
 0x24c   : > { %v1434_v46 = vpop.xlane.xlu1 %1433  ;;  %v1481_v35 = vsel %vm1480_vm6, %v7128_v23, -inf }
 0x24d   : > { %3672 = vmax.xlane.f32.xlu0 %v3671_v58  ;;  %v7134_v30 = vsel %vm1471_vm5, %v1464_v34, %v1434_v46 }
 0x24e   : > { %v1967_v47 = vpop.xlane.xlu0 %1966  ;;  %v1484_v45 = vsel %vm1480_vm6, %v7134_v30, -inf }
 0x24f   : > { %3675 = vmax.xlane.f32.xlu1 %v3674_v20 }
 0x250   : > { %v1973_v28 = vpop.xlane.xlu1 %1972 }
 0x251   : > { %1482 = vmax.xlane.f32.xlu0 %v1481_v35 }
 0x252   : > { %v2031_v17 = vpop.xlane.xlu0 %2030 }
 0x253   : > { %1485 = vmax.xlane.f32.xlu1 %v1484_v45  ;;  %v2181_v61 = vsel %vm1453_vm3, %v1967_v47, %v2031_v17 }
 0x254   : > { %v2034_v37 = vpop.xlane.xlu1 %2033 }
 0x256   : > { %v2095_v62 = vpop.xlane.xlu0 %2094 }
 0x257   : > { %v2189_v40 = vsel %vm1462_vm4, %v2181_v61, %v2095_v62 }
 0x258   : > { %v2098_v42 = vpop.xlane.xlu1 %2097 }
 0x25a   : > { %v2159_v38 = vpop.xlane.xlu0 %2158 }
 0x25b   : > { %v7143_v44 = vsel %vm1471_vm5, %v2189_v40, %v2159_v38 }
 0x25c   : > { %v2162_v27 = vpop.xlane.xlu1 %2161  ;;  %v2205_v52 = vsel %vm1480_vm6, %v7143_v44, -inf }
 0x25d   : > { %2206 = vmax.xlane.f32.xlu0 %v2205_v52 }
 0x25e   : > { %v1245_v5 = vpop.xlane.xlu0 %1244 }
 0x260   : > { %v1248_v14 = vpop.xlane.xlu1 %1247 }
 0x262   : > { %v1309_v8 = vpop.xlane.xlu0 %1308 }
 0x263   : > { %v1456_v21 = vsel %vm1453_vm3, %v1245_v5, %v1309_v8 }
 0x264   : > { %v1312_v1 = vpop.xlane.xlu1 %1311 }
 0x265   : > { %v1457_v10 = vsel %vm1453_vm3, %v1248_v14, %v1312_v1 }
 0x266   : > { %v1373_v43 = vpop.xlane.xlu0 %1372 }
 0x267   : > { %v1465_v4 = vsel %vm1462_vm4, %v1456_v21, %v1373_v43 }
 0x268   : > { %v1376_v19 = vpop.xlane.xlu1 %1375 }
 0x269   : > { %v1466_v54 = vsel %vm1462_vm4, %v1457_v10, %v1376_v19  ;;  %v8673_v10 = vld [vmem:[#allocation9_spill] sm:$0xff] }
 0x26a   : > { %v1437_v6 = vpop.xlane.xlu0 %1436 }
 0x26b   : > { %v7150_v26 = vsel %vm1471_vm5, %v1465_v4, %v1437_v6 }
 0x26c   : > { %v1440_v11 = vpop.xlane.xlu1 %1439  ;;  %v1487_v55 = vsel %vm1480_vm6, %v7150_v26, -inf }
 0x26d   : > { %1488 = vmax.xlane.f32.xlu0 %v1487_v55  ;;  %v7164_v31 = vsel %vm1471_vm5, %v1466_v54, %v1440_v11  ;;  %v5583_v55 = vld [vmem:[%s5959_s14 + $0x28] ss:$48 sps:$4 sm:$0xff]  }
 0x26e   : > { %v1970_v50 = vpop.xlane.xlu0 %1969  ;;  %v1490_v57 = vsel %vm1480_vm6, %v7164_v31, -inf }
 0x26f   : > { %v2182_v16 = vsel %vm1453_vm3, %v1970_v50, %v2034_v37  ;;  %v5585_v50 = vld [vmem:[%s5959_s14 + $0x2c] ss:$48 sps:$4 sm:$0xff]  }
 0x270   : > { %v2190_v49 = vsel %vm1462_vm4, %v2182_v16, %v2098_v42  ;;  %v1976_v53 = vpop.xlane.xlu1 %1975  ;;  %1107 = vmatprep.subr.bf16.mxu1 %v5585_v50 }
 0x271   : > { %v7158_v29 = vsel %vm1471_vm5, %v2190_v49, %v2162_v27  ;;  %1108 = vmatpush1.bf16.msra.mxu1 %v5583_v55 }
 0x272   : > { %v2037_v51 = vpop.xlane.xlu0 %2036  ;;  %v2208_v15 = vsel %vm1480_vm6, %v7158_v29, -inf }
 0x273   : > { %2209 = vmax.xlane.f32.xlu1 %v2208_v15  ;;  %v2183_v46 = vsel %vm1453_vm3, %v1973_v28, %v2037_v51  ;;  %v8674_v51 = vmov 0  }
 0x274   : > { %v2040_v25 = vpop.xlane.xlu1 %2039  ;;  %5256 = vmatmul.mubr.msk.bf16.vlgmr.msra.gmra.mrb[12].mxu1 %vm835_vm1, %v8673_v10 }
 0x275   : > { %v2184_v34 = vsel %vm1453_vm3, %v1976_v53, %v2040_v25  ;;  %1149 = vmatprep.mubr.bf16.mxu1 %v8674_v51 }
 0x276   : > { %v2101_v0 = vpop.xlane.xlu0 %2100 }
 0x277   : > { %1491 = vmax.xlane.f32.xlu1 %v1490_v57  ;;  %v2191_v58 = vsel %vm1462_vm4, %v2183_v46, %v2101_v0 }
 0x278   : > { %v2104_v41 = vpop.xlane.xlu1 %2103 }
 0x279   : > { %v2192_v20 = vsel %vm1462_vm4, %v2184_v34, %v2104_v41 }
 0x27a   : > { %v2165_v12 = vpop.xlane.xlu0 %2164 }
 0x27b   : > { %v7172_v47 = vsel %vm1471_vm5, %v2191_v58, %v2165_v12 }
 0x27c   : > { %v2168_v35 = vpop.xlane.xlu1 %2167  ;;  %v2211_v17 = vsel %vm1480_vm6, %v7172_v47, -inf }
 0x27d   : > { %v7178_v45 = vsel %vm1471_vm5, %v2192_v20, %v2168_v35  ;;  %2212 = vmax.xlane.f32.xlu0 %v2211_v17  ;;  %v8675_v17 = vld [vmem:[#allocation10_spill] sm:$0xff] }
 0x27e   : > { %v1251_v37 = vpop.xlane.xlu0 %1250  ;;  %v2214_v28 = vsel %vm1480_vm6, %v7178_v45, -inf  ;;  %5257 = vmatmul.mubr.msk.bf16.gmra.mrb[16].mxu1 %vm835_vm1, %v8675_v17 }
 0x27f   : > { %2215 = vmax.xlane.f32.xlu1 %v2214_v28 }
 0x280   : > { %v1254_v62 = vpop.xlane.xlu1 %1253 }
 0x282   : > { %v1315_v42 = vpop.xlane.xlu0 %1314 }
 0x283   : > { %v1458_v27 = vsel %vm1453_vm3, %v1251_v37, %v1315_v42 }
 0x284   : > { %v1318_v61 = vpop.xlane.xlu1 %1317 }
 0x285   : > { %v1459_v14 = vsel %vm1453_vm3, %v1254_v62, %v1318_v61 }
 0x286   : > { %v1379_v40 = vpop.xlane.xlu0 %1378 }
 0x287   : > { %v1467_v52 = vsel %vm1462_vm4, %v1458_v27, %v1379_v40 }
 0x288   : > { %v1382_v38 = vpop.xlane.xlu1 %1381 }
 0x289   : > { %v1468_v1 = vsel %vm1462_vm4, %v1459_v14, %v1382_v38 }
 0x28a   : > { %v1443_v5 = vpop.xlane.xlu0 %1442 }
 0x28b   : > { %v7186_v8 = vsel %vm1471_vm5, %v1467_v52, %v1443_v5 }
 0x28c   : > { %v1446_v43 = vpop.xlane.xlu1 %1445  ;;  %v1493_v19 = vsel %vm1480_vm6, %v7186_v8, -inf }
 0x28d   : > { %v7192_v21 = vsel %vm1471_vm5, %v1468_v1, %v1446_v43  ;;  %1494 = vmax.xlane.f32.xlu0 %v1493_v19 }
 0x28e   : > { %v1979_v4 = vpop.xlane.xlu0 %1978  ;;  %v1496_v6 = vsel %vm1480_vm6, %v7192_v21, -inf }
 0x28f   : > { %1497 = vmax.xlane.f32.xlu1 %v1496_v6 }
 0x290   : > { %v1982_v11 = vpop.xlane.xlu1 %1981 }
 0x292   : > { %v2043_v16 = vpop.xlane.xlu0 %2042 }
 0x293   : > { %v2185_v15 = vsel %vm1453_vm3, %v1979_v4, %v2043_v16 }
 0x294   : > { %v2046_v49 = vpop.xlane.xlu1 %2045 }
 0x295   : > { %v2186_v57 = vsel %vm1453_vm3, %v1982_v11, %v2046_v49 }
 0x296   : > { %v2107_v53 = vpop.xlane.xlu0 %2106 }
 0x297   : > { %v2193_v25 = vsel %vm1462_vm4, %v2185_v15, %v2107_v53 }
 0x298   : > { %v2110_v54 = vpop.xlane.xlu1 %2109 }
 0x299   : > { %v2194_v46 = vsel %vm1462_vm4, %v2186_v57, %v2110_v54 }
 0x29a   : > { %v2171_v0 = vpop.xlane.xlu0 %2170 }
 0x29b   : > { %v7205_v41 = vsel %vm1471_vm5, %v2193_v25, %v2171_v0 }
 0x29c   : > { %v2174_v58 = vpop.xlane.xlu1 %2173  ;;  %v2217_v12 = vsel %vm1480_vm6, %v7205_v41, -inf }
 0x29d   : > { %v7211_v34 = vsel %vm1471_vm5, %v2194_v46, %v2174_v58  ;;  %2218 = vmax.xlane.f32.xlu0 %v2217_v12 }
 0x29e   : > { %v1257_v20 = vpop.xlane.xlu0 %1256  ;;  %v2220_v35 = vsel %vm1480_vm6, %v7211_v34, -inf }
 0x29f   : > { %2221 = vmax.xlane.f32.xlu1 %v2220_v35 }
 0x2a0   : > { %v1260_v37 = vpop.xlane.xlu1 %1259 }
 0x2a2   : > { %v1321_v28 = vpop.xlane.xlu0 %1320 }
 0x2a3   : > { %v1460_v40 = vsel %vm1453_vm3, %v1257_v20, %v1321_v28 }
 0x2a4   : > { %v1324_v62 = vpop.xlane.xlu1 %1323 }
 0x2a5   : > { %v1461_v52 = vsel %vm1453_vm3, %v1260_v37, %v1324_v62 }
 0x2a6   : > { %v1385_v42 = vpop.xlane.xlu0 %1384 }
 0x2a7   : > { %v1469_v38 = vsel %vm1462_vm4, %v1460_v40, %v1385_v42 }
 0x2a8   : > { %v1388_v61 = vpop.xlane.xlu1 %1387 }
 0x2a9   : > { %v1470_v14 = vsel %vm1462_vm4, %v1461_v52, %v1388_v61 }
 0x2aa   : > { %v1449_v27 = vpop.xlane.xlu0 %1448 }
 0x2ab   : > { %v7221_v5 = vsel %vm1471_vm5, %v1469_v38, %v1449_v27 }
 0x2ac   : > { %v1452_v1 = vpop.xlane.xlu1 %1451  ;;  %v1499_v43 = vsel %vm1480_vm6, %v7221_v5, -inf }
 0x2ad   : > { %v7227_v19 = vsel %vm1471_vm5, %v1470_v14, %v1452_v1  ;;  %1500 = vmax.xlane.f32.xlu0 %v1499_v43 }
 0x2ae   : > { %v1985_v4 = vpop.xlane.xlu0 %1984  ;;  %v1502_v6 = vsel %vm1480_vm6, %v7227_v19, -inf }
 0x2af   : > { %1503 = vmax.xlane.f32.xlu1 %v1502_v6 }
 0x2b0   : > { %v1988_v11 = vpop.xlane.xlu1 %1987 }
 0x2b2   : > { %v2049_v55 = vpop.xlane.xlu0 %2048 }
 0x2b3   : > { %v2187_v53 = vsel %vm1453_vm3, %v1985_v4, %v2049_v55 }
 0x2b4   : > { %v2052_v50 = vpop.xlane.xlu1 %2051 }
 0x2b5   : > { %v2188_v25 = vsel %vm1453_vm3, %v1988_v11, %v2052_v50 }
 0x2b6   : > { %v2113_v16 = vpop.xlane.xlu0 %2112 }
 0x2b7   : > { %v2195_v54 = vsel %vm1462_vm4, %v2187_v53, %v2113_v16 }
 0x2b8   : > { %v2116_v49 = vpop.xlane.xlu1 %2115 }
 0x2b9   : > { %v2196_v57 = vsel %vm1462_vm4, %v2188_v25, %v2116_v49 }
 0x2ba   : > { %v2177_v15 = vpop.xlane.xlu0 %2176 }
 0x2bb   : > { %v7235_v0 = vsel %vm1471_vm5, %v2195_v54, %v2177_v15 }
 0x2bc   : > { %v2180_v46 = vpop.xlane.xlu1 %2179  ;;  %v2223_v58 = vsel %vm1480_vm6, %v7235_v0, -inf }
 0x2bd   : > { %v7241_v12 = vsel %vm1471_vm5, %v2196_v57, %v2180_v46  ;;  %2224 = vmax.xlane.f32.xlu0 %v2223_v58 }
 0x2be   : > { %v2931_v20 = vpop.xlane.xlu0 %2930  ;;  %v2226_v35 = vsel %vm1480_vm6, %v7241_v12, -inf }
 0x2bf   : > { %v2953_v37 = vsub.f32 %v6856_v60, %v2931_v20  ;;  %2227 = vmax.xlane.f32.xlu1 %v2226_v35 }
 0x2c0   : > { %v2934_v28 = vpop.xlane.xlu1 %2933 }
 0x2c1   : > { %v2961_v62 = vmul.f32 1.442695, %v2953_v37  ;;  %v2954_v42 = vsub.f32 %v6861_v63, %v2934_v28 }
 0x2c2   : > { %v3655_v61 = vpop.xlane.xlu0 %3654 }
 0x2c3   : > { %5630 = vpow2.f32 %v2961_v62  ;;  %v2963_v40 = vmul.f32 1.442695, %v2954_v42  ;;  %v3677_v38 = vsub.f32 %v6882_v56, %v3655_v61 }
 0x2c4   : > { %v3658_v27 = vpop.xlane.xlu1 %3657 }
 0x2c5   : > { %5632 = vpow2.f32 %v2963_v40  ;;  %v3685_v52 = vmul.f32 1.442695, %v3677_v38  ;;  %v3678_v14 = vsub.f32 %v6887_v59, %v3658_v27 }
 0x2c6   : > { %v2937_v1 = vpop.xlane.xlu0 %2936 }
 0x2c7   : > { %5634 = vpow2.f32 %v3685_v52  ;;  %v3687_v43 = vmul.f32 1.442695, %v3678_v14  ;;  %v2955_v60 = vsub.f32 %v6908_v7, %v2937_v1 }
 0x2c8   : > { %v2940_v4 = vpop.xlane.xlu1 %2939 }
 0x2c9   : > { %5636 = vpow2.f32 %v3687_v43  ;;  %v2965_v6 = vmul.f32 1.442695, %v2955_v60  ;;  %v2956_v63 = vsub.f32 %v6913_v18, %v2940_v4 }
 0x2ca   : > { %v2943_v11 = vpop.xlane.xlu0 %2942 }
 0x2cb   : > { %5638 = vpow2.f32 %v2965_v6  ;;  %v2967_v55 = vmul.f32 1.442695, %v2956_v63  ;;  %v2957_v56 = vsub.f32 %v6934_v9, %v2943_v11 }
 0x2cc   : > { %v2946_v50 = vpop.xlane.xlu1 %2945 }
 0x2cd   : > { %v7252_v16 = vpop.eup %5630  ;;  %5640 = vpow2.f32 %v2967_v55  ;;  %v2969_v59 = vmul.f32 1.442695, %v2957_v56  ;;  %v2958_v49 = vsub.f32 %v6939_v36, %v2946_v50 }
 0x2ce   : > { %v3661_v53 = vpop.xlane.xlu0 %3660  ;;  %v2977_v7 = vsel %vm1480_vm6, %v7252_v16, 0.0 }
 0x2cf   : > { %v7257_v54 = vpop.eup %5632  ;;  %5642 = vpow2.f32 %v2969_v59  ;;  %v2971_v18 = vmul.f32 1.442695, %v2958_v49  ;;  %v3679_v15 = vsub.f32 %v7057_v39, %v3661_v53  ;;  %2978 = vadd.xlane.f32.xlu0 %v2977_v7 }
 0x2d0   : > { %v3664_v25 = vpop.xlane.xlu1 %3663  ;;  %v2980_v9 = vsel %vm1480_vm6, %v7257_v54, 0.0 }
 0x2d1   : > { %v7262_v57 = vpop.eup %5634  ;;  %5644 = vpow2.f32 %v2971_v18  ;;  %v3689_v46 = vmul.f32 1.442695, %v3679_v15  ;;  %v3680_v36 = vsub.f32 %v7065_v22, %v3664_v25  ;;  %2981 = vadd.xlane.f32.xlu1 %v2980_v9 }
 0x2d2   : > { %v3667_v58 = vpop.xlane.xlu0 %3666  ;;  %v3701_v20 = vsel %vm1480_vm6, %v7262_v57, 0.0 }
 0x2d3   : > { %v7267_v35 = vpop.eup %5636  ;;  %5646 = vpow2.f32 %v3689_v46  ;;  %v3691_v39 = vmul.f32 1.442695, %v3680_v36  ;;  %v3681_v37 = vsub.f32 %v7079_v24, %v3667_v58  ;;  %3702 = vadd.xlane.f32.xlu0 %v3701_v20 }
 0x2d4   : > { %v3670_v28 = vpop.xlane.xlu1 %3669  ;;  %v3704_v62 = vsel %vm1480_vm6, %v7267_v35, 0.0 }
 0x2d5   : > { %v7272_v42 = vpop.eup %5638  ;;  %5648 = vpow2.f32 %v3691_v39  ;;  %v3693_v22 = vmul.f32 1.442695, %v3681_v37  ;;  %v3682_v61 = vsub.f32 %v7087_v2, %v3670_v28  ;;  %3705 = vadd.xlane.f32.xlu1 %v3704_v62 }
 0x2d6   : > { %v2949_v40 = vpop.xlane.xlu0 %2948  ;;  %v2983_v38 = vsel %vm1480_vm6, %v7272_v42, 0.0 }
 0x2d7   : > { %v7277_v27 = vpop.eup %5640  ;;  %5650 = vpow2.f32 %v3693_v22  ;;  %v3695_v24 = vmul.f32 1.442695, %v3682_v61  ;;  %v2959_v52 = vsub.f32 %v7099_v32, %v2949_v40  ;;  %2984 = vadd.xlane.f32.xlu0 %v2983_v38 }
 0x2d8   : > { %v2952_v14 = vpop.xlane.xlu1 %2951  ;;  %v2986_v1 = vsel %vm1480_vm6, %v7277_v27, 0.0 }
 0x2d9   : > { %v7282_v43 = vpop.eup %5642  ;;  %5652 = vpow2.f32 %v3695_v24  ;;  %v2973_v2 = vmul.f32 1.442695, %v2959_v52  ;;  %v2960_v60 = vsub.f32 %v7106_v48, %v2952_v14  ;;  %2987 = vadd.xlane.f32.xlu1 %v2986_v1 }
 0x2da   : > { %v3673_v4 = vpop.xlane.xlu0 %3672  ;;  %v2989_v6 = vsel %vm1480_vm6, %v7282_v43, 0.0 }
 0x2db   : > { %v7287_v63 = vpop.eup %5644  ;;  %5654 = vpow2.f32 %v2973_v2  ;;  %v2975_v32 = vmul.f32 1.442695, %v2960_v60  ;;  %v3683_v11 = vsub.f32 %v7114_v13, %v3673_v4  ;;  %2990 = vadd.xlane.f32.xlu0 %v2989_v6  ;;  %v8546_v2 = vmov 1  }
 0x2dc   : > { %v3676_v55 = vpop.xlane.xlu1 %3675  ;;  %v2992_v56 = vsel %vm1480_vm6, %v7287_v63, 0.0  ;;  %5457 = vset.pattern.permute.xlu1 %v8546_v2 }
 0x2dd   : > { %v7292_v50 = vpop.eup %5646  ;;  %5656 = vpow2.f32 %v2975_v32  ;;  %v3697_v48 = vmul.f32 1.442695, %v3683_v11  ;;  %v3684_v59 = vsub.f32 %v7120_v3, %v3676_v55  ;;  %2993 = vadd.xlane.f32.xlu1 %v2992_v56 }
 0x2de   : > { %v1483_v49 = vpop.xlane.xlu0 %1482  ;;  %v3707_v53 = vsel %vm1480_vm6, %v7292_v50, 0.0 }
 0x2df   : > { %v7297_v7 = vpop.eup %5648  ;;  %5658 = vpow2.f32 %v3697_v48  ;;  %v3699_v13 = vmul.f32 1.442695, %v3684_v59  ;;  %v1505_v18 = vsub.f32 %v7128_v23, %v1483_v49  ;;  %3708 = vadd.xlane.f32.xlu0 %v3707_v53 }
 0x2e0   : > { %v1486_v15 = vpop.xlane.xlu1 %1485  ;;  %v3710_v25 = vsel %vm1480_vm6, %v7297_v7, 0.0 }
 0x2e1   : > { %v7302_v9 = vpop.eup %5650  ;;  %5660 = vpow2.f32 %v3699_v13  ;;  %v1513_v3 = vmul.f32 1.442695, %v1505_v18  ;;  %v1506_v46 = vsub.f32 %v7134_v30, %v1486_v15  ;;  %3711 = vadd.xlane.f32.xlu1 %v3710_v25 }
 0x2e2   : > { %v3713_v36 = vsel %vm1480_vm6, %v7302_v9, 0.0 }
 0x2e3   : > { %v7307_v58 = vpop.eup %5652  ;;  %5662 = vpow2.f32 %v1513_v3  ;;  %v1515_v20 = vmul.f32 1.442695, %v1506_v46  ;;  %3714 = vadd.xlane.f32.xlu0 %v3713_v36  ;;  %v5586_v3 = vld [vmem:[%s5959_s14 + $0x20] ss:$48 sps:$4 sm:$0xff]   ;;  %v5588_v46 = vld [vmem:[%s5959_s14 + $0x24] ss:$48 sps:$4 sm:$0xff]  }
 0x2e4   : > { %v3716_v23 = vsel %vm1480_vm6, %v7307_v58, 0.0  ;;  %1054 = vmatprep.subr.bf16.mxu0 %v5588_v46 }
 0x2e5   : > { %v7311_v39 = vpop.eup %5654  ;;  %5664 = vpow2.f32 %v1515_v20  ;;  %3717 = vadd.xlane.f32.xlu1 %v3716_v23  ;;  %1055 = vmatpush1.bf16.msra.mxu0 %v5586_v3 }
 0x2e6   : > { %v2995_v37 = vsel %vm1480_vm6, %v7311_v39, 0.0 }
 0x2e7   : > { %v7315_v30 = vpop.eup %5656  ;;  %2996 = vadd.xlane.f32.xlu0 %v2995_v37 }
 0x2e8   : > { %v2998_v28 = vsel %vm1480_vm6, %v7315_v30, 0.0  ;;  %5254 = vmatmul.mubr.msk.bf16.vlgmr.msra.gmra.mrb[20].mxu0 %vm835_vm1, %v8673_v10 }
 0x2e9   : > { %v7319_v62 = vpop.eup %5658  ;;  %2999 = vadd.xlane.f32.xlu1 %v2998_v28  ;;  %1096 = vmatprep.mubr.bf16.mxu0 %v8674_v51 }
 0x2ea   : > { %v2207_v22 = vpop.xlane.xlu0 %2206  ;;  %v3719_v61 = vsel %vm1480_vm6, %v7319_v62, 0.0 }
 0x2eb   : > { %v7323_v40 = vpop.eup %5660  ;;  %v2229_v38 = vsub.f32 %v7143_v44, %v2207_v22  ;;  %3720 = vadd.xlane.f32.xlu0 %v3719_v61 }
 0x2ec   : > { %v3722_v24 = vsel %vm1480_vm6, %v7323_v40, 0.0 }
 0x2ed   : > { %v7328_v52 = vpop.eup %5662  ;;  %v2237_v14 = vmul.f32 1.442695, %v2229_v38  ;;  %3723 = vadd.xlane.f32.xlu1 %v3722_v24 }
 0x2ee   : > { %v1529_v1 = vsel %vm1480_vm6, %v7328_v52, 0.0 }
 0x2ef   : > { %v7333_v60 = vpop.eup %5664  ;;  %5666 = vpow2.f32 %v2237_v14  ;;  %1530 = vadd.xlane.f32.xlu0 %v1529_v1 }
 0x2f0   : > { %v1532_v44 = vsel %vm1480_vm6, %v7333_v60, 0.0  ;;  %5255 = vmatmul.mubr.msk.bf16.gmra.mrb[24].mxu0 %vm835_vm1, %v8675_v17 }
 0x2f1   : > { %1533 = vadd.xlane.f32.xlu1 %v1532_v44 }
 0x2f9   : > { %v7337_v4 = vpop.eup %5666 }
 0x2fa   : > { %v1489_v6 = vpop.xlane.xlu0 %1488  ;;  %v2253_v32 = vsel %vm1480_vm6, %v7337_v4, 0.0 }
 0x2fb   : > { %v1507_v11 = vsub.f32 %v7150_v26, %v1489_v6  ;;  %2254 = vadd.xlane.f32.xlu0 %v2253_v32 }
 0x2fd   : > { %v1517_v55 = vmul.f32 1.442695, %v1507_v11 }
 0x2ff   : > { %5668 = vpow2.f32 %v1517_v55 }
 0x300   : > { %v2210_v56 = vpop.xlane.xlu1 %2209 }
 0x301   : > { %v2230_v48 = vsub.f32 %v7158_v29, %v2210_v56 }
 0x303   : > { %v2239_v59 = vmul.f32 1.442695, %v2230_v48 }
 0x304   : > { %v1492_v49 = vpop.xlane.xlu1 %1491 }
 0x305   : > { %5670 = vpow2.f32 %v2239_v59  ;;  %v1508_v53 = vsub.f32 %v7164_v31, %v1492_v49 }
 0x307   : > { %v1519_v13 = vmul.f32 1.442695, %v1508_v53 }
 0x309   : > { %v7344_v18 = vpop.eup %5668  ;;  %5672 = vpow2.f32 %v1519_v13 }
 0x30a   : > { %v2213_v15 = vpop.xlane.xlu0 %2212  ;;  %v1535_v26 = vsel %vm1480_vm6, %v7344_v18, 0.0 }
 0x30b   : > { %v2231_v25 = vsub.f32 %v7172_v47, %v2213_v15  ;;  %1536 = vadd.xlane.f32.xlu0 %v1535_v26 }
 0x30c   : > { %v2216_v36 = vpop.xlane.xlu1 %2215 }
 0x30d   : > { %v2241_v29 = vmul.f32 1.442695, %v2231_v25  ;;  %v2232_v20 = vsub.f32 %v7178_v45, %v2216_v36 }
 0x30f   : > { %v7352_v31 = vpop.eup %5670  ;;  %5674 = vpow2.f32 %v2241_v29  ;;  %v2243_v23 = vmul.f32 1.442695, %v2232_v20 }
 0x310   : > { %v2256_v37 = vsel %vm1480_vm6, %v7352_v31, 0.0 }
 0x311   : > { %5676 = vpow2.f32 %v2243_v23  ;;  %2257 = vadd.xlane.f32.xlu1 %v2256_v37 }
 0x313   : > { %v7359_v47 = vpop.eup %5672 }
 0x314   : > { %v1538_v45 = vsel %vm1480_vm6, %v7359_v47, 0.0 }
 0x315   : > { %1539 = vadd.xlane.f32.xlu1 %v1538_v45 }
 0x319   : > { %v7363_v28 = vpop.eup %5674 }
 0x31a   : > { %v1495_v22 = vpop.xlane.xlu0 %1494  ;;  %v2259_v61 = vsel %vm1480_vm6, %v7363_v28, 0.0 }
 0x31b   : > { %v7369_v38 = vpop.eup %5676  ;;  %v1509_v10 = vsub.f32 %v7186_v8, %v1495_v22  ;;  %2260 = vadd.xlane.f32.xlu0 %v2259_v61 }
 0x31c   : > { %v1498_v24 = vpop.xlane.xlu1 %1497  ;;  %v2262_v14 = vsel %vm1480_vm6, %v7369_v38, 0.0 }
 0x31d   : > { %v1521_v1 = vmul.f32 1.442695, %v1509_v10  ;;  %v1510_v44 = vsub.f32 %v7192_v21, %v1498_v24  ;;  %2263 = vadd.xlane.f32.xlu1 %v2262_v14 }
 0x31f   : > { %5678 = vpow2.f32 %v1521_v1  ;;  %v1523_v6 = vmul.f32 1.442695, %v1510_v44 }
 0x321   : > { %5680 = vpow2.f32 %v1523_v6 }
 0x329   : > { %v7375_v17 = vpop.eup %5678 }
 0x32a   : > { %v2219_v32 = vpop.xlane.xlu0 %2218  ;;  %v1541_v11 = vsel %vm1480_vm6, %v7375_v17, 0.0 }
 0x32b   : > { %v7379_v55 = vpop.eup %5680  ;;  %v2233_v8 = vsub.f32 %v7205_v41, %v2219_v32  ;;  %1542 = vadd.xlane.f32.xlu0 %v1541_v11 }
 0x32c   : > { %v2222_v56 = vpop.xlane.xlu1 %2221  ;;  %v1544_v48 = vsel %vm1480_vm6, %v7379_v55, 0.0 }
 0x32d   : > { %v2245_v21 = vmul.f32 1.442695, %v2233_v8  ;;  %v2234_v59 = vsub.f32 %v7211_v34, %v2222_v56  ;;  %1545 = vadd.xlane.f32.xlu1 %v1544_v48  ;;  %v8548_v48 = vmov 2  }
 0x32f   : > { %5682 = vpow2.f32 %v2245_v21  ;;  %v2247_v49 = vmul.f32 1.442695, %v2234_v59 }
 0x331   : > { %5684 = vpow2.f32 %v2247_v49 }
 0x339   : > { %v7385_v53 = vpop.eup %5682 }
 0x33a   : > { %v1501_v13 = vpop.xlane.xlu0 %1500  ;;  %v2265_v15 = vsel %vm1480_vm6, %v7385_v53, 0.0 }
 0x33b   : > { %v7389_v26 = vpop.eup %5684  ;;  %v1511_v41 = vsub.f32 %v7221_v5, %v1501_v13  ;;  %2266 = vadd.xlane.f32.xlu0 %v2265_v15  ;;  %v8544_v13 = vmov 3  }
 0x33c   : > { %v1504_v25 = vpop.xlane.xlu1 %1503  ;;  %v2268_v3 = vsel %vm1480_vm6, %v7389_v26, 0.0 }
 0x33d   : > { %v1525_v34 = vmul.f32 1.442695, %v1511_v41  ;;  %v1512_v46 = vsub.f32 %v7227_v19, %v1504_v25  ;;  %2269 = vadd.xlane.f32.xlu1 %v2268_v3 }
 0x33f   : > { %5686 = vpow2.f32 %v1525_v34  ;;  %v1527_v36 = vmul.f32 1.442695, %v1512_v46 }
 0x341   : > { %5688 = vpow2.f32 %v1527_v36 }
 0x347   : > { %v7413_v32 = vpop.f32.mrb[12].mxu1 }
 0x348   : > { %v7417_v21 = vpop.f32.mrb[13].mxu1 }
 0x349   : > { %v7395_v29 = vpop.eup %5686  ;;  %v7429_v25 = vpop.f32.mrb[14].mxu1 }
 0x34a   : > { %8676 = vst [vmem:[#allocation21_spill] sm:$0xff] %v7395_v29  ;;  %v2225_v20 = vpop.xlane.xlu0 %2224  ;;  %v1547_v23 = vsel %vm1480_vm6, %v7395_v29, 0.0  ;;  %v7433_v3 = vpop.f32.mrb[15].mxu1 }
 0x34b   : > { %v7399_v37 = vpop.eup %5688  ;;  %v2235_v5 = vsub.f32 %v7235_v0, %v2225_v20  ;;  %1548 = vadd.xlane.f32.xlu0 %v1547_v23 }
 0x34c   : > { %v2228_v45 = vpop.xlane.xlu1 %2227  ;;  %v1550_v22 = vsel %vm1480_vm6, %v7399_v37, 0.0 }
 0x34d   : > { %v2249_v19 = vmul.f32 1.442695, %v2235_v5  ;;  %v2236_v61 = vsub.f32 %v7241_v12, %v2228_v45  ;;  %1551 = vadd.xlane.f32.xlu1 %v1550_v22 }
 0x34f   : > { %5690 = vpow2.f32 %v2249_v19  ;;  %v2251_v10 = vmul.f32 1.442695, %v2236_v61 }
 0x351   : > { %5692 = vpow2.f32 %v2251_v10  ;;  %v7438_v20 = vpop.f32.mrb[16].mxu1 }
 0x352   : > { %v7449_v10 = vpop.f32.mrb[17].mxu1 }
 0x353   : > { %8678 = vst [vmem:[#allocation23_spill] sm:$0xff] %v7449_v10 }
 0x359   : > { %v7405_v24 = vpop.eup %5690 }
 0x35a   : > { %8677 = vst [vmem:[#allocation22_spill] sm:$0xff] %v7405_v24  ;;  %v2271_v14 = vsel %vm1480_vm6, %v7405_v24, 0.0 }
 0x35b   : > { %v7409_v1 = vpop.eup %5692  ;;  %2272 = vadd.xlane.f32.xlu0 %v2271_v14 }
 0x35c   : > { %v2979_v0 = vpop.xlane.xlu0 %2978  ;;  %v2274_v44 = vsel %vm1480_vm6, %v7409_v1, 0.0 }
 0x35d   : > { %2275 = vadd.xlane.f32.xlu1 %v2274_v44  ;;  %5694 = vrcp.f32 %v2979_v0 }
 0x35e   : > { %v2982_v8 = vpop.xlane.xlu1 %2981 }
 0x360   : > { %v3703_v6 = vpop.xlane.xlu0 %3702 }
 0x361   : > { %5696 = vrcp.f32 %v3703_v6 }
 0x362   : > { %5698 = vrcp.f32 %v2982_v8  ;;  %v3706_v46 = vpop.xlane.xlu1 %3705 }
 0x364   : > { %v2985_v49 = vpop.xlane.xlu0 %2984 }
 0x365   : > { %5700 = vrcp.f32 %v2985_v49 }
 0x366   : > { %v2988_v22 = vpop.xlane.xlu1 %2987 }
 0x367   : > { %v5695_v12 = vpop.eup %5694 }
 0x368   : > { %v3009_v11 = vmul.f32 %v5695_v12, %v7252_v16  ;;  %v2991_v15 = vpop.xlane.xlu0 %2990 }
 0x369   : > { %5702 = vrcp.f32 %v2991_v15 }
 0x36a   : > { %5704 = vrcp.f32 %v3706_v46  ;;  %v2994_v14 = vpop.xlane.xlu1 %2993 }
 0x36b   : > { %v5697_v56 = vpop.eup %5696 }
 0x36c   : > { %v3733_v59 = vmul.f32 %v5697_v56, %v7262_v57  ;;  %v5699_v16 = vpop.eup %5698  ;;  %v3709_v23 = vpop.xlane.xlu0 %3708 }
 0x36d   : > { %v3010_v41 = vmul.f32 %v5699_v16, %v7257_v54  ;;  %5706 = vrcp.f32 %v3709_v23  ;;  %v7501_v23 = vpop.f32.mrb[18].mxu1 }
 0x36e   : > { %3098 = vperm.xlu1 %5457, %v3009_v11   ;;  %v3712_v0 = vpop.xlane.xlu1 %3711 }
 0x36f   : > { %v5701_v57 = vpop.eup %5700 }
 0x370   : > { %v3011_v54 = vmul.f32 %v5701_v57, %v7272_v42  ;;  %v3715_v42 = vpop.xlane.xlu0 %3714 }
 0x371   : > { %3019 = vperm.xlu0 %5456, %v3009_v11   ;;  %5708 = vrcp.f32 %v3715_v42 }
 0x372   : > { %5458 = vset.pattern.permute.xlu1 %v8548_v48  ;;  %5710 = vrcp.f32 %v2988_v22  ;;  %v3718_v6 = vpop.xlane.xlu1 %3717 }
 0x373   : > { %3178 = vperm.xlu1 %5458, %v3009_v11   ;;  %v5703_v34 = vpop.eup %5702  ;;  %5712 = vrcp.f32 %v2994_v14  ;;  %v5591_v14 = vld [vmem:[%s5969_s15 + $0xc8] sm:$0xff]  }
 0x374   : > { %v3013_v36 = vmul.f32 %v5703_v34, %v7282_v43  ;;  %v5705_v43 = vpop.eup %5704  ;;  %5714 = vrcp.f32 %v3712_v0  ;;  %v2997_v56 = vpop.xlane.xlu0 %2996 }
 0x375   : > { %5461 = vset.pattern.permute.xlu0 %v8546_v2  ;;  %v3734_v5 = vmul.f32 %v5705_v43, %v7267_v35  ;;  %5716 = vrcp.f32 %v3718_v6  ;;  %v7511_v43 = vpop.f32.mrb[19].mxu1 }
 0x376   : > { %3822 = vperm.xlu0 %5461, %v3733_v59   ;;  %v3000_v8 = vpop.xlane.xlu1 %2999  ;;  %5718 = vrcp.f32 %v2997_v56  ;;  %8680 = vst [vmem:[#allocation25_spill] sm:$0xff] %v7511_v43  ;;  %v5594_v56 = vld [vmem:[%s5969_s15 + $0x90] sm:$0xff]  }
 0x377   : > { %5459 = vset.pattern.permute.xlu1 %v8544_v13  ;;  %v5707_v45 = vpop.eup %5706  ;;  %5720 = vrcp.f32 %v3000_v8  ;;  %v5593_v8 = vld [vmem:[%s5969_s15 + $0xd0] sm:$0xff]  }
 0x378   : > { %3258 = vperm.xlu1 %5459, %v3009_v11   ;;  %v3735_v19 = vmul.f32 %v5707_v45, %v7292_v50  ;;  %v7478_v49 = vpop.xlane.xlu0 %3720 }
 0x37a   : > { %5463 = vset.pattern.permute.xlu0 %v8544_v13 }
 0x37b   : > { %3982 = vperm.xlu0 %5463, %v3733_v59   ;;  %v5709_v61 = vpop.eup %5708 }
 0x37c   : > { %5460 = vset.pattern.permute.xlu1 %v8674_v51  ;;  %v3737_v35 = vmul.f32 %v5709_v61, %v7302_v9  ;;  %v5711_v50 = vpop.eup %5710  ;;  %v1531_v57 = vpop.xlane.xlu0 %1530  ;;  %v5590_v61 = vld [vmem:[%s5969_s15 + $0x80] sm:$0xff]  }
 0x37d   : > { %3743 = vperm.xlu1 %5460, %v3733_v59   ;;  %v3012_v44 = vmul.f32 %v5711_v50, %v7277_v27  ;;  %v5713_v9 = vpop.eup %5712 }
 0x37e   : > { %v7461_v12 = vmul.f32 %v5713_v9, %v7287_v63  ;;  %v5715_v27 = vpop.eup %5714  ;;  %v5592_v9 = vld [vmem:[%s5969_s15 + $0x88] sm:$0xff]  }
 0x37f   : > { %5465 = vset.pattern.permute.xlu0 %v8546_v2  ;;  %v7467_v11 = vmul.f32 %v5715_v27, %v7297_v7  ;;  %v5717_v63 = vpop.eup %5716 }
 0x380   : > { %3102 = vperm.xlu0 %5465, %v3010_v41   ;;  %v7476_v7 = vmul.f32 %v5717_v63, %v7307_v58  ;;  %v5719_v15 = vpop.eup %5718 }
 0x381   : > { %5462 = vset.pattern.permute.xlu1 %v8548_v48  ;;  %v7490_v58 = vmul.f32 %v5719_v15, %v7311_v39 }
 0x382   : > { %3902 = vperm.xlu1 %5462, %v3733_v59   ;;  %v3724_v59 = vpop.xlane.xlu1 %3723 }
 0x383   : > { %5722 = vrcp.f32 %v3724_v59 }
 0x384   : > { %5467 = vset.pattern.permute.xlu0 %v8548_v48  ;;  %5724 = vrcp.f32 %v1531_v57 }
 0x385   : > { %3182 = vperm.xlu0 %5467, %v3010_v41  }
 0x386   : > { %5464 = vset.pattern.permute.xlu1 %v8674_v51  ;;  %v7482_v16 = vpop.xlane.xlu1 %1533 }
 0x387   : > { %3024 = vperm.xlu1 %5464, %v3010_v41  }
 0x388   : > { %v2255_v46 = vpop.xlane.xlu0 %2254 }
 0x389   : > { %5469 = vset.pattern.permute.xlu0 %v8544_v13  ;;  %5726 = vrcp.f32 %v2255_v46  ;;  %v5595_v46 = vld [vmem:[%s5969_s15 + $0xd8] sm:$0xff]  }
 0x38a   : > { %3262 = vperm.xlu0 %5469, %v3010_v41   ;;  %v5721_v41 = vpop.eup %5720  ;;  %5728 = vrcp.f32 %v7478_v49  ;;  %v5598_v49 = vld [vmem:[%s5969_s15 + $0xa0] sm:$0xff]  }
 0x38b   : > { %3029 = vperm.xlu1 %5464, %v3011_v54   ;;  %v7495_v34 = vmul.f32 %v5721_v41, %v7315_v30  ;;  %5730 = vrcp.f32 %v7482_v16 }
 0x38d   : > { %8679 = vst [vmem:[#allocation24_spill] sm:$0xff] %v7495_v34  ;;  %v5723_v30 = vpop.eup %5722 }
 0x38e   : > { %5472 = vset.pattern.permute.xlu0 %v8546_v2  ;;  %v7517_v45 = vmul.f32 %v5723_v30, %v7323_v40  ;;  %v5725_v50 = vpop.eup %5724  ;;  %v5596_v30 = vld [vmem:[%s5969_s15 + $0x98] sm:$0xff]  }
 0x38f   : > { %3114 = vperm.xlu0 %5472, %v3013_v36   ;;  %5466 = vset.pattern.permute.xlu1 %v8546_v2  ;;  %v7543_v27 = vmul.f32 %v5725_v50, %v7328_v52 }
 0x390   : > { %3106 = vperm.xlu1 %5466, %v3011_v54  }
 0x393   : > { %5473 = vset.pattern.permute.xlu0 %v8548_v48  ;;  %v5727_v59 = vpop.eup %5726 }
 0x394   : > { %3194 = vperm.xlu0 %5473, %v3013_v36   ;;  %5468 = vset.pattern.permute.xlu1 %v8548_v48  ;;  %v7560_v57 = vmul.f32 %v5727_v59, %v7337_v4  ;;  %v5597_v4 = vld [vmem:[%s5969_s15 + $0xe0] sm:$0xff]   ;;  %v5729_v50 = vpop.eup %5728  ;;  %v5601_v59 = vld [vmem:[%s5969_s15 + $0xf0] sm:$0xff]  }
 0x395   : > { %3186 = vperm.xlu1 %5468, %v3011_v54  }
 0x398   : > { %5474 = vset.pattern.permute.xlu0 %v8544_v13  ;;  %v7504_v39 = vpop.xlane.xlu0 %1536 }
 0x399   : > { %3274 = vperm.xlu0 %5474, %v3013_v36   ;;  %5470 = vset.pattern.permute.xlu1 %v8544_v13 }
 0x39a   : > { %3266 = vperm.xlu1 %5470, %v3011_v54  }
 0x39d   : > { %5475 = vset.pattern.permute.xlu0 %v8674_v51 }
 0x39e   : > { %5471 = vset.pattern.permute.xlu1 %v8674_v51  ;;  %3748 = vperm.xlu0 %5475, %v3734_v5   ;;  %v7486_v54 = vpop.xlane.xlu1 %2257 }
 0x39f   : > { %3039 = vperm.xlu1 %5471, %v3013_v36  }
 0x3a2   : > { %5477 = vset.pattern.permute.xlu0 %v8548_v48  ;;  %v7499_v36 = vpop.xlane.xlu1 %1539 }
 0x3a3   : > { %3753 = vperm.xlu1 %5471, %v3735_v19   ;;  %3906 = vperm.xlu0 %5477, %v3734_v5   ;;  %5732 = vrcp.f32 %v7499_v36 }
 0x3a7   : > { %5476 = vset.pattern.permute.xlu1 %v8546_v2  ;;  %5480 = vset.pattern.permute.xlu0 %v8674_v51 }
 0x3a8   : > { %3826 = vperm.xlu1 %5476, %v3734_v5   ;;  %3763 = vperm.xlu0 %5480, %v3737_v35  }
 0x3aa   : > { %v7508_v42 = vpop.xlane.xlu1 %2263 }
 0x3ab   : > { %5734 = vrcp.f32 %v7508_v42  ;;  %v8691_v42 = vmov 3  }
 0x3ac   : > { %3830 = vperm.xlu1 %5476, %v3735_v19   ;;  %5482 = vset.pattern.permute.xlu0 %v8548_v48 }
 0x3ad   : > { %3918 = vperm.xlu0 %5482, %v3737_v35  }
 0x3b0   : > { %5478 = vset.pattern.permute.xlu1 %v8548_v48 }
 0x3b1   : > { %3910 = vperm.xlu1 %5478, %v3735_v19   ;;  %5484 = vset.pattern.permute.xlu0 %v8674_v51 }
 0x3b2   : > { %3034 = vperm.xlu0 %5484, %v3012_v44  }
 0x3b5   : > { %5479 = vset.pattern.permute.xlu1 %v8544_v13 }
 0x3b6   : > { %3986 = vperm.xlu1 %5479, %v3734_v5   ;;  %5487 = vset.pattern.permute.xlu0 %v8544_v13  ;;  %v7513_v5 = vpop.xlane.xlu0 %2260 }
 0x3b7   : > { %3270 = vperm.xlu0 %5487, %v3012_v44  }
 0x3ba   : > { %3990 = vperm.xlu1 %5479, %v3735_v19   ;;  %v7519_v22 = vpop.xlane.xlu1 %1545  ;;  %v5589_v19 = vld [vmem:[%s5969_s15 + $0xc0] sm:$0xff]  }
 0x3bb   : > { %5488 = vset.pattern.permute.xlu0 %v8674_v51  ;;  %5341 = vmatprep.subr.bf16.mxu1 %v5589_v19 }
 0x3bc   : > { %3044 = vperm.xlu0 %5488, %v7461_v12   ;;  %5342 = vmatpush3.bf16.msra.mxu1 %v5590_v61  ;;  %v5599_v61 = vld [vmem:[%s5969_s15 + $0xe8] sm:$0xff]  }
 0x3bd   : > { %5343 = vmatprep.subr.bf16.mxu1 %v5591_v14 }
 0x3be   : > { %5481 = vset.pattern.permute.xlu1 %v8546_v2 }
 0x3bf   : > { %3838 = vperm.xlu1 %5481, %v3737_v35  }
 0x3c0   : > { %5494 = vset.pattern.permute.xlu0 %v8546_v2  ;;  %5344 = vmatpush3.bf16.msra.mxu1 %v5592_v9 }
 0x3c1   : > { %3834 = vperm.xlu0 %5494, %v7467_v11   ;;  %5345 = vmatprep.subr.bf16.mxu1 %v5593_v8  ;;  %v5731_v8 = vpop.eup %5730 }
 0x3c3   : > { %5483 = vset.pattern.permute.xlu1 %v8544_v13 }
 0x3c4   : > { %3998 = vperm.xlu1 %5483, %v3737_v35   ;;  %v7525_v35 = vpop.xlane.xlu0 %1542  ;;  %5346 = vmatpush3.bf16.msra.mxu1 %v5594_v56  ;;  %v5600_v56 = vld [vmem:[%s5969_s15 + $0xa8] sm:$0xff]  }
 0x3c5   : > { %5496 = vset.pattern.permute.xlu0 %v8544_v13  ;;  %5347 = vmatprep.subr.bf16.mxu1 %v5595_v46  ;;  %v5602_v46 = vld [vmem:[%s5969_s15 + $0xb0] sm:$0xff]   ;;  %5736 = vrcp.f32 %v7525_v35  ;;  %v8694_v35 = vmov 1  }
 0x3c6   : > { %3994 = vperm.xlu0 %5496, %v7467_v11  }
 0x3c8   : > { %5485 = vset.pattern.permute.xlu1 %v8546_v2  ;;  %v7533_v0 = vpop.xlane.xlu0 %2266  ;;  %5348 = vmatpush3.bf16.msra.mxu1 %v5596_v30  ;;  %v3739_v30 = vmul.f32 %v5729_v50, %v7319_v62 }
 0x3c9   : > { %3110 = vperm.xlu1 %5485, %v3012_v44   ;;  %5349 = vmatprep.subr.bf16.mxu1 %v5597_v4  ;;  %v7598_v4 = vmul.f32 %v5731_v8, %v7333_v60  ;;  %v5733_v8 = vpop.eup %5732  ;;  %5738 = vrcp.f32 %v7533_v0 }
 0x3ca   : > { %5498 = vset.pattern.permute.xlu0 %v8546_v2  ;;  %v7529_v40 = vpop.xlane.xlu1 %2269  ;;  %5740 = vrcp.f32 %v7519_v22 }
 0x3cb   : > { %3842 = vperm.xlu0 %5498, %v7476_v7   ;;  %5742 = vrcp.f32 %v7504_v39  ;;  %v8706_v39 = vld [vmem:[#allocation11_spill] sm:$0xff] }
 0x3cc   : > { %5350 = vmatpush3.bf16.msra.mxu1 %v5598_v49  ;;  %v5603_v49 = vld [vmem:[%s5969_s15 + $0xf8] sm:$0xff]   ;;  %5744 = vrcp.f32 %v7529_v40 }
 0x3cd   : > { %5486 = vset.pattern.permute.xlu1 %v8548_v48  ;;  %5351 = vmatprep.subr.bf16.mxu1 %v5599_v61 }
 0x3ce   : > { %3190 = vperm.xlu1 %5486, %v3012_v44   ;;  %v7536_v44 = vpop.f32.mrb[20].mxu0 }
 0x3cf   : > { %5501 = vset.pattern.permute.xlu0 %v8544_v13  ;;  %8681 = vst [vmem:[#allocation26_spill] sm:$0xff] %v7536_v44  ;;  %v7552_v15 = vpop.f32.mrb[21].mxu0 }
 0x3d0   : > { %4002 = vperm.xlu0 %5501, %v7476_v7   ;;  %8683 = vst [vmem:[#allocation28_spill] sm:$0xff] %v7552_v15  ;;  %5352 = vmatpush3.bf16.msra.mxu1 %v5600_v56  ;;  %v5604_v56 = vld [vmem:[%s5969_s15 + $0xb8] sm:$0xff]   ;;  %v7616_v36 = vpop.f32.mrb[22].mxu0  ;;  %v8693_v15 = vmov 2  }
 0x3d1   : > { %5353 = vmatprep.subr.bf16.mxu1 %v5601_v59  ;;  %8688 = vst [vmem:[#allocation33_spill] sm:$0xff] %v7616_v36 }
 0x3d2   : > { %5489 = vset.pattern.permute.xlu1 %v8674_v51 }
 0x3d3   : > { %3049 = vperm.xlu1 %5489, %v7490_v58  }
 0x3d4   : > { %5504 = vset.pattern.permute.xlu0 %v8546_v2  ;;  %5354 = vmatpush3.bf16.msra.mxu1 %v5602_v46 }
 0x3d5   : > { %3126 = vperm.xlu0 %5504, %v7495_v34   ;;  %5355 = vmatprep.subr.bf16.mxu1 %v5603_v49  ;;  %v7630_v49 = vmul.f32 %v5733_v8, %v7359_v47 }
 0x3d7   : > { %5490 = vset.pattern.permute.xlu1 %v8546_v2  ;;  %8689 = vst [vmem:[#allocation34_spill] sm:$0xff] %v7630_v49 }
 0x3d8   : > { %3118 = vperm.xlu1 %5490, %v7461_v12   ;;  %v7547_v63 = vpop.xlane.xlu0 %1548  ;;  %5356 = vmatpush3.bf16.msra.mxu1 %v5604_v56  ;;  %v7634_v56 = vpop.f32.mrb[23].mxu0 }
 0x3d9   : > { %5505 = vset.pattern.permute.xlu0 %v8548_v48  ;;  %8682 = vst [vmem:[#allocation27_spill] sm:$0xff] %v7547_v63  ;;  %8690 = vst [vmem:[#allocation35_spill] sm:$0xff] %v7634_v56  ;;  %v7706_v63 = vld [vmem:[%s5964_s27 + $0x8] sm:$0xf] }
 0x3da   : > { %3206 = vperm.xlu0 %5505, %v7495_v34   ;;  %v7540_v6 = vpop.xlane.xlu1 %1551  ;;  %v7717_v40 = vrot.slane %v7706_v63, %v8706_v39 }
 0x3db   : > { %5746 = vrcp.f32 %v7540_v6 }
 0x3dc   : > { %3122 = vperm.xlu1 %5490, %v7490_v58   ;;  %5748 = vrcp.f32 %v7486_v54 }
 0x3de   : > { %5506 = vset.pattern.permute.xlu0 %v8674_v51 }
 0x3df   : > { %3778 = vperm.xlu0 %5506, %v7517_v45  }
 0x3e0   : > { %5491 = vset.pattern.permute.xlu1 %v8548_v48 }
 0x3e1   : > { %3198 = vperm.xlu1 %5491, %v7461_v12  }
 0x3e3   : > { %5508 = vset.pattern.permute.xlu0 %v8548_v48 }
 0x3e4   : > { %3930 = vperm.xlu0 %5508, %v7517_v45  }
 0x3e5   : > { %3202 = vperm.xlu1 %5491, %v7490_v58  }
 0x3e8   : > { %5513 = vset.pattern.permute.xlu0 %v8544_v13  ;;  %v7557_v52 = vpop.xlane.xlu0 %2272 }
 0x3e9   : > { %5492 = vset.pattern.permute.xlu1 %v8544_v13  ;;  %1810 = vperm.xlu0 %5513, %v7543_v27   ;;  %8684 = vst [vmem:[#allocation29_spill] sm:$0xff] %v7557_v52 }
 0x3ea   : > { %3278 = vperm.xlu1 %5492, %v7461_v12   ;;  %v7555_v41 = vpop.xlane.xlu1 %2275 }
 0x3eb   : > { %5750 = vrcp.f32 %v7555_v41 }
 0x3ec   : > { %5752 = vrcp.f32 %v7513_v5 }
 0x3ed   : > { %5514 = vset.pattern.permute.xlu0 %v8674_v51 }
 0x3ee   : > { %5493 = vset.pattern.permute.xlu1 %v8674_v51  ;;  %2295 = vperm.xlu0 %5514, %v7560_v57   ;;  %v7567_v12 = vpop.permute.xlu1 %3098 }
 0x3ef   : > { %3758 = vperm.xlu1 %5493, %v7467_v11  }
 0x3f0   : > { %v7572_v19 = vpop.permute.xlu0 %3019 }
 0x3f2   : > { %5516 = vset.pattern.permute.xlu0 %v8548_v48  ;;  %v7577_v16 = vpop.permute.xlu1 %3178 }
 0x3f3   : > { %5495 = vset.pattern.permute.xlu1 %v8548_v48  ;;  %2454 = vperm.xlu0 %5516, %v7560_v57  }
 0x3f4   : > { %3914 = vperm.xlu1 %5495, %v7467_v11  }
 0x3f5   : > { %v7583_v14 = vpop.permute.xlu0 %3822 }
 0x3f6   : > { %8685 = vst [vmem:[#allocation31_spill] sm:$0xff] %v7583_v14 }
 0x3f7   : > { %5517 = vset.pattern.permute.xlu0 %v8544_v13  ;;  %v7586_v9 = vpop.permute.xlu1 %3258 }
 0x3f8   : > { %5497 = vset.pattern.permute.xlu1 %v8674_v51  ;;  %2534 = vperm.xlu0 %5517, %v7560_v57  }
 0x3f9   : > { %3768 = vperm.xlu1 %5497, %v7476_v7  }
 0x3fa   : > { %v7593_v11 = vpop.permute.xlu0 %3982 }
 0x3fb   : > { %8686 = vst [vmem:[#allocation30_spill] sm:$0xff] %v7593_v11 }
 0x3fc   : > { %5518 = vset.pattern.permute.xlu0 %v8674_v51  ;;  %v7602_v61 = vpop.permute.xlu1 %3743 }
 0x3fd   : > { %3773 = vperm.xlu1 %5497, %v3739_v30   ;;  %1576 = vperm.xlu0 %5518, %v7598_v4  }
 0x3ff   : > { %v7606_v13 = vpop.permute.xlu0 %3102 }
 0x401   : > { %5499 = vset.pattern.permute.xlu1 %v8546_v2  ;;  %5520 = vset.pattern.permute.xlu0 %v8546_v2  ;;  %v7611_v62 = vpop.permute.xlu1 %3902 }
 0x402   : > { %8687 = vst [vmem:[#allocation32_spill] sm:$0xff] %v7611_v62  ;;  %3846 = vperm.xlu1 %5499, %v3739_v30   ;;  %1654 = vperm.xlu0 %5520, %v7598_v4  }
 0x404   : > { %v7614_v60 = vpop.permute.xlu0 %3182 }
 0x406   : > { %5500 = vset.pattern.permute.xlu1 %v8548_v48  ;;  %5522 = vset.pattern.permute.xlu0 %v8548_v48  ;;  %v7620_v50 = vpop.permute.xlu1 %3024  ;;  %v5735_v48 = vpop.eup %5734 }
 0x407   : > { %3922 = vperm.xlu1 %5500, %v7476_v7   ;;  %1734 = vperm.xlu0 %5522, %v7598_v4   ;;  %v7650_v56 = vmul.f32 %v5735_v48, %v7369_v38  ;;  %v5737_v44 = vpop.eup %5736  ;;  %v7664_v38 = vpop.f32.mrb[24].mxu0 }
 0x408   : > { %8695 = vst [vmem:[#allocation37_spill] sm:$0xff] %v7664_v38  ;;  %v7672_v24 = vmul.f32 %v5737_v44, %v7375_v17  ;;  %v5739_v17 = vpop.eup %5738 }
 0x409   : > { %v7625_v59 = vpop.permute.xlu0 %3262  ;;  %8692 = vst [vmem:[#allocation36_spill] sm:$0xff] %v7650_v56  ;;  %v7694_v52 = vmul.f32 %v5739_v17, %v7385_v53  ;;  %v5741_v29 = vpop.eup %5740 }
 0x40a   : > { %v7627_v46 = vpop.permute.xlu1 %3029  ;;  %8697 = vst [vmem:[#allocation41_spill] sm:$0xff] %v7672_v24  ;;  %v7710_v53 = vmul.f32 %v5741_v29, %v7379_v55  ;;  %v5743_v55 = vpop.eup %5742 }
 0x40b   : > { %3926 = vperm.xlu1 %5500, %v3739_v30   ;;  %5529 = vset.pattern.permute.xlu0 %v8674_v51  ;;  %8702 = vst [vmem:[#allocation14_spill] sm:$0xff] %v7694_v52  ;;  %v5745_v29 = vpop.eup %5744 }
 0x40c   : > { %1586 = vperm.xlu0 %5529, %v7630_v49   ;;  %8705 = vst [vmem:[#allocation44_spill] sm:$0xff] %v7710_v53 }
 0x40e   : > { %v7636_v2 = vpop.permute.xlu0 %3114 }
 0x40f   : > { %5502 = vset.pattern.permute.xlu1 %v8691_v42  ;;  %v7639_v7 = vpop.permute.xlu1 %3106 }
 0x410   : > { %4006 = vperm.xlu1 %5502, %v3739_v30   ;;  %5532 = vset.pattern.permute.xlu0 %v8691_v42 }
 0x411   : > { %1822 = vperm.xlu0 %5532, %v7630_v49  }
 0x413   : > { %v7644_v47 = vpop.permute.xlu0 %3194 }
 0x414   : > { %5503 = vset.pattern.permute.xlu1 %v8674_v51  ;;  %v7647_v8 = vpop.permute.xlu1 %3186 }
 0x415   : > { %3054 = vperm.xlu1 %5503, %v7495_v34   ;;  %5535 = vset.pattern.permute.xlu0 %v8693_v15 }
 0x416   : > { %2466 = vperm.xlu0 %5535, %v7650_v56  }
 0x418   : > { %v7655_v30 = vpop.permute.xlu0 %3274 }
 0x419   : > { %5507 = vset.pattern.permute.xlu1 %v8694_v35  ;;  %v7658_v36 = vpop.permute.xlu1 %3266 }
 0x41a   : > { %3850 = vperm.xlu1 %5507, %v7517_v45   ;;  %5536 = vset.pattern.permute.xlu0 %v8691_v42 }
 0x41b   : > { %2546 = vperm.xlu0 %5536, %v7650_v56  }
 0x41d   : > { %v7666_v48 = vpop.permute.xlu0 %3748 }
 0x41e   : > { %8696 = vst [vmem:[#allocation38_spill] sm:$0xff] %v7666_v48  ;;  %5509 = vset.pattern.permute.xlu1 %v8691_v42  ;;  %v7669_v34 = vpop.permute.xlu1 %3039 }
 0x41f   : > { %4010 = vperm.xlu1 %5509, %v7517_v45   ;;  %5538 = vset.pattern.permute.xlu0 %v8694_v35  ;;  %v7686_v45 = vpop.f32.mrb[25].mxu0 }
 0x420   : > { %1666 = vperm.xlu0 %5538, %v7672_v24   ;;  %8700 = vst [vmem:[#allocation40_spill] sm:$0xff] %v7686_v45  ;;  %v7768_v11 = vpop.f32.mrb[26].mxu0 }
 0x421   : > { %8713 = vst [vmem:[#allocation10_spill] sm:$0xff] %v7768_v11  ;;  %v5747_v11 = vpop.eup %5746 }
 0x422   : > { %v7678_v0 = vpop.permute.xlu0 %3906  ;;  %v7680_v38 = vpop.permute.xlu1 %3753 }
 0x423   : > { %8698 = vst [vmem:[#allocation39_spill] sm:$0xff] %v7678_v0  ;;  %8699 = vst [vmem:[#allocation42_spill] sm:$0xff] %v7680_v38  ;;  %5510 = vset.pattern.permute.xlu1 %v8674_v51 }
 0x424   : > { %1571 = vperm.xlu1 %5510, %v7543_v27   ;;  %5539 = vset.pattern.permute.xlu0 %v8693_v15 }
 0x425   : > { %1746 = vperm.xlu0 %5539, %v7672_v24  }
 0x427   : > { %v7688_v44 = vpop.permute.xlu0 %3763  ;;  %v7690_v22 = vpop.permute.xlu1 %3826 }
 0x428   : > { %8701 = vst [vmem:[#allocation43_spill] sm:$0xff] %v7688_v44  ;;  %5511 = vset.pattern.permute.xlu1 %v8694_v35 }
 0x429   : > { %1650 = vperm.xlu1 %5511, %v7543_v27   ;;  %5542 = vset.pattern.permute.xlu0 %v8694_v35 }
 0x42a   : > { %2390 = vperm.xlu0 %5542, %v7694_v52   ;;  %v7725_v52 = vadd.f32 %v7438_v20, %v7717_v40  ;;  %v7740_v20 = vmul.f32 %v5743_v55, %v7344_v18  ;;  %v7756_v55 = vadd.f32 %v7413_v32, %v7717_v40 }
 0x42b   : > { %v7701_v45 = vpop.permute.xlu1 %3830 }
 0x42c   : > { %8703 = vst [vmem:[#allocation17_spill] sm:$0xff] %v7701_v45  ;;  %v7703_v44 = vpop.permute.xlu0 %3918  ;;  %v2641_v6 = vcombine.high %v7756_v55, %v7756_v55 }
 0x42d   : > { %8704 = vst [vmem:[#allocation19_spill] sm:$0xff] %v7703_v44  ;;  %5512 = vset.pattern.permute.xlu1 %v8693_v15 }
 0x42e   : > { %1730 = vperm.xlu1 %5512, %v7543_v27   ;;  %5545 = vset.pattern.permute.xlu0 %v8674_v51  ;;  %v7733_v27 = vcombine.high %v7725_v52, %v7725_v52 }
 0x42f   : > { %1596 = vperm.xlu0 %5545, %v7710_v53  }
 0x430   : > { %v7719_v17 = vpop.permute.xlu1 %3910 }
 0x431   : > { %8707 = vst [vmem:[#allocation15_spill] sm:$0xff] %v7719_v17  ;;  %v7721_v44 = vpop.permute.xlu0 %3034 }
 0x432   : > { %5515 = vset.pattern.permute.xlu1 %v8694_v35 }
 0x433   : > { %2374 = vperm.xlu1 %5515, %v7560_v57   ;;  %5549 = vset.pattern.permute.xlu0 %v8691_v42  ;;  %v7744_v57 = vmul.f32 %v5745_v29, %v7389_v26 }
 0x434   : > { %1830 = vperm.xlu0 %5549, %v7710_v53   ;;  %v8710_v53 = vld [vmem:[#allocation12_spill] sm:$0xff] }
 0x435   : > { %v7735_v43 = vpop.permute.xlu1 %3986  ;;  %8709 = vst [vmem:[#allocation20_spill] sm:$0xff] %v7744_v57  ;;  %v3080_v24 = vrot.slane %v7733_v27, %v8710_v53  ;;  %v3060_v54 = vrot.slane %v7756_v55, %v8710_v53 }
 0x436   : > { %8708 = vst [vmem:[#allocation18_spill] sm:$0xff] %v7735_v43  ;;  %v7737_v10 = vpop.permute.xlu0 %3270  ;;  %v3216_v43 = vrot.slane %v2641_v6, %v8706_v39 }
 0x437   : > { %5519 = vset.pattern.permute.xlu1 %v8674_v51  ;;  %v3089_v5 = vmul.f32 %v3060_v54, %v7572_v19  ;;  %v3292_v54 = vrot.slane %v7756_v55, %v6083_v33 }
 0x438   : > { %1581 = vperm.xlu1 %5519, %v7740_v20   ;;  %5551 = vset.pattern.permute.xlu0 %v8674_v51 }
 0x439   : > { %2320 = vperm.xlu0 %5551, %v7744_v57   ;;  %v7752_v56 = vpop.permute.xlu1 %3990 }
 0x43a   : > { %8711 = vst [vmem:[#allocation16_spill] sm:$0xff] %v7752_v56  ;;  %v1146_v56 = vadd.f32 %v7429_v25, %v7717_v40 }
 0x43b   : > { %v3045_v18 = vpop.permute.xlu0 %3044 }
 0x43c   : > { %v7758_v26 = vmul.f32 %v3080_v24, %v3045_v18  ;;  %5521 = vset.pattern.permute.xlu1 %v8694_v35  ;;  %v3064_v24 = vrot.slane %v2641_v6, %v8710_v53  ;;  %v8715_v18 = vld [vmem:[#allocation13_spill] sm:$0xff]  ;;  %v2642_v41 = vcombine.high %v1146_v56, %v1146_v56 }
 0x43d   : > { %1658 = vperm.xlu1 %5521, %v7740_v20   ;;  %5554 = vset.pattern.permute.xlu0 %v8693_v15  ;;  %v3136_v49 = vrot.slane %v2641_v6, %v8715_v18  ;;  %v3132_v25 = vrot.slane %v7756_v55, %v8715_v18  ;;  %v3140_v0 = vrot.slane %v1146_v56, %v8715_v18 }
 0x43e   : > { %2474 = vperm.xlu0 %5554, %v7744_v57   ;;  %v7766_v29 = vpop.permute.xlu1 %3838  ;;  %v3224_v48 = vrot.slane %v2642_v41, %v8706_v39 }
 0x43f   : > { %8712 = vst [vmem:[#allocation9_spill] sm:$0xff] %v7766_v29  ;;  %v3162_v38 = vmul.f32 %v3136_v49, %v7606_v13  ;;  %v3068_v49 = vrot.slane %v1146_v56, %v8710_v53  ;;  %v3161_v19 = vmul.f32 %v3132_v25, %v7567_v12  ;;  %v3163_v45 = vmul.f32 %v3140_v0, %v7639_v7 }
 0x440   : > { %v7772_v32 = vpop.permute.xlu0 %3834  ;;  %v3321_v0 = vmul.f32 %v3292_v54, %v7586_v9  ;;  %v3152_v54 = vrot.slane %v7733_v27, %v8715_v18 }
 0x441   : > { %8714 = vst [vmem:[#allocation11_spill] sm:$0xff] %v7772_v32  ;;  %5523 = vset.pattern.permute.xlu1 %v8693_v15  ;;  %v3090_v32 = vmul.f32 %v3064_v24, %v7620_v50  ;;  %v3144_v50 = vrot.slane %v2642_v41, %v8715_v18  ;;  %v3212_v24 = vrot.slane %v7756_v55, %v8706_v39 }
 0x442   : > { %1738 = vperm.xlu1 %5523, %v7740_v20   ;;  %5556 = vset.pattern.permute.xlu0 %v8691_v42  ;;  %v3169_v12 = vadd.f32 %v3161_v19, %v3089_v5 }
 0x443   : > { %2554 = vperm.xlu0 %5556, %v7744_v57   ;;  %v7784_v29 = vpop.permute.xlu1 %3998  ;;  %v7797_v57 = vmul.f32 %v5747_v11, %v7399_v37  ;;  %v3170_v13 = vadd.f32 %v3162_v38, %v3090_v32  ;;  %v3072_v37 = vrot.slane %v2642_v41, %v8710_v53  ;;  %v5749_v38 = vpop.eup %5748  ;;  %v3242_v32 = vmul.f32 %v3216_v43, %v7614_v60 }
 0x444   : > { %8716 = vst [vmem:[#allocation12_spill] sm:$0xff] %v7784_v29  ;;  %v3296_v29 = vrot.slane %v2641_v6, %v6083_v33  ;;  %v3300_v6 = vrot.slane %v1146_v56, %v6083_v33  ;;  %v3241_v25 = vmul.f32 %v3212_v24, %v7577_v16  ;;  %v3091_v43 = vmul.f32 %v3068_v49, %v7627_v46 }
 0x445   : > { %v7791_v17 = vpop.permute.xlu0 %3994  ;;  %v3092_v7 = vmul.f32 %v3072_v37, %v7721_v44 }
 0x446   : > { %8717 = vst [vmem:[#allocation13_spill] sm:$0xff] %v7791_v17  ;;  %5524 = vset.pattern.permute.xlu1 %v8691_v42  ;;  %v3220_v17 = vrot.slane %v1146_v56, %v8706_v39  ;;  %v3322_v55 = vmul.f32 %v3296_v29, %v7625_v59  ;;  %v3304_v56 = vrot.slane %v2642_v41, %v6083_v33  ;;  %v7840_v29 = vpop.f32.mrb[27].mxu0 }
 0x447   : > { %1814 = vperm.xlu1 %5524, %v7598_v4   ;;  %5559 = vset.pattern.permute.xlu0 %v8694_v35  ;;  %v7816_v4 = vadd.f32 %v7501_v23, %v7717_v40  ;;  %v5751_v23 = vpop.eup %5750  ;;  %v3250_v40 = vadd.f32 %v3242_v32, %v3170_v13  ;;  %v7834_v59 = vmul.f32 %v5749_v38, %v7352_v31 }
 0x448   : > { %1678 = vperm.xlu0 %5559, %v7797_v57   ;;  %v3111_v11 = vpop.permute.xlu1 %3110  ;;  %v3243_v60 = vmul.f32 %v3220_v17, %v7647_v8  ;;  %v3171_v46 = vadd.f32 %v3163_v45, %v3091_v43  ;;  %v3323_v8 = vmul.f32 %v3300_v6, %v7658_v36  ;;  %v5753_v41 = vpop.eup %5752  ;;  %v7847_v31 = vmul.f32 %v5751_v23, %v7409_v1 }
 0x449   : > { %v3164_v62 = vmul.f32 %v3144_v50, %v3111_v11  ;;  %v3249_v50 = vadd.f32 %v3241_v25, %v3169_v12  ;;  %v3330_v5 = vadd.f32 %v3322_v55, %v3250_v40  ;;  %v3324_v13 = vmul.f32 %v3304_v56, %v7737_v10 }
 0x44a   : > { %v7820_v14 = vpop.permute.xlu0 %3842  ;;  %v3251_v24 = vadd.f32 %v3243_v60, %v3171_v46  ;;  %v7858_v1 = vmul.f32 %v5753_v41, %v7363_v28  ;;  %v3076_v40 = vrot.slane %v7725_v52, %v8710_v53  ;;  %v3148_v43 = vrot.slane %v7725_v52, %v8715_v18 }
 0x44b   : > { %1818 = vperm.xlu1 %5524, %v7740_v20   ;;  %v7838_v20 = vcombine.high %v7816_v4, %v7816_v4  ;;  %v3172_v44 = vadd.f32 %v3164_v62, %v3092_v7  ;;  %v3329_v36 = vadd.f32 %v3321_v0, %v3249_v50  ;;  %v7887_v60 = vrot.slane %v7706_v63, %v6083_v33 }
 0x44c   : > { %5560 = vset.pattern.permute.xlu0 %v8693_v15  ;;  %v3228_v46 = vrot.slane %v7725_v52, %v8706_v39 }
 0x44d   : > { %1758 = vperm.xlu0 %5560, %v7797_v57   ;;  %v3191_v16 = vpop.permute.xlu1 %3190  ;;  %8718 = vst [vmem:[#allocation45_spill] sm:$0xff] %v7838_v20  ;;  %v3160_v62 = vrot.slane %v7838_v20, %v8715_v18  ;;  %v4101_v11 = vcombine.low %v3329_v36, %v3330_v5  ;;  %v3240_v32 = vrot.slane %v7838_v20, %v8706_v39 }
 0x44e   : > { %v3244_v17 = vmul.f32 %v3224_v48, %v3191_v16  ;;  %v3331_v48 = vadd.f32 %v3323_v8, %v3251_v24  ;;  %v3165_v16 = vmul.f32 %v3148_v43, %v7636_v2  ;;  %v7897_v8 = vadd.f32 %v7417_v21, %v7887_v60  ;;  %v8723_v43 = vld [vmem:[#allocation31_spill] sm:$0xff] }
 0x44f   : > { %v7843_v9 = vpop.permute.xlu0 %4002  ;;  %5525 = vset.pattern.permute.xlu1 %v8674_v51  ;;  %v3245_v50 = vmul.f32 %v3228_v46, %v7644_v47  ;;  %v3308_v2 = vrot.slane %v7725_v52, %v6083_v33  ;;  %v3312_v5 = vrot.slane %v7733_v27, %v6083_v33  ;;  %v1148_v24 = vadd.f32 %v7433_v3, %v7887_v60 }
 0x450   : > { %v3252_v49 = vadd.f32 %v3244_v17, %v3172_v44  ;;  %2300 = vperm.xlu1 %5525, %v7834_v59  }
 0x451   : > { %5563 = vset.pattern.permute.xlu0 %v8694_v35  ;;  %v3325_v36 = vmul.f32 %v3308_v2, %v7655_v30  ;;  %v3366_v52 = vcombine.high %v1148_v24, %v1148_v24 }
 0x452   : > { %v3332_v45 = vadd.f32 %v3324_v13, %v3252_v49  ;;  %2402 = vperm.xlu0 %5563, %v7847_v31   ;;  %v7855_v37 = vpop.permute.xlu1 %3049  ;;  %v3784_v49 = vrot.slane %v7897_v8, %v8710_v53 }
 0x453   : > { %v3796_v30 = vrot.slane %v3366_v52, %v8710_v53 }
 0x454   : > { %v4102_v10 = vcombine.low %v3331_v48, %v3332_v45  ;;  %v3127_v19 = vpop.permute.xlu0 %3126  ;;  %2305 = vperm.xlu1 %5525, %v7858_v1   ;;  %v3936_v45 = vrot.slane %v7897_v8, %v8706_v39 }
 0x455   : > { %v7863_v6 = vmul.f32 %v3160_v62, %v3127_v19 }
 0x456   : > { %v7865_v38 = vpack.c.bf16 %v4102_v10, %v4101_v11  ;;  %5564 = vset.pattern.permute.xlu0 %v8691_v42  ;;  %v3864_v11 = vrot.slane %v1148_v24, %v8715_v18 }
 0x457   : > { %3282 = vperm.xlu0 %5564, %v7490_v58   ;;  %v3119_v28 = vpop.permute.xlu1 %3118  ;;  %v3232_v58 = vrot.slane %v7733_v27, %v8706_v39  ;;  %v3856_v27 = vrot.slane %v7897_v8, %v8715_v18 }
 0x458   : > { %v3166_v12 = vmul.f32 %v3152_v54, %v3119_v28  ;;  %5526 = vset.pattern.permute.xlu1 %v8694_v35  ;;  %v3813_v54 = vmul.f32 %v3784_v49, %v7602_v61 }
 0x459   : > { %v3207_v25 = vpop.permute.xlu0 %3206  ;;  %2378 = vperm.xlu1 %5526, %v7834_v59   ;;  %v3885_v61 = vmul.f32 %v3856_v27, %v8723_v43  ;;  %v8729_v27 = vld [vmem:[#allocation18_spill] sm:$0xff]  ;;  %v8734_v43 = vld [vmem:[#allocation13_spill] sm:$0xff] }
 0x45a   : > { %v3174_v55 = vadd.f32 %v3166_v12, %v7758_v26  ;;  %v7874_v56 = vmul.f32 %v3240_v32, %v3207_v25  ;;  %v3093_v26 = vmul.f32 %v3076_v40, %v7669_v34  ;;  %v3365_v34 = vcombine.high %v7897_v8, %v7897_v8  ;;  %v8722_v32 = vld [vmem:[#allocation38_spill] sm:$0xff] }
 0x45b   : > { %v7876_v23 = vpop.permute.xlu1 %3122  ;;  %v3792_v25 = vrot.slane %v1148_v24, %v8710_v53  ;;  %v3893_v2 = vadd.f32 %v3885_v61, %v3813_v54 }
 0x45c   : > { %v3173_v17 = vadd.f32 %v3165_v16, %v3093_v26  ;;  %v3860_v21 = vrot.slane %v3365_v34, %v8715_v18  ;;  %v3788_v62 = vrot.slane %v3365_v34, %v8710_v53  ;;  %v3940_v12 = vrot.slane %v3365_v34, %v8706_v39  ;;  %v8724_v26 = vld [vmem:[#allocation32_spill] sm:$0xff]  ;;  %v8725_v16 = vld [vmem:[#allocation17_spill] sm:$0xff] }
 0x45d   : > { %2382 = vperm.xlu1 %5526, %v7858_v1   ;;  %v3887_v46 = vmul.f32 %v3864_v11, %v8725_v16  ;;  %v5609_v16 = vld [vmem:[%s5969_s15 + $0x50] sm:$0xff]  }
 0x45e   : > { %v3253_v13 = vadd.f32 %v3245_v50, %v3173_v17  ;;  %v3886_v3 = vmul.f32 %v3860_v21, %v7690_v22  ;;  %v3814_v28 = vmul.f32 %v3788_v62, %v8722_v32  ;;  %v3944_v22 = vrot.slane %v1148_v24, %v8706_v39  ;;  %v5605_v62 = vld [vmem:[%s5969_s15 + $0x40] sm:$0xff]   ;;  %v8731_v32 = vld [vmem:[#allocation16_spill] sm:$0xff] }
 0x45f   : > { %v4016_v50 = vrot.slane %v7897_v8, %v6083_v33  ;;  %5313 = vmatprep.subr.bf16.mxu0 %v5605_v62  ;;  %v5610_v62 = vld [vmem:[%s5969_s15 + $0x10] sm:$0xff]  }
 0x460   : > { %v3199_v7 = vpop.permute.xlu1 %3198  ;;  %v7924_v10 = vadd.f32 %v3325_v36, %v3253_v13  ;;  %v8727_v13 = vld [vmem:[#allocation42_spill] sm:$0xff]  ;;  %v8728_v36 = vld [vmem:[#allocation15_spill] sm:$0xff] }
 0x461   : > { %v3246_v0 = vmul.f32 %v3232_v58, %v3199_v7  ;;  %5527 = vset.pattern.permute.xlu1 %v8693_v15  ;;  %v3965_v7 = vmul.f32 %v3936_v45, %v8724_v26  ;;  %v3815_v49 = vmul.f32 %v3792_v25, %v8727_v13  ;;  %v8735_v13 = vld [vmem:[#allocation36_spill] sm:$0xff] }
 0x462   : > { %2458 = vperm.xlu1 %5527, %v7834_v59   ;;  %8720 = vst [vmem:[#allocation47_spill] sm:$0xff] %v7924_v10 }
 0x463   : > { %v3254_v44 = vadd.f32 %v3246_v0, %v3174_v55  ;;  %v4020_v55 = vrot.slane %v3365_v34, %v6083_v33  ;;  %v3894_v0 = vadd.f32 %v3886_v3, %v3814_v28  ;;  %v3948_v34 = vrot.slane %v3366_v52, %v8706_v39 }
 0x464   : > { %v7899_v41 = vpop.permute.xlu1 %3202  ;;  %v3973_v11 = vadd.f32 %v3965_v7, %v3893_v2  ;;  %v5607_v7 = vld [vmem:[%s5969_s15 + $0x48] sm:$0xff]  }
 0x465   : > { %8719 = vst [vmem:[#allocation46_spill] sm:$0xff] %v7899_v41  ;;  %v4046_v45 = vmul.f32 %v4020_v55, %v8729_v27  ;;  %v8733_v55 = vld [vmem:[#allocation30_spill] sm:$0xff]  ;;  %v8755_v41 = vld [vmem:[#allocation35_spill] sm:$0xff] }
 0x466   : > { %2462 = vperm.xlu1 %5527, %v7858_v1  }
 0x469   : > { %v3279_v47 = vpop.permute.xlu1 %3278 }
 0x46a   : > { %v3326_v48 = vmul.f32 %v3312_v5, %v3279_v47  ;;  %5528 = vset.pattern.permute.xlu1 %v8691_v42  ;;  %v8726_v5 = vld [vmem:[#allocation39_spill] sm:$0xff]  ;;  %v5606_v47 = vld [vmem:[%s5969_s15] sm:$0xff]  }
 0x46b   : > { %2538 = vperm.xlu1 %5528, %v7834_v59   ;;  %v3868_v59 = vrot.slane %v3366_v52, %v8715_v18  ;;  %v3966_v21 = vmul.f32 %v3940_v12, %v8726_v5  ;;  %5314 = vmatpush3.bf16.msra.mxu0 %v5606_v47  ;;  %v5611_v47 = vld [vmem:[%s5969_s15 + $0x58] sm:$0xff]  }
 0x46c   : > { %v7926_v19 = vadd.f32 %v3326_v48, %v3254_v44  ;;  %v4024_v44 = vrot.slane %v1148_v24, %v6083_v33  ;;  %v3967_v48 = vmul.f32 %v3944_v22, %v8728_v36  ;;  %v4028_v24 = vrot.slane %v3366_v52, %v6083_v33  ;;  %v8732_v22 = vld [vmem:[#allocation34_spill] sm:$0xff]  ;;  %5315 = vmatprep.subr.bf16.mxu0 %v5607_v7  ;;  %v5612_v36 = vld [vmem:[%s5969_s15 + $0x18] sm:$0xff]   ;;  %v3779_v7 = vpop.permute.xlu0 %3778 }
 0x46d   : > { %v3974_v8 = vadd.f32 %v3966_v21, %v3894_v0  ;;  %v5608_v0 = vld [vmem:[%s5969_s15 + $0x8] sm:$0xff]  }
 0x46e   : > { %8721 = vst [vmem:[#allocation48_spill] sm:$0xff] %v7926_v19  ;;  %v3759_v58 = vpop.permute.xlu1 %3758  ;;  %v4047_v28 = vmul.f32 %v4024_v44, %v8731_v32  ;;  %v4048_v61 = vmul.f32 %v4028_v24, %v8734_v43  ;;  %v5616_v24 = vld [vmem:[%s5969_s15 + $0x28] sm:$0xff]  }
 0x46f   : > { %2542 = vperm.xlu1 %5528, %v7858_v1   ;;  %v3816_v17 = vmul.f32 %v3796_v30, %v3759_v58  ;;  %v8730_v1 = vld [vmem:[#allocation11_spill] sm:$0xff]  ;;  %v3895_v30 = vadd.f32 %v3887_v46, %v3815_v49  ;;  %v4054_v58 = vadd.f32 %v4046_v45, %v3974_v8  ;;  %5316 = vmatpush3.bf16.msra.mxu0 %v5608_v0  ;;  %v8736_v45 = vld [vmem:[#allocation41_spill] sm:$0xff] }
 0x470   : > { %v3888_v3 = vmul.f32 %v3868_v59, %v8730_v1  ;;  %v4045_v59 = vmul.f32 %v4016_v50, %v8733_v55  ;;  %5317 = vmatprep.subr.bf16.mxu0 %v5609_v16  ;;  %v5615_v1 = vld [vmem:[%s5969_s15 + $0x68] sm:$0xff]   ;;  %v5619_v55 = vld [vmem:[%s5969_s15 + $0x78] sm:$0xff]  }
 0x471   : > { %v3975_v52 = vadd.f32 %v3967_v48, %v3895_v30  ;;  %v5613_v48 = vld [vmem:[%s5969_s15 + $0x60] sm:$0xff]   ;;  %v8737_v30 = vld [vmem:[#allocation23_spill] sm:$0xff]  ;;  %v5620_v16 = vld [vmem:[%s5969_s15 + $0x38] sm:$0xff]  }
 0x472   : > { %v3896_v12 = vadd.f32 %v3888_v3, %v3816_v17  ;;  %v4053_v46 = vadd.f32 %v4045_v59, %v3973_v11  ;;  %v5617_v11 = vld [vmem:[%s5969_s15 + $0x70] sm:$0xff]   ;;  %v7986_v8 = vadd.f32 %v8737_v30, %v7887_v60 }
 0x473   : > { %5530 = vset.pattern.permute.xlu1 %v8694_v35  ;;  %v3915_v54 = vpop.permute.xlu1 %3914  ;;  %v4055_v2 = vadd.f32 %v4047_v28, %v3975_v52  ;;  %5318 = vmatpush3.bf16.msra.mxu0 %v5610_v62  ;;  %v3088_v52 = vrot.slane %v7838_v20, %v8710_v53 }
 0x474   : > { %v3968_v25 = vmul.f32 %v3948_v34, %v3915_v54  ;;  %1662 = vperm.xlu1 %5530, %v8732_v22   ;;  %v4117_v17 = vcombine.low %v4053_v46, %v4054_v58  ;;  %5319 = vmatprep.subr.bf16.mxu0 %v5611_v47  ;;  %v8738_v54 = vld [vmem:[#allocation25_spill] sm:$0xff]  ;;  %v3367_v28 = vcombine.high %v7986_v8, %v7986_v8  ;;  %v8739_v58 = vld [vmem:[#allocation27_spill] sm:$0xff] }
 0x475   : > { %v7990_v32 = vadd.f32 %v8738_v54, %v7887_v60  ;;  %5754 = vrcp.f32 %v8739_v58  ;;  %v3800_v43 = vrot.slane %v7986_v8, %v8710_v53  ;;  %v3952_v46 = vrot.slane %v7986_v8, %v8706_v39  ;;  %v8742_v47 = vld [vmem:[#allocation43_spill] sm:$0xff] }
 0x476   : > { %v3976_v26 = vadd.f32 %v3968_v25, %v3896_v12  ;;  %v5618_v25 = vld [vmem:[%s5969_s15 + $0x30] sm:$0xff]   ;;  %v3804_v60 = vrot.slane %v3367_v28, %v8710_v53  ;;  %v3956_v0 = vrot.slane %v3367_v28, %v8706_v39  ;;  %v4032_v30 = vrot.slane %v7986_v8, %v6083_v33 }
 0x477   : > { %5320 = vmatpush3.bf16.msra.mxu0 %v5612_v36  ;;  %v3368_v59 = vcombine.high %v7990_v32, %v7990_v32  ;;  %v3817_v36 = vmul.f32 %v3800_v43, %v8742_v47  ;;  %v4036_v54 = vrot.slane %v3367_v28, %v6083_v33  ;;  %v8746_v47 = vld [vmem:[#allocation21_spill] sm:$0xff] }
 0x478   : > { %v4056_v5 = vadd.f32 %v4048_v61, %v3976_v26  ;;  %5531 = vset.pattern.permute.xlu1 %v8693_v15  ;;  %v3769_v44 = vpop.permute.xlu1 %3768  ;;  %5321 = vmatprep.subr.bf16.mxu0 %v5613_v48  ;;  %v8740_v61 = vld [vmem:[#allocation14_spill] sm:$0xff]  ;;  %v3876_v26 = vrot.slane %v3367_v28, %v8715_v18  ;;  %v3808_v48 = vrot.slane %v7990_v32, %v8710_v53 }
 0x479   : > { %1742 = vperm.xlu1 %5531, %v8732_v22   ;;  %v3872_v22 = vrot.slane %v7986_v8, %v8715_v18 }
 0x47a   : > { %v4118_v34 = vcombine.low %v4055_v2, %v4056_v5  ;;  %v8741_v2 = vld [vmem:[#allocation9_spill] sm:$0xff] }
 0x47b   : > { %v3889_v5 = vmul.f32 %v3872_v22, %v8741_v2  ;;  %v3931_v22 = vpop.permute.xlu0 %3930 }
 0x47c   : > { %v7964_v50 = vpop.permute.xlu1 %3773  ;;  %v4128_v21 = vpack.c.bf16 %v4118_v34, %v4117_v17  ;;  %v3812_v34 = vrot.slane %v3368_v59, %v8710_v53 }
 0x47d   : > { %5533 = vset.pattern.permute.xlu1 %v8674_v51  ;;  %v3819_v8 = vmul.f32 %v3808_v48, %v7964_v50 }
 0x47e   : > { %2310 = vperm.xlu1 %5533, %v8735_v13   ;;  %4477 = vmatprep.mubr.bf16.mxu1 %v4128_v21  ;;  %v3818_v21 = vmul.f32 %v3804_v60, %v3769_v44  ;;  %v3820_v43 = vmul.f32 %v3812_v34, %v3779_v7 }
 0x47f   : > { %4478 = vmatmul.mubr.bf16.vlgmr.msra.gmra.mrb[20].mxu1 %v7865_v38  ;;  %v5614_v38 = vld [vmem:[%s5969_s15 + $0x20] sm:$0xff]  }
 0x480   : > { %5322 = vmatpush3.bf16.msra.mxu0 %v5614_v38  ;;  %v3960_v38 = vrot.slane %v7990_v32, %v8706_v39 }
 0x481   : > { %v7969_v49 = vpop.permute.xlu1 %3846  ;;  %5323 = vmatprep.subr.bf16.mxu0 %v5615_v1  ;;  %v3890_v1 = vmul.f32 %v3876_v26, %v7820_v14  ;;  %v4040_v14 = vrot.slane %v7990_v32, %v6083_v33 }
 0x482   : > { %5534 = vset.pattern.permute.xlu1 %v8694_v35 }
 0x483   : > { %2386 = vperm.xlu1 %5534, %v8735_v13   ;;  %v3880_v13 = vrot.slane %v7990_v32, %v8715_v18 }
 0x484   : > { %5324 = vmatpush3.bf16.msra.mxu0 %v5616_v24 }
 0x485   : > { %5325 = vmatprep.subr.bf16.mxu0 %v5617_v11  ;;  %v3897_v11 = vadd.f32 %v3889_v5, %v3817_v36  ;;  %v3891_v60 = vmul.f32 %v3880_v13, %v7969_v49  ;;  %v5755_v49 = vpop.eup %5754 }
 0x486   : > { %v3923_v27 = vpop.permute.xlu1 %3922  ;;  %v1567_v36 = vmul.f32 %v5755_v49, %v8746_v47 }
 0x487   : > { %5537 = vset.pattern.permute.xlu1 %v8674_v51  ;;  %v3970_v24 = vmul.f32 %v3956_v0, %v3923_v27  ;;  %v3899_v7 = vadd.f32 %v3891_v60, %v3819_v8 }
 0x488   : > { %1591 = vperm.xlu1 %5537, %v8736_v45   ;;  %5326 = vmatpush3.bf16.msra.mxu0 %v5618_v25  ;;  %v3964_v25 = vrot.slane %v3368_v59, %v8706_v39 }
 0x489   : > { %5327 = vmatprep.subr.bf16.mxu0 %v5619_v55  ;;  %v3898_v55 = vadd.f32 %v3890_v1, %v3818_v21 }
 0x48a   : > { %v3927_v3 = vpop.permute.xlu1 %3926  ;;  %v3972_v5 = vmul.f32 %v3964_v25, %v3931_v22  ;;  %v8749_v22 = vld [vmem:[#allocation22_spill] sm:$0xff] }
 0x48b   : > { %v3978_v28 = vadd.f32 %v3970_v24, %v3898_v55  ;;  %v3971_v0 = vmul.f32 %v3960_v38, %v3927_v3 }
 0x48c   : > { %5540 = vset.pattern.permute.xlu1 %v8691_v42  ;;  %5328 = vmatpush3.bf16.msra.mxu0 %v5620_v16  ;;  %v4044_v16 = vrot.slane %v3368_v59, %v6083_v33 }
 0x48d   : > { %1826 = vperm.xlu1 %5540, %v8736_v45   ;;  %v3884_v45 = vrot.slane %v3368_v59, %v8715_v18  ;;  %v3979_v3 = vadd.f32 %v3971_v0, %v3899_v7 }
 0x48f   : > { %v4007_v12 = vpop.permute.xlu1 %4006 }
 0x490   : > { %v4051_v34 = vmul.f32 %v4040_v14, %v4007_v12  ;;  %v8747_v12 = vld [vmem:[#allocation44_spill] sm:$0xff]  ;;  %v8067_v14 = vpop.permute.xlu0 %1810 }
 0x491   : > { %5541 = vset.pattern.permute.xlu1 %v8674_v51 }
 0x492   : > { %2315 = vperm.xlu1 %5541, %v8740_v61   ;;  %v4059_v48 = vadd.f32 %v4051_v34, %v3979_v3  ;;  %v8115_v34 = vrot.slane %v7706_v63, %v8715_v18  ;;  %v8753_v3 = vld [vmem:[#allocation24_spill] sm:$0xff] }
 0x494   : > { %v3055_v17 = vpop.permute.xlu1 %3054 }
 0x495   : > { %v3096_v62 = vmul.f32 %v3088_v52, %v3055_v17  ;;  %v8744_v52 = vld [vmem:[#allocation19_spill] sm:$0xff] }
 0x496   : > { %5543 = vset.pattern.permute.xlu1 %v8693_v15  ;;  %v3969_v58 = vmul.f32 %v3952_v46, %v8744_v52  ;;  %v4050_v46 = vmul.f32 %v4036_v54, %v7843_v9  ;;  %v8750_v52 = vld [vmem:[#allocation20_spill] sm:$0xff] }
 0x497   : > { %v3176_v44 = vadd.f32 %v7863_v6, %v3096_v62  ;;  %2470 = vperm.xlu1 %5543, %v8740_v61  }
 0x498   : > { %v3977_v2 = vadd.f32 %v3969_v58, %v3897_v11  ;;  %v4058_v13 = vadd.f32 %v4050_v46, %v3978_v28  ;;  %v8748_v11 = vld [vmem:[#allocation29_spill] sm:$0xff]  ;;  %v8073_v58 = vpop.permute.xlu0 %2295  ;;  %v8107_v46 = vrot.slane %v7706_v63, %v8710_v53 }
 0x499   : > { %v3851_v27 = vpop.permute.xlu1 %3850  ;;  %v8036_v6 = vadd.f32 %v7874_v56, %v3176_v44  ;;  %v8745_v56 = vld [vmem:[#allocation12_spill] sm:$0xff]  ;;  %5756 = vrcp.f32 %v8748_v11 }
 0x49a   : > { %v3892_v26 = vmul.f32 %v3884_v45, %v3851_v27  ;;  %v4049_v17 = vmul.f32 %v4032_v30, %v8745_v56 }
 0x49b   : > { %8743 = vst [vmem:[#allocation38_spill] sm:$0xff] %v8036_v6  ;;  %5544 = vset.pattern.permute.xlu1 %v8691_v42 }
 0x49c   : > { %v3900_v32 = vadd.f32 %v3892_v26, %v3820_v43  ;;  %2550 = vperm.xlu1 %5544, %v8740_v61   ;;  %v4057_v59 = vadd.f32 %v4049_v17, %v3977_v2  ;;  %v8080_v8 = vpop.permute.xlu0 %2454 }
 0x49e   : > { %v3980_v21 = vadd.f32 %v3972_v5, %v3900_v32  ;;  %v4011_v50 = vpop.permute.xlu1 %4010  ;;  %v4119_v1 = vcombine.low %v4057_v59, %v4058_v13 }
 0x49f   : > { %v4052_v62 = vmul.f32 %v4044_v16, %v4011_v50 }
 0x4a0   : > { %5546 = vset.pattern.permute.xlu1 %v8674_v51 }
 0x4a1   : > { %v4060_v38 = vadd.f32 %v4052_v62, %v3980_v21  ;;  %1601 = vperm.xlu1 %5546, %v1567_v36   ;;  %v8752_v21 = vld [vmem:[#allocation33_spill] sm:$0xff] }
 0x4a2   : > { %v1093_v50 = vadd.f32 %v8752_v21, %v8107_v46 }
 0x4a3   : > { %v4120_v61 = vcombine.low %v4059_v48, %v4060_v38  ;;  %v8047_v45 = vpop.permute.xlu1 %1571  ;;  %v5757_v25 = vpop.eup %5756 }
 0x4a4   : > { %v2291_v55 = vmul.f32 %v5757_v25, %v8749_v22  ;;  %v1189_v63 = vcombine.high %v1093_v50, %v1093_v50  ;;  %v1620_v21 = vrot.slane %v1093_v50, %v8710_v53 }
 0x4a5   : > { %5547 = vset.pattern.permute.xlu1 %v8694_v35  ;;  %v4132_v9 = vpack.c.bf16 %v4120_v61, %v4119_v1 }
 0x4a6   : > { %1670 = vperm.xlu1 %5547, %v8747_v12   ;;  %v1696_v11 = vrot.slane %v1189_v63, %v8715_v18 }
 0x4a7   : > { %4485 = vmatprep.mubr.bf16.mxu1 %v4132_v9 }
 0x4a8   : > { %v8051_v24 = vpop.permute.xlu1 %1650 }
 0x4aa   : > { %1674 = vperm.xlu1 %5547, %v1567_v36  }
 0x4ad   : > { %v8053_v44 = vpop.permute.xlu1 %1730 }
 0x4ae   : > { %5548 = vset.pattern.permute.xlu1 %v8693_v15 }
 0x4af   : > { %1750 = vperm.xlu1 %5548, %v8747_v12   ;;  %v1692_v12 = vrot.slane %v1093_v50, %v8715_v18 }
 0x4b2   : > { %v8058_v30 = vpop.permute.xlu1 %2374 }
 0x4b3   : > { %1754 = vperm.xlu1 %5548, %v1567_v36  }
 0x4b7   : > { %5550 = vset.pattern.permute.xlu1 %v8691_v42  ;;  %v8061_v54 = vpop.permute.xlu1 %1581 }
 0x4b8   : > { %1834 = vperm.xlu1 %5550, %v1567_v36  }
 0x4bc   : > { %5552 = vset.pattern.permute.xlu1 %v8674_v51  ;;  %v8065_v60 = vpop.permute.xlu1 %1658 }
 0x4bd   : > { %2325 = vperm.xlu1 %5552, %v2291_v55  }
 0x4c1   : > { %5553 = vset.pattern.permute.xlu1 %v8694_v35  ;;  %v8070_v27 = vpop.permute.xlu1 %1738  ;;  %v8085_v35 = vpop.permute.xlu0 %2534 }
 0x4c2   : > { %2394 = vperm.xlu1 %5553, %v8750_v52  }
 0x4c5   : > { %v1577_v16 = vpop.permute.xlu0 %1576 }
 0x4c6   : > { %2398 = vperm.xlu1 %5553, %v2291_v55   ;;  %v8075_v43 = vpop.permute.xlu1 %1814 }
 0x4c9   : > { %v1655_v5 = vpop.permute.xlu0 %1654 }
 0x4ca   : > { %5555 = vset.pattern.permute.xlu1 %v8693_v15  ;;  %v8078_v26 = vpop.permute.xlu1 %1818 }
 0x4cb   : > { %2478 = vperm.xlu1 %5555, %v2291_v55  }
 0x4cd   : > { %v1735_v56 = vpop.permute.xlu0 %1734 }
 0x4cf   : > { %5557 = vset.pattern.permute.xlu1 %v8691_v42  ;;  %v8083_v28 = vpop.permute.xlu1 %2300 }
 0x4d0   : > { %2558 = vperm.xlu1 %5557, %v2291_v55  }
 0x4d3   : > { %v8087_v0 = vpop.permute.xlu1 %2305 }
 0x4d4   : > { %5558 = vset.pattern.permute.xlu1 %v8674_v51 }
 0x4d5   : > { %1606 = vperm.xlu1 %5558, %v7797_v57  }
 0x4d8   : > { %v8091_v49 = vpop.permute.xlu1 %2378 }
 0x4d9   : > { %5561 = vset.pattern.permute.xlu1 %v8691_v42 }
 0x4da   : > { %1838 = vperm.xlu1 %5561, %v7797_v57   ;;  %v1587_v57 = vpop.permute.xlu0 %1586 }
 0x4dc   : > { %v8095_v2 = vpop.permute.xlu1 %2382 }
 0x4de   : > { %5562 = vset.pattern.permute.xlu1 %v8674_v51  ;;  %v8751_v51 = vld [vmem:[#allocation26_spill] sm:$0xff]  ;;  %v1823_v59 = vpop.permute.xlu0 %1822 }
 0x4df   : > { %2330 = vperm.xlu1 %5562, %v7847_v31   ;;  %v1089_v7 = vadd.f32 %v8751_v51, %v8107_v46  ;;  %v1624_v51 = vrot.slane %v1189_v63, %v8710_v53 }
 0x4e1   : > { %v8099_v32 = vpop.permute.xlu1 %2458  ;;  %v1188_v13 = vcombine.high %v1089_v7, %v1089_v7  ;;  %v1684_v47 = vrot.slane %v1089_v7, %v8715_v18  ;;  %v1612_v61 = vrot.slane %v1089_v7, %v8710_v53  ;;  %v1764_v1 = vrot.slane %v1089_v7, %v8706_v39 }
 0x4e2   : > { %v1844_v9 = vrot.slane %v1089_v7, %v6083_v33  ;;  %v8148_v20 = vpop.permute.xlu0 %2466 }
 0x4e3   : > { %5565 = vset.pattern.permute.xlu1 %v8693_v15  ;;  %v1616_v48 = vrot.slane %v1188_v13, %v8710_v53  ;;  %v1768_v38 = vrot.slane %v1188_v13, %v8706_v39  ;;  %v1713_v52 = vmul.f32 %v1684_v47, %v8051_v24  ;;  %v1848_v7 = vrot.slane %v1188_v13, %v6083_v33 }
 0x4e4   : > { %2482 = vperm.xlu1 %5565, %v7847_v31   ;;  %v1641_v10 = vmul.f32 %v1612_v61, %v8047_v45  ;;  %v1793_v6 = vmul.f32 %v1764_v1, %v8053_v44  ;;  %v1852_v24 = vrot.slane %v1093_v50, %v6083_v33  ;;  %v1776_v47 = vrot.slane %v1189_v63, %v8706_v39 }
 0x4e5   : > { %v8103_v17 = vpop.permute.xlu1 %2462  ;;  %v1642_v40 = vmul.f32 %v1616_v48, %v1577_v16  ;;  %v1794_v19 = vmul.f32 %v1768_v38, %v1735_v56  ;;  %v1856_v16 = vrot.slane %v1189_v63, %v6083_v33  ;;  %v1644_v45 = vmul.f32 %v1624_v51, %v1587_v57 }
 0x4e6   : > { %v1721_v56 = vadd.f32 %v1713_v52, %v1641_v10  ;;  %v1643_v44 = vmul.f32 %v1620_v21, %v8061_v54  ;;  %v1875_v63 = vmul.f32 %v1852_v24, %v8078_v26  ;;  %v1873_v54 = vmul.f32 %v1844_v9, %v8067_v14 }
 0x4e8   : > { %5566 = vset.pattern.permute.xlu1 %v8691_v42  ;;  %v8754_v42 = vld [vmem:[#allocation28_spill] sm:$0xff] }
 0x4e9   : > { %2562 = vperm.xlu1 %5566, %v7847_v31   ;;  %v8124_v62 = vadd.f32 %v8754_v42, %v8115_v34  ;;  %v1688_v31 = vrot.slane %v1188_v13, %v8715_v18  ;;  %v8155_v13 = vadd.f32 %v8755_v41, %v8115_v34 }
 0x4ea   : > { %v8117_v15 = vpop.permute.xlu1 %2538 }
 0x4eb   : > { %v2336_v25 = vrot.slane %v8124_v62, %v8710_v53  ;;  %v1714_v55 = vmul.f32 %v1688_v31, %v1655_v5  ;;  %v1715_v5 = vmul.f32 %v1692_v12, %v8065_v60  ;;  %v1874_v60 = vmul.f32 %v1848_v7, %v8075_v43  ;;  %v2547_v12 = vpop.permute.xlu0 %2546 }
 0x4ec   : > { %v2408_v61 = vrot.slane %v8124_v62, %v8715_v18  ;;  %v1876_v43 = vmul.f32 %v1856_v16, %v1823_v59  ;;  %v2344_v14 = vrot.slane %v8155_v13, %v8710_v53  ;;  %v2416_v9 = vrot.slane %v8155_v13, %v8715_v18 }
 0x4ed   : > { %3286 = vperm.xlu1 %5566, %v8753_v3   ;;  %v1772_v3 = vrot.slane %v1093_v50, %v8706_v39  ;;  %v1722_v22 = vadd.f32 %v1714_v55, %v1642_v40  ;;  %v1801_v50 = vadd.f32 %v1793_v6, %v1721_v56  ;;  %v1917_v40 = vcombine.high %v8124_v62, %v8124_v62 }
 0x4ee   : > { %v8128_v36 = vpop.permute.xlu1 %2542  ;;  %v1723_v1 = vadd.f32 %v1715_v5, %v1643_v44  ;;  %v2437_v52 = vmul.f32 %v2408_v61, %v8058_v30  ;;  %v2496_v30 = vrot.slane %v8155_v13, %v8706_v39  ;;  %v8756_v44 = vld [vmem:[#allocation37_spill] sm:$0xff] }
 0x4ef   : > { %v1795_v48 = vmul.f32 %v1772_v3, %v8070_v27  ;;  %v1802_v38 = vadd.f32 %v1794_v19, %v1722_v22  ;;  %v2568_v27 = vrot.slane %v8124_v62, %v6083_v33  ;;  %v1918_v19 = vcombine.high %v8155_v13, %v8155_v13 }
 0x4f0   : > { %v2412_v6 = vrot.slane %v1917_v40, %v8715_v18  ;;  %v2340_v26 = vrot.slane %v1917_v40, %v8710_v53  ;;  %v1881_v51 = vadd.f32 %v1873_v54, %v1801_v50  ;;  %v2492_v3 = vrot.slane %v1917_v40, %v8706_v39 }
 0x4f1   : > { %v1882_v22 = vadd.f32 %v1874_v60, %v1802_v38  ;;  %v2572_v24 = vrot.slane %v1917_v40, %v6083_v33  ;;  %v2348_v16 = vrot.slane %v1918_v19, %v8710_v53  ;;  %v2420_v56 = vrot.slane %v1918_v19, %v8715_v18 }
 0x4f2   : > { %v2438_v5 = vmul.f32 %v2412_v6, %v8091_v49  ;;  %v2366_v49 = vmul.f32 %v2340_v26, %v8083_v28  ;;  %v2439_v60 = vmul.f32 %v2416_v9, %v8095_v2  ;;  %v2518_v38 = vmul.f32 %v2492_v3, %v8099_v32 }
 0x4f3   : > { %v1663_v42 = vpop.permute.xlu1 %1662  ;;  %v2576_v50 = vrot.slane %v8155_v13, %v6083_v33  ;;  %v8757_v40 = vrot.slane %v8124_v62, %v8706_v39  ;;  %v2598_v2 = vmul.f32 %v2572_v24, %v8117_v15 }
 0x4f4   : > { %v1716_v31 = vmul.f32 %v1696_v11, %v1663_v42  ;;  %v1803_v11 = vadd.f32 %v1795_v48, %v1723_v1  ;;  %v2365_v42 = vmul.f32 %v2336_v25, %v8073_v58  ;;  %v8189_v48 = vadd.f32 %v8756_v44, %v8107_v46  ;;  %v1667_v25 = vpop.permute.xlu0 %1666 }
 0x4f5   : > { %v2580_v1 = vrot.slane %v1918_v19, %v6083_v33 }
 0x4f6   : > { %v1724_v10 = vadd.f32 %v1716_v31, %v1644_v45  ;;  %v1883_v21 = vadd.f32 %v1875_v63, %v1803_v11  ;;  %v4069_v31 = vcombine.low %v1881_v51, %v1882_v22  ;;  %v2500_v45 = vrot.slane %v1918_v19, %v8706_v39 }
 0x4f7   : > { %v2445_v58 = vadd.f32 %v2437_v52, %v2365_v42  ;;  %v2367_v63 = vmul.f32 %v2344_v14, %v8087_v0  ;;  %v1700_v6 = vrot.slane %v8189_v48, %v8715_v18  ;;  %v2599_v0 = vmul.f32 %v2576_v50, %v8128_v36 }
 0x4f8   : > { %v1743_v41 = vpop.permute.xlu1 %1742  ;;  %v2520_v13 = vmul.f32 %v2500_v45, %v8148_v20  ;;  %v1780_v15 = vrot.slane %v8189_v48, %v8706_v39  ;;  %v2600_v22 = vmul.f32 %v2580_v1, %v2547_v12  ;;  %v1860_v36 = vrot.slane %v8189_v48, %v6083_v33 }
 0x4f9   : > { %v1796_v57 = vmul.f32 %v1776_v47, %v1743_v41  ;;  %v2517_v41 = vmul.f32 %v8757_v40, %v8080_v8  ;;  %v1628_v8 = vrot.slane %v8189_v48, %v8710_v53  ;;  %v2447_v62 = vadd.f32 %v2439_v60, %v2367_v63 }
 0x4fa   : > { %v1717_v9 = vmul.f32 %v1700_v6, %v1667_v25 }
 0x4fb   : > { %v1804_v55 = vadd.f32 %v1796_v57, %v1724_v10  ;;  %v2446_v10 = vadd.f32 %v2438_v5, %v2366_v49  ;;  %v2519_v57 = vmul.f32 %v2496_v30, %v8103_v17  ;;  %v2597_v17 = vmul.f32 %v2568_v27, %v8085_v35  ;;  %v8758_v35 = vld [vmem:[#allocation40_spill] sm:$0xff] }
 0x4fc   : > { %v1101_v27 = vadd.f32 %v8758_v35, %v8115_v34 }
 0x4fd   : > { %v1884_v7 = vadd.f32 %v1876_v43, %v1804_v55  ;;  %v2311_v59 = vpop.permute.xlu1 %2310  ;;  %v2525_v43 = vadd.f32 %v2517_v41, %v2445_v58  ;;  %v2526_v19 = vadd.f32 %v2518_v38, %v2446_v10  ;;  %v1747_v55 = vpop.permute.xlu0 %1746  ;;  %v2527_v20 = vadd.f32 %v2519_v57, %v2447_v62 }
 0x4fe   : > { %v2368_v32 = vmul.f32 %v2348_v16, %v2311_v59  ;;  %v1797_v59 = vmul.f32 %v1780_v15, %v1747_v55  ;;  %v2424_v16 = vrot.slane %v1101_v27, %v8715_v18  ;;  %v2504_v60 = vrot.slane %v1101_v27, %v8706_v39 }
 0x4ff   : > { %v4070_v47 = vcombine.low %v1883_v21, %v1884_v7  ;;  %v2606_v52 = vadd.f32 %v2598_v2, %v2526_v19  ;;  %v2605_v21 = vadd.f32 %v2597_v17, %v2525_v43  ;;  %v2607_v3 = vadd.f32 %v2599_v0, %v2527_v20 }
 0x500   : > { %v2584_v41 = vrot.slane %v1101_v27, %v6083_v33  ;;  %v1190_v2 = vcombine.high %v8189_v48, %v8189_v48 }
 0x501   : > { %v4125_v61 = vpack.c.bf16 %v4070_v47, %v4069_v31  ;;  %v4085_v5 = vcombine.low %v2605_v21, %v2606_v52  ;;  %v2391_v45 = vpop.permute.xlu0 %2390 }
 0x502   : > { %v2387_v28 = vpop.permute.xlu1 %2386  ;;  %v2441_v49 = vmul.f32 %v2424_v16, %v2391_v45  ;;  %v1864_v19 = vrot.slane %v1190_v2, %v6083_v33 }
 0x503   : > { %v2440_v54 = vmul.f32 %v2420_v56, %v2387_v28  ;;  %v2352_v56 = vrot.slane %v1101_v27, %v8710_v53 }
 0x505   : > { %v2448_v11 = vadd.f32 %v2440_v54, %v2368_v32  ;;  %v1704_v32 = vrot.slane %v1190_v2, %v8715_v18  ;;  %v1597_v54 = vpop.permute.xlu0 %1596 }
 0x507   : > { %v2528_v26 = vadd.f32 %v2520_v13, %v2448_v11  ;;  %v1592_v14 = vpop.permute.xlu1 %1591  ;;  %v1632_v13 = vrot.slane %v1190_v2, %v8710_v53 }
 0x508   : > { %v1645_v51 = vmul.f32 %v1628_v8, %v1592_v14  ;;  %v1784_v8 = vrot.slane %v1190_v2, %v8706_v39 }
 0x509   : > { %v2608_v7 = vadd.f32 %v2600_v22, %v2528_v26  ;;  %v1646_v62 = vmul.f32 %v1632_v13, %v1597_v54  ;;  %v1831_v0 = vpop.permute.xlu0 %1830 }
 0x50a   : > { %v1725_v42 = vadd.f32 %v1717_v9, %v1645_v51  ;;  %v1878_v22 = vmul.f32 %v1864_v19, %v1831_v0  ;;  %v1919_v9 = vcombine.high %v1101_v27, %v1101_v27 }
 0x50b   : > { %v4086_v12 = vcombine.low %v2607_v3, %v2608_v7 }
 0x50c   : > { %v1805_v30 = vadd.f32 %v1797_v59, %v1725_v42  ;;  %v1827_v24 = vpop.permute.xlu1 %1826  ;;  %v2356_v3 = vrot.slane %v1919_v9, %v8710_v53  ;;  %v2428_v7 = vrot.slane %v1919_v9, %v8715_v18  ;;  %v2588_v42 = vrot.slane %v1919_v9, %v6083_v33 }
 0x50d   : > { %v1877_v31 = vmul.f32 %v1860_v36, %v1827_v24  ;;  %v4126_v47 = vpack.c.bf16 %v4086_v12, %v4085_v5  ;;  %v2321_v26 = vpop.permute.xlu0 %2320  ;;  %v2508_v36 = vrot.slane %v1919_v9, %v8706_v39 }
 0x50e   : > { %v2370_v35 = vmul.f32 %v2356_v3, %v2321_v26 }
 0x50f   : > { %v8219_v44 = vadd.f32 %v1877_v31, %v1805_v30  ;;  %4428 = vmatprep.mubr.bf16.mxu0 %v4126_v47 }
 0x510   : > { %4429 = vmatmul.mubr.bf16.vlgmr.msra.gmra.mrb[28].mxu0 %v4125_v61 }
 0x511   : > { %v2316_v58 = vpop.permute.xlu1 %2315  ;;  %v2475_v21 = vpop.permute.xlu0 %2474 }
 0x512   : > { %v2369_v25 = vmul.f32 %v2352_v56, %v2316_v58  ;;  %v2522_v30 = vmul.f32 %v2508_v36, %v2475_v21  ;;  %v8759_v56 = vld [vmem:[#allocation10_spill] sm:$0xff] }
 0x513   : > { %v1103_v45 = vadd.f32 %v8759_v56, %v8107_v46 }
 0x514   : > { %v2449_v38 = vadd.f32 %v2441_v49, %v2369_v25 }
 0x515   : > { %v2555_v12 = vpop.permute.xlu0 %2554  ;;  %v1191_v25 = vcombine.high %v1103_v45, %v1103_v45  ;;  %v1868_v54 = vrot.slane %v1103_v45, %v6083_v33 }
 0x516   : > { %v2471_v50 = vpop.permute.xlu1 %2470  ;;  %v2602_v47 = vmul.f32 %v2588_v42, %v2555_v12 }
 0x517   : > { %v2521_v40 = vmul.f32 %v2504_v60, %v2471_v50  ;;  %v1708_v50 = vrot.slane %v1103_v45, %v8715_v18  ;;  %v1792_v46 = vrot.slane %v1191_v25, %v8706_v39 }
 0x519   : > { %v2529_v1 = vadd.f32 %v2521_v40, %v2449_v38  ;;  %v1679_v60 = vpop.permute.xlu0 %1678  ;;  %v1712_v40 = vrot.slane %v1191_v25, %v8715_v18 }
 0x51b   : > { %v2551_v63 = vpop.permute.xlu1 %2550 }
 0x51c   : > { %v2601_v10 = vmul.f32 %v2584_v41, %v2551_v63  ;;  %v1640_v41 = vrot.slane %v1191_v25, %v8710_v53  ;;  %v1788_v63 = vrot.slane %v1103_v45, %v8706_v39 }
 0x51d   : > { %v1759_v2 = vpop.permute.xlu0 %1758 }
 0x51e   : > { %v8223_v28 = vadd.f32 %v2601_v10, %v2529_v1  ;;  %v1636_v1 = vrot.slane %v1103_v45, %v8710_v53 }
 0x520   : > { %v1602_v57 = vpop.permute.xlu1 %1601 }
 0x521   : > { %v2403_v56 = vpop.permute.xlu0 %2402 }
 0x525   : > { %v1671_v61 = vpop.permute.xlu1 %1670 }
 0x526   : > { %v1718_v43 = vmul.f32 %v1704_v32, %v1671_v61 }
 0x528   : > { %v1726_v17 = vadd.f32 %v1718_v43, %v1646_v62  ;;  %v1720_v62 = vmul.f32 %v1712_v40, %v1679_v60 }
 0x529   : > { %v1675_v6 = vpop.permute.xlu1 %1674 }
 0x52a   : > { %v1719_v32 = vmul.f32 %v1708_v50, %v1675_v6  ;;  %v1105_v6 = vadd.f32 %v7840_v29, %v8115_v34 }
 0x52c   : > { %v2432_v12 = vrot.slane %v1105_v6, %v8715_v18  ;;  %v2360_v29 = vrot.slane %v1105_v6, %v8710_v53  ;;  %v2512_v34 = vrot.slane %v1105_v6, %v8706_v39 }
 0x52e   : > { %v1751_v11 = vpop.permute.xlu1 %1750 }
 0x52f   : > { %v1798_v15 = vmul.f32 %v1784_v8, %v1751_v11  ;;  %v1647_v11 = vmul.f32 %v1636_v1, %v1602_v57 }
 0x531   : > { %v1806_v55 = vadd.f32 %v1798_v15, %v1726_v17  ;;  %v1727_v9 = vadd.f32 %v1719_v32, %v1647_v11 }
 0x532   : > { %v1755_v48 = vpop.permute.xlu1 %1754 }
 0x533   : > { %v8231_v20 = vadd.f32 %v1878_v22, %v1806_v55  ;;  %v1799_v17 = vmul.f32 %v1788_v63, %v1755_v48  ;;  %v1872_v22 = vrot.slane %v1191_v25, %v6083_v33  ;;  %v1800_v55 = vmul.f32 %v1792_v46, %v1759_v2 }
 0x534   : > { %v2592_v25 = vrot.slane %v1105_v6, %v6083_v33 }
 0x535   : > { %v4071_v52 = vcombine.low %v8219_v44, %v8231_v20  ;;  %v1807_v36 = vadd.f32 %v1799_v17, %v1727_v9  ;;  %v3084_v44 = vrot.slane %v7816_v4, %v8710_v53  ;;  %v3236_v20 = vrot.slane %v7816_v4, %v8706_v39 }
 0x537   : > { %v1835_v14 = vpop.permute.xlu1 %1834 }
 0x538   : > { %v1879_v21 = vmul.f32 %v1868_v54, %v1835_v14 }
 0x53c   : > { %v8235_v51 = vpop.permute.xlu1 %2325 }
 0x53d   : > { %v2371_v40 = vmul.f32 %v2360_v29, %v8235_v51 }
 0x541   : > { %v2395_v59 = vpop.permute.xlu1 %2394 }
 0x542   : > { %v2442_v5 = vmul.f32 %v2428_v7, %v2395_v59 }
 0x544   : > { %v2450_v24 = vadd.f32 %v2442_v5, %v2370_v35  ;;  %v1887_v35 = vadd.f32 %v1879_v21, %v1807_v36  ;;  %v1920_v5 = vcombine.high %v1105_v6, %v1105_v6  ;;  %v8763_v6 = vld [vmem:[#allocation47_spill] sm:$0xff] }
 0x545   : > { %v2399_v31 = vpop.permute.xlu1 %2398 }
 0x546   : > { %v2530_v27 = vadd.f32 %v2522_v30, %v2450_v24  ;;  %v2364_v30 = vrot.slane %v1920_v5, %v8710_v53  ;;  %v2436_v24 = vrot.slane %v1920_v5, %v8715_v18  ;;  %v2443_v45 = vmul.f32 %v2432_v12, %v2399_v31 }
 0x547   : > { %v2596_v2 = vrot.slane %v1920_v5, %v6083_v33  ;;  %v3095_v53 = vmul.f32 %v3084_v44, %v7855_v37 }
 0x548   : > { %v8241_v16 = vadd.f32 %v2602_v47, %v2530_v27  ;;  %v2516_v47 = vrot.slane %v1920_v5, %v8706_v39  ;;  %v3156_v27 = vrot.slane %v7816_v4, %v8715_v18  ;;  %v3316_v18 = vrot.slane %v7816_v4, %v6083_v33  ;;  %v8760_v39 = vld [vmem:[#allocation46_spill] sm:$0xff]  ;;  %v8761_v4 = vld [vmem:[#allocation45_spill] sm:$0xff] }
 0x549   : > { %v2451_v31 = vadd.f32 %v2443_v45, %v2371_v40  ;;  %v3247_v54 = vmul.f32 %v3236_v20, %v8760_v39 }
 0x54a   : > { %v2479_v58 = vpop.permute.xlu1 %2478  ;;  %v4087_v49 = vcombine.low %v8223_v28, %v8241_v16  ;;  %v3167_v63 = vmul.f32 %v3156_v27, %v7876_v23  ;;  %v5792_v27 = vld [vmem:[%s6014_s18 + $0x8] sm:$0xf] }
 0x54f   : > { %v2559_v38 = vpop.permute.xlu1 %2558 }
 0x552   : > { %v5357_v10 = vpop.f32.mrb[20].mxu1 }
 0x553   : > { %v5358_v61 = vpop.f32.mrb[21].mxu1 }
 0x554   : > { %v8254_v13 = vadd.f32 %v5358_v61, %v5357_v10  ;;  %v5360_v43 = vpop.f32.mrb[22].mxu1  ;;  %v1607_v8 = vpop.permute.xlu1 %1606  ;;  %v2603_v10 = vmul.f32 %v2592_v25, %v2559_v38  ;;  %v3320_v38 = vrot.slane %v8761_v4, %v6083_v33 }
 0x555   : > { %v1648_v19 = vmul.f32 %v1640_v41, %v1607_v8  ;;  %v5361_v0 = vpop.f32.mrb[23].mxu1  ;;  %v2523_v41 = vmul.f32 %v2512_v34, %v2479_v58  ;;  %v3283_v61 = vpop.permute.xlu0 %3282  ;;  %v3175_v8 = vadd.f32 %v3167_v63, %v3095_v53  ;;  %v5791_v34 = vld [vmem:[%s6014_s18 + $0x4] sm:$0xf] }
 0x556   : > { %v8256_v15 = vadd.f32 %v5361_v0, %v5360_v43 }
 0x557   : > { %v1728_v26 = vadd.f32 %v1720_v62, %v1648_v19  ;;  %v2531_v43 = vadd.f32 %v2523_v41, %v2451_v31  ;;  %v3327_v62 = vmul.f32 %v3316_v18, %v3283_v61  ;;  %v3255_v11 = vadd.f32 %v3247_v54, %v3175_v8 }
 0x559   : > { %v1808_v3 = vadd.f32 %v1800_v55, %v1728_v26  ;;  %v1839_v7 = vpop.permute.xlu1 %1838  ;;  %v2611_v23 = vadd.f32 %v2603_v10, %v2531_v43  ;;  %v3335_v37 = vadd.f32 %v3327_v62, %v3255_v11  ;;  %v8762_v55 = vld [vmem:[#allocation38_spill] sm:$0xff]  ;;  %v5794_v43 = vld [vmem:[%s6014_s18 + $0x10] sm:$0xf]  ;;  %v5795_v62 = vld [vmem:[%s6014_s18 + $0x14] sm:$0xf] }
 0x55a   : > { %v1880_v59 = vmul.f32 %v1872_v22, %v1839_v7 }
 0x55c   : > { %v1888_v42 = vadd.f32 %v1880_v59, %v1808_v3  ;;  %v8764_v3 = vld [vmem:[#allocation48_spill] sm:$0xff]  ;;  %v5258_v59 = vld [vmem:[%s8766_s7] ss:$0 sm:$0xff] }
 0x55d   : > { %v8765_v7 = vcombine.low %v8763_v6, %v8764_v3 }
 0x55e   : > { %v4072_v57 = vcombine.low %v1887_v35, %v1888_v42  ;;  %v2331_v48 = vpop.permute.xlu1 %2330 }
 0x55f   : > { %v2372_v60 = vmul.f32 %v2364_v30, %v2331_v48  ;;  %v5790_v30 = vld [vmem:[%s6014_s18] sm:$0xf] }
 0x560   : > { %v4129_v14 = vpack.c.bf16 %v4072_v57, %v4071_v52  ;;  %v2444_v52 = vmul.f32 %v2436_v24, %v2403_v56 }
 0x562   : > { %v2452_v46 = vadd.f32 %v2444_v52, %v2372_v60  ;;  %v5793_v60 = vld [vmem:[%s6014_s18 + $0xc] sm:$0xf] }
 0x563   : > { %v2483_v50 = vpop.permute.xlu1 %2482 }
 0x564   : > { %v2524_v1 = vmul.f32 %v2516_v47, %v2483_v50 }
 0x566   : > { %v2532_v51 = vadd.f32 %v2524_v1, %v2452_v46 }
 0x568   : > { %v2563_v32 = vpop.permute.xlu1 %2562 }
 0x569   : > { %v2604_v58 = vmul.f32 %v2596_v2, %v2563_v32 }
 0x56b   : > { %v2612_v19 = vadd.f32 %v2604_v58, %v2532_v51 }
 0x56c   : > { %v3287_v0 = vpop.permute.xlu1 %3286 }
 0x56d   : > { %v4088_v17 = vcombine.low %v2611_v23, %v2612_v19  ;;  %v3328_v22 = vmul.f32 %v3320_v38, %v3287_v0  ;;  %v5796_v19 = vld [vmem:[%s6014_s18 + $0x18] sm:$0xf]  ;;  %v5797_v0 = vld [vmem:[%s6014_s18 + $0x1c] sm:$0xf] }
 0x56f   : > { %v3336_v26 = vadd.f32 %v3328_v22, %v8762_v55  ;;  %v4130_v9 = vpack.c.bf16 %v4088_v17, %v4087_v49 }
 0x571   : > { %v4104_v21 = vcombine.low %v3335_v37, %v3336_v26  ;;  %4436 = vmatprep.mubr.bf16.mxu0 %v4130_v9 }
 0x572   : > { %4437 = vmatmul.mubr.bf16.gmra.mrb[32].mxu0 %v4129_v14 }
 0x573   : > { %v4131_v36 = vpack.c.bf16 %v4104_v21, %v8765_v7 }
 0x575   : > { %4486 = vmatmul.mubr.bf16.gmra.mrb[24].mxu1 %v4131_v36 }
 0x5e3   : > { %v5329_v33 = vpop.f32.mrb[28].mxu0 }
 0x5e4   : > { %v5330_v35 = vpop.f32.mrb[29].mxu0 }
 0x5e5   : > { %v5331_v28 = vadd.f32 %v5330_v35, %v5329_v33  ;;  %v5332_v16 = vpop.f32.mrb[30].mxu0 }
 0x5e6   : > { %v5333_v49 = vpop.f32.mrb[31].mxu0 }
 0x5e7   : > { %v4431_v42 = vadd.f32 %v5331_v28, %v5258_v59  ;;  %v5334_v5 = vadd.f32 %v5333_v49, %v5332_v16 }
 0x5e9   : > { %v4480_v57 = vadd.f32 %v8254_v13, %v4431_v42  ;;  %v4434_v48 = vadd.f32 %v5334_v5, %v5258_v59 }
 0x5eb   : > { %v4483_v12 = vadd.f32 %v8256_v15, %v4434_v48  ;;  %v4506_v14 = vadd.f32 %v5790_v30, %v4480_v57  ;;  %v4498_v24 = vcombine.high %v4480_v57, %v4480_v57 }
 0x5ed   : > { %v4517_v29 = vsel %vm4516_vm7, %v4506_v14, 0.0  ;;  %v4507_v47 = vadd.f32 %v5791_v34, %v4498_v24  ;;  %v4508_v56 = vadd.f32 %v5792_v27, %v4483_v12  ;;  %v4499_v45 = vcombine.high %v4483_v12, %v4483_v12 }
 0x5ee   : > { %4518 = vadd.xlane.f32.xlu0 %v4517_v29 }
 0x5ef   : > { %v4520_v25 = vsel %vm4516_vm7, %v4507_v47, 0.0  ;;  %v4523_v13 = vsel %vm4516_vm7, %v4508_v56, 0.0  ;;  %v4509_v50 = vadd.f32 %v5793_v60, %v4499_v45 }
 0x5f0   : > { %4521 = vadd.xlane.f32.xlu1 %v4520_v25 }
 0x5f1   : > { %v4526_v15 = vsel %vm4516_vm7, %v4509_v50, 0.0 }
 0x5f2   : > { %4524 = vadd.xlane.f32.xlu0 %v4523_v13 }
 0x5f6   : > { %4527 = vadd.xlane.f32.xlu0 %v4526_v15 }
 0x645   : > { %v5335_v44 = vpop.f32.mrb[32].mxu0 }
 0x646   : > { %v5336_v20 = vpop.f32.mrb[33].mxu0 }
 0x647   : > { %v5337_v52 = vadd.f32 %v5336_v20, %v5335_v44  ;;  %v5338_v40 = vpop.f32.mrb[34].mxu0 }
 0x648   : > { %v5339_v41 = vpop.f32.mrb[35].mxu0  ;;  %v5363_v1 = vpop.f32.mrb[24].mxu1 }
 0x649   : > { %v4439_v63 = vadd.f32 %v5337_v52, %v5258_v59  ;;  %v5340_v18 = vadd.f32 %v5339_v41, %v5338_v40  ;;  %v5364_v31 = vpop.f32.mrb[25].mxu1 }
 0x64a   : > { %v5365_v10 = vadd.f32 %v5364_v31, %v5363_v1  ;;  %v5366_v46 = vpop.f32.mrb[26].mxu1 }
 0x64b   : > { %v4442_v2 = vadd.f32 %v5340_v18, %v5258_v59  ;;  %v5367_v53 = vpop.f32.mrb[27].mxu1 }
 0x64c   : > { %v4488_v61 = vadd.f32 %v5365_v10, %v4439_v63  ;;  %v5368_v32 = vadd.f32 %v5367_v53, %v5366_v46  ;;  %v5621_v63 = vld [vmem:[%s5979_s17] sm:$0xff]  }
 0x64d   : > { %5382 = vmatprep.subr.bf16.mxu0 %v5621_v63  ;;  %v5622_v53 = vld [vmem:[%s5993_s12] sm:$0xff]  }
 0x64e   : > { %v4500_v39 = vcombine.high %v4488_v61, %v4488_v61  ;;  %v4491_v54 = vadd.f32 %v5368_v32, %v4442_v2  ;;  %v4510_v51 = vadd.f32 %v5794_v43, %v4488_v61  ;;  %5383 = vmatpush3.bf16.msra.mxu0 %v5621_v63  ;;  %v5623_v61 = vld [vmem:[%s5993_s12 + $0x8] sm:$0xff]   ;;  %5388 = vmatprep.subr.bf16.mxu1 %v5622_v53 }
 0x64f   : > { %5389 = vmatpush3.bf16.msra.mxu1 %v5622_v53 }
 0x650   : > { %v4501_v58 = vcombine.high %v4491_v54, %v4491_v54  ;;  %v4529_v8 = vsel %vm4516_vm7, %v4510_v51, 0.0  ;;  %v4511_v23 = vadd.f32 %v5795_v62, %v4500_v39  ;;  %v4512_v4 = vadd.f32 %v5796_v19, %v4491_v54  ;;  %5390 = vmatprep.subr.bf16.mxu1 %v5623_v61  ;;  %v5626_v19 = vld [vmem:[%s5993_s12 + $0x20] sm:$0xff]  }
 0x651   : > { %4530 = vadd.xlane.f32.xlu1 %v4529_v8 }
 0x652   : > { %v4532_v38 = vsel %vm4516_vm7, %v4511_v23, 0.0  ;;  %v4513_v11 = vadd.f32 %v5797_v0, %v4501_v58  ;;  %v4535_v17 = vsel %vm4516_vm7, %v4512_v4, 0.0 }
 0x653   : > { %4533 = vadd.xlane.f32.xlu0 %v4532_v38  ;;  %5391 = vmatpush3.bf16.msra.mxu1 %v5623_v61 }
 0x654   : > { %v4538_v22 = vsel %vm4516_vm7, %v4513_v11, 0.0 }
 0x655   : > { %4536 = vadd.xlane.f32.xlu1 %v4535_v17  ;;  %v5627_v17 = vld [vmem:[%s5993_s12 + $0x28] sm:$0xff]  }
 0x657   : > { %4539 = vadd.xlane.f32.xlu0 %v4538_v22 }
 0x67b   : > { %v4519_v37 = vpop.xlane.xlu0 %4518 }
 0x67c   : > { %v4542_v55 = vmul.f32 0.0625, %v4519_v37 }
 0x67d   : > { %v4522_v26 = vpop.xlane.xlu1 %4521 }
 0x67e   : > { %v8316_v9 = vsub.f32 %v4506_v14, %v4542_v55  ;;  %v4543_v21 = vmul.f32 0.0625, %v4522_v26  ;;  %v5291_v55 = vld [vmem:[%s635_s0] ss:$0 sm:$0xff] }
 0x67f   : > { %v4525_v6 = vpop.xlane.xlu0 %4524 }
 0x680   : > { %v8318_v3 = vsub.f32 %v4507_v47, %v4543_v21  ;;  %v4544_v7 = vmul.f32 0.0625, %v4525_v6  ;;  %v4558_v36 = vmul.f32 %v8316_v9, %v8316_v9 }
 0x682   : > { %v8322_v33 = vsub.f32 %v4508_v56, %v4544_v7  ;;  %v4566_v59 = vsel %vm4516_vm7, %v4558_v36, 0.0  ;;  %v4559_v35 = vmul.f32 %v8318_v3, %v8318_v3 }
 0x683   : > { %v4528_v28 = vpop.xlane.xlu0 %4527  ;;  %4567 = vadd.xlane.f32.xlu1 %v4566_v59 }
 0x684   : > { %v4545_v16 = vmul.f32 0.0625, %v4528_v28  ;;  %v4569_v49 = vsel %vm4516_vm7, %v4559_v35, 0.0  ;;  %v4560_v42 = vmul.f32 %v8322_v33, %v8322_v33 }
 0x685   : > { %4570 = vadd.xlane.f32.xlu0 %v4569_v49 }
 0x686   : > { %v8330_v5 = vsub.f32 %v4509_v50, %v4545_v16  ;;  %v4572_v57 = vsel %vm4516_vm7, %v4560_v42, 0.0 }
 0x687   : > { %4573 = vadd.xlane.f32.xlu1 %v4572_v57 }
 0x688   : > { %v4561_v48 = vmul.f32 %v8330_v5, %v8330_v5 }
 0x68a   : > { %v4575_v12 = vsel %vm4516_vm7, %v4561_v48, 0.0 }
 0x68b   : > { %4576 = vadd.xlane.f32.xlu0 %v4575_v12 }
 0x6de   : > { %v4531_v30 = vpop.xlane.xlu1 %4530 }
 0x6df   : > { %v4546_v14 = vmul.f32 0.0625, %v4531_v30 }
 0x6e0   : > { %v4534_v24 = vpop.xlane.xlu0 %4533 }
 0x6e1   : > { %v8336_v29 = vsub.f32 %v4510_v51, %v4546_v14  ;;  %v4547_v34 = vmul.f32 0.0625, %v4534_v24  ;;  %v5624_v51 = vld [vmem:[%s5993_s12 + $0x10] sm:$0xff]  }
 0x6e2   : > { %v4537_v47 = vpop.xlane.xlu1 %4536  ;;  %5392 = vmatprep.subr.bf16.mxu1 %v5624_v51 }
 0x6e3   : > { %v8338_v27 = vsub.f32 %v4511_v23, %v4547_v34  ;;  %v4548_v56 = vmul.f32 0.0625, %v4537_v47  ;;  %v4562_v45 = vmul.f32 %v8336_v29, %v8336_v29  ;;  %v5625_v23 = vld [vmem:[%s5993_s12 + $0x18] sm:$0xff]   ;;  %5393 = vmatpush3.bf16.msra.mxu1 %v5624_v51 }
 0x6e4   : > { %v4540_v25 = vpop.xlane.xlu0 %4539  ;;  %5394 = vmatprep.subr.bf16.mxu1 %v5625_v23 }
 0x6e5   : > { %v8342_v13 = vsub.f32 %v4512_v4, %v4548_v56  ;;  %v4549_v60 = vmul.f32 0.0625, %v4540_v25  ;;  %v4578_v50 = vsel %vm4516_vm7, %v4562_v45, 0.0  ;;  %v4563_v15 = vmul.f32 %v8338_v27, %v8338_v27 }
 0x6e6   : > { %4579 = vadd.xlane.f32.xlu1 %v4578_v50 }
 0x6e7   : > { %v8347_v44 = vsub.f32 %v4513_v11, %v4549_v60  ;;  %v4581_v20 = vsel %vm4516_vm7, %v4563_v15, 0.0  ;;  %v4564_v52 = vmul.f32 %v8342_v13, %v8342_v13  ;;  %5395 = vmatpush3.bf16.msra.mxu1 %v5625_v23 }
 0x6e8   : > { %4582 = vadd.xlane.f32.xlu0 %v4581_v20  ;;  %5396 = vmatprep.subr.bf16.mxu1 %v5626_v19 }
 0x6e9   : > { %v4584_v40 = vsel %vm4516_vm7, %v4564_v52, 0.0  ;;  %v4565_v41 = vmul.f32 %v8347_v44, %v8347_v44 }
 0x6ea   : > { %4585 = vadd.xlane.f32.xlu1 %v4584_v40 }
 0x6eb   : > { %v4587_v1 = vsel %vm4516_vm7, %v4565_v41, 0.0  ;;  %5397 = vmatpush3.bf16.msra.mxu1 %v5626_v19 }
 0x6ec   : > { %4588 = vadd.xlane.f32.xlu0 %v4587_v1  ;;  %5398 = vmatprep.subr.bf16.mxu1 %v5627_v17 }
 0x6ef   : > { %5399 = vmatpush3.bf16.msra.mxu1 %v5627_v17 }
 0x710   : > { %v4568_v18 = vpop.xlane.xlu1 %4567 }
 0x711   : > { %v4590_v31 = vmul.f32 0.0625, %v4568_v18 }
 0x712   : > { %v4571_v10 = vpop.xlane.xlu0 %4570 }
 0x713   : > { %v4598_v46 = vadd.f32 1e-05, %v4590_v31  ;;  %v4591_v2 = vmul.f32 0.0625, %v4571_v10 }
 0x714   : > { %v4574_v32 = vpop.xlane.xlu1 %4573 }
 0x715   : > { %v4599_v39 = vadd.f32 1e-05, %v4591_v2  ;;  %v4592_v54 = vmul.f32 0.0625, %v4574_v32  ;;  %5758 = vrsqrt.f32 %v4598_v46 }
 0x717   : > { %5760 = vrsqrt.f32 %v4599_v39  ;;  %v4600_v43 = vadd.f32 1e-05, %v4592_v54  ;;  %v5628_v39 = vld [vmem:[%s5993_s12 + $0x30] sm:$0xff]   ;;  %v5629_v54 = vld [vmem:[%s5993_s12 + $0x38] sm:$0xff]  }
 0x718   : > { %v4577_v58 = vpop.xlane.xlu0 %4576  ;;  %5400 = vmatprep.subr.bf16.mxu1 %v5628_v39 }
 0x719   : > { %5762 = vrsqrt.f32 %v4600_v43  ;;  %v4593_v8 = vmul.f32 0.0625, %v4577_v58  ;;  %5401 = vmatpush3.bf16.msra.mxu1 %v5628_v39 }
 0x71a   : > { %5402 = vmatprep.subr.bf16.mxu1 %v5629_v54 }
 0x71b   : > { %v4601_v62 = vadd.f32 1e-05, %v4593_v8 }
 0x71d   : > { %5764 = vrsqrt.f32 %v4601_v62  ;;  %5403 = vmatpush3.bf16.msra.mxu1 %v5629_v54 }
 0x71f   : > { %v5759_v4 = vpop.eup %5758 }
 0x720   : > { %v4614_v22 = vmul.f32 %v5759_v4, %v8316_v9  ;;  %v5292_v9 = vld [vmem:[%s638_s2] ss:$0 sm:$0xff] }
 0x721   : > { %v5761_v38 = vpop.eup %5760 }
 0x722   : > { %v4615_v0 = vmul.f32 %v5761_v38, %v8318_v3  ;;  %v4628_v3 = vmul.f32 %v5291_v55, %v4614_v22 }
 0x723   : > { %v5763_v11 = vpop.eup %5762 }
 0x724   : > { %v4616_v37 = vmul.f32 %v5763_v11, %v8322_v33  ;;  %v4629_v26 = vmul.f32 %v5291_v55, %v4615_v0  ;;  %v8379_v59 = vadd.f32 %v5292_v9, %v4628_v3 }
 0x726   : > { %v4630_v7 = vmul.f32 %v5291_v55, %v4616_v37  ;;  %v8377_v33 = vadd.f32 %v5292_v9, %v4629_v26  ;;  %v5297_v37 = vld [vmem:[%s8768_s23] ss:$0 sm:$0xff] }
 0x727   : > { %v5765_v21 = vpop.eup %5764 }
 0x728   : > { %v4617_v6 = vmul.f32 %v5765_v21, %v8330_v5  ;;  %v8381_v35 = vadd.f32 %v5292_v9, %v4630_v7  ;;  %v4658_v16 = vcombine.low %v8379_v59, %v8377_v33 }
 0x72a   : > { %v4631_v36 = vmul.f32 %v5291_v55, %v4617_v6 }
 0x72c   : > { %v8383_v28 = vadd.f32 %v5292_v9, %v4631_v36 }
 0x72e   : > { %v4659_v49 = vcombine.low %v8381_v35, %v8383_v28 }
 0x730   : > { %v4666_v42 = vpack.c.bf16 %v4659_v49, %v4658_v16 }
 0x732   : > { %5384 = vmatprep.mubr.msk.bf16.mxu0 %vm835_vm1, %v4666_v42 }
 0x773   : > { %v4580_v5 = vpop.xlane.xlu1 %4579 }
 0x774   : > { %v4594_v57 = vmul.f32 0.0625, %v4580_v5 }
 0x775   : > { %v4583_v48 = vpop.xlane.xlu0 %4582 }
 0x776   : > { %v4602_v12 = vadd.f32 1e-05, %v4594_v57  ;;  %v4595_v30 = vmul.f32 0.0625, %v4583_v48 }
 0x777   : > { %v4586_v14 = vpop.xlane.xlu1 %4585 }
 0x778   : > { %5766 = vrsqrt.f32 %v4602_v12  ;;  %v4603_v24 = vadd.f32 1e-05, %v4595_v30  ;;  %v4596_v34 = vmul.f32 0.0625, %v4586_v14 }
 0x779   : > { %v4589_v47 = vpop.xlane.xlu0 %4588 }
 0x77a   : > { %5768 = vrsqrt.f32 %v4603_v24  ;;  %v4604_v56 = vadd.f32 1e-05, %v4596_v34  ;;  %v4597_v45 = vmul.f32 0.0625, %v4589_v47 }
 0x77c   : > { %5770 = vrsqrt.f32 %v4604_v56  ;;  %v4605_v25 = vadd.f32 1e-05, %v4597_v45 }
 0x77e   : > { %5772 = vrsqrt.f32 %v4605_v25 }
 0x782   : > { %v5767_v60 = vpop.eup %5766 }
 0x783   : > { %v4618_v15 = vmul.f32 %v5767_v60, %v8336_v29 }
 0x784   : > { %v5769_v50 = vpop.eup %5768 }
 0x785   : > { %v4619_v20 = vmul.f32 %v5769_v50, %v8338_v27  ;;  %v4632_v63 = vmul.f32 %v5291_v55, %v4618_v15 }
 0x786   : > { %v5771_v52 = vpop.eup %5770 }
 0x787   : > { %v4633_v40 = vmul.f32 %v5291_v55, %v4619_v20  ;;  %v4620_v41 = vmul.f32 %v5771_v52, %v8342_v13  ;;  %v4646_v2 = vadd.f32 %v5292_v9, %v4632_v63  ;;  %v5293_v13 = vld [vmem:[%s8767_s13] ss:$0 sm:$0xff] }
 0x788   : > { %v5773_v1 = vpop.eup %5772 }
 0x789   : > { %v4634_v18 = vmul.f32 %v5291_v55, %v4620_v41  ;;  %v4621_v31 = vmul.f32 %v5773_v1, %v8347_v44  ;;  %v4647_v10 = vadd.f32 %v5292_v9, %v4633_v40 }
 0x78b   : > { %v4635_v46 = vmul.f32 %v5291_v55, %v4621_v31  ;;  %v4648_v53 = vadd.f32 %v5292_v9, %v4634_v18  ;;  %v4660_v29 = vcombine.low %v4646_v2, %v4647_v10 }
 0x78d   : > { %v4649_v61 = vadd.f32 %v5292_v9, %v4635_v46 }
 0x78f   : > { %v4661_v32 = vcombine.low %v4648_v53, %v4649_v61 }
 0x791   : > { %v4667_v27 = vpack.c.bf16 %v4661_v32, %v4660_v29 }
 0x793   : > { %5385 = vmatmul.mubr.msk.bf16.vlgmr.msra.gmra.mrb[36].mxu0 %vm835_vm1, %v4667_v27 }
 0x866   : > { %v5386_v44 = vpop.f32.mrb[36].mxu0 }
 0x867   : > { %v4732_v43 = vadd.f32 %v5386_v44, %v5293_v13  ;;  %v4723_v51 = vpop.f32.mrb[37].mxu0 }
 0x868   : > { %v4724_v58 = vadd.f32 %v5293_v13, %v4723_v51  ;;  %v5387_v8 = vpop.f32.mrb[38].mxu0 }
 0x869   : > { %v4735_v62 = vadd.f32 %v5387_v8, %v5293_v13  ;;  %v4726_v23 = vpop.f32.mrb[39].mxu0  ;;  %v4740_v4 = vmax.f32 %v4732_v43, 0.0 }
 0x86a   : > { %v4727_v19 = vadd.f32 %v5293_v13, %v4726_v23  ;;  %v4738_v0 = vmax.f32 %v4724_v58, 0.0 }
 0x86b   : > { %v4741_v38 = vmax.f32 %v4735_v62, 0.0 }
 0x86c   : > { %v4739_v11 = vmax.f32 %v4727_v19, 0.0 }
 0x86d   : > { %v4743_v17 = vpack.c.bf16 %v4741_v38, %v4740_v4 }
 0x86e   : > { %v4742_v22 = vpack.c.bf16 %v4739_v11, %v4738_v0 }
 0x870   : > { %5404 = vmatprep.mubr.bf16.mxu1 %v4742_v22 }
 0x871   : > { %5405 = vmatmul.mubr.bf16.vlgmr.msra.gmra.mrb[28].mxu1 %v4743_v17 }
 0x944   : > { %v5406_v55 = vpop.f32.mrb[28].mxu1 }
 0x945   : > { %v4858_v26 = vadd.f32 %v5406_v55, %v5297_v37  ;;  %v4849_v21 = vpop.f32.mrb[29].mxu1 }
 0x946   : > { %v4850_v6 = vadd.f32 %v5297_v37, %v4849_v21  ;;  %v5407_v3 = vpop.f32.mrb[30].mxu1 }
 0x947   : > { %v4870_v7 = vcombine.high %v4858_v26, %v4858_v26  ;;  %v4880_v9 = vadd.f32 %v4858_v26, %v4646_v2  ;;  %v4852_v36 = vpop.f32.mrb[31].mxu1  ;;  %v4861_v48 = vadd.f32 %v5407_v3, %v5297_v37 }
 0x948   : > { %v4868_v16 = vcombine.high %v4850_v6, %v4850_v6  ;;  %v4853_v49 = vadd.f32 %v5297_v37, %v4852_v36  ;;  %v4876_v42 = vadd.f32 %v4850_v6, %v8379_v59 }
 0x949   : > { %v4898_v5 = vsel %vm4516_vm7, %v4880_v9, 0.0  ;;  %v4881_v57 = vadd.f32 %v4870_v7, %v4647_v10  ;;  %v4871_v47 = vcombine.high %v4861_v48, %v4861_v48  ;;  %v4882_v45 = vadd.f32 %v4861_v48, %v4648_v53 }
 0x94a   : > { %4899 = vadd.xlane.f32.xlu1 %v4898_v5  ;;  %v4869_v12 = vcombine.high %v4853_v49, %v4853_v49  ;;  %v4877_v14 = vadd.f32 %v4868_v16, %v8377_v33  ;;  %v4878_v24 = vadd.f32 %v4853_v49, %v8381_v35  ;;  %v4886_v34 = vsel %vm4516_vm7, %v4876_v42, 0.0 }
 0x94b   : > { %v4901_v30 = vsel %vm4516_vm7, %v4881_v57, 0.0  ;;  %v4883_v50 = vadd.f32 %v4871_v47, %v4649_v61  ;;  %v4904_v33 = vsel %vm4516_vm7, %v4882_v45, 0.0 }
 0x94c   : > { %4902 = vadd.xlane.f32.xlu0 %v4901_v30  ;;  %v4889_v56 = vsel %vm4516_vm7, %v4877_v14, 0.0  ;;  %v4879_v59 = vadd.f32 %v4869_v12, %v8383_v28  ;;  %v4892_v25 = vsel %vm4516_vm7, %v4878_v24, 0.0 }
 0x94d   : > { %v4907_v35 = vsel %vm4516_vm7, %v4883_v50, 0.0 }
 0x94e   : > { %4887 = vadd.xlane.f32.xlu1 %v4886_v34  ;;  %v4895_v60 = vsel %vm4516_vm7, %v4879_v59, 0.0 }
 0x950   : > { %4890 = vadd.xlane.f32.xlu0 %v4889_v56 }
 0x952   : > { %4893 = vadd.xlane.f32.xlu1 %v4892_v25 }
 0x954   : > { %4896 = vadd.xlane.f32.xlu0 %v4895_v60 }
 0x956   : > { %4905 = vadd.xlane.f32.xlu1 %v4904_v33  ;;  %v5306_v33 = vld [vmem:[%s641_s28] ss:$0 sm:$0xff] }
 0x958   : > { %4908 = vadd.xlane.f32.xlu0 %v4907_v35 }
 0x9d7   : > { %v4900_v15 = vpop.xlane.xlu1 %4899 }
 0x9d8   : > { %v4914_v20 = vmul.f32 0.0625, %v4900_v15 }
 0x9d9   : > { %v4903_v52 = vpop.xlane.xlu0 %4902 }
 0x9da   : > { %v8419_v40 = vsub.f32 %v4880_v9, %v4914_v20  ;;  %v4915_v28 = vmul.f32 0.0625, %v4903_v52 }
 0x9db   : > { %v4888_v41 = vpop.xlane.xlu1 %4887 }
 0x9dc   : > { %v8421_v1 = vsub.f32 %v4881_v57, %v4915_v28  ;;  %v4910_v63 = vmul.f32 0.0625, %v4888_v41  ;;  %v4930_v18 = vmul.f32 %v8419_v40, %v8419_v40  ;;  %v5307_v28 = vld [vmem:[%s644_s25] ss:$0 sm:$0xff] }
 0x9dd   : > { %v4891_v31 = vpop.xlane.xlu0 %4890 }
 0x9de   : > { %v8425_v10 = vsub.f32 %v4876_v42, %v4910_v63  ;;  %v4911_v46 = vmul.f32 0.0625, %v4891_v31  ;;  %v4946_v2 = vsel %vm4516_vm7, %v4930_v18, 0.0  ;;  %v4931_v53 = vmul.f32 %v8421_v1, %v8421_v1 }
 0x9df   : > { %4947 = vadd.xlane.f32.xlu1 %v4946_v2  ;;  %v4894_v61 = vpop.xlane.xlu1 %4893 }
 0x9e0   : > { %v8430_v29 = vsub.f32 %v4877_v14, %v4911_v46  ;;  %v4912_v32 = vmul.f32 0.0625, %v4894_v61  ;;  %v4949_v27 = vsel %vm4516_vm7, %v4931_v53, 0.0  ;;  %v4926_v39 = vmul.f32 %v8425_v10, %v8425_v10 }
 0x9e1   : > { %4950 = vadd.xlane.f32.xlu0 %v4949_v27  ;;  %v4897_v54 = vpop.xlane.xlu0 %4896 }
 0x9e2   : > { %v8435_v13 = vsub.f32 %v4878_v24, %v4912_v32  ;;  %v4913_v44 = vmul.f32 0.0625, %v4897_v54  ;;  %v4934_v43 = vsel %vm4516_vm7, %v4926_v39, 0.0  ;;  %v4927_v51 = vmul.f32 %v8430_v29, %v8430_v29 }
 0x9e3   : > { %4935 = vadd.xlane.f32.xlu1 %v4934_v43  ;;  %v4906_v58 = vpop.xlane.xlu1 %4905 }
 0x9e4   : > { %v8440_v8 = vsub.f32 %v4879_v59, %v4913_v44  ;;  %v4916_v62 = vmul.f32 0.0625, %v4906_v58  ;;  %v4937_v23 = vsel %vm4516_vm7, %v4927_v51, 0.0  ;;  %v4928_v19 = vmul.f32 %v8435_v13, %v8435_v13 }
 0x9e5   : > { %4938 = vadd.xlane.f32.xlu0 %v4937_v23  ;;  %v4909_v4 = vpop.xlane.xlu0 %4908 }
 0x9e6   : > { %v8445_v38 = vsub.f32 %v4882_v45, %v4916_v62  ;;  %v4917_v0 = vmul.f32 0.0625, %v4909_v4  ;;  %v4940_v11 = vsel %vm4516_vm7, %v4928_v19, 0.0  ;;  %v4929_v17 = vmul.f32 %v8440_v8, %v8440_v8 }
 0x9e7   : > { %4941 = vadd.xlane.f32.xlu1 %v4940_v11 }
 0x9e8   : > { %v8450_v22 = vsub.f32 %v4883_v50, %v4917_v0  ;;  %v4943_v37 = vsel %vm4516_vm7, %v4929_v17, 0.0  ;;  %v4932_v55 = vmul.f32 %v8445_v38, %v8445_v38 }
 0x9e9   : > { %4944 = vadd.xlane.f32.xlu0 %v4943_v37 }
 0x9ea   : > { %v4952_v26 = vsel %vm4516_vm7, %v4932_v55, 0.0  ;;  %v4933_v21 = vmul.f32 %v8450_v22, %v8450_v22 }
 0x9eb   : > { %4953 = vadd.xlane.f32.xlu1 %v4952_v26 }
 0x9ec   : > { %v4955_v6 = vsel %vm4516_vm7, %v4933_v21, 0.0 }
 0x9ed   : > { %4956 = vadd.xlane.f32.xlu0 %v4955_v6 }
 0xa6c   : > { %v4948_v3 = vpop.xlane.xlu1 %4947 }
 0xa6d   : > { %v4962_v7 = vmul.f32 0.0625, %v4948_v3 }
 0xa6e   : > { %v4951_v9 = vpop.xlane.xlu0 %4950 }
 0xa6f   : > { %v4970_v36 = vadd.f32 1e-05, %v4962_v7  ;;  %v4963_v16 = vmul.f32 0.0625, %v4951_v9 }
 0xa70   : > { %v4936_v49 = vpop.xlane.xlu1 %4935 }
 0xa71   : > { %5774 = vrsqrt.f32 %v4970_v36  ;;  %v4971_v42 = vadd.f32 1e-05, %v4963_v16  ;;  %v4958_v5 = vmul.f32 0.0625, %v4936_v49 }
 0xa72   : > { %v4939_v57 = vpop.xlane.xlu0 %4938 }
 0xa73   : > { %5776 = vrsqrt.f32 %v4971_v42  ;;  %v4966_v48 = vadd.f32 1e-05, %v4958_v5  ;;  %v4959_v12 = vmul.f32 0.0625, %v4939_v57 }
 0xa74   : > { %v4942_v30 = vpop.xlane.xlu1 %4941 }
 0xa75   : > { %5778 = vrsqrt.f32 %v4966_v48  ;;  %v4967_v14 = vadd.f32 1e-05, %v4959_v12  ;;  %v4960_v24 = vmul.f32 0.0625, %v4942_v30 }
 0xa76   : > { %v4945_v34 = vpop.xlane.xlu0 %4944 }
 0xa77   : > { %5780 = vrsqrt.f32 %v4967_v14  ;;  %v4968_v47 = vadd.f32 1e-05, %v4960_v24  ;;  %v4961_v56 = vmul.f32 0.0625, %v4945_v34 }
 0xa78   : > { %v4954_v59 = vpop.xlane.xlu1 %4953 }
 0xa79   : > { %5782 = vrsqrt.f32 %v4968_v47  ;;  %v4969_v45 = vadd.f32 1e-05, %v4961_v56  ;;  %v4964_v25 = vmul.f32 0.0625, %v4954_v59 }
 0xa7a   : > { %v4957_v60 = vpop.xlane.xlu0 %4956 }
 0xa7b   : > { %v5775_v50 = vpop.eup %5774  ;;  %5784 = vrsqrt.f32 %v4969_v45  ;;  %v4972_v35 = vadd.f32 1e-05, %v4964_v25  ;;  %v4965_v15 = vmul.f32 0.0625, %v4957_v60 }
 0xa7c   : > { %v4986_v20 = vmul.f32 %v5775_v50, %v8419_v40 }
 0xa7d   : > { %v5777_v52 = vpop.eup %5776  ;;  %5786 = vrsqrt.f32 %v4972_v35  ;;  %v4973_v41 = vadd.f32 1e-05, %v4965_v15 }
 0xa7e   : > { %v5000_v63 = vmul.f32 %v5306_v33, %v4986_v20  ;;  %v4987_v18 = vmul.f32 %v5777_v52, %v8421_v1 }
 0xa7f   : > { %v5779_v31 = vpop.eup %5778  ;;  %5788 = vrsqrt.f32 %v4973_v41 }
 0xa80   : > { %v5014_v46 = vadd.f32 %v5307_v28, %v5000_v63  ;;  %v5001_v2 = vmul.f32 %v5306_v33, %v4987_v18  ;;  %v4982_v53 = vmul.f32 %v5779_v31, %v8425_v10 }
 0xa81   : > { %v5781_v40 = vpop.eup %5780 }
 0xa82   : > { %5022 = vst.msk [vmem:[%s6014_s18 + $0x10] sm:$0xf] %vm4516_vm7, %v5014_v46  ;;  %v5015_v61 = vadd.f32 %v5307_v28, %v5001_v2  ;;  %v4996_v32 = vmul.f32 %v5306_v33, %v4982_v53  ;;  %v4983_v27 = vmul.f32 %v5781_v40, %v8430_v29 }
 0xa83   : > { %v5783_v39 = vpop.eup %5782 }
 0xa84   : > { %5023 = vst.msk [vmem:[%s6014_s18 + $0x14] sm:$0xf] %vm4516_vm7, %v5015_v61  ;;  %v5010_v1 = vadd.f32 %v5307_v28, %v4996_v32  ;;  %v4997_v54 = vmul.f32 %v5306_v33, %v4983_v27  ;;  %v4984_v44 = vmul.f32 %v5783_v39, %v8435_v13 }
 0xa85   : > { %v5785_v43 = vpop.eup %5784 }
 0xa86   : > { %5018 = vst.msk [vmem:[%s6014_s18] sm:$0xf] %vm4516_vm7, %v5010_v1  ;;  %v5011_v10 = vadd.f32 %v5307_v28, %v4997_v54  ;;  %v4998_v51 = vmul.f32 %v5306_v33, %v4984_v44  ;;  %v4985_v58 = vmul.f32 %v5785_v43, %v8440_v8 }
 0xa87   : > { %v5787_v62 = vpop.eup %5786 }
 0xa88   : > { %5019 = vst.msk [vmem:[%s6014_s18 + $0x4] sm:$0xf] %vm4516_vm7, %v5011_v10  ;;  %v5012_v29 = vadd.f32 %v5307_v28, %v4998_v51  ;;  %v4999_v23 = vmul.f32 %v5306_v33, %v4985_v58  ;;  %v4988_v19 = vmul.f32 %v5787_v62, %v8445_v38 }
 0xa89   : > { %v5789_v4 = vpop.eup %5788 }
 0xa8a   : > { %5020 = vst.msk [vmem:[%s6014_s18 + $0x8] sm:$0xf] %vm4516_vm7, %v5012_v29  ;;  %v5013_v13 = vadd.f32 %v5307_v28, %v4999_v23  ;;  %v5002_v0 = vmul.f32 %v5306_v33, %v4988_v19  ;;  %v4989_v11 = vmul.f32 %v5789_v4, %v8450_v22 }
 0xa8c   : > { %5021 = vst.msk [vmem:[%s6014_s18 + $0xc] sm:$0xf] %vm4516_vm7, %v5013_v13  ;;  %v5016_v17 = vadd.f32 %v5307_v28, %v5002_v0  ;;  %v5003_v37 = vmul.f32 %v5306_v33, %v4989_v11 }
 0xa8e   : > { %5024 = vst.msk [vmem:[%s6014_s18 + $0x18] sm:$0xf] %vm4516_vm7, %v5016_v17  ;;  %v5017_v8 = vadd.f32 %v5307_v28, %v5003_v37 }
 0xa90   : > { %5025 = vst.msk [vmem:[%s6014_s18 + $0x1c] sm:$0xf] %vm4516_vm7, %v5017_v8 }
 0xa91 PF: > { %s8770_s16 = sld [smem:[#allocation5_spill]]  ;;  %s8771_s25 = sld [smem:[#allocation3_spill]] }
 0xa92   : > { %s8772_s26 = sld [smem:[#allocation4_spill]]  ;;  %s8773_s27 = sld [smem:[#allocation6_spill]] }
 0xa93   : > { %s8774_s28 = sld [smem:[#allocation7_spill]] }
 0xa97   : > { %s23_s29 = sadd.s32 1, %s8770_s16  }
 0xa98   : > { %p20_p8 = scmp.ge.s32.totalorder %s23_s29, 8  }
 0xa9a   :  { %22 = sbr.rel (!%p20_p8) target bundleno = 9 (0x9), region = 142 }

</bundles_post_ra>
